<compile_context>
chip_gen: v7x
topology: tpu7x:2x2x1
jax: 0.10.0
libtpu: 0.0.40
codegen_flags: <defaults>
</compile_context>

<pallas_src>
import functools

import jax
import jax.numpy as jnp
import numpy as np
from jax.experimental import pallas as pl
from jax.experimental.pallas import tpu as pltpu

NPOSE = 24 * 6                      # 144
NSHAPE = 10
NCAM = 3
NSTATE = NPOSE + NSHAPE + NCAM      # 157
SPAD = 256                          # lane-aligned padded state width
HIDDEN = 1024


def _round_up(n, m):
    return ((n + m - 1) // m) * m


def _cdiv(a, b):
    return (a + b - 1) // b


# ----------------------------------------------------------------------------
# Pallas kernel: n_iter iterations of the HMR/PyMAF regressor MLP.
# ----------------------------------------------------------------------------
def _regressor_kernel(x_ref, state0_ref,
                      w1x_ref, w1s_ref, b1_ref,
                      w2_ref, b2_ref,
                      wh_ref, bh_ref,
                      state_out,
                      *, n_iter):
    bf16 = jnp.bfloat16
    f32 = jnp.float32

    x = x_ref[...]                      # (TB, feat_pad) bf16, pad cols == 0
    state = state0_ref[...]             # (TB, SPAD)     f32, pad lanes == 0
    tb = state.shape[0]

    # Hoist broadcasts used n_iter times (JAX does not CSE broadcast_in_dim
    # across the statically unrolled loop).  b1 is used once -> plain add.
    b2b = jnp.broadcast_to(b2_ref[...], (tb, HIDDEN))
    bhb = jnp.broadcast_to(bh_ref[...], (tb, SPAD))

    # Hoisted loop-invariant part of fc1:  x @ W1[:feat_dim] + b1.
    hx = jnp.dot(x, w1x_ref[...], preferred_element_type=f32) + b1_ref[...]

    w1s = w1s_ref[...]                  # (SPAD, HIDDEN)  bf16, pad rows == 0
    w2 = w2_ref[...]                    # (HIDDEN, HIDDEN) bf16
    wh = wh_ref[...]                    # (HIDDEN, SPAD)  bf16, pad cols == 0

    for _ in range(n_iter):             # static unroll; n_iter is small
        # fc1 over the implicit concat [x, pose, shape, cam]
        h = hx + jnp.dot(state.astype(bf16), w1s, preferred_element_type=f32)
        # drop1: identity (eval mode)
        h = jnp.dot(h.astype(bf16), w2, preferred_element_type=f32) + b2b
        # drop2: identity (eval mode)
        # fused decpose/decshape/deccam + residual (pad lanes stay exactly 0)
        state = state + jnp.dot(h.astype(bf16), wh,
                                preferred_element_type=f32) + bhb

    state_out[...] = state


# ----------------------------------------------------------------------------
# Wrapper: fuse/pad weights, pad batch, launch the kernel, slice outputs.
# ----------------------------------------------------------------------------
def fuse_params(params):
    """Build the lane-aligned, bf16 fused weight layout used by the kernel."""
    bf16 = jnp.bfloat16
    feat_dim = params["w1x"].shape[0]
    feat_pad = _round_up(feat_dim, 128)
    # fc1 rows for x, zero-padded to a lane-aligned K (matching zero x cols).
    w1x = jnp.pad(params["w1x"], ((0, feat_pad - feat_dim), (0, 0)))
    # fc1 rows for [pose | shape | cam], zero-padded to SPAD rows.
    w1s = jnp.concatenate([params["w1p"], params["w1s"], params["w1c"]], axis=0)
    w1s = jnp.pad(w1s, ((0, SPAD - NSTATE), (0, 0)))
    # decoder heads fused along the output dim, zero-padded to SPAD cols.
    wh = jnp.concatenate([params["wp"], params["ws"], params["wc"]], axis=1)
    wh = jnp.pad(wh, ((0, 0), (0, SPAD - NSTATE)))
    bh = jnp.concatenate([params["bp"], params["bs"], params["bc"]], axis=1)
    bh = jnp.pad(bh, ((0, 0), (0, SPAD - NSTATE)))
    # TODO(synk): optional int8 (v5e/v6e) or fp8 (v7x) quantization of w2 for
    # large-batch MXU-bound regimes; kept bf16 here for accuracy/simplicity.
    return dict(
        w1x=w1x.astype(bf16),
        w1s=w1s.astype(bf16),
        b1=params["b1"].astype(jnp.float32),
        w2=params["w2"].astype(bf16),
        b2=params["b2"].astype(jnp.float32),
        wh=wh.astype(bf16),
        bh=bh.astype(jnp.float32),
    )


def regressor_forward(x, init_pose, init_shape, init_cam, fused, n_iter=3):
    """Runs the iterative regressor; returns (pred_pose, pred_shape, pred_cam)."""
    B, feat_dim = x.shape
    feat_pad = fused["w1x"].shape[0]

    # Batch tile: >= 8 sublanes, <= 256; force the grid to have >= 2 steps so
    # the ("parallel",) axis shards across both TensorCores on v7x.
    TB = min(256, _round_up(max(_cdiv(B, 2), 1), 8))
    n_steps = max(2, _cdiv(B, TB))
    B_pad = n_steps * TB
    grid = (n_steps,)

    x_p = jnp.zeros((B_pad, feat_pad), jnp.bfloat16)
    x_p = x_p.at[:B, :feat_dim].set(x.astype(jnp.bfloat16))

    state0 = jnp.zeros((B_pad, SPAD), jnp.float32)
    state0 = state0.at[:B, 0:NPOSE].set(init_pose)
    state0 = state0.at[:B, NPOSE:NPOSE + NSHAPE].set(init_shape)
    state0 = state0.at[:B, NPOSE + NSHAPE:NSTATE].set(init_cam)

    # Grid-invariant operands: single-buffered (no pipelining benefit, halves
    # their VMEM footprint).
    def invariant(shape):
        return pl.BlockSpec(shape, lambda i: (0, 0), pipeline_mode=pl.Buffered(1))

    grid_spec = pltpu.PrefetchScalarGridSpec(
        num_scalar_prefetch=0,
        grid=grid,
        in_specs=[
            pl.BlockSpec((TB, feat_pad), lambda i: (i, 0)),   # x
            pl.BlockSpec((TB, SPAD), lambda i: (i, 0)),       # state0
            invariant((feat_pad, HIDDEN)),                    # w1x
            invariant((SPAD, HIDDEN)),                        # w1s (fused)
            invariant((1, HIDDEN)),                           # b1
            invariant((HIDDEN, HIDDEN)),                      # w2
            invariant((1, HIDDEN)),                           # b2
            invariant((HIDDEN, SPAD)),                        # wh (fused heads)
            invariant((1, SPAD)),                             # bh (fused)
        ],
        out_specs=pl.BlockSpec((TB, SPAD), lambda i: (i, 0)),
    )

    # Explicit VMEM budget: single-buffered bf16 weights + double-buffered
    # batch tiles + in-kernel f32 temps, with ~1.5x headroom.
    weight_bytes = 2 * (feat_pad * HIDDEN + SPAD * HIDDEN
                        + HIDDEN * HIDDEN + HIDDEN * SPAD) \
        + 4 * (2 * HIDDEN + SPAD)
    tile_bytes = 2 * (TB * feat_pad * 2 + TB * SPAD * 4) + 2 * TB * SPAD * 4
    temp_bytes = 4 * TB * (4 * HIDDEN + 3 * SPAD)
    vmem_limit = min(int(1.5 * (weight_bytes + tile_bytes + temp_bytes))
                     + (4 << 20), 100 << 20)

    state = pl.pallas_call(
        functools.partial(_regressor_kernel, n_iter=n_iter),
        out_shape=jax.ShapeDtypeStruct((B_pad, SPAD), jnp.float32),
        grid_spec=grid_spec,
        compiler_params=pltpu.CompilerParams(
            dimension_semantics=("parallel",),
            vmem_limit_bytes=vmem_limit),
    )(x_p, state0,
      fused["w1x"], fused["w1s"], fused["b1"],
      fused["w2"], fused["b2"],
      fused["wh"], fused["bh"])

    pred_pose = state[:B, 0:NPOSE]
    pred_shape = state[:B, NPOSE:NPOSE + NSHAPE]
    pred_cam = state[:B, NPOSE + NSHAPE:NSTATE]
    return pred_pose, pred_shape, pred_cam


# ----------------------------------------------------------------------------
# JAX glue: 6D rotation representation -> rotation matrices (rot6d_to_rotmat)
# ----------------------------------------------------------------------------
def rot6d_to_rotmat(x):
    """x: (B, 144) -> (B, 24, 3, 3)."""
    B = x.shape[0]
    x = x.reshape(-1, 3, 2)
    a1 = x[:, :, 0]
    a2 = x[:, :, 1]
    b1 = a1 / jnp.linalg.norm(a1, axis=-1, keepdims=True)
    proj = jnp.sum(b1 * a2, axis=-1, keepdims=True) * b1
    b2_u = a2 - proj
    b2 = b2_u / jnp.linalg.norm(b2_u, axis=-1, keepdims=True)
    b3 = jnp.cross(b1, b2)
    rot = jnp.stack([b1, b2, b3], axis=-1)        # (B*24, 3, 3)
    return rot.reshape(B, 24, 3, 3)


# ----------------------------------------------------------------------------
# Deterministic parameter construction (synthetic, no checkpoint loading)
# ----------------------------------------------------------------------------
def make_params(key, feat_dim):
    fin = feat_dim + NPOSE + NSHAPE + NCAM
    ks = jax.random.split(key, 16)

    def linear_default(kw, kb, fan_in, fan_out):
        # PyTorch default Linear init: U(-1/sqrt(fan_in), 1/sqrt(fan_in))
        bound = 1.0 / np.sqrt(fan_in)
        w = jax.random.uniform(kw, (fan_in, fan_out), jnp.float32, -bound, bound)
        b = jax.random.uniform(kb, (1, fan_out), jnp.float32, -bound, bound)
        return w, b

    def linear_xavier(kw, kb, fan_in, fan_out, gain=0.01):
        bound = gain * np.sqrt(6.0 / (fan_in + fan_out))
        w = jax.random.uniform(kw, (fan_in, fan_out), jnp.float32, -bound, bound)
        bb = 1.0 / np.sqrt(fan_in)
        b = jax.random.uniform(kb, (1, fan_out), jnp.float32, -bb, bb)
        return w, b

    w1, b1 = linear_default(ks[0], ks[1], fin, HIDDEN)
    w2, b2 = linear_default(ks[2], ks[3], HIDDEN, HIDDEN)
    wp, bp = linear_xavier(ks[4], ks[5], HIDDEN, NPOSE)
    ws, bs = linear_xavier(ks[6], ks[7], HIDDEN, NSHAPE)
    wc, bc = linear_xavier(ks[8], ks[9], HIDDEN, NCAM)

    params = dict(
        w1x=w1[:feat_dim],                                   # rows for x
        w1p=w1[feat_dim:feat_dim + NPOSE],                   # rows for pose
        w1s=w1[feat_dim + NPOSE:feat_dim + NPOSE + NSHAPE],  # rows for shape
        w1c=w1[feat_dim + NPOSE + NSHAPE:],                  # rows for cam
        b1=b1, w2=w2, b2=b2, wp=wp, bp=bp, ws=ws, bs=bs, wc=wc, bc=bc,
    )
    # synthetic "mean params" buffers (deterministic; no .npz load)
    init_pose = 0.1 * jax.random.normal(ks[10], (1, NPOSE), jnp.float32)
    init_shape = 0.1 * jax.random.normal(ks[11], (1, NSHAPE), jnp.float32)
    init_cam = jnp.array([[0.9, 0.0, 0.0]], jnp.float32)
    return params, init_pose, init_shape, init_cam


# Pure-JAX f32 reference of the same math (for verification).
def reference_forward(x, pose, shape, cam, params, n_iter):
    w1 = jnp.concatenate(
        [params["w1x"], params["w1p"], params["w1s"], params["w1c"]], axis=0)
    for _ in range(n_iter):
        xc = jnp.concatenate([x, pose, shape, cam], axis=1)
        h = xc @ w1 + params["b1"]
        h = h @ params["w2"] + params["b2"]
        pose = h @ params["wp"] + params["bp"] + pose
        shape = h @ params["ws"] + params["bs"] + shape
        cam = h @ params["wc"] + params["bc"] + cam
    return pose, shape, cam


if __name__ == "__main__":
    B = 2
    FEAT_DIM = 32
    N_ITER = 3

    key = jax.random.PRNGKey(0)
    kx, kp = jax.random.split(key)
    x = jax.random.normal(kx, (B, FEAT_DIM), jnp.float32)
    params, init_pose, init_shape, init_cam = make_params(kp, FEAT_DIM)
    fused = fuse_params(params)

    pose0 = jnp.broadcast_to(init_pose, (B, NPOSE))
    shape0 = jnp.broadcast_to(init_shape, (B, NSHAPE))
    cam0 = jnp.broadcast_to(init_cam, (B, NCAM))

    fwd = jax.jit(functools.partial(regressor_forward, n_iter=N_ITER))
    pred_pose, pred_shape, pred_cam = fwd(x, pose0, shape0, cam0, fused)
    jax.block_until_ready((pred_pose, pred_shape, pred_cam))

    # rot6d -> rotation matrices (as in the PyTorch forward)
    pred_rotmat = rot6d_to_rotmat(pred_pose)
    jax.block_until_ready(pred_rotmat)

    # correctness check vs. pure-JAX f32 reference (bf16 MXU inputs => looser tol)
    rp, rs, rc = reference_forward(x, pose0, shape0, cam0, params, N_ITER)
    assert np.allclose(np.asarray(pred_pose), np.asarray(rp), atol=5e-3, rtol=5e-3)
    assert np.allclose(np.asarray(pred_shape), np.asarray(rs), atol=5e-3, rtol=5e-3)
    assert np.allclose(np.asarray(pred_cam), np.asarray(rc), atol=5e-3, rtol=5e-3)
    assert pred_rotmat.shape == (B, 24, 3, 3)
    assert np.isfinite(np.asarray(pred_pose)).all()

    print("KERNEL_OK")
</pallas_src>

<mosaic_0001>
module attributes {stable_mosaic.version = 11 : i64} {
  func.func @_regressor_kernel(%arg0: i32, %arg1: memref<8x128xbf16, #tpu.memory_space<vmem>>, %arg2: memref<8x256xf32, #tpu.memory_space<vmem>>, %arg3: memref<128x1024xbf16, #tpu.memory_space<vmem>>, %arg4: memref<256x1024xbf16, #tpu.memory_space<vmem>>, %arg5: memref<1x1024xf32, #tpu.memory_space<vmem>>, %arg6: memref<1024x1024xbf16, #tpu.memory_space<vmem>>, %arg7: memref<1x1024xf32, #tpu.memory_space<vmem>>, %arg8: memref<1024x256xbf16, #tpu.memory_space<vmem>>, %arg9: memref<1x256xf32, #tpu.memory_space<vmem>>, %arg10: memref<8x256xf32, #tpu.memory_space<vmem>>) attributes {dimension_semantics = [#tpu.dimension_semantics<parallel>], iteration_bounds = array<i64: 2>, scalar_prefetch = 0 : i64, scratch_operands = 0 : i64, tpu.core_type = #tpu.core_type<tc>, window_params = [{transform_indices = @transform_0, window_bounds = array<i64: 8, 128>}, {transform_indices = @transform_1, window_bounds = array<i64: 8, 256>}, {pipeline_mode = #tpu.pipeline_mode<synchronous>, transform_indices = @transform_2, window_bounds = array<i64: 128, 1024>}, {pipeline_mode = #tpu.pipeline_mode<synchronous>, transform_indices = @transform_3, window_bounds = array<i64: 256, 1024>}, {pipeline_mode = #tpu.pipeline_mode<synchronous>, transform_indices = @transform_4, window_bounds = array<i64: 1, 1024>}, {pipeline_mode = #tpu.pipeline_mode<synchronous>, transform_indices = @transform_5, window_bounds = array<i64: 1024, 1024>}, {pipeline_mode = #tpu.pipeline_mode<synchronous>, transform_indices = @transform_6, window_bounds = array<i64: 1, 1024>}, {pipeline_mode = #tpu.pipeline_mode<synchronous>, transform_indices = @transform_7, window_bounds = array<i64: 1024, 256>}, {pipeline_mode = #tpu.pipeline_mode<synchronous>, transform_indices = @transform_8, window_bounds = array<i64: 1, 256>}, {transform_indices = @transform_9, window_bounds = array<i64: 8, 256>}]} {
    %c0 = arith.constant 0 : index
    %c0_0 = arith.constant 0 : index
    %0 = vector.load %arg1[%c0, %c0_0] : memref<8x128xbf16, #tpu.memory_space<vmem>>, vector<8x128xbf16>
    %c0_1 = arith.constant 0 : index
    %c0_2 = arith.constant 0 : index
    %1 = vector.load %arg2[%c0_1, %c0_2] : memref<8x256xf32, #tpu.memory_space<vmem>>, vector<8x256xf32>
    %c0_3 = arith.constant 0 : index
    %c0_4 = arith.constant 0 : index
    %2 = vector.load %arg7[%c0_3, %c0_4] : memref<1x1024xf32, #tpu.memory_space<vmem>>, vector<1x1024xf32>
    %3 = vector.shape_cast %2 : vector<1x1024xf32> to vector<1x1024xf32>
    %4 = vector.broadcast %3 : vector<1x1024xf32> to vector<8x1024xf32>
    %c0_5 = arith.constant 0 : index
    %c0_6 = arith.constant 0 : index
    %5 = vector.load %arg9[%c0_5, %c0_6] : memref<1x256xf32, #tpu.memory_space<vmem>>, vector<1x256xf32>
    %6 = vector.shape_cast %5 : vector<1x256xf32> to vector<1x256xf32>
    %7 = vector.broadcast %6 : vector<1x256xf32> to vector<8x256xf32>
    %c0_7 = arith.constant 0 : index
    %c0_8 = arith.constant 0 : index
    %8 = vector.load %arg3[%c0_7, %c0_8] : memref<128x1024xbf16, #tpu.memory_space<vmem>>, vector<128x1024xbf16>
    %cst = arith.constant dense<0.000000e+00> : vector<8x1024xf32>
    %9 = tpu.matmul %0, %8, %cst {dimension_numbers = #tpu.dot_dimension_numbers<[1], [0], [0], [1], [0, 0, 1, 1], [], []>} : vector<8x128xbf16>, vector<128x1024xbf16>, vector<8x1024xf32> -> vector<8x1024xf32>
    %c0_9 = arith.constant 0 : index
    %c0_10 = arith.constant 0 : index
    %10 = vector.load %arg5[%c0_9, %c0_10] : memref<1x1024xf32, #tpu.memory_space<vmem>>, vector<1x1024xf32>
    %11 = vector.broadcast %10 : vector<1x1024xf32> to vector<8x1024xf32>
    %12 = arith.addf %9, %11 : vector<8x1024xf32>
    %c0_11 = arith.constant 0 : index
    %c0_12 = arith.constant 0 : index
    %13 = vector.load %arg4[%c0_11, %c0_12] : memref<256x1024xbf16, #tpu.memory_space<vmem>>, vector<256x1024xbf16>
    %c0_13 = arith.constant 0 : index
    %c0_14 = arith.constant 0 : index
    %14 = vector.load %arg6[%c0_13, %c0_14] : memref<1024x1024xbf16, #tpu.memory_space<vmem>>, vector<1024x1024xbf16>
    %c0_15 = arith.constant 0 : index
    %c0_16 = arith.constant 0 : index
    %15 = vector.load %arg8[%c0_15, %c0_16] : memref<1024x256xbf16, #tpu.memory_space<vmem>>, vector<1024x256xbf16>
    %16 = arith.truncf %1 : vector<8x256xf32> to vector<8x256xbf16>
    %cst_17 = arith.constant dense<0.000000e+00> : vector<8x1024xf32>
    %17 = tpu.matmul %16, %13, %cst_17 {dimension_numbers = #tpu.dot_dimension_numbers<[1], [0], [0], [1], [0, 0, 1, 1], [], []>} : vector<8x256xbf16>, vector<256x1024xbf16>, vector<8x1024xf32> -> vector<8x1024xf32>
    %18 = arith.addf %12, %17 : vector<8x1024xf32>
    %19 = arith.truncf %18 : vector<8x1024xf32> to vector<8x1024xbf16>
    %cst_18 = arith.constant dense<0.000000e+00> : vector<8x1024xf32>
    %20 = tpu.matmul %19, %14, %cst_18 {dimension_numbers = #tpu.dot_dimension_numbers<[1], [0], [0], [1], [0, 0, 1, 1], [], []>} : vector<8x1024xbf16>, vector<1024x1024xbf16>, vector<8x1024xf32> -> vector<8x1024xf32>
    %21 = arith.addf %20, %4 : vector<8x1024xf32>
    %22 = arith.truncf %21 : vector<8x1024xf32> to vector<8x1024xbf16>
    %cst_19 = arith.constant dense<0.000000e+00> : vector<8x256xf32>
    %23 = tpu.matmul %22, %15, %cst_19 {dimension_numbers = #tpu.dot_dimension_numbers<[1], [0], [0], [1], [0, 0, 1, 1], [], []>} : vector<8x1024xbf16>, vector<1024x256xbf16>, vector<8x256xf32> -> vector<8x256xf32>
    %24 = arith.addf %1, %23 : vector<8x256xf32>
    %25 = arith.addf %24, %7 : vector<8x256xf32>
    %26 = arith.truncf %25 : vector<8x256xf32> to vector<8x256xbf16>
    %cst_20 = arith.constant dense<0.000000e+00> : vector<8x1024xf32>
    %27 = tpu.matmul %26, %13, %cst_20 {dimension_numbers = #tpu.dot_dimension_numbers<[1], [0], [0], [1], [0, 0, 1, 1], [], []>} : vector<8x256xbf16>, vector<256x1024xbf16>, vector<8x1024xf32> -> vector<8x1024xf32>
    %28 = arith.addf %12, %27 : vector<8x1024xf32>
    %29 = arith.truncf %28 : vector<8x1024xf32> to vector<8x1024xbf16>
    %cst_21 = arith.constant dense<0.000000e+00> : vector<8x1024xf32>
    %30 = tpu.matmul %29, %14, %cst_21 {dimension_numbers = #tpu.dot_dimension_numbers<[1], [0], [0], [1], [0, 0, 1, 1], [], []>} : vector<8x1024xbf16>, vector<1024x1024xbf16>, vector<8x1024xf32> -> vector<8x1024xf32>
    %31 = arith.addf %30, %4 : vector<8x1024xf32>
    %32 = arith.truncf %31 : vector<8x1024xf32> to vector<8x1024xbf16>
    %cst_22 = arith.constant dense<0.000000e+00> : vector<8x256xf32>
    %33 = tpu.matmul %32, %15, %cst_22 {dimension_numbers = #tpu.dot_dimension_numbers<[1], [0], [0], [1], [0, 0, 1, 1], [], []>} : vector<8x1024xbf16>, vector<1024x256xbf16>, vector<8x256xf32> -> vector<8x256xf32>
    %34 = arith.addf %25, %33 : vector<8x256xf32>
    %35 = arith.addf %34, %7 : vector<8x256xf32>
    %36 = arith.truncf %35 : vector<8x256xf32> to vector<8x256xbf16>
    %cst_23 = arith.constant dense<0.000000e+00> : vector<8x1024xf32>
    %37 = tpu.matmul %36, %13, %cst_23 {dimension_numbers = #tpu.dot_dimension_numbers<[1], [0], [0], [1], [0, 0, 1, 1], [], []>} : vector<8x256xbf16>, vector<256x1024xbf16>, vector<8x1024xf32> -> vector<8x1024xf32>
    %38 = arith.addf %12, %37 : vector<8x1024xf32>
    %39 = arith.truncf %38 : vector<8x1024xf32> to vector<8x1024xbf16>
    %cst_24 = arith.constant dense<0.000000e+00> : vector<8x1024xf32>
    %40 = tpu.matmul %39, %14, %cst_24 {dimension_numbers = #tpu.dot_dimension_numbers<[1], [0], [0], [1], [0, 0, 1, 1], [], []>} : vector<8x1024xbf16>, vector<1024x1024xbf16>, vector<8x1024xf32> -> vector<8x1024xf32>
    %41 = arith.addf %40, %4 : vector<8x1024xf32>
    %42 = arith.truncf %41 : vector<8x1024xf32> to vector<8x1024xbf16>
    %cst_25 = arith.constant dense<0.000000e+00> : vector<8x256xf32>
    %43 = tpu.matmul %42, %15, %cst_25 {dimension_numbers = #tpu.dot_dimension_numbers<[1], [0], [0], [1], [0, 0, 1, 1], [], []>} : vector<8x1024xbf16>, vector<1024x256xbf16>, vector<8x256xf32> -> vector<8x256xf32>
    %44 = arith.addf %35, %43 : vector<8x256xf32>
    %45 = arith.addf %44, %7 : vector<8x256xf32>
    %c0_26 = arith.constant 0 : index
    %c0_27 = arith.constant 0 : index
    %46 = vector.load %arg10[%c0_26, %c0_27] : memref<8x256xf32, #tpu.memory_space<vmem>>, vector<8x256xf32>
    tpu.vector_store %arg10[%c0_26, %c0_27], %45 {strides = array<i32>} : memref<8x256xf32, #tpu.memory_space<vmem>>, vector<8x256xf32>,
    return
  }
  func.func @transform_0(%arg0: i32) -> (i32, i32) {
    %c0_i32 = arith.constant 0 : i32
    %c0_i32_0 = arith.constant 0 : i32
    return %arg0, %c0_i32 : i32, i32
  }
  func.func @transform_1(%arg0: i32) -> (i32, i32) {
    %c0_i32 = arith.constant 0 : i32
    %c0_i32_0 = arith.constant 0 : i32
    return %arg0, %c0_i32 : i32, i32
  }
  func.func @transform_2(%arg0: i32) -> (i32, i32) {
    %c0_i32 = arith.constant 0 : i32
    %c0_i32_0 = arith.constant 0 : i32
    %c0_i32_1 = arith.constant 0 : i32
    return %c0_i32, %c0_i32_0 : i32, i32
  }
  func.func @transform_3(%arg0: i32) -> (i32, i32) {
    %c0_i32 = arith.constant 0 : i32
    %c0_i32_0 = arith.constant 0 : i32
    %c0_i32_1 = arith.constant 0 : i32
    return %c0_i32, %c0_i32_0 : i32, i32
  }
  func.func @transform_4(%arg0: i32) -> (i32, i32) {
    %c0_i32 = arith.constant 0 : i32
    %c0_i32_0 = arith.constant 0 : i32
    %c0_i32_1 = arith.constant 0 : i32
    return %c0_i32, %c0_i32_0 : i32, i32
  }
  func.func @transform_5(%arg0: i32) -> (i32, i32) {
    %c0_i32 = arith.constant 0 : i32
    %c0_i32_0 = arith.constant 0 : i32
    %c0_i32_1 = arith.constant 0 : i32
    return %c0_i32, %c0_i32_0 : i32, i32
  }
  func.func @transform_6(%arg0: i32) -> (i32, i32) {
    %c0_i32 = arith.constant 0 : i32
    %c0_i32_0 = arith.constant 0 : i32
    %c0_i32_1 = arith.constant 0 : i32
    return %c0_i32, %c0_i32_0 : i32, i32
  }
  func.func @transform_7(%arg0: i32) -> (i32, i32) {
    %c0_i32 = arith.constant 0 : i32
    %c0_i32_0 = arith.constant 0 : i32
    %c0_i32_1 = arith.constant 0 : i32
    return %c0_i32, %c0_i32_0 : i32, i32
  }
  func.func @transform_8(%arg0: i32) -> (i32, i32) {
    %c0_i32 = arith.constant 0 : i32
    %c0_i32_0 = arith.constant 0 : i32
    %c0_i32_1 = arith.constant 0 : i32
    return %c0_i32, %c0_i32_0 : i32, i32
  }
  func.func @transform_9(%arg0: i32) -> (i32, i32) {
    %c0_i32 = arith.constant 0 : i32
    %c0_i32_0 = arith.constant 0 : i32
    return %arg0, %c0_i32 : i32, i32
  }
}

</mosaic_0001>

<bundles_post_ra>
// kernel: regressor_forward.1
= control target key start
LH: loop header
LB: loop body
LE: loop exit
PB: predicated region body
PF: predicated region fallthrough
CT: control target
= control target key end

     0   :  { %14 = vsyncpa [#allocation3], 0  ;;  %s14614_s0 = inlined_call_operand.vmem [shape: bf16[16,128], index: 0, kind: input, shape index: {}]   ;;  %s14615_s1 = inlined_call_operand.vmem [shape: f32[16,256], index: 1, kind: input, shape index: {}]   ;;  %s14616_s2 = inlined_call_operand.hbm [shape: bf16[128,1024], index: 2, kind: input, shape index: {}]   ;;  %s14617_s3 = inlined_call_operand.hbm [shape: bf16[256,1024], index: 3, kind: input, shape index: {}]   ;;  %s14618_s4 = inlined_call_operand.hbm [shape: f32[1,1024], index: 4, kind: input, shape index: {}]   ;;  %s14619_s5 = inlined_call_operand.hbm [shape: bf16[1024,1024], index: 5, kind: input, shape index: {}]   ;;  %s14620_s6 = inlined_call_operand.hbm [shape: f32[1,1024], index: 6, kind: input, shape index: {}]   ;;  %s14621_s7 = inlined_call_operand.hbm [shape: bf16[1024,256], index: 7, kind: input, shape index: {}]   ;;  %s14622_s8 = inlined_call_operand.hbm [shape: f32[1,256], index: 8, kind: input, shape index: {}]   ;;  %s14623_s9 = inlined_call_operand.vmem [shape: f32[16,256], index: 9, kind: output, shape index: {}]  }
   0x1   :  { %15 = vsyncpa [#allocation5], 0 }
   0x2   :  { %16 = vsyncpa [#allocation8], 0 }
   0x3   :  { %17 = vsyncpa [#allocation11], 0  ;;  %s10727_s30 = smov 0  }
   0x4 LB: > { %s10733_s10 = sadd.s32 4294967295, %s10663_s30   ;;  %p8884_p0 = scmp.ge.s32.totalorder %s10663_s30, 1  ;;  %s10663_s30 = sphi %s10727_s30, %s23_s30  }
   0x5   : > { %p253_p1 = scmp.lt.s32.totalorder %s10663_s30, 3  ;;  %p14624_p2 = scmp.eq.s32.totalorder %s10733_s10, 0 }
   0x6   : > { %s10665_s12 = smov [#allocation4]   ;;  %s10666_s14 = smov [#allocation7]  }
   0x7   : > { %p10738_p3 = pnand %p8884_p0, %p253_p1  ;;  %s278_s13 = sshll.u32 %s10665_s12, 4  ;;  %s10742_s13 = int_to_ptr.vmem [resolvable:$true] %s278_s13 }
   0x8   : > { %s302_s15 = sshll.u32 %s10666_s14, 4  ;;  %s10667_s17 = smov [#allocation10]   ;;  %s10746_s15 = int_to_ptr.vmem [resolvable:$true] %s302_s15 }
   0x9   : > { %s15868_s11 = scalar_select %p10738_p3, 1, 0 }
   0xa   : > { %p9938_p4 = pneg %p10738_p3  ;;  %s326_s18 = sshll.u32 %s10667_s17, 4  ;;  %s10754_s18 = int_to_ptr.vmem [resolvable:$true] %s326_s18 }
   0xb   : > { %s10445_s21 = scalar_lea.hbm %s14617_s3, 16384 }
   0xc   : > { %p10750_p5 = pnand %p14624_p2, %p9938_p4  ;;  %p10446_p6 = scmp.ne.s32.totalorder %s14617_s3, %s10445_s21 }
   0xd   : > { %p10452_p10 = scmp.lt.u32.totalorder %s10445_s21, %s14617_s3 }
   0xe   : > { %p10764_p7 = pneg %p10750_p5 }
  0x10   : > { %p10448_p8 = pnand %p10764_p7, %p10446_p6 }
  0x12   : > { %p10449_p9 = pneg %p10448_p8 }
  0x14   : > { %p10454_p11 = pnand %p10452_p10, %p10449_p9 }
  0x16   : > { %10457 = shalt.err (!%p10454_p11)
}
  0x17   : > { %s10458_s27 = scalar_lea.vmem %s10742_s13, 16384  ;;  %p10466_p1 = scmp.lt.s32.totalorder %s10742_s13, %s10742_s13 }
  0x18   : > { %p10459_p12 = scmp.ne.s32.totalorder %s10742_s13, %s10458_s27  ;;  %p10467_p4 = scmp.lt.s32.totalorder %s10458_s27, %s10458_s27 }
  0x1a   : > { %p10461_p13 = pnand %p10459_p12, %p10764_p7  ;;  %p10468_p6 = por %p10467_p4, %p10466_p1 }
  0x1c   : > { %p10462_p0 = pneg %p10461_p13 }
  0x1e   : > { %p10469_p8 = pnand %p10468_p6, %p10462_p0 }
  0x20   : > { %10472 = shalt.err (!%p10469_p8)
}
  0x21   : > { %s10668_s28 = smov 512   ;;  %s10669_s29 = smov 32  }
  0x22   : > { %9944 = dma.hbm_to_vmem [thread:$0]  (!%p10750_p5), %s14617_s3, 16384, %s10742_s13, [#allocation5], %s10668_s28, %s10668_s28, %s10669_s29  }
  0x23   : > { %s10473_s20 = scalar_lea.hbm %s14619_s5, 65536 }
  0x24   : > { %p10474_p9 = scmp.ne.s32.totalorder %s14619_s5, %s10473_s20  ;;  %p10480_p12 = scmp.lt.u32.totalorder %s10473_s20, %s14619_s5 }
  0x26   : > { %p10476_p10 = pnand %p10474_p9, %p10764_p7 }
  0x28   : > { %p10477_p11 = pneg %p10476_p10 }
  0x2a   : > { %p10482_p13 = pnand %p10480_p12, %p10477_p11 }
  0x2c   : > { %10485 = shalt.err (!%p10482_p13)
}
  0x2d   : > { %s10486_s13 = scalar_lea.vmem %s10746_s15, 65536  ;;  %p10494_p6 = scmp.lt.s32.totalorder %s10746_s15, %s10746_s15 }
  0x2e   : > { %p10487_p0 = scmp.ne.s32.totalorder %s10746_s15, %s10486_s13  ;;  %p10495_p8 = scmp.lt.s32.totalorder %s10486_s13, %s10486_s13 }
  0x30   : > { %p10489_p1 = pnand %p10487_p0, %p10764_p7  ;;  %p10496_p9 = por %p10495_p8, %p10494_p6 }
  0x32   : > { %p10490_p4 = pneg %p10489_p1 }
  0x34   : > { %p10497_p10 = pnand %p10496_p9, %p10490_p4 }
  0x36   : > { %10500 = shalt.err (!%p10497_p10)
}
  0x37   : > { %9950 = dma.hbm_to_vmem [thread:$0]  (!%p10750_p5), %s14619_s5, 65536, %s10746_s15, [#allocation8], %s10668_s28, %s10668_s28, %s10669_s29  }
  0x38   : > { %s10501_s17 = scalar_lea.hbm %s14621_s7, 16384 }
  0x39   : > { %p10502_p11 = scmp.ne.s32.totalorder %s14621_s7, %s10501_s17  ;;  %p10508_p0 = scmp.lt.u32.totalorder %s10501_s17, %s14621_s7 }
  0x3b   : > { %p10504_p12 = pnand %p10502_p11, %p10764_p7 }
  0x3d   : > { %p10505_p13 = pneg %p10504_p12 }
  0x3f   : > { %p10510_p1 = pnand %p10508_p0, %p10505_p13 }
  0x41   : > { %10513 = shalt.err (!%p10510_p1)
}
  0x42   : > { %s10514_s15 = scalar_lea.vmem %s10754_s18, 16384  ;;  %p10522_p9 = scmp.lt.s32.totalorder %s10754_s18, %s10754_s18 }
  0x43   : > { %p10515_p4 = scmp.ne.s32.totalorder %s10754_s18, %s10514_s15  ;;  %p10523_p10 = scmp.lt.s32.totalorder %s10514_s15, %s10514_s15 }
  0x45   : > { %p10517_p6 = pnand %p10515_p4, %p10764_p7  ;;  %p10524_p11 = por %p10523_p10, %p10522_p9 }
  0x47   : > { %p10518_p8 = pneg %p10517_p6 }
  0x49   : > { %p10525_p12 = pnand %p10524_p11, %p10518_p8 }
  0x4b   : > { %10528 = shalt.err (!%p10525_p12)
}
  0x4c   : > { %s10670_s23 = smov 128   ;;  %s10671_s25 = smov 8  }
  0x4d   : > { %9956 = dma.hbm_to_vmem [thread:$0]  (!%p10750_p5), %s14621_s7, 16384, %s10754_s18, [#allocation11], %s10670_s23, %s10670_s23, %s10671_s25  }
  0x4e   : > { %s10672_s27 = smov [#allocation2]   ;;  %s10673_s14 = smov [#allocation6]  }
  0x4f   : > { %s265_s12 = sshll.u32 %s10672_s27, 4  ;;  %s292_s17 = sshll.u32 %s10673_s14, 4  ;;  %s266_s12 = int_to_ptr.vmem [resolvable:$true] %s265_s12  ;;  %s10837_s17 = int_to_ptr.vmem [resolvable:$true] %s292_s17 }
  0x50   : > { %s10529_s21 = scalar_lea.hbm %s14616_s2, 8192 }
  0x51   : > { %p10530_p13 = scmp.ne.s32.totalorder %s14616_s2, %s10529_s21  ;;  %p10536_p4 = scmp.lt.u32.totalorder %s10529_s21, %s14616_s2 }
  0x53   : > { %p10532_p0 = pnand %p10530_p13, %p10764_p7 }
  0x55   : > { %p10533_p1 = pneg %p10532_p0 }
  0x57   : > { %p10538_p6 = pnand %p10536_p4, %p10533_p1 }
  0x59   : > { %10541 = shalt.err (!%p10538_p6)
}
  0x5a   : > { %s10542_s23 = scalar_lea.vmem %s266_s12, 8192  ;;  %p10550_p11 = scmp.lt.s32.totalorder %s266_s12, %s266_s12 }
  0x5b   : > { %p10543_p8 = scmp.ne.s32.totalorder %s266_s12, %s10542_s23  ;;  %p10551_p12 = scmp.lt.s32.totalorder %s10542_s23, %s10542_s23 }
  0x5d   : > { %p10545_p9 = pnand %p10543_p8, %p10764_p7  ;;  %p10552_p2 = por %p10551_p12, %p10550_p11 }
  0x5f   : > { %p10546_p10 = pneg %p10545_p9 }
  0x61   : > { %p10553_p3 = pnand %p10552_p2, %p10546_p10 }
  0x63   : > { %10556 = shalt.err (!%p10553_p3)
}
  0x64   : > { %9941 = dma.hbm_to_vmem [thread:$0]  (!%p10750_p5), %s14616_s2, 8192, %s266_s12, [#allocation3], %s10668_s28, %s10668_s28, %s10669_s29  }
  0x65   : > { %s10557_s19 = scalar_lea.hbm %s14618_s4, 128 }
  0x66   : > { %p10558_p13 = scmp.ne.s32.totalorder %s14618_s4, %s10557_s19  ;;  %p10564_p0 = scmp.lt.u32.totalorder %s10557_s19, %s14618_s4 }
  0x68   : > { %p10560_p2 = pnand %p10558_p13, %p10764_p7 }
  0x6a   : > { %p10561_p3 = pneg %p10560_p2 }
  0x6c   : > { %p10566_p1 = pnand %p10564_p0, %p10561_p3 }
  0x6e   : > { %10569 = shalt.err (!%p10566_p1)
}
  0x6f   : > { %s10570_s28 = scalar_lea.vmem %s10837_s17, 128  ;;  %p10578_p9 = scmp.lt.s32.totalorder %s10837_s17, %s10837_s17 }
  0x70   : > { %p10571_p4 = scmp.ne.s32.totalorder %s10837_s17, %s10570_s28  ;;  %p10579_p10 = scmp.lt.s32.totalorder %s10570_s28, %s10570_s28 }
  0x72   : > { %p10573_p6 = pnand %p10571_p4, %p10764_p7  ;;  %p10580_p11 = por %p10579_p10, %p10578_p9 }
  0x74   : > { %p10574_p8 = pneg %p10573_p6 }
  0x76   : > { %p10581_p12 = pnand %p10580_p11, %p10574_p8 }
  0x78   : > { %10584 = shalt.err (!%p10581_p12)
}
  0x79   : > { %9947 = dma.hbm_to_vmem [thread:$0]  (!%p10750_p5), %s14618_s4, 128, %s10837_s17, [#allocation5]  }
  0x7a   : > { %s10674_s13 = smov [#allocation9]   ;;  %s10675_s23 = smov [#allocation12]  }
  0x7b   : > { %s316_s18 = sshll.u32 %s10674_s13, 4  ;;  %s340_s25 = sshll.u32 %s10675_s23, 4  ;;  %s317_s18 = int_to_ptr.vmem [resolvable:$true] %s316_s18  ;;  %s10883_s25 = int_to_ptr.vmem [resolvable:$true] %s340_s25 }
  0x7c   : > { %s10585_s14 = scalar_lea.hbm %s14620_s6, 128 }
  0x7d   : > { %p10586_p13 = scmp.ne.s32.totalorder %s14620_s6, %s10585_s14  ;;  %p10592_p0 = scmp.lt.u32.totalorder %s10585_s14, %s14620_s6 }
  0x7f   : > { %p10588_p2 = pnand %p10586_p13, %p10764_p7 }
  0x81   : > { %p10589_p3 = pneg %p10588_p2 }
  0x83   : > { %p10594_p1 = pnand %p10592_p0, %p10589_p3 }
  0x85   : > { %10597 = shalt.err (!%p10594_p1)
}
  0x86   : > { %s10598_s22 = scalar_lea.vmem %s317_s18, 128  ;;  %p10606_p9 = scmp.lt.s32.totalorder %s317_s18, %s317_s18 }
  0x87   : > { %p10599_p4 = scmp.ne.s32.totalorder %s317_s18, %s10598_s22  ;;  %p10607_p10 = scmp.lt.s32.totalorder %s10598_s22, %s10598_s22 }
  0x89   : > { %p10601_p6 = pnand %p10599_p4, %p10764_p7  ;;  %p10608_p11 = por %p10607_p10, %p10606_p9 }
  0x8b   : > { %p10602_p8 = pneg %p10601_p6 }
  0x8d   : > { %p10609_p12 = pnand %p10608_p11, %p10602_p8 }
  0x8f   : > { %10612 = shalt.err (!%p10609_p12)
}
  0x90   : > { %9953 = dma.hbm_to_vmem [thread:$0]  (!%p10750_p5), %s14620_s6, 128, %s317_s18, [#allocation8]  }
  0x91   : > { %s10613_s13 = scalar_lea.hbm %s14622_s8, 32 }
  0x92   : > { %p10614_p13 = scmp.ne.s32.totalorder %s14622_s8, %s10613_s13  ;;  %p10620_p0 = scmp.lt.u32.totalorder %s10613_s13, %s14622_s8 }
  0x94   : > { %p10616_p2 = pnand %p10614_p13, %p10764_p7 }
  0x96   : > { %p10617_p3 = pneg %p10616_p2 }
  0x98   : > { %p10622_p1 = pnand %p10620_p0, %p10617_p3 }
  0x9a   : > { %10625 = shalt.err (!%p10622_p1)
}
  0x9b   : > { %s10626_s18 = scalar_lea.vmem %s10883_s25, 32  ;;  %p10634_p9 = scmp.lt.s32.totalorder %s10883_s25, %s10883_s25 }
  0x9c   : > { %p10627_p4 = scmp.ne.s32.totalorder %s10883_s25, %s10626_s18  ;;  %p10635_p10 = scmp.lt.s32.totalorder %s10626_s18, %s10626_s18 }
  0x9e   : > { %p10629_p6 = pnand %p10627_p4, %p10764_p7  ;;  %p10636_p11 = por %p10635_p10, %p10634_p9 }
  0xa0   : > { %p10630_p8 = pneg %p10629_p6 }
  0xa2   : > { %p10637_p12 = pnand %p10636_p11, %p10630_p8 }
  0xa4   : > { %10640 = shalt.err (!%p10637_p12)
}
  0xa5   : > { %9959 = dma.hbm_to_vmem [thread:$0]  (!%p10750_p5), %s14622_s8, 32, %s10883_s25, [#allocation11]  }
  0xa6   : > { %p15871_p13 = scmp.ne.s32.totalorder %s15868_s11, 0 }
  0xa8   : > { %368 = sbr.rel (%p15871_p13) target bundleno = 3642 (0xe3a), region = 56 }
  0xaf   : > { %p15872_p2 = scmp.eq.s32.totalorder %s10733_s10, 0 }
  0xb1   : > { %10646 = dma.done.wait (%p15872_p2), [#allocation3], 8192   ;;  %p15873_p7 = pmov %p15872_p2 }
  0xb2   : > { %p15874_p3 = pmov %p15872_p2 }
  0xb3   : > { %10648 = vsyncadd (%p15873_p7), [#allocation3], 4294959104 }
  0xb4   : > { %10650 = dma.done.wait (%p15874_p3), [#allocation5], 16512   ;;  %p15875_p0 = pmov %p15872_p2 }
  0xb6   : > { %10652 = vsyncadd (%p15875_p0), [#allocation5], 4294950784  ;;  %p15876_p1 = pmov %p15875_p0 }
  0xb7   : > { %p15877_p5 = pmov %p15875_p0 }
  0xb8   : > { %10654 = dma.done.wait (%p15876_p1), [#allocation8], 65664  }
  0xb9   : > { %10656 = vsyncadd (%p15877_p5), [#allocation8], 4294901632  ;;  %p15878_p4 = pmov %p15875_p0 }
  0xba   : > { %p15879_p6 = pmov %p15875_p0 }
  0xbb   : > { %10658 = dma.done.wait (%p15878_p4), [#allocation11], 16416  }
  0xbc   : > { %10660 = vsyncadd (%p15879_p6), [#allocation11], 4294950880  ;;  %v10676_v0 = vmov 0   ;;  %v504_v1 = vld [vmem:[#allocation2] sm:$0xff]  ;;  %v505_v3 = vld [vmem:[#allocation2 + $0x8] sm:$0xff]  ;;  %p432_p8 = scmp.lt.s32.totalorder %s10733_s10, 1 }
  0xbd   : > { %962 = vmatprep.mubr.bf16.mxu0 %v10676_v0  ;;  %1003 = vmatprep.mubr.bf16.mxu1 %v10676_v0  ;;  %v508_v2 = vld [vmem:[#allocation2 + $0x20] sm:$0xff]  ;;  %v509_v5 = vld [vmem:[#allocation2 + $0x28] sm:$0xff]  ;;  %v506_v63 = vld [vmem:[#allocation2 + $0x10] sm:$0xff] }
  0xbe   : > { %v8907_v4 = vcombine.high %v504_v1, %v508_v2  ;;  %v8906_v6 = vcombine.low %v504_v1, %v508_v2  ;;  %v512_v7 = vld [vmem:[#allocation2 + $0x40] sm:$0xff]  ;;  %v8909_v9 = vcombine.high %v505_v3, %v509_v5  ;;  %v8908_v10 = vcombine.low %v505_v3, %v509_v5  ;;  %v513_v12 = vld [vmem:[#allocation2 + $0x48] sm:$0xff]  ;;  %s17742_s10 = smov (!%p432_p8, %s10733_s10), 1  ;;  %v510_v1 = vld [vmem:[#allocation2 + $0x30] sm:$0xff] }
  0xbf   : > { %v516_v8 = vld [vmem:[#allocation2 + $0x60] sm:$0xff]  ;;  %v517_v13 = vld [vmem:[#allocation2 + $0x68] sm:$0xff]  ;;  %s8901_s11 = sshll.u32 %s17742_s10, 2  ;;  %v507_v2 = vld [vmem:[#allocation2 + $0x18] sm:$0xff]  ;;  %s9740_s21 = sshll.u32 %s17742_s10, 4 }
  0xc0   : > { %v8915_v11 = vcombine.high %v512_v7, %v516_v8  ;;  %v520_v14 = vld [vmem:[#allocation2 + $0x80] sm:$0xff]  ;;  %930 = vmatprep.subr.bf16.mxu0 %v8907_v4  ;;  %v8917_v15 = vcombine.high %v513_v12, %v517_v13  ;;  %v521_v17 = vld [vmem:[#allocation2 + $0x88] sm:$0xff]  ;;  %971 = vmatprep.subr.bf16.mxu1 %v8909_v9  ;;  %v8914_v19 = vcombine.low %v512_v7, %v516_v8  ;;  %v511_v3 = vld [vmem:[#allocation2 + $0x38] sm:$0xff]  ;;  %s435_s25 = scalar_lea.vmem %s14614_s0, %s8901_s11  ;;  %s10966_s15 = scalar_lea.vmem %s14615_s1, %s9740_s21 }
  0xc1   : > { %v524_v16 = vld [vmem:[#allocation2 + $0xa0] sm:$0xff]  ;;  %v525_v18 = vld [vmem:[#allocation2 + $0xa8] sm:$0xff]  ;;  %931 = vmatpush1.bf16.msra.mxu0 %v8906_v6  ;;  %972 = vmatpush1.bf16.msra.mxu1 %v8908_v10  ;;  %v8916_v20 = vcombine.low %v513_v12, %v517_v13  ;;  %v8911_v6 = vcombine.high %v506_v63, %v510_v1  ;;  %v8913_v7 = vcombine.high %v507_v2, %v511_v3  ;;  %v514_v8 = vld [vmem:[#allocation2 + $0x50] sm:$0xff]  ;;  %s445_s12 = scalar_lea.vmem %s14623_s9, %s9740_s21 }
  0xc2   : > { %932 = vmatprep.subr.bf16.mxu0 %v8915_v11  ;;  %v8923_v21 = vcombine.high %v520_v14, %v524_v16  ;;  %973 = vmatprep.subr.bf16.mxu1 %v8917_v15  ;;  %v8925_v22 = vcombine.high %v521_v17, %v525_v18  ;;  %v528_v23 = vld [vmem:[#allocation2 + $0xc0] sm:$0xff]  ;;  %v529_v25 = vld [vmem:[#allocation2 + $0xc8] sm:$0xff]  ;;  %v8922_v27 = vcombine.low %v520_v14, %v524_v16  ;;  %v518_v9 = vld [vmem:[#allocation2 + $0x70] sm:$0xff] }
  0xc3   : > { %v532_v24 = vld [vmem:[#allocation2 + $0xe0] sm:$0xff]  ;;  %v533_v26 = vld [vmem:[#allocation2 + $0xe8] sm:$0xff]  ;;  %v8924_v28 = vcombine.low %v521_v17, %v525_v18  ;;  %v515_v10 = vld [vmem:[#allocation2 + $0x58] sm:$0xff]  ;;  %v8910_v13 = vcombine.low %v506_v63, %v510_v1  ;;  %v8912_v14 = vcombine.low %v507_v2, %v511_v3  ;;  %v8919_v15 = vcombine.high %v514_v8, %v518_v9 }
  0xc4   : > { %v8931_v29 = vcombine.high %v528_v23, %v532_v24  ;;  %v8933_v30 = vcombine.high %v529_v25, %v533_v26  ;;  %v536_v31 = vld [vmem:[#allocation2 + $0x100] sm:$0xff]  ;;  %v537_v33 = vld [vmem:[#allocation2 + $0x108] sm:$0xff]  ;;  %v8930_v35 = vcombine.low %v528_v23, %v532_v24  ;;  %v8932_v36 = vcombine.low %v529_v25, %v533_v26  ;;  %v519_v11 = vld [vmem:[#allocation2 + $0x78] sm:$0xff] }
  0xc5   : > { %933 = vmatpush1.bf16.msra.mxu0 %v8914_v19  ;;  %974 = vmatpush1.bf16.msra.mxu1 %v8916_v20  ;;  %v540_v32 = vld [vmem:[#allocation2 + $0x120] sm:$0xff]  ;;  %v541_v34 = vld [vmem:[#allocation2 + $0x128] sm:$0xff]  ;;  %v8921_v16 = vcombine.high %v515_v10, %v519_v11  ;;  %v522_v17 = vld [vmem:[#allocation2 + $0x90] sm:$0xff] }
  0xc6   : > { %934 = vmatprep.subr.bf16.mxu0 %v8923_v21  ;;  %975 = vmatprep.subr.bf16.mxu1 %v8925_v22  ;;  %v8939_v37 = vcombine.high %v536_v31, %v540_v32  ;;  %v8941_v38 = vcombine.high %v537_v33, %v541_v34  ;;  %v544_v39 = vld [vmem:[#allocation2 + $0x140] sm:$0xff]  ;;  %v545_v41 = vld [vmem:[#allocation2 + $0x148] sm:$0xff]  ;;  %v8938_v43 = vcombine.low %v536_v31, %v540_v32  ;;  %v526_v18 = vld [vmem:[#allocation2 + $0xb0] sm:$0xff] }
  0xc7   : > { %v548_v40 = vld [vmem:[#allocation2 + $0x160] sm:$0xff]  ;;  %v549_v42 = vld [vmem:[#allocation2 + $0x168] sm:$0xff]  ;;  %v8940_v44 = vcombine.low %v537_v33, %v541_v34  ;;  %v523_v19 = vld [vmem:[#allocation2 + $0x98] sm:$0xff]  ;;  %v8918_v21 = vcombine.low %v514_v8, %v518_v9  ;;  %v8920_v22 = vcombine.low %v515_v10, %v519_v11  ;;  %v8927_v23 = vcombine.high %v522_v17, %v526_v18 }
  0xc8   : > { %v8947_v45 = vcombine.high %v544_v39, %v548_v40  ;;  %v8949_v46 = vcombine.high %v545_v41, %v549_v42  ;;  %v552_v47 = vld [vmem:[#allocation2 + $0x180] sm:$0xff]  ;;  %v553_v49 = vld [vmem:[#allocation2 + $0x188] sm:$0xff]  ;;  %v8946_v51 = vcombine.low %v544_v39, %v548_v40  ;;  %v8948_v52 = vcombine.low %v545_v41, %v549_v42  ;;  %v527_v20 = vld [vmem:[#allocation2 + $0xb8] sm:$0xff] }
  0xc9   : > { %935 = vmatpush1.bf16.msra.mxu0 %v8922_v27  ;;  %976 = vmatpush1.bf16.msra.mxu1 %v8924_v28  ;;  %v556_v48 = vld [vmem:[#allocation2 + $0x1a0] sm:$0xff]  ;;  %v557_v50 = vld [vmem:[#allocation2 + $0x1a8] sm:$0xff]  ;;  %v8929_v24 = vcombine.high %v523_v19, %v527_v20  ;;  %v530_v25 = vld [vmem:[#allocation2 + $0xd0] sm:$0xff] }
  0xca   : > { %936 = vmatprep.subr.bf16.mxu0 %v8931_v29  ;;  %977 = vmatprep.subr.bf16.mxu1 %v8933_v30  ;;  %v8955_v53 = vcombine.high %v552_v47, %v556_v48  ;;  %v8957_v54 = vcombine.high %v553_v49, %v557_v50  ;;  %v560_v55 = vld [vmem:[#allocation2 + $0x1c0] sm:$0xff]  ;;  %v561_v57 = vld [vmem:[#allocation2 + $0x1c8] sm:$0xff]  ;;  %v8954_v59 = vcombine.low %v552_v47, %v556_v48  ;;  %v534_v26 = vld [vmem:[#allocation2 + $0xf0] sm:$0xff] }
  0xcb   : > { %v564_v56 = vld [vmem:[#allocation2 + $0x1e0] sm:$0xff]  ;;  %v565_v58 = vld [vmem:[#allocation2 + $0x1e8] sm:$0xff]  ;;  %v8956_v60 = vcombine.low %v553_v49, %v557_v50  ;;  %v531_v27 = vld [vmem:[#allocation2 + $0xd8] sm:$0xff]  ;;  %v8926_v29 = vcombine.low %v522_v17, %v526_v18  ;;  %v8928_v30 = vcombine.low %v523_v19, %v527_v20  ;;  %v8935_v31 = vcombine.high %v530_v25, %v534_v26 }
  0xcc   : > { %v8963_v61 = vcombine.high %v560_v55, %v564_v56  ;;  %v8965_v62 = vcombine.high %v561_v57, %v565_v58  ;;  %v8962_v4 = vcombine.low %v560_v55, %v564_v56  ;;  %v8964_v5 = vcombine.low %v561_v57, %v565_v58  ;;  %v10954_v12 = vld [vmem:[%s435_s25] sm:$0xf]  ;;  %v535_v28 = vld [vmem:[#allocation2 + $0xf8] sm:$0xff]  ;;  %v538_v33 = vld [vmem:[#allocation2 + $0x110] sm:$0xff] }
  0xcd   : > { %937 = vmatpush1.bf16.msra.mxu0 %v8930_v35  ;;  %978 = vmatpush1.bf16.msra.mxu1 %v8932_v36  ;;  %v8937_v32 = vcombine.high %v531_v27, %v535_v28  ;;  %v542_v34 = vld [vmem:[#allocation2 + $0x130] sm:$0xff]  ;;  %v539_v35 = vld [vmem:[#allocation2 + $0x118] sm:$0xff]  ;;  %v1094_v1 = vld [vmem:[#allocation4] sm:$0xff] }
  0xce   : > { %938 = vmatprep.subr.bf16.mxu0 %v8939_v37  ;;  %979 = vmatprep.subr.bf16.mxu1 %v8941_v38  ;;  %v543_v36 = vld [vmem:[#allocation2 + $0x138] sm:$0xff]  ;;  %v8934_v37 = vcombine.low %v530_v25, %v534_v26  ;;  %v8936_v38 = vcombine.low %v531_v27, %v535_v28  ;;  %v8943_v39 = vcombine.high %v538_v33, %v542_v34  ;;  %v546_v40 = vld [vmem:[#allocation2 + $0x150] sm:$0xff]  ;;  %v1098_v2 = vld [vmem:[#allocation4 + $0x20] sm:$0xff] }
  0xcf   : > { %v550_v41 = vld [vmem:[#allocation2 + $0x170] sm:$0xff]  ;;  %v547_v42 = vld [vmem:[#allocation2 + $0x158] sm:$0xff]  ;;  %v1095_v3 = vld [vmem:[#allocation4 + $0x8] sm:$0xff] }
  0xd0   : > { %v554_v48 = vld [vmem:[#allocation2 + $0x190] sm:$0xff]  ;;  %v555_v50 = vld [vmem:[#allocation2 + $0x198] sm:$0xff]  ;;  %v1102_v9 = vld [vmem:[#allocation4 + $0x40] sm:$0xff] }
  0xd1   : > { %939 = vmatpush1.bf16.msra.mxu0 %v8938_v43  ;;  %980 = vmatpush1.bf16.msra.mxu1 %v8940_v44  ;;  %v551_v43 = vld [vmem:[#allocation2 + $0x178] sm:$0xff]  ;;  %v8942_v44 = vcombine.low %v538_v33, %v542_v34  ;;  %v558_v49 = vld [vmem:[#allocation2 + $0x1b0] sm:$0xff]  ;;  %v1106_v10 = vld [vmem:[#allocation4 + $0x60] sm:$0xff] }
  0xd2   : > { %940 = vmatprep.subr.bf16.mxu0 %v8947_v45  ;;  %981 = vmatprep.subr.bf16.mxu1 %v8949_v46  ;;  %v8944_v45 = vcombine.low %v539_v35, %v543_v36  ;;  %v8951_v46 = vcombine.high %v546_v40, %v550_v41  ;;  %v8953_v47 = vcombine.high %v547_v42, %v551_v43  ;;  %v562_v56 = vld [vmem:[#allocation2 + $0x1d0] sm:$0xff]  ;;  %v563_v58 = vld [vmem:[#allocation2 + $0x1d8] sm:$0xff]  ;;  %v1103_v11 = vld [vmem:[#allocation4 + $0x48] sm:$0xff] }
  0xd3   : > { %v566_v57 = vld [vmem:[#allocation2 + $0x1f0] sm:$0xff]  ;;  %v1114_v17 = vld [vmem:[#allocation4 + $0xa0] sm:$0xff]  ;;  %v10978_v19 = vcombine.high %v1102_v9, %v1106_v10  ;;  %v1111_v20 = vld [vmem:[#allocation4 + $0x88] sm:$0xff] }
  0xd4   : > { %v1118_v25 = vld [vmem:[#allocation4 + $0xc0] sm:$0xff] }
  0xd5   : > { %941 = vmatpush1.bf16.msra.mxu0 %v8946_v51  ;;  %982 = vmatpush1.bf16.msra.mxu1 %v8948_v52  ;;  %v559_v51 = vld [vmem:[#allocation2 + $0x1b8] sm:$0xff]  ;;  %v8950_v52 = vcombine.low %v546_v40, %v550_v41  ;;  %v1122_v26 = vld [vmem:[#allocation4 + $0xe0] sm:$0xff] }
  0xd6   : > { %942 = vmatprep.subr.bf16.mxu0 %v8955_v53  ;;  %983 = vmatprep.subr.bf16.mxu1 %v8957_v54  ;;  %v8952_v53 = vcombine.low %v547_v42, %v551_v43  ;;  %v8959_v54 = vcombine.high %v554_v48, %v558_v49  ;;  %v8961_v55 = vcombine.high %v555_v50, %v559_v51  ;;  %v1130_v33 = vld [vmem:[#allocation4 + $0x120] sm:$0xff]  ;;  %v1135_v43 = vld [vmem:[#allocation4 + $0x148] sm:$0xff] }
  0xd7   : > { %v1138_v40 = vld [vmem:[#allocation4 + $0x160] sm:$0xff] }
  0xd9   : > { %943 = vmatpush1.bf16.msra.mxu0 %v8954_v59  ;;  %984 = vmatpush1.bf16.msra.mxu1 %v8956_v60  ;;  %v567_v59 = vld [vmem:[#allocation2 + $0x1f8] sm:$0xff]  ;;  %v8958_v60 = vcombine.low %v554_v48, %v558_v49  ;;  %v1146_v48 = vld [vmem:[#allocation4 + $0x1a0] sm:$0xff] }
  0xda   : > { %944 = vmatprep.subr.bf16.mxu0 %v8963_v61  ;;  %985 = vmatprep.subr.bf16.mxu1 %v8965_v62  ;;  %v8960_v61 = vcombine.low %v555_v50, %v559_v51  ;;  %v8967_v62 = vcombine.high %v562_v56, %v566_v57  ;;  %v8969_v63 = vcombine.high %v563_v58, %v567_v59  ;;  %v1143_v51 = vld [vmem:[#allocation4 + $0x188] sm:$0xff] }
  0xdd   : > { %945 = vmatpush1.bf16.msra.mxu0 %v8962_v4  ;;  %986 = vmatpush1.bf16.msra.mxu1 %v8964_v5  ;;  %v1099_v4 = vld [vmem:[#allocation4 + $0x28] sm:$0xff]  ;;  %v8966_v5 = vcombine.low %v562_v56, %v566_v57  ;;  %v1154_v56 = vld [vmem:[#allocation4 + $0x1e0] sm:$0xff] }
  0xde   : > { %1012 = vmatprep.subr.bf16.mxu0 %v8911_v6  ;;  %1053 = vmatprep.subr.bf16.mxu1 %v8913_v7  ;;  %v8968_v6 = vcombine.low %v563_v58, %v567_v59  ;;  %v10968_v7 = vcombine.high %v1094_v1, %v1098_v2  ;;  %v10970_v8 = vcombine.high %v1095_v3, %v1099_v4  ;;  %v1151_v59 = vld [vmem:[#allocation4 + $0x1c8] sm:$0xff] }
  0xdf   : > { %v10976_v18 = vcombine.low %v1095_v3, %v1099_v4  ;;  %v1159_v4 = vld [vmem:[#allocation4 + $0x208] sm:$0xff] }
  0xe0   : > { %963 = vmatmul.mubr.bf16.vlgmr.msra.gmra.mrb[0].mxu0 %v10954_v12  ;;  %1004 = vmatmul.mubr.bf16.vlgmr.msra.gmra.mrb[0].mxu1 %v10954_v12  ;;  %15880 = vst [vmem:[#allocation17_spill] sm:$0xff] %v10970_v8 }
  0xe1   : > { %1013 = vmatpush1.bf16.msra.mxu0 %v8910_v13  ;;  %1054 = vmatpush1.bf16.msra.mxu1 %v8912_v14  ;;  %v1107_v13 = vld [vmem:[#allocation4 + $0x68] sm:$0xff] }
  0xe2   : > { %1014 = vmatprep.subr.bf16.mxu0 %v8919_v15  ;;  %1055 = vmatprep.subr.bf16.mxu1 %v8921_v16  ;;  %v449_v14 = vld [vmem:[%s10966_s15 + $0x8] sm:$0xff]  ;;  %v10973_v15 = vcombine.low %v1094_v1, %v1098_v2  ;;  %v1110_v16 = vld [vmem:[#allocation4 + $0x80] sm:$0xff]  ;;  %v10992_v27 = vcombine.low %v1103_v11, %v1107_v13 }
  0xe3   : > { %1044 = vmatprep.mubr.bf16.mxu0 %v10676_v0  ;;  %1085 = vmatprep.mubr.bf16.mxu1 %v10676_v0  ;;  %v8945_v0 = vcombine.high %v539_v35, %v543_v36  ;;  %v10994_v28 = vcombine.high %v1110_v16, %v1114_v17  ;;  %v11008_v35 = vcombine.high %v1118_v25, %v1122_v26  ;;  %v1127_v36 = vld [vmem:[#allocation4 + $0x108] sm:$0xff]  ;;  %v1162_v1 = vld [vmem:[#allocation4 + $0x220] sm:$0xff] }
  0xe5   : > { %1015 = vmatpush1.bf16.msra.mxu0 %v8918_v21  ;;  %1056 = vmatpush1.bf16.msra.mxu1 %v8920_v22  ;;  %v1115_v21 = vld [vmem:[#allocation4 + $0xa8] sm:$0xff]  ;;  %v10981_v22 = vcombine.high %v1103_v11, %v1107_v13  ;;  %v1170_v11 = vld [vmem:[#allocation4 + $0x260] sm:$0xff] }
  0xe6   : > { %1016 = vmatprep.subr.bf16.mxu0 %v8927_v23  ;;  %1057 = vmatprep.subr.bf16.mxu1 %v8929_v24  ;;  %v10983_v23 = vpack.c.bf16 %v449_v14, %v449_v14  ;;  %v10988_v24 = vcombine.low %v1102_v9, %v1106_v10  ;;  %v11006_v34 = vcombine.low %v1111_v20, %v1115_v21  ;;  %v1166_v10 = vld [vmem:[#allocation4 + $0x240] sm:$0xff] }
  0xe9   : > { %1017 = vmatpush1.bf16.msra.mxu0 %v8926_v29  ;;  %1058 = vmatpush1.bf16.msra.mxu1 %v8928_v30  ;;  %v1119_v29 = vld [vmem:[#allocation4 + $0xc8] sm:$0xff] }
  0xea   : > { %1018 = vmatprep.subr.bf16.mxu0 %v8935_v31  ;;  %1059 = vmatprep.subr.bf16.mxu1 %v8937_v32  ;;  %v1123_v30 = vld [vmem:[#allocation4 + $0xe8] sm:$0xff]  ;;  %v10997_v31 = vcombine.high %v1111_v20, %v1115_v21  ;;  %v1126_v32 = vld [vmem:[#allocation4 + $0x100] sm:$0xff] }
  0xeb   : > { %v11018_v41 = vcombine.low %v1119_v29, %v1123_v30  ;;  %v11020_v42 = vcombine.high %v1126_v32, %v1130_v33 }
  0xed   : > { %1019 = vmatpush1.bf16.msra.mxu0 %v8934_v37  ;;  %1060 = vmatpush1.bf16.msra.mxu1 %v8936_v38  ;;  %v1131_v37 = vld [vmem:[#allocation4 + $0x128] sm:$0xff]  ;;  %v11011_v38 = vcombine.high %v1119_v29, %v1123_v30  ;;  %v11080_v30 = vcombine.high %v1166_v10, %v1170_v11 }
  0xee   : > { %1020 = vmatprep.subr.bf16.mxu0 %v8943_v39  ;;  %1061 = vmatprep.subr.bf16.mxu1 %v8945_v0  ;;  %v11014_v39 = vcombine.low %v1118_v25, %v1122_v26  ;;  %v1134_v0 = vld [vmem:[#allocation4 + $0x140] sm:$0xff]  ;;  %v11030_v49 = vcombine.low %v1127_v36, %v1131_v37 }
  0xef   : > { %v11032_v50 = vcombine.high %v1134_v0, %v1138_v40  ;;  %v1174_v25 = vld [vmem:[#allocation4 + $0x280] sm:$0xff]  ;;  %15893 = vst [vmem:[#allocation30_spill] sm:$0xff] %v11080_v30 }
  0xf0   : > { %v1178_v26 = vld [vmem:[#allocation4 + $0x2a0] sm:$0xff] }
  0xf1   : > { %1021 = vmatpush1.bf16.msra.mxu0 %v8942_v44  ;;  %1062 = vmatpush1.bf16.msra.mxu1 %v8944_v45  ;;  %v1139_v44 = vld [vmem:[#allocation4 + $0x168] sm:$0xff]  ;;  %v11023_v45 = vcombine.high %v1127_v36, %v1131_v37  ;;  %v11086_v37 = vcombine.low %v1166_v10, %v1170_v11 }
  0xf2   : > { %1022 = vmatprep.subr.bf16.mxu0 %v8951_v46  ;;  %1063 = vmatprep.subr.bf16.mxu1 %v8953_v47  ;;  %v11026_v46 = vcombine.low %v1126_v32, %v1130_v33  ;;  %v1142_v47 = vld [vmem:[#allocation4 + $0x180] sm:$0xff]  ;;  %v11042_v57 = vcombine.low %v1135_v43, %v1139_v44  ;;  %v1175_v32 = vld [vmem:[#allocation4 + $0x288] sm:$0xff] }
  0xf3   : > { %v11044_v58 = vcombine.high %v1142_v47, %v1146_v48  ;;  %v1179_v33 = vld [vmem:[#allocation4 + $0x2a8] sm:$0xff]  ;;  %15895 = vst [vmem:[#allocation32_spill] sm:$0xff] %v11086_v37 }
  0xf5   : > { %1023 = vmatpush1.bf16.msra.mxu0 %v8950_v52  ;;  %1064 = vmatpush1.bf16.msra.mxu1 %v8952_v53  ;;  %v1147_v52 = vld [vmem:[#allocation4 + $0x1a8] sm:$0xff]  ;;  %v11035_v53 = vcombine.high %v1135_v43, %v1139_v44  ;;  %15881 = vst [vmem:[#allocation18_spill] sm:$0xff] %v11044_v58  ;;  %v11092_v44 = vcombine.high %v1174_v25, %v1178_v26 }
  0xf6   : > { %1024 = vmatprep.subr.bf16.mxu0 %v8959_v54  ;;  %1065 = vmatprep.subr.bf16.mxu1 %v8961_v55  ;;  %v11038_v54 = vcombine.low %v1134_v0, %v1138_v40  ;;  %v1150_v55 = vld [vmem:[#allocation4 + $0x1c0] sm:$0xff]  ;;  %v11054_v2 = vcombine.low %v1143_v51, %v1147_v52 }
  0xf7   : > { %v11056_v3 = vcombine.high %v1150_v55, %v1154_v56  ;;  %v11062_v9 = vcombine.low %v1150_v55, %v1154_v56  ;;  %v1182_v0 = vld [vmem:[#allocation4 + $0x2c0] sm:$0xff]  ;;  %15897 = vst [vmem:[#allocation34_spill] sm:$0xff] %v11092_v44 }
  0xf8   : > { %15884 = vst [vmem:[#allocation21_spill] sm:$0xff] %v11054_v2  ;;  %v1186_v40 = vld [vmem:[#allocation4 + $0x2e0] sm:$0xff] }
  0xf9   : > { %1025 = vmatpush1.bf16.msra.mxu0 %v8958_v60  ;;  %1066 = vmatpush1.bf16.msra.mxu1 %v8960_v61  ;;  %v1155_v60 = vld [vmem:[#allocation4 + $0x1e8] sm:$0xff]  ;;  %v11047_v61 = vcombine.high %v1143_v51, %v1147_v52  ;;  %15885 = vst [vmem:[#allocation22_spill] sm:$0xff] %v11056_v3  ;;  %15887 = vst [vmem:[#allocation24_spill] sm:$0xff] %v11062_v9  ;;  %v11095_v51 = vcombine.high %v1175_v32, %v1179_v33  ;;  %v1190_v55 = vld [vmem:[#allocation4 + $0x300] sm:$0xff] }
  0xfa   : > { %1026 = vmatprep.subr.bf16.mxu0 %v8967_v62  ;;  %1067 = vmatprep.subr.bf16.mxu1 %v8969_v63  ;;  %v11050_v62 = vcombine.low %v1142_v47, %v1146_v48  ;;  %v1158_v63 = vld [vmem:[#allocation4 + $0x200] sm:$0xff]  ;;  %v11066_v13 = vcombine.low %v1151_v59, %v1155_v60  ;;  %v1183_v47 = vld [vmem:[#allocation4 + $0x2c8] sm:$0xff]  ;;  %v11098_v52 = vcombine.low %v1174_v25, %v1178_v26 }
  0xfb   : > { %15882 = vst [vmem:[#allocation19_spill] sm:$0xff] %v11047_v61  ;;  %v11068_v14 = vcombine.high %v1158_v63, %v1162_v1  ;;  %v11074_v21 = vcombine.low %v1158_v63, %v1162_v1  ;;  %v1187_v48 = vld [vmem:[#allocation4 + $0x2e8] sm:$0xff]  ;;  %15898 = vst [vmem:[#allocation35_spill] sm:$0xff] %v11095_v51  ;;  %v1194_v56 = vld [vmem:[#allocation4 + $0x320] sm:$0xff] }
  0xfc   : > { %15883 = vst [vmem:[#allocation20_spill] sm:$0xff] %v11050_v62  ;;  %15888 = vst [vmem:[#allocation25_spill] sm:$0xff] %v11066_v13  ;;  %v1191_v63 = vld [vmem:[#allocation4 + $0x308] sm:$0xff]  ;;  %v11114_v10 = vcombine.low %v1183_v47, %v1187_v48  ;;  %v11116_v11 = vcombine.high %v1190_v55, %v1194_v56  ;;  %v1202_v25 = vld [vmem:[#allocation4 + $0x360] sm:$0xff] }
  0xfd   : > { %1027 = vmatpush1.bf16.msra.mxu0 %v8966_v5  ;;  %1068 = vmatpush1.bf16.msra.mxu1 %v8968_v6  ;;  %v1163_v5 = vld [vmem:[#allocation4 + $0x228] sm:$0xff]  ;;  %v11059_v6 = vcombine.high %v1151_v59, %v1155_v60  ;;  %15889 = vst [vmem:[#allocation26_spill] sm:$0xff] %v11068_v14  ;;  %15891 = vst [vmem:[#allocation28_spill] sm:$0xff] %v11074_v21  ;;  %v11102_v59 = vcombine.low %v1175_v32, %v1179_v33 }
  0xfe   : > { %2504 = vmatprep.subr.bf16.mxu0 %v10968_v7  ;;  %2545 = vmatprep.subr.bf16.mxu1 %v10970_v8  ;;  %v11071_v20 = vcombine.high %v1159_v4, %v1163_v5  ;;  %v11078_v29 = vcombine.low %v1159_v4, %v1163_v5  ;;  %15899 = vst [vmem:[#allocation36_spill] sm:$0xff] %v11098_v52  ;;  %v1195_v1 = vld [vmem:[#allocation4 + $0x328] sm:$0xff]  ;;  %15904 = vst [vmem:[#allocation41_spill] sm:$0xff] %v11114_v10 }
  0xff   : > { %15886 = vst [vmem:[#allocation23_spill] sm:$0xff] %v11059_v6  ;;  %15900 = vst [vmem:[#allocation37_spill] sm:$0xff] %v11102_v59  ;;  %v11104_v60 = vcombine.high %v1182_v0, %v1186_v40  ;;  %v11107_v4 = vcombine.high %v1183_v47, %v1187_v48  ;;  %v11110_v5 = vcombine.low %v1182_v0, %v1186_v40  ;;  %v1199_v26 = vld [vmem:[#allocation4 + $0x348] sm:$0xff]  ;;  %v1206_v48 = vld [vmem:[#allocation4 + $0x380] sm:$0xff] }
 0x100   : > { %1045 = vmatmul.mubr.bf16.vlgmr.msra.gmra.mrb[4].mxu0 %v10954_v12  ;;  %1086 = vmatmul.mubr.bf16.vlgmr.msra.gmra.mrb[4].mxu1 %v10954_v12  ;;  %v11002_v12 = vcombine.low %v1110_v16, %v1114_v17  ;;  %v1167_v16 = vld [vmem:[#allocation4 + $0x248] sm:$0xff]  ;;  %15890 = vst [vmem:[#allocation27_spill] sm:$0xff] %v11071_v20  ;;  %15892 = vst [vmem:[#allocation29_spill] sm:$0xff] %v11078_v29  ;;  %v11122_v33 = vcombine.low %v1190_v55, %v1194_v56 }
 0x101   : > { %2505 = vmatpush1.bf16.msra.mxu0 %v10973_v15  ;;  %2546 = vmatpush1.bf16.msra.mxu1 %v10976_v18  ;;  %v1171_v17 = vld [vmem:[#allocation4 + $0x268] sm:$0xff]  ;;  %15901 = vst [vmem:[#allocation38_spill] sm:$0xff] %v11104_v60  ;;  %15902 = vst [vmem:[#allocation39_spill] sm:$0xff] %v11107_v4  ;;  %v11126_v0 = vcombine.low %v1191_v63, %v1195_v1 }
 0x102   : > { %2506 = vmatprep.subr.bf16.mxu0 %v10978_v19  ;;  %2547 = vmatprep.subr.bf16.mxu1 %v10981_v22  ;;  %v11083_v36 = vcombine.high %v1167_v16, %v1171_v17  ;;  %v11090_v43 = vcombine.low %v1167_v16, %v1171_v17  ;;  %15903 = vst [vmem:[#allocation40_spill] sm:$0xff] %v11110_v5  ;;  %15905 = vst [vmem:[#allocation42_spill] sm:$0xff] %v11116_v11  ;;  %v1198_v17 = vld [vmem:[#allocation4 + $0x340] sm:$0xff]  ;;  %v1203_v32 = vld [vmem:[#allocation4 + $0x368] sm:$0xff] }
 0x103   : > { %2536 = vmatprep.mubr.bf16.mxu0 %v10983_v23  ;;  %2577 = vmatprep.mubr.bf16.mxu1 %v10983_v23  ;;  %v11119_v16 = vcombine.high %v1191_v63, %v1195_v1  ;;  %15907 = vst [vmem:[#allocation44_spill] sm:$0xff] %v11122_v33  ;;  %15908 = vst [vmem:[#allocation45_spill] sm:$0xff] %v11126_v0  ;;  %v11128_v40 = vcombine.high %v1198_v17, %v1202_v25 }
 0x104   : > { %15894 = vst [vmem:[#allocation31_spill] sm:$0xff] %v11083_v36  ;;  %15896 = vst [vmem:[#allocation33_spill] sm:$0xff] %v11090_v43  ;;  %v11131_v47 = vcombine.high %v1199_v26, %v1203_v32  ;;  %v11134_v55 = vcombine.low %v1198_v17, %v1202_v25  ;;  %v11138_v56 = vcombine.low %v1199_v26, %v1203_v32 }
 0x105   : > { %2507 = vmatpush1.bf16.msra.mxu0 %v10988_v24  ;;  %2548 = vmatpush1.bf16.msra.mxu1 %v10992_v27  ;;  %15906 = vst [vmem:[#allocation43_spill] sm:$0xff] %v11119_v16  ;;  %15909 = vst [vmem:[#allocation46_spill] sm:$0xff] %v11128_v40 }
 0x106   : > { %2508 = vmatprep.subr.bf16.mxu0 %v10994_v28  ;;  %2549 = vmatprep.subr.bf16.mxu1 %v10997_v31  ;;  %15910 = vst [vmem:[#allocation47_spill] sm:$0xff] %v11131_v47  ;;  %15911 = vst [vmem:[#allocation48_spill] sm:$0xff] %v11134_v55 }
 0x107   : > { %15912 = vst [vmem:[#allocation49_spill] sm:$0xff] %v11138_v56 }
 0x109   : > { %2509 = vmatpush1.bf16.msra.mxu0 %v11002_v12  ;;  %2550 = vmatpush1.bf16.msra.mxu1 %v11006_v34 }
 0x10a   : > { %2510 = vmatprep.subr.bf16.mxu0 %v11008_v35  ;;  %2551 = vmatprep.subr.bf16.mxu1 %v11011_v38 }
 0x10d   : > { %2511 = vmatpush1.bf16.msra.mxu0 %v11014_v39  ;;  %2552 = vmatpush1.bf16.msra.mxu1 %v11018_v41 }
 0x10e   : > { %2512 = vmatprep.subr.bf16.mxu0 %v11020_v42  ;;  %2553 = vmatprep.subr.bf16.mxu1 %v11023_v45 }
 0x111   : > { %2513 = vmatpush1.bf16.msra.mxu0 %v11026_v46  ;;  %2554 = vmatpush1.bf16.msra.mxu1 %v11030_v49 }
 0x112   : > { %2514 = vmatprep.subr.bf16.mxu0 %v11032_v50  ;;  %2555 = vmatprep.subr.bf16.mxu1 %v11035_v53 }
 0x115   : > { %2515 = vmatpush1.bf16.msra.mxu0 %v11038_v54  ;;  %2556 = vmatpush1.bf16.msra.mxu1 %v11042_v57 }
 0x116   : > { %2516 = vmatprep.subr.bf16.mxu0 %v11044_v58  ;;  %2557 = vmatprep.subr.bf16.mxu1 %v11047_v61 }
 0x119   : > { %2517 = vmatpush1.bf16.msra.mxu0 %v11050_v62  ;;  %2558 = vmatpush1.bf16.msra.mxu1 %v11054_v2 }
 0x11a   : > { %2518 = vmatprep.subr.bf16.mxu0 %v11056_v3  ;;  %2559 = vmatprep.subr.bf16.mxu1 %v11059_v6  ;;  %v1479_v6 = vld [vmem:[#allocation7 + $0x808] sm:$0xff] }
 0x11d   : > { %2519 = vmatpush1.bf16.msra.mxu0 %v11062_v9  ;;  %2560 = vmatpush1.bf16.msra.mxu1 %v11066_v13  ;;  %v1387_v13 = vld [vmem:[#allocation7 + $0x528] sm:$0xff]  ;;  %v1482_v9 = vld [vmem:[#allocation7 + $0x820] sm:$0xff] }
 0x11e   : > { %2520 = vmatprep.subr.bf16.mxu0 %v11068_v14  ;;  %2561 = vmatprep.subr.bf16.mxu1 %v11071_v20  ;;  %v1383_v14 = vld [vmem:[#allocation7 + $0x508] sm:$0xff] }
 0x121   : > { %2521 = vmatpush1.bf16.msra.mxu0 %v11074_v21  ;;  %2562 = vmatpush1.bf16.msra.mxu1 %v11078_v29 }
 0x122   : > { %2522 = vmatprep.subr.bf16.mxu0 %v11080_v30  ;;  %2563 = vmatprep.subr.bf16.mxu1 %v11083_v36 }
 0x125   : > { %2523 = vmatpush1.bf16.msra.mxu0 %v11086_v37  ;;  %2564 = vmatpush1.bf16.msra.mxu1 %v11090_v43  ;;  %v1303_v43 = vld [vmem:[#allocation7 + $0x288] sm:$0xff] }
 0x126   : > { %2524 = vmatprep.subr.bf16.mxu0 %v11092_v44  ;;  %2565 = vmatprep.subr.bf16.mxu1 %v11095_v51  ;;  %v1299_v51 = vld [vmem:[#allocation7 + $0x268] sm:$0xff] }
 0x127   : > { %v1307_v37 = vld [vmem:[#allocation7 + $0x2a8] sm:$0xff] }
 0x129   : > { %2525 = vmatpush1.bf16.msra.mxu0 %v11098_v52  ;;  %2566 = vmatpush1.bf16.msra.mxu1 %v11102_v59  ;;  %v1211_v59 = vld [vmem:[#allocation4 + $0x3a8] sm:$0xff]  ;;  %v1295_v52 = vld [vmem:[#allocation7 + $0x248] sm:$0xff] }
 0x12a   : > { %2526 = vmatprep.subr.bf16.mxu0 %v11104_v60  ;;  %2567 = vmatprep.subr.bf16.mxu1 %v11107_v4  ;;  %v1210_v4 = vld [vmem:[#allocation4 + $0x3a0] sm:$0xff]  ;;  %v1207_v60 = vld [vmem:[#allocation4 + $0x388] sm:$0xff] }
 0x12b   : > { %v11140_v63 = vcombine.high %v1206_v48, %v1210_v4  ;;  %v11143_v1 = vcombine.high %v1207_v60, %v1211_v59  ;;  %v11146_v17 = vcombine.low %v1206_v48, %v1210_v4  ;;  %v11150_v25 = vcombine.low %v1207_v60, %v1211_v59  ;;  %v448_v48 = vld [vmem:[%s10966_s15] sm:$0xff] }
 0x12d   : > { %2527 = vmatpush1.bf16.msra.mxu0 %v11110_v5  ;;  %2568 = vmatpush1.bf16.msra.mxu1 %v11114_v10  ;;  %15913 = vst [vmem:[#allocation50_spill] sm:$0xff] %v11140_v63  ;;  %15914 = vst [vmem:[#allocation51_spill] sm:$0xff] %v11143_v1  ;;  %v1215_v10 = vld [vmem:[#allocation4 + $0x3c8] sm:$0xff] }
 0x12e   : > { %2528 = vmatprep.subr.bf16.mxu0 %v11116_v11  ;;  %2569 = vmatprep.subr.bf16.mxu1 %v11119_v16  ;;  %v1214_v16 = vld [vmem:[#allocation4 + $0x3c0] sm:$0xff]  ;;  %v1219_v5 = vld [vmem:[#allocation4 + $0x3e8] sm:$0xff]  ;;  %15915 = vst [vmem:[#allocation52_spill] sm:$0xff] %v11146_v17  ;;  %15916 = vst [vmem:[#allocation53_spill] sm:$0xff] %v11150_v25 }
 0x12f   : > { %v1218_v11 = vld [vmem:[#allocation4 + $0x3e0] sm:$0xff]  ;;  %v11155_v32 = vcombine.high %v1215_v10, %v1219_v5  ;;  %v11163_v59 = vcombine.low %v1215_v10, %v1219_v5 }
 0x130   : > { %v11152_v26 = vcombine.high %v1214_v16, %v1218_v11  ;;  %v11158_v4 = vcombine.low %v1214_v16, %v1218_v11  ;;  %v1109_v11 = vld [vmem:[#allocation4 + $0x78] sm:$0xff] }
 0x131   : > { %2529 = vmatpush1.bf16.msra.mxu0 %v11122_v33  ;;  %2570 = vmatpush1.bf16.msra.mxu1 %v11126_v0  ;;  %15918 = vst [vmem:[#allocation55_spill] sm:$0xff] %v11155_v32  ;;  %v1097_v0 = vld [vmem:[#allocation4 + $0x18] sm:$0xff]  ;;  %15920 = vst [vmem:[#allocation57_spill] sm:$0xff] %v11163_v59 }
 0x132   : > { %2530 = vmatprep.subr.bf16.mxu0 %v11128_v40  ;;  %2571 = vmatprep.subr.bf16.mxu1 %v11131_v47  ;;  %15917 = vst [vmem:[#allocation54_spill] sm:$0xff] %v11152_v26  ;;  %v1096_v47 = vld [vmem:[#allocation4 + $0x10] sm:$0xff]  ;;  %v1101_v33 = vld [vmem:[#allocation4 + $0x38] sm:$0xff]  ;;  %15919 = vst [vmem:[#allocation56_spill] sm:$0xff] %v11158_v4 }
 0x133   : > { %v1100_v40 = vld [vmem:[#allocation4 + $0x30] sm:$0xff]  ;;  %v11177_v5 = vcombine.low %v1097_v0, %v1101_v33 }
 0x134   : > { %v11165_v60 = vcombine.high %v1096_v47, %v1100_v40  ;;  %v11173_v16 = vcombine.low %v1096_v47, %v1100_v40 }
 0x135   : > { %2531 = vmatpush1.bf16.msra.mxu0 %v11134_v55  ;;  %2572 = vmatpush1.bf16.msra.mxu1 %v11138_v56  ;;  %v1108_v56 = vld [vmem:[#allocation4 + $0x70] sm:$0xff]  ;;  %v11170_v55 = vpack.c.bf16 %v448_v48, %v448_v48  ;;  %15924 = vst [vmem:[#allocation61_spill] sm:$0xff] %v11177_v5 }
 0x136   : > { %2532 = vmatprep.subr.bf16.mxu0 %v11140_v63  ;;  %2573 = vmatprep.subr.bf16.mxu1 %v11143_v1  ;;  %15921 = vst [vmem:[#allocation58_spill] sm:$0xff] %v11165_v60  ;;  %v11168_v1 = vcombine.high %v1097_v0, %v1101_v33  ;;  %v1104_v63 = vld [vmem:[#allocation4 + $0x50] sm:$0xff]  ;;  %15923 = vst [vmem:[#allocation60_spill] sm:$0xff] %v11173_v16 }
 0x137   : > { %v11179_v10 = vcombine.high %v1104_v63, %v1108_v56  ;;  %v1112_v48 = vld [vmem:[#allocation4 + $0x90] sm:$0xff]  ;;  %v11187_v40 = vcombine.low %v1104_v63, %v1108_v56 }
 0x138   : > { %15922 = vst [vmem:[#allocation59_spill] sm:$0xff] %v11168_v1 }
 0x139   : > { %2533 = vmatpush1.bf16.msra.mxu0 %v11146_v17  ;;  %2574 = vmatpush1.bf16.msra.mxu1 %v11150_v25  ;;  %v1105_v17 = vld [vmem:[#allocation4 + $0x58] sm:$0xff]  ;;  %15925 = vst [vmem:[#allocation62_spill] sm:$0xff] %v11179_v10  ;;  %15927 = vst [vmem:[#allocation64_spill] sm:$0xff] %v11187_v40 }
 0x13a   : > { %2534 = vmatprep.subr.bf16.mxu0 %v11152_v26  ;;  %2575 = vmatprep.subr.bf16.mxu1 %v11155_v32  ;;  %v11182_v32 = vcombine.high %v1105_v17, %v1109_v11  ;;  %v1116_v26 = vld [vmem:[#allocation4 + $0xb0] sm:$0xff]  ;;  %v1113_v25 = vld [vmem:[#allocation4 + $0x98] sm:$0xff]  ;;  %v11191_v33 = vcombine.low %v1105_v17, %v1109_v11 }
 0x13b   : > { %v11193_v0 = vcombine.high %v1112_v48, %v1116_v26  ;;  %v11201_v56 = vcombine.low %v1112_v48, %v1116_v26 }
 0x13c   : > { %15926 = vst [vmem:[#allocation63_spill] sm:$0xff] %v11182_v32  ;;  %15928 = vst [vmem:[#allocation65_spill] sm:$0xff] %v11191_v33 }
 0x13d   : > { %2535 = vmatpush1.bf16.msra.mxu0 %v11158_v4  ;;  %2576 = vmatpush1.bf16.msra.mxu1 %v11163_v59  ;;  %v1117_v4 = vld [vmem:[#allocation4 + $0xb8] sm:$0xff]  ;;  %15929 = vst [vmem:[#allocation66_spill] sm:$0xff] %v11193_v0  ;;  %15931 = vst [vmem:[#allocation68_spill] sm:$0xff] %v11201_v56 }
 0x13e   : > { %2586 = vmatprep.subr.bf16.mxu0 %v11165_v60  ;;  %2627 = vmatprep.subr.bf16.mxu1 %v11168_v1  ;;  %v11196_v47 = vcombine.high %v1113_v25, %v1117_v4  ;;  %v1120_v1 = vld [vmem:[#allocation4 + $0xd0] sm:$0xff]  ;;  %v1121_v59 = vld [vmem:[#allocation4 + $0xd8] sm:$0xff]  ;;  %v11205_v63 = vcombine.low %v1113_v25, %v1117_v4 }
 0x13f   : > { %v1124_v60 = vld [vmem:[#allocation4 + $0xf0] sm:$0xff] }
 0x140   : > { %2537 = vmatmul.mubr.bf16.vlgmr.msra.gmra.mrb[8].mxu0 %v11170_v55  ;;  %2578 = vmatmul.mubr.bf16.vlgmr.msra.gmra.mrb[8].mxu1 %v11170_v55  ;;  %15930 = vst [vmem:[#allocation67_spill] sm:$0xff] %v11196_v47  ;;  %15932 = vst [vmem:[#allocation69_spill] sm:$0xff] %v11205_v63  ;;  %v11207_v17 = vcombine.high %v1120_v1, %v1124_v60  ;;  %v11213_v26 = vcombine.low %v1120_v1, %v1124_v60 }
 0x141   : > { %2587 = vmatpush1.bf16.msra.mxu0 %v11173_v16  ;;  %2628 = vmatpush1.bf16.msra.mxu1 %v11177_v5  ;;  %v1125_v16 = vld [vmem:[#allocation4 + $0xf8] sm:$0xff] }
 0x142   : > { %2588 = vmatprep.subr.bf16.mxu0 %v11179_v10  ;;  %2629 = vmatprep.subr.bf16.mxu1 %v11182_v32  ;;  %15933 = vst [vmem:[#allocation70_spill] sm:$0xff] %v11207_v17  ;;  %v11210_v11 = vcombine.high %v1121_v59, %v1125_v16  ;;  %v1128_v32 = vld [vmem:[#allocation4 + $0x110] sm:$0xff]  ;;  %v1129_v5 = vld [vmem:[#allocation4 + $0x118] sm:$0xff]  ;;  %15935 = vst [vmem:[#allocation72_spill] sm:$0xff] %v11213_v26  ;;  %v11217_v25 = vcombine.low %v1121_v59, %v1125_v16 }
 0x143   : > { %2618 = vmatprep.mubr.bf16.mxu0 %v10983_v23  ;;  %2659 = vmatprep.mubr.bf16.mxu1 %v10983_v23  ;;  %v1132_v10 = vld [vmem:[#allocation4 + $0x130] sm:$0xff]  ;;  %v1133_v23 = vld [vmem:[#allocation4 + $0x138] sm:$0xff] }
 0x144   : > { %15934 = vst [vmem:[#allocation71_spill] sm:$0xff] %v11210_v11  ;;  %15936 = vst [vmem:[#allocation73_spill] sm:$0xff] %v11217_v25  ;;  %v11219_v4 = vcombine.high %v1128_v32, %v1132_v10  ;;  %v11222_v48 = vcombine.high %v1129_v5, %v1133_v23  ;;  %v11225_v1 = vcombine.low %v1128_v32, %v1132_v10 }
 0x145   : > { %2589 = vmatpush1.bf16.msra.mxu0 %v11187_v40  ;;  %2630 = vmatpush1.bf16.msra.mxu1 %v11191_v33  ;;  %v1137_v33 = vld [vmem:[#allocation4 + $0x158] sm:$0xff]  ;;  %v11229_v59 = vcombine.low %v1129_v5, %v1133_v23 }
 0x146   : > { %2590 = vmatprep.subr.bf16.mxu0 %v11193_v0  ;;  %2631 = vmatprep.subr.bf16.mxu1 %v11196_v47  ;;  %15937 = vst [vmem:[#allocation74_spill] sm:$0xff] %v11219_v4  ;;  %15938 = vst [vmem:[#allocation75_spill] sm:$0xff] %v11222_v48  ;;  %v1136_v47 = vld [vmem:[#allocation4 + $0x150] sm:$0xff]  ;;  %v1141_v40 = vld [vmem:[#allocation4 + $0x178] sm:$0xff] }
 0x147   : > { %v1140_v0 = vld [vmem:[#allocation4 + $0x170] sm:$0xff]  ;;  %15939 = vst [vmem:[#allocation76_spill] sm:$0xff] %v11225_v1  ;;  %15940 = vst [vmem:[#allocation77_spill] sm:$0xff] %v11229_v59  ;;  %v11234_v16 = vcombine.high %v1137_v33, %v1141_v40  ;;  %v11241_v5 = vcombine.low %v1137_v33, %v1141_v40 }
 0x148   : > { %v11231_v60 = vcombine.high %v1136_v47, %v1140_v0  ;;  %v11237_v32 = vcombine.low %v1136_v47, %v1140_v0 }
 0x149   : > { %2591 = vmatpush1.bf16.msra.mxu0 %v11201_v56  ;;  %2632 = vmatpush1.bf16.msra.mxu1 %v11205_v63  ;;  %15942 = vst [vmem:[#allocation79_spill] sm:$0xff] %v11234_v16  ;;  %v1145_v63 = vld [vmem:[#allocation4 + $0x198] sm:$0xff]  ;;  %15944 = vst [vmem:[#allocation81_spill] sm:$0xff] %v11241_v5 }
 0x14a   : > { %2592 = vmatprep.subr.bf16.mxu0 %v11207_v17  ;;  %2633 = vmatprep.subr.bf16.mxu1 %v11210_v11  ;;  %15941 = vst [vmem:[#allocation78_spill] sm:$0xff] %v11231_v60  ;;  %v1144_v11 = vld [vmem:[#allocation4 + $0x190] sm:$0xff]  ;;  %v1149_v56 = vld [vmem:[#allocation4 + $0x1b8] sm:$0xff]  ;;  %15943 = vst [vmem:[#allocation80_spill] sm:$0xff] %v11237_v32 }
 0x14b   : > { %v1148_v17 = vld [vmem:[#allocation4 + $0x1b0] sm:$0xff]  ;;  %v11246_v23 = vcombine.high %v1145_v63, %v1149_v56  ;;  %v11253_v40 = vcombine.low %v1145_v63, %v1149_v56 }
 0x14c   : > { %v11243_v10 = vcombine.high %v1144_v11, %v1148_v17  ;;  %v11249_v0 = vcombine.low %v1144_v11, %v1148_v17 }
 0x14d   : > { %2593 = vmatpush1.bf16.msra.mxu0 %v11213_v26  ;;  %2634 = vmatpush1.bf16.msra.mxu1 %v11217_v25  ;;  %15946 = vst [vmem:[#allocation83_spill] sm:$0xff] %v11246_v23  ;;  %v1153_v25 = vld [vmem:[#allocation4 + $0x1d8] sm:$0xff]  ;;  %15948 = vst [vmem:[#allocation85_spill] sm:$0xff] %v11253_v40 }
 0x14e   : > { %2594 = vmatprep.subr.bf16.mxu0 %v11219_v4  ;;  %2635 = vmatprep.subr.bf16.mxu1 %v11222_v48  ;;  %15945 = vst [vmem:[#allocation82_spill] sm:$0xff] %v11243_v10  ;;  %v1152_v48 = vld [vmem:[#allocation4 + $0x1d0] sm:$0xff]  ;;  %v1157_v26 = vld [vmem:[#allocation4 + $0x1f8] sm:$0xff]  ;;  %15947 = vst [vmem:[#allocation84_spill] sm:$0xff] %v11249_v0 }
 0x14f   : > { %v1156_v4 = vld [vmem:[#allocation4 + $0x1f0] sm:$0xff]  ;;  %v11258_v47 = vcombine.high %v1153_v25, %v1157_v26  ;;  %v11265_v56 = vcombine.low %v1153_v25, %v1157_v26 }
 0x150   : > { %v11255_v33 = vcombine.high %v1152_v48, %v1156_v4  ;;  %v11261_v17 = vcombine.low %v1152_v48, %v1156_v4 }
 0x151   : > { %2595 = vmatpush1.bf16.msra.mxu0 %v11225_v1  ;;  %2636 = vmatpush1.bf16.msra.mxu1 %v11229_v59  ;;  %15950 = vst [vmem:[#allocation87_spill] sm:$0xff] %v11258_v47  ;;  %v1161_v59 = vld [vmem:[#allocation4 + $0x218] sm:$0xff]  ;;  %15952 = vst [vmem:[#allocation89_spill] sm:$0xff] %v11265_v56 }
 0x152   : > { %2596 = vmatprep.subr.bf16.mxu0 %v11231_v60  ;;  %2637 = vmatprep.subr.bf16.mxu1 %v11234_v16  ;;  %15949 = vst [vmem:[#allocation86_spill] sm:$0xff] %v11255_v33  ;;  %v1160_v16 = vld [vmem:[#allocation4 + $0x210] sm:$0xff]  ;;  %v1165_v1 = vld [vmem:[#allocation4 + $0x238] sm:$0xff]  ;;  %15951 = vst [vmem:[#allocation88_spill] sm:$0xff] %v11261_v17 }
 0x153   : > { %v1164_v60 = vld [vmem:[#allocation4 + $0x230] sm:$0xff]  ;;  %v11270_v11 = vcombine.high %v1161_v59, %v1165_v1  ;;  %v11277_v26 = vcombine.low %v1161_v59, %v1165_v1 }
 0x154   : > { %v11267_v63 = vcombine.high %v1160_v16, %v1164_v60  ;;  %v11273_v4 = vcombine.low %v1160_v16, %v1164_v60 }
 0x155   : > { %2597 = vmatpush1.bf16.msra.mxu0 %v11237_v32  ;;  %2638 = vmatpush1.bf16.msra.mxu1 %v11241_v5  ;;  %15954 = vst [vmem:[#allocation91_spill] sm:$0xff] %v11270_v11  ;;  %v1169_v5 = vld [vmem:[#allocation4 + $0x258] sm:$0xff]  ;;  %15956 = vst [vmem:[#allocation93_spill] sm:$0xff] %v11277_v26 }
 0x156   : > { %2598 = vmatprep.subr.bf16.mxu0 %v11243_v10  ;;  %2639 = vmatprep.subr.bf16.mxu1 %v11246_v23  ;;  %15953 = vst [vmem:[#allocation90_spill] sm:$0xff] %v11267_v63  ;;  %v1168_v23 = vld [vmem:[#allocation4 + $0x250] sm:$0xff]  ;;  %v1173_v32 = vld [vmem:[#allocation4 + $0x278] sm:$0xff]  ;;  %15955 = vst [vmem:[#allocation92_spill] sm:$0xff] %v11273_v4 }
 0x157   : > { %v1172_v10 = vld [vmem:[#allocation4 + $0x270] sm:$0xff]  ;;  %v11282_v48 = vcombine.high %v1169_v5, %v1173_v32  ;;  %v11289_v1 = vcombine.low %v1169_v5, %v1173_v32 }
 0x158   : > { %v11279_v25 = vcombine.high %v1168_v23, %v1172_v10  ;;  %v11285_v60 = vcombine.low %v1168_v23, %v1172_v10 }
 0x159   : > { %2599 = vmatpush1.bf16.msra.mxu0 %v11249_v0  ;;  %2640 = vmatpush1.bf16.msra.mxu1 %v11253_v40  ;;  %15958 = vst [vmem:[#allocation95_spill] sm:$0xff] %v11282_v48  ;;  %v1177_v40 = vld [vmem:[#allocation4 + $0x298] sm:$0xff]  ;;  %15960 = vst [vmem:[#allocation97_spill] sm:$0xff] %v11289_v1 }
 0x15a   : > { %2600 = vmatprep.subr.bf16.mxu0 %v11255_v33  ;;  %2641 = vmatprep.subr.bf16.mxu1 %v11258_v47  ;;  %15957 = vst [vmem:[#allocation94_spill] sm:$0xff] %v11279_v25  ;;  %v1176_v47 = vld [vmem:[#allocation4 + $0x290] sm:$0xff]  ;;  %v1181_v0 = vld [vmem:[#allocation4 + $0x2b8] sm:$0xff]  ;;  %15959 = vst [vmem:[#allocation96_spill] sm:$0xff] %v11285_v60 }
 0x15b   : > { %v1180_v33 = vld [vmem:[#allocation4 + $0x2b0] sm:$0xff]  ;;  %v11294_v16 = vcombine.high %v1177_v40, %v1181_v0  ;;  %v11301_v32 = vcombine.low %v1177_v40, %v1181_v0 }
 0x15c   : > { %v11291_v59 = vcombine.high %v1176_v47, %v1180_v33  ;;  %v11297_v10 = vcombine.low %v1176_v47, %v1180_v33 }
 0x15d   : > { %2601 = vmatpush1.bf16.msra.mxu0 %v11261_v17  ;;  %2642 = vmatpush1.bf16.msra.mxu1 %v11265_v56  ;;  %15962 = vst [vmem:[#allocation99_spill] sm:$0xff] %v11294_v16  ;;  %v1185_v56 = vld [vmem:[#allocation4 + $0x2d8] sm:$0xff]  ;;  %15964 = vst [vmem:[#allocation101_spill] sm:$0xff] %v11301_v32 }
 0x15e   : > { %2602 = vmatprep.subr.bf16.mxu0 %v11267_v63  ;;  %2643 = vmatprep.subr.bf16.mxu1 %v11270_v11  ;;  %15961 = vst [vmem:[#allocation98_spill] sm:$0xff] %v11291_v59  ;;  %v1184_v11 = vld [vmem:[#allocation4 + $0x2d0] sm:$0xff]  ;;  %v1189_v17 = vld [vmem:[#allocation4 + $0x2f8] sm:$0xff]  ;;  %15963 = vst [vmem:[#allocation100_spill] sm:$0xff] %v11297_v10 }
 0x15f   : > { %v1188_v63 = vld [vmem:[#allocation4 + $0x2f0] sm:$0xff]  ;;  %v11306_v23 = vcombine.high %v1185_v56, %v1189_v17  ;;  %v11313_v0 = vcombine.low %v1185_v56, %v1189_v17 }
 0x160   : > { %v11303_v5 = vcombine.high %v1184_v11, %v1188_v63  ;;  %v11309_v33 = vcombine.low %v1184_v11, %v1188_v63 }
 0x161   : > { %2603 = vmatpush1.bf16.msra.mxu0 %v11273_v4  ;;  %2644 = vmatpush1.bf16.msra.mxu1 %v11277_v26  ;;  %15966 = vst [vmem:[#allocation103_spill] sm:$0xff] %v11306_v23  ;;  %v1193_v26 = vld [vmem:[#allocation4 + $0x318] sm:$0xff]  ;;  %15968 = vst [vmem:[#allocation105_spill] sm:$0xff] %v11313_v0 }
 0x162   : > { %2604 = vmatprep.subr.bf16.mxu0 %v11279_v25  ;;  %2645 = vmatprep.subr.bf16.mxu1 %v11282_v48  ;;  %15965 = vst [vmem:[#allocation102_spill] sm:$0xff] %v11303_v5  ;;  %v1192_v48 = vld [vmem:[#allocation4 + $0x310] sm:$0xff]  ;;  %v1197_v4 = vld [vmem:[#allocation4 + $0x338] sm:$0xff]  ;;  %15967 = vst [vmem:[#allocation104_spill] sm:$0xff] %v11309_v33 }
 0x163   : > { %v1196_v25 = vld [vmem:[#allocation4 + $0x330] sm:$0xff]  ;;  %v11318_v47 = vcombine.high %v1193_v26, %v1197_v4  ;;  %v11325_v17 = vcombine.low %v1193_v26, %v1197_v4 }
 0x164   : > { %v11315_v40 = vcombine.high %v1192_v48, %v1196_v25  ;;  %v11321_v63 = vcombine.low %v1192_v48, %v1196_v25 }
 0x165   : > { %2605 = vmatpush1.bf16.msra.mxu0 %v11285_v60  ;;  %2646 = vmatpush1.bf16.msra.mxu1 %v11289_v1  ;;  %15970 = vst [vmem:[#allocation107_spill] sm:$0xff] %v11318_v47  ;;  %v1201_v1 = vld [vmem:[#allocation4 + $0x358] sm:$0xff]  ;;  %15972 = vst [vmem:[#allocation109_spill] sm:$0xff] %v11325_v17 }
 0x166   : > { %2606 = vmatprep.subr.bf16.mxu0 %v11291_v59  ;;  %2647 = vmatprep.subr.bf16.mxu1 %v11294_v16  ;;  %15969 = vst [vmem:[#allocation106_spill] sm:$0xff] %v11315_v40  ;;  %v1200_v16 = vld [vmem:[#allocation4 + $0x350] sm:$0xff]  ;;  %v1205_v60 = vld [vmem:[#allocation4 + $0x378] sm:$0xff]  ;;  %15971 = vst [vmem:[#allocation108_spill] sm:$0xff] %v11321_v63 }
 0x167   : > { %v1204_v59 = vld [vmem:[#allocation4 + $0x370] sm:$0xff]  ;;  %v11330_v11 = vcombine.high %v1201_v1, %v1205_v60  ;;  %v11337_v4 = vcombine.low %v1201_v1, %v1205_v60 }
 0x168   : > { %v11327_v56 = vcombine.high %v1200_v16, %v1204_v59  ;;  %v11333_v25 = vcombine.low %v1200_v16, %v1204_v59 }
 0x169   : > { %2607 = vmatpush1.bf16.msra.mxu0 %v11297_v10  ;;  %2648 = vmatpush1.bf16.msra.mxu1 %v11301_v32  ;;  %15974 = vst [vmem:[#allocation111_spill] sm:$0xff] %v11330_v11  ;;  %v1209_v32 = vld [vmem:[#allocation4 + $0x398] sm:$0xff]  ;;  %15976 = vst [vmem:[#allocation113_spill] sm:$0xff] %v11337_v4 }
 0x16a   : > { %2608 = vmatprep.subr.bf16.mxu0 %v11303_v5  ;;  %2649 = vmatprep.subr.bf16.mxu1 %v11306_v23  ;;  %15973 = vst [vmem:[#allocation110_spill] sm:$0xff] %v11327_v56  ;;  %v1208_v23 = vld [vmem:[#allocation4 + $0x390] sm:$0xff]  ;;  %v1213_v10 = vld [vmem:[#allocation4 + $0x3b8] sm:$0xff]  ;;  %15975 = vst [vmem:[#allocation112_spill] sm:$0xff] %v11333_v25 }
 0x16b   : > { %v1212_v5 = vld [vmem:[#allocation4 + $0x3b0] sm:$0xff]  ;;  %v11342_v48 = vcombine.high %v1209_v32, %v1213_v10  ;;  %v11349_v60 = vcombine.low %v1209_v32, %v1213_v10 }
 0x16c   : > { %v11339_v26 = vcombine.high %v1208_v23, %v1212_v5  ;;  %v11345_v59 = vcombine.low %v1208_v23, %v1212_v5 }
 0x16d   : > { %2609 = vmatpush1.bf16.msra.mxu0 %v11309_v33  ;;  %2650 = vmatpush1.bf16.msra.mxu1 %v11313_v0  ;;  %15978 = vst [vmem:[#allocation115_spill] sm:$0xff] %v11342_v48  ;;  %v1217_v0 = vld [vmem:[#allocation4 + $0x3d8] sm:$0xff]  ;;  %15980 = vst [vmem:[#allocation117_spill] sm:$0xff] %v11349_v60 }
 0x16e   : > { %2610 = vmatprep.subr.bf16.mxu0 %v11315_v40  ;;  %2651 = vmatprep.subr.bf16.mxu1 %v11318_v47  ;;  %15977 = vst [vmem:[#allocation114_spill] sm:$0xff] %v11339_v26  ;;  %v1216_v47 = vld [vmem:[#allocation4 + $0x3d0] sm:$0xff]  ;;  %v1221_v33 = vld [vmem:[#allocation4 + $0x3f8] sm:$0xff]  ;;  %15979 = vst [vmem:[#allocation116_spill] sm:$0xff] %v11345_v59 }
 0x16f   : > { %v1220_v40 = vld [vmem:[#allocation4 + $0x3f0] sm:$0xff]  ;;  %v11354_v16 = vcombine.high %v1217_v0, %v1221_v33  ;;  %v11361_v10 = vcombine.low %v1217_v0, %v1221_v33 }
 0x170   : > { %v11351_v1 = vcombine.high %v1216_v47, %v1220_v40  ;;  %v11357_v5 = vcombine.low %v1216_v47, %v1220_v40 }
 0x171   : > { %2611 = vmatpush1.bf16.msra.mxu0 %v11321_v63  ;;  %2652 = vmatpush1.bf16.msra.mxu1 %v11325_v17  ;;  %15982 = vst [vmem:[#allocation119_spill] sm:$0xff] %v11354_v16  ;;  %v1223_v17 = vld [vmem:[#allocation7 + $0x8] sm:$0xff]  ;;  %15984 = vst [vmem:[#allocation121_spill] sm:$0xff] %v11361_v10 }
 0x172   : > { %2612 = vmatprep.subr.bf16.mxu0 %v11327_v56  ;;  %2653 = vmatprep.subr.bf16.mxu1 %v11330_v11  ;;  %15981 = vst [vmem:[#allocation118_spill] sm:$0xff] %v11351_v1  ;;  %v1222_v11 = vld [vmem:[#allocation7] sm:$0xff]  ;;  %v1227_v63 = vld [vmem:[#allocation7 + $0x28] sm:$0xff]  ;;  %15983 = vst [vmem:[#allocation120_spill] sm:$0xff] %v11357_v5 }
 0x173   : > { %v1226_v56 = vld [vmem:[#allocation7 + $0x20] sm:$0xff]  ;;  %v11366_v23 = vcombine.high %v1223_v17, %v1227_v63  ;;  %v11373_v33 = vcombine.low %v1223_v17, %v1227_v63 }
 0x174   : > { %v11363_v32 = vcombine.high %v1222_v11, %v1226_v56  ;;  %v11369_v40 = vcombine.low %v1222_v11, %v1226_v56 }
 0x175   : > { %2613 = vmatpush1.bf16.msra.mxu0 %v11333_v25  ;;  %2654 = vmatpush1.bf16.msra.mxu1 %v11337_v4  ;;  %15986 = vst [vmem:[#allocation123_spill] sm:$0xff] %v11366_v23  ;;  %v1231_v4 = vld [vmem:[#allocation7 + $0x48] sm:$0xff]  ;;  %15988 = vst [vmem:[#allocation125_spill] sm:$0xff] %v11373_v33 }
 0x176   : > { %2614 = vmatprep.subr.bf16.mxu0 %v11339_v26  ;;  %2655 = vmatprep.subr.bf16.mxu1 %v11342_v48  ;;  %15985 = vst [vmem:[#allocation122_spill] sm:$0xff] %v11363_v32  ;;  %v1230_v48 = vld [vmem:[#allocation7 + $0x40] sm:$0xff]  ;;  %v1235_v25 = vld [vmem:[#allocation7 + $0x68] sm:$0xff]  ;;  %15987 = vst [vmem:[#allocation124_spill] sm:$0xff] %v11369_v40 }
 0x177   : > { %v1234_v26 = vld [vmem:[#allocation7 + $0x60] sm:$0xff]  ;;  %v11378_v47 = vcombine.high %v1231_v4, %v1235_v25  ;;  %v11387_v63 = vcombine.low %v1231_v4, %v1235_v25 }
 0x178   : > { %v11375_v0 = vcombine.high %v1230_v48, %v1234_v26  ;;  %v11383_v56 = vcombine.low %v1230_v48, %v1234_v26 }
 0x179   : > { %2615 = vmatpush1.bf16.msra.mxu0 %v11345_v59  ;;  %2656 = vmatpush1.bf16.msra.mxu1 %v11349_v60  ;;  %15990 = vst [vmem:[#allocation127_spill] sm:$0xff] %v11378_v47  ;;  %v1239_v60 = vld [vmem:[#allocation7 + $0x88] sm:$0xff]  ;;  %15992 = vst [vmem:[#allocation129_spill] sm:$0xff] %v11387_v63 }
 0x17a   : > { %2616 = vmatprep.subr.bf16.mxu0 %v11351_v1  ;;  %2657 = vmatprep.subr.bf16.mxu1 %v11354_v16  ;;  %15989 = vst [vmem:[#allocation126_spill] sm:$0xff] %v11375_v0  ;;  %v1238_v16 = vld [vmem:[#allocation7 + $0x80] sm:$0xff]  ;;  %15991 = vst [vmem:[#allocation128_spill] sm:$0xff] %v11383_v56 }
 0x17b   : > { %v1242_v1 = vld [vmem:[#allocation7 + $0xa0] sm:$0xff] }
 0x17c   : > { %v11389_v17 = vcombine.high %v1238_v16, %v1242_v1  ;;  %v11395_v26 = vcombine.low %v1238_v16, %v1242_v1 }
 0x17d   : > { %2617 = vmatpush1.bf16.msra.mxu0 %v11357_v5  ;;  %2658 = vmatpush1.bf16.msra.mxu1 %v11361_v10  ;;  %v1243_v5 = vld [vmem:[#allocation7 + $0xa8] sm:$0xff] }
 0x17e   : > { %5244 = vmatprep.subr.bf16.mxu0 %v11363_v32  ;;  %5408 = vmatprep.subr.bf16.mxu1 %v11366_v23  ;;  %15993 = vst [vmem:[#allocation130_spill] sm:$0xff] %v11389_v17  ;;  %v11392_v11 = vcombine.high %v1239_v60, %v1243_v5  ;;  %v1246_v23 = vld [vmem:[#allocation7 + $0xc0] sm:$0xff]  ;;  %v1247_v10 = vld [vmem:[#allocation7 + $0xc8] sm:$0xff]  ;;  %15995 = vst [vmem:[#allocation132_spill] sm:$0xff] %v11395_v26  ;;  %v11399_v25 = vcombine.low %v1239_v60, %v1243_v5 }
 0x17f   : > { %v1250_v32 = vld [vmem:[#allocation7 + $0xe0] sm:$0xff] }
 0x180   : > { %2619 = vmatmul.mubr.bf16.vlgmr.msra.gmra.mrb[12].mxu0 %v11170_v55  ;;  %2660 = vmatmul.mubr.bf16.vlgmr.msra.gmra.mrb[12].mxu1 %v11170_v55  ;;  %15994 = vst [vmem:[#allocation131_spill] sm:$0xff] %v11392_v11  ;;  %v1251_v55 = vld [vmem:[#allocation7 + $0xe8] sm:$0xff]  ;;  %15996 = vst [vmem:[#allocation133_spill] sm:$0xff] %v11399_v25  ;;  %v11401_v4 = vcombine.high %v1246_v23, %v1250_v32  ;;  %v11407_v1 = vcombine.low %v1246_v23, %v1250_v32 }
 0x181   : > { %5245 = vmatpush1.bf16.msra.mxu0 %v11369_v40  ;;  %5409 = vmatpush1.bf16.msra.mxu1 %v11373_v33  ;;  %v11404_v48 = vcombine.high %v1247_v10, %v1251_v55  ;;  %v1255_v33 = vld [vmem:[#allocation7 + $0x108] sm:$0xff]  ;;  %v11411_v60 = vcombine.low %v1247_v10, %v1251_v55 }
 0x182   : > { %5246 = vmatprep.subr.bf16.mxu0 %v11375_v0  ;;  %5410 = vmatprep.subr.bf16.mxu1 %v11378_v47  ;;  %15997 = vst [vmem:[#allocation134_spill] sm:$0xff] %v11401_v4  ;;  %v1254_v47 = vld [vmem:[#allocation7 + $0x100] sm:$0xff]  ;;  %v1259_v40 = vld [vmem:[#allocation7 + $0x128] sm:$0xff]  ;;  %15999 = vst [vmem:[#allocation136_spill] sm:$0xff] %v11407_v1 }
 0x183   : > { %15998 = vst [vmem:[#allocation135_spill] sm:$0xff] %v11404_v48  ;;  %v1258_v0 = vld [vmem:[#allocation7 + $0x120] sm:$0xff]  ;;  %16000 = vst [vmem:[#allocation137_spill] sm:$0xff] %v11411_v60  ;;  %v11416_v5 = vcombine.high %v1255_v33, %v1259_v40  ;;  %v11423_v10 = vcombine.low %v1255_v33, %v1259_v40 }
 0x184   : > { %v11413_v16 = vcombine.high %v1254_v47, %v1258_v0  ;;  %v11419_v32 = vcombine.low %v1254_v47, %v1258_v0 }
 0x185   : > { %5247 = vmatpush1.bf16.msra.mxu0 %v11383_v56  ;;  %5411 = vmatpush1.bf16.msra.mxu1 %v11387_v63  ;;  %16002 = vst [vmem:[#allocation139_spill] sm:$0xff] %v11416_v5  ;;  %v1263_v63 = vld [vmem:[#allocation7 + $0x148] sm:$0xff]  ;;  %16004 = vst [vmem:[#allocation141_spill] sm:$0xff] %v11423_v10 }
 0x186   : > { %5248 = vmatprep.subr.bf16.mxu0 %v11389_v17  ;;  %5412 = vmatprep.subr.bf16.mxu1 %v11392_v11  ;;  %16001 = vst [vmem:[#allocation138_spill] sm:$0xff] %v11413_v16  ;;  %v1262_v11 = vld [vmem:[#allocation7 + $0x140] sm:$0xff]  ;;  %v1267_v56 = vld [vmem:[#allocation7 + $0x168] sm:$0xff]  ;;  %16003 = vst [vmem:[#allocation140_spill] sm:$0xff] %v11419_v32 }
 0x187   : > { %v1266_v17 = vld [vmem:[#allocation7 + $0x160] sm:$0xff]  ;;  %v11428_v55 = vcombine.high %v1263_v63, %v1267_v56  ;;  %v11435_v40 = vcombine.low %v1263_v63, %v1267_v56 }
 0x188   : > { %v11425_v23 = vcombine.high %v1262_v11, %v1266_v17  ;;  %v11431_v0 = vcombine.low %v1262_v11, %v1266_v17  ;;  %v1286_v11 = vld [vmem:[#allocation7 + $0x200] sm:$0xff] }
 0x189   : > { %5249 = vmatpush1.bf16.msra.mxu0 %v11395_v26  ;;  %5413 = vmatpush1.bf16.msra.mxu1 %v11399_v25  ;;  %16006 = vst [vmem:[#allocation143_spill] sm:$0xff] %v11428_v55  ;;  %v1271_v25 = vld [vmem:[#allocation7 + $0x188] sm:$0xff]  ;;  %16008 = vst [vmem:[#allocation145_spill] sm:$0xff] %v11435_v40 }
 0x18a   : > { %5250 = vmatprep.subr.bf16.mxu0 %v11401_v4  ;;  %5414 = vmatprep.subr.bf16.mxu1 %v11404_v48  ;;  %16005 = vst [vmem:[#allocation142_spill] sm:$0xff] %v11425_v23  ;;  %v1270_v48 = vld [vmem:[#allocation7 + $0x180] sm:$0xff]  ;;  %v1275_v26 = vld [vmem:[#allocation7 + $0x1a8] sm:$0xff]  ;;  %16007 = vst [vmem:[#allocation144_spill] sm:$0xff] %v11431_v0 }
 0x18b   : > { %v1274_v4 = vld [vmem:[#allocation7 + $0x1a0] sm:$0xff]  ;;  %v11440_v47 = vcombine.high %v1271_v25, %v1275_v26  ;;  %v11447_v56 = vcombine.low %v1271_v25, %v1275_v26 }
 0x18c   : > { %v11437_v33 = vcombine.high %v1270_v48, %v1274_v4  ;;  %v11443_v17 = vcombine.low %v1270_v48, %v1274_v4  ;;  %v11458_v4 = vld [vmem:[#allocation7 + $0x408] sm:$0xff] }
 0x18d   : > { %5251 = vmatpush1.bf16.msra.mxu0 %v11407_v1  ;;  %5415 = vmatpush1.bf16.msra.mxu1 %v11411_v60  ;;  %16010 = vst [vmem:[#allocation147_spill] sm:$0xff] %v11440_v47  ;;  %v1279_v60 = vld [vmem:[#allocation7 + $0x1c8] sm:$0xff]  ;;  %16012 = vst [vmem:[#allocation149_spill] sm:$0xff] %v11447_v56 }
 0x18e   : > { %5252 = vmatprep.subr.bf16.mxu0 %v11413_v16  ;;  %5416 = vmatprep.subr.bf16.mxu1 %v11416_v5  ;;  %16009 = vst [vmem:[#allocation146_spill] sm:$0xff] %v11437_v33  ;;  %v1278_v5 = vld [vmem:[#allocation7 + $0x1c0] sm:$0xff]  ;;  %v1283_v1 = vld [vmem:[#allocation7 + $0x1e8] sm:$0xff]  ;;  %16011 = vst [vmem:[#allocation148_spill] sm:$0xff] %v11443_v17 }
 0x18f   : > { %v1282_v16 = vld [vmem:[#allocation7 + $0x1e0] sm:$0xff]  ;;  %v1287_v48 = vld [vmem:[#allocation7 + $0x208] sm:$0xff] }
 0x190   : > { %v11449_v63 = vcombine.high %v1278_v5, %v1282_v16  ;;  %v11463_v26 = vcombine.low %v1278_v5, %v1282_v16  ;;  %v1294_v5 = vld [vmem:[#allocation7 + $0x240] sm:$0xff] }
 0x191   : > { %5253 = vmatpush1.bf16.msra.mxu0 %v11419_v32  ;;  %5417 = vmatpush1.bf16.msra.mxu1 %v11423_v10  ;;  %v11454_v10 = vld [vmem:[#allocation7 + $0x400] sm:$0xff] }
 0x192   : > { %5254 = vmatprep.subr.bf16.mxu0 %v11425_v23  ;;  %5418 = vmatprep.subr.bf16.mxu1 %v11428_v55  ;;  %16013 = vst [vmem:[#allocation150_spill] sm:$0xff] %v11449_v63  ;;  %v1290_v55 = vld [vmem:[#allocation7 + $0x220] sm:$0xff]  ;;  %v11452_v23 = vcombine.high %v1279_v60, %v1283_v1  ;;  %16015 = vst [vmem:[#allocation152_spill] sm:$0xff] %v11463_v26 }
 0x193   : > { %v11456_v32 = vld [vmem:[#allocation7 + $0x420] sm:$0xff]  ;;  %v11477_v59 = vcombine.high %v1286_v11, %v1290_v55  ;;  %v11483_v44 = vcombine.low %v1286_v11, %v1290_v55 }
 0x194   : > { %16014 = vst [vmem:[#allocation151_spill] sm:$0xff] %v11452_v23  ;;  %v11467_v25 = vcombine.low %v11454_v10, %v11456_v32 }
 0x195   : > { %5255 = vmatpush1.bf16.msra.mxu0 %v11431_v0  ;;  %5419 = vmatpush1.bf16.msra.mxu1 %v11435_v40  ;;  %v1291_v40 = vld [vmem:[#allocation7 + $0x228] sm:$0xff]  ;;  %16019 = vst [vmem:[#allocation156_spill] sm:$0xff] %v11477_v59  ;;  %16021 = vst [vmem:[#allocation158_spill] sm:$0xff] %v11483_v44 }
 0x196   : > { %5256 = vmatprep.subr.bf16.mxu0 %v11437_v33  ;;  %5420 = vmatprep.subr.bf16.mxu1 %v11440_v47  ;;  %v11460_v0 = vld [vmem:[#allocation7 + $0x428] sm:$0xff]  ;;  %16016 = vst [vmem:[#allocation153_spill] sm:$0xff] %v11467_v25  ;;  %v11475_v33 = vcombine.low %v1279_v60, %v1283_v1  ;;  %v11480_v16 = vcombine.high %v1287_v48, %v1291_v40 }
 0x197   : > { %v11471_v47 = vcombine.low %v11458_v4, %v11460_v0  ;;  %v11487_v1 = vcombine.low %v1287_v48, %v1291_v40  ;;  %v11499_v40 = vcombine.low %v1295_v52, %v1299_v51  ;;  %v11504_v48 = vcombine.high %v1303_v43, %v1307_v37 }
 0x198   : > { %16018 = vst [vmem:[#allocation155_spill] sm:$0xff] %v11475_v33  ;;  %16020 = vst [vmem:[#allocation157_spill] sm:$0xff] %v11480_v16 }
 0x199   : > { %5257 = vmatpush1.bf16.msra.mxu0 %v11443_v17  ;;  %16017 = vst [vmem:[#allocation154_spill] sm:$0xff] %v11471_v47  ;;  %5421 = vmatpush1.bf16.msra.mxu1 %v11447_v56  ;;  %v1298_v17 = vld [vmem:[#allocation7 + $0x260] sm:$0xff]  ;;  %16022 = vst [vmem:[#allocation159_spill] sm:$0xff] %v11487_v1 }
 0x19a   : > { %5258 = vmatprep.subr.bf16.mxu0 %v11449_v63  ;;  %5422 = vmatprep.subr.bf16.mxu1 %v11452_v23  ;;  %v11489_v60 = vcombine.high %v1294_v5, %v1298_v17  ;;  %v11492_v23 = vcombine.high %v1295_v52, %v1299_v51  ;;  %v1302_v63 = vld [vmem:[#allocation7 + $0x280] sm:$0xff]  ;;  %v11495_v55 = vcombine.low %v1294_v5, %v1298_v17 }
 0x19b   : > { %v1306_v56 = vld [vmem:[#allocation7 + $0x2a0] sm:$0xff]  ;;  %16026 = vst [vmem:[#allocation163_spill] sm:$0xff] %v11499_v40  ;;  %16028 = vst [vmem:[#allocation165_spill] sm:$0xff] %v11504_v48  ;;  %v11511_v51 = vcombine.low %v1303_v43, %v1307_v37 }
 0x19c   : > { %16023 = vst [vmem:[#allocation160_spill] sm:$0xff] %v11489_v60  ;;  %16024 = vst [vmem:[#allocation161_spill] sm:$0xff] %v11492_v23  ;;  %v11501_v11 = vcombine.high %v1302_v63, %v1306_v56  ;;  %v11507_v17 = vcombine.low %v1302_v63, %v1306_v56 }
 0x19d   : > { %5259 = vmatpush1.bf16.msra.mxu0 %v11463_v26  ;;  %5423 = vmatpush1.bf16.msra.mxu1 %v11475_v33  ;;  %16025 = vst [vmem:[#allocation162_spill] sm:$0xff] %v11495_v55  ;;  %v1311_v33 = vld [vmem:[#allocation7 + $0x2c8] sm:$0xff]  ;;  %16030 = vst [vmem:[#allocation167_spill] sm:$0xff] %v11511_v51 }
 0x19e   : > { %5260 = vmatprep.subr.bf16.mxu0 %v11477_v59  ;;  %5424 = vmatprep.subr.bf16.mxu1 %v11480_v16  ;;  %16027 = vst [vmem:[#allocation164_spill] sm:$0xff] %v11501_v11  ;;  %v1310_v16 = vld [vmem:[#allocation7 + $0x2c0] sm:$0xff]  ;;  %v1315_v26 = vld [vmem:[#allocation7 + $0x2e8] sm:$0xff]  ;;  %16029 = vst [vmem:[#allocation166_spill] sm:$0xff] %v11507_v17 }
 0x19f   : > { %v1314_v59 = vld [vmem:[#allocation7 + $0x2e0] sm:$0xff]  ;;  %v11516_v5 = vcombine.high %v1311_v33, %v1315_v26  ;;  %v11523_v37 = vcombine.low %v1311_v33, %v1315_v26 }
 0x1a0   : > { %v11513_v52 = vcombine.high %v1310_v16, %v1314_v59  ;;  %v11519_v56 = vcombine.low %v1310_v16, %v1314_v59 }
 0x1a1   : > { %5261 = vmatpush1.bf16.msra.mxu0 %v11483_v44  ;;  %5425 = vmatpush1.bf16.msra.mxu1 %v11487_v1  ;;  %16032 = vst [vmem:[#allocation169_spill] sm:$0xff] %v11516_v5  ;;  %v1319_v1 = vld [vmem:[#allocation7 + $0x308] sm:$0xff]  ;;  %16034 = vst [vmem:[#allocation171_spill] sm:$0xff] %v11523_v37 }
 0x1a2   : > { %5262 = vmatprep.subr.bf16.mxu0 %v11489_v60  ;;  %5426 = vmatprep.subr.bf16.mxu1 %v11492_v23  ;;  %16031 = vst [vmem:[#allocation168_spill] sm:$0xff] %v11513_v52  ;;  %v1318_v23 = vld [vmem:[#allocation7 + $0x300] sm:$0xff]  ;;  %v1323_v44 = vld [vmem:[#allocation7 + $0x328] sm:$0xff]  ;;  %16033 = vst [vmem:[#allocation170_spill] sm:$0xff] %v11519_v56 }
 0x1a3   : > { %v1322_v60 = vld [vmem:[#allocation7 + $0x320] sm:$0xff]  ;;  %v11528_v63 = vcombine.high %v1319_v1, %v1323_v44  ;;  %v11535_v33 = vcombine.low %v1319_v1, %v1323_v44 }
 0x1a4   : > { %v11525_v43 = vcombine.high %v1318_v23, %v1322_v60  ;;  %v11531_v59 = vcombine.low %v1318_v23, %v1322_v60 }
 0x1a5   : > { %5263 = vmatpush1.bf16.msra.mxu0 %v11495_v55  ;;  %5427 = vmatpush1.bf16.msra.mxu1 %v11499_v40  ;;  %16036 = vst [vmem:[#allocation173_spill] sm:$0xff] %v11528_v63  ;;  %v1327_v40 = vld [vmem:[#allocation7 + $0x348] sm:$0xff]  ;;  %16038 = vst [vmem:[#allocation175_spill] sm:$0xff] %v11535_v33 }
 0x1a6   : > { %5264 = vmatprep.subr.bf16.mxu0 %v11501_v11  ;;  %5428 = vmatprep.subr.bf16.mxu1 %v11504_v48  ;;  %16035 = vst [vmem:[#allocation172_spill] sm:$0xff] %v11525_v43  ;;  %v1326_v48 = vld [vmem:[#allocation7 + $0x340] sm:$0xff]  ;;  %v1331_v55 = vld [vmem:[#allocation7 + $0x368] sm:$0xff]  ;;  %16037 = vst [vmem:[#allocation174_spill] sm:$0xff] %v11531_v59 }
 0x1a7   : > { %v1330_v11 = vld [vmem:[#allocation7 + $0x360] sm:$0xff]  ;;  %v11540_v16 = vcombine.high %v1327_v40, %v1331_v55  ;;  %v11547_v44 = vcombine.low %v1327_v40, %v1331_v55 }
 0x1a8   : > { %v11537_v26 = vcombine.high %v1326_v48, %v1330_v11  ;;  %v11543_v23 = vcombine.low %v1326_v48, %v1330_v11  ;;  %v1343_v11 = vld [vmem:[#allocation7 + $0x3c8] sm:$0xff] }
 0x1a9   : > { %5265 = vmatpush1.bf16.msra.mxu0 %v11507_v17  ;;  %5429 = vmatpush1.bf16.msra.mxu1 %v11511_v51  ;;  %16040 = vst [vmem:[#allocation177_spill] sm:$0xff] %v11540_v16  ;;  %v1335_v51 = vld [vmem:[#allocation7 + $0x388] sm:$0xff]  ;;  %16042 = vst [vmem:[#allocation179_spill] sm:$0xff] %v11547_v44 }
 0x1aa   : > { %5266 = vmatprep.subr.bf16.mxu0 %v11513_v52  ;;  %5430 = vmatprep.subr.bf16.mxu1 %v11516_v5  ;;  %16039 = vst [vmem:[#allocation176_spill] sm:$0xff] %v11537_v26  ;;  %v1334_v5 = vld [vmem:[#allocation7 + $0x380] sm:$0xff]  ;;  %v1339_v17 = vld [vmem:[#allocation7 + $0x3a8] sm:$0xff]  ;;  %16041 = vst [vmem:[#allocation178_spill] sm:$0xff] %v11543_v23 }
 0x1ab   : > { %v1338_v52 = vld [vmem:[#allocation7 + $0x3a0] sm:$0xff]  ;;  %v1347_v48 = vld [vmem:[#allocation7 + $0x3e8] sm:$0xff] }
 0x1ac   : > { %v11549_v1 = vcombine.high %v1334_v5, %v1338_v52  ;;  %v11557_v55 = vcombine.low %v1334_v5, %v1338_v52  ;;  %v11566_v21 = vcombine.high %v1343_v11, %v1347_v48  ;;  %v11573_v52 = vcombine.low %v1343_v11, %v1347_v48 }
 0x1ad   : > { %5267 = vmatpush1.bf16.msra.mxu0 %v11519_v56  ;;  %5431 = vmatpush1.bf16.msra.mxu1 %v11523_v37  ;;  %v1346_v37 = vld [vmem:[#allocation7 + $0x3e0] sm:$0xff] }
 0x1ae   : > { %5268 = vmatprep.subr.bf16.mxu0 %v11525_v43  ;;  %5432 = vmatprep.subr.bf16.mxu1 %v11528_v63  ;;  %16043 = vst [vmem:[#allocation180_spill] sm:$0xff] %v11549_v1  ;;  %v11552_v63 = vcombine.high %v1335_v51, %v1339_v17  ;;  %v1342_v43 = vld [vmem:[#allocation7 + $0x3c0] sm:$0xff]  ;;  %16045 = vst [vmem:[#allocation182_spill] sm:$0xff] %v11557_v55 }
 0x1af   : > { %v11563_v30 = vcombine.high %v1342_v43, %v1346_v37  ;;  %16048 = vst [vmem:[#allocation185_spill] sm:$0xff] %v11566_v21  ;;  %16050 = vst [vmem:[#allocation187_spill] sm:$0xff] %v11573_v52 }
 0x1b0   : > { %16044 = vst [vmem:[#allocation181_spill] sm:$0xff] %v11552_v63 }
 0x1b1   : > { %5269 = vmatpush1.bf16.msra.mxu0 %v11531_v59  ;;  %5433 = vmatpush1.bf16.msra.mxu1 %v11535_v33  ;;  %16047 = vst [vmem:[#allocation184_spill] sm:$0xff] %v11563_v30 }
 0x1b2   : > { %5270 = vmatprep.subr.bf16.mxu0 %v11537_v26  ;;  %5434 = vmatprep.subr.bf16.mxu1 %v11540_v16  ;;  %v11561_v16 = vcombine.low %v1335_v51, %v1339_v17  ;;  %v11577_v17 = vcombine.high %v11454_v10, %v11456_v32 }
 0x1b3   : > { %v964_v60 = vpop.f32.mrb[0].mxu0  ;;  %v11554_v36 = vpop.f32.mrb[0].mxu1 }
 0x1b4   : > { %v966_v56 = vpop.f32.mrb[1].mxu0  ;;  %v1007_v33 = vpop.f32.mrb[1].mxu1  ;;  %16046 = vst [vmem:[#allocation183_spill] sm:$0xff] %v11561_v16  ;;  %16051 = vst [vmem:[#allocation188_spill] sm:$0xff] %v11577_v17 }
 0x1b5   : > { %v968_v59 = vpop.f32.mrb[2].mxu0  ;;  %5271 = vmatpush1.bf16.msra.mxu0 %v11543_v23  ;;  %v1009_v26 = vpop.f32.mrb[2].mxu1  ;;  %5435 = vmatpush1.bf16.msra.mxu1 %v11547_v44  ;;  %v1358_v44 = vld [vmem:[#allocation7 + $0x440] sm:$0xff] }
 0x1b6   : > { %v969_v40 = vpop.f32.mrb[3].mxu0  ;;  %5272 = vmatprep.subr.bf16.mxu0 %v11549_v1  ;;  %v1010_v29 = vpop.f32.mrb[3].mxu1  ;;  %5436 = vmatprep.subr.bf16.mxu1 %v11552_v63  ;;  %v11569_v59 = vcombine.low %v1342_v43, %v1346_v37  ;;  %v452_v26 = vlaneseq }
 0x1b7   : > { %v11582_v29 = vcombine.high %v11458_v4, %v11460_v0  ;;  %v11601_v40 = vld [vmem:[#allocation6] sm:$0xff] }
 0x1b8   : > { %16049 = vst [vmem:[#allocation186_spill] sm:$0xff] %v11569_v59  ;;  %v11596_v11 = vshrl.u32 %v452_v26, 7 }
 0x1b9   : > { %5273 = vmatpush1.bf16.msra.mxu0 %v11557_v55  ;;  %5437 = vmatpush1.bf16.msra.mxu1 %v11561_v16  ;;  %16052 = vst [vmem:[#allocation189_spill] sm:$0xff] %v11582_v29 }
 0x1ba   : > { %5274 = vmatprep.subr.bf16.mxu0 %v11563_v30  ;;  %5438 = vmatprep.subr.bf16.mxu1 %v11566_v21  ;;  %v11599_v48 = vsub.s32 0, %v11596_v11 }
 0x1bd   : > { %5275 = vmatpush1.bf16.msra.mxu0 %v11569_v59  ;;  %5439 = vmatpush1.bf16.msra.mxu1 %v11573_v52 }
 0x1be   : > { %5285 = vmatprep.subr.bf16.mxu0 %v11577_v17  ;;  %5449 = vmatprep.subr.bf16.mxu1 %v11582_v29  ;;  %v11604_v29 = vsub.s32 1, %v11596_v11  ;;  %v14946_v17 = vsub.s32 3, %v11596_v11 }
 0x1d3   : > { %v11588_v51 = vpop.f32.mrb[4].mxu0  ;;  %v11592_v32 = vpop.f32.mrb[4].mxu1 }
 0x1d4   : > { %v11590_v5 = vpop.f32.mrb[5].mxu0  ;;  %v11594_v37 = vpop.f32.mrb[5].mxu1 }
 0x1d5   : > { %v1050_v10 = vpop.f32.mrb[6].mxu0  ;;  %v1091_v0 = vpop.f32.mrb[6].mxu1 }
 0x1d6   : > { %v1051_v43 = vpop.f32.mrb[7].mxu0  ;;  %v1092_v4 = vpop.f32.mrb[7].mxu1  ;;  %v573_v10 = vrot.slane %v11601_v40, %v11599_v48  ;;  %v585_v0 = vrot.slane %v11601_v40, %v14946_v17 }
 0x1d7   : > { %v577_v43 = vrot.slane %v11601_v40, %v11604_v29 }
 0x1d8   : > { %v11614_v4 = vadd.f32 %v964_v60, %v573_v10  ;;  %v11618_v59 = vadd.f32 %v1007_v33, %v585_v0  ;;  %v1362_v60 = vld [vmem:[#allocation7 + $0x460] sm:$0xff]  ;;  %v1359_v10 = vld [vmem:[#allocation7 + $0x448] sm:$0xff] }
 0x1d9   : > { %v11616_v26 = vadd.f32 %v966_v56, %v577_v43  ;;  %v1363_v56 = vld [vmem:[#allocation7 + $0x468] sm:$0xff] }
 0x1da   : > { %16053 = vst [vmem:[#allocation190_spill] sm:$0xff] %v11614_v4  ;;  %16055 = vst [vmem:[#allocation192_spill] sm:$0xff] %v11618_v59 }
 0x1db   : > { %16054 = vst [vmem:[#allocation191_spill] sm:$0xff] %v11616_v26 }
 0x213   : > { %v2538_v52 = vpop.f32.mrb[8].mxu0  ;;  %v11621_v30 = vpop.f32.mrb[8].mxu1 }
 0x214   : > { %v2668_v21 = vadd.f32 %v2538_v52, %v11614_v4  ;;  %v2540_v16 = vpop.f32.mrb[9].mxu0  ;;  %v2581_v63 = vpop.f32.mrb[9].mxu1  ;;  %v1366_v52 = vld [vmem:[#allocation7 + $0x480] sm:$0xff]  ;;  %v1375_v4 = vld [vmem:[#allocation7 + $0x4c8] sm:$0xff] }
 0x215   : > { %v2669_v55 = vadd.f32 %v2540_v16, %v11616_v26  ;;  %v2542_v1 = vpop.f32.mrb[10].mxu0  ;;  %v2671_v23 = vadd.f32 %v2581_v63, %v11618_v59  ;;  %v2583_v43 = vpop.f32.mrb[10].mxu1  ;;  %v11631_v16 = vcombine.high %v1358_v44, %v1362_v60  ;;  %v1370_v63 = vld [vmem:[#allocation7 + $0x4a0] sm:$0xff]  ;;  %v1371_v59 = vld [vmem:[#allocation7 + $0x4a8] sm:$0xff] }
 0x216   : > { %v2543_v17 = vpop.f32.mrb[11].mxu0  ;;  %v2584_v33 = vpop.f32.mrb[11].mxu1  ;;  %v11627_v0 = vpack.c.bf16 %v2668_v21, %v2668_v21  ;;  %v11633_v1 = vcombine.high %v1359_v10, %v1363_v56  ;;  %v11641_v21 = vcombine.low %v1358_v44, %v1362_v60  ;;  %v11647_v43 = vcombine.high %v1366_v52, %v1370_v63 }
 0x217   : > { %v11625_v20 = vpack.c.bf16 %v2669_v55, %v2669_v55  ;;  %16056 = vst [vmem:[#allocation193_spill] sm:$0xff] %v11631_v16  ;;  %v1367_v17 = vld [vmem:[#allocation7 + $0x488] sm:$0xff]  ;;  %v11635_v26 = vpack.c.bf16 %v2671_v23, %v2671_v23  ;;  %v11643_v55 = vcombine.low %v1359_v10, %v1363_v56  ;;  %v1374_v33 = vld [vmem:[#allocation7 + $0x4c0] sm:$0xff]  ;;  %v11655_v44 = vcombine.low %v1366_v52, %v1370_v63 }
 0x218   : > { %16057 = vst [vmem:[#allocation194_spill] sm:$0xff] %v11633_v1  ;;  %16058 = vst [vmem:[#allocation195_spill] sm:$0xff] %v11641_v21  ;;  %v11649_v23 = vcombine.high %v1367_v17, %v1371_v59  ;;  %v11657_v60 = vcombine.low %v1367_v17, %v1371_v59  ;;  %v11675_v17 = vcombine.high %v1383_v14, %v1387_v13 }
 0x219   : > { %5276 = vmatprep.mubr.bf16.mxu0 %v11625_v20  ;;  %5440 = vmatprep.mubr.bf16.mxu1 %v11625_v20  ;;  %16059 = vst [vmem:[#allocation196_spill] sm:$0xff] %v11643_v55  ;;  %16060 = vst [vmem:[#allocation197_spill] sm:$0xff] %v11647_v43 }
 0x21a   : > { %5277 = vmatmul.mubr.bf16.vlgmr.msra.gmra.mrb[16].mxu0 %v11627_v0  ;;  %5441 = vmatmul.mubr.bf16.vlgmr.msra.gmra.mrb[16].mxu1 %v11627_v0  ;;  %16061 = vst [vmem:[#allocation198_spill] sm:$0xff] %v11649_v23  ;;  %16062 = vst [vmem:[#allocation199_spill] sm:$0xff] %v11655_v44 }
 0x21b   : > { %5286 = vmatpush1.bf16.msra.mxu0 %v11467_v25  ;;  %5450 = vmatpush1.bf16.msra.mxu1 %v11471_v47  ;;  %v1378_v25 = vld [vmem:[#allocation7 + $0x4e0] sm:$0xff]  ;;  %v1379_v47 = vld [vmem:[#allocation7 + $0x4e8] sm:$0xff]  ;;  %16063 = vst [vmem:[#allocation200_spill] sm:$0xff] %v11657_v60  ;;  %16069 = vst [vmem:[#allocation206_spill] sm:$0xff] %v11675_v17 }
 0x21c   : > { %5317 = vmatprep.mubr.bf16.mxu0 %v11635_v26  ;;  %5481 = vmatprep.mubr.bf16.mxu1 %v11635_v26  ;;  %v11661_v10 = vcombine.high %v1374_v33, %v1378_v25  ;;  %v11663_v56 = vcombine.high %v1375_v4, %v1379_v47  ;;  %v11667_v52 = vcombine.low %v1374_v33, %v1378_v25 }
 0x21d   : > { %5287 = vmatprep.subr.bf16.mxu0 %v11631_v16  ;;  %5451 = vmatprep.subr.bf16.mxu1 %v11633_v1  ;;  %v1382_v1 = vld [vmem:[#allocation7 + $0x500] sm:$0xff]  ;;  %v11669_v59 = vcombine.low %v1375_v4, %v1379_v47  ;;  %v11681_v47 = vcombine.low %v1383_v14, %v1387_v13 }
 0x21e   : > { %16064 = vst [vmem:[#allocation201_spill] sm:$0xff] %v11661_v10  ;;  %16065 = vst [vmem:[#allocation202_spill] sm:$0xff] %v11663_v56  ;;  %v1386_v16 = vld [vmem:[#allocation7 + $0x520] sm:$0xff] }
 0x21f   : > { %5288 = vmatpush1.bf16.msra.mxu0 %v11641_v21  ;;  %5452 = vmatpush1.bf16.msra.mxu1 %v11643_v55  ;;  %16066 = vst [vmem:[#allocation203_spill] sm:$0xff] %v11667_v52  ;;  %16067 = vst [vmem:[#allocation204_spill] sm:$0xff] %v11669_v59  ;;  %v11673_v63 = vcombine.high %v1382_v1, %v1386_v16  ;;  %v1391_v55 = vld [vmem:[#allocation7 + $0x548] sm:$0xff]  ;;  %v11679_v25 = vcombine.low %v1382_v1, %v1386_v16 }
 0x220   : > { %5289 = vmatprep.subr.bf16.mxu0 %v11647_v43  ;;  %5453 = vmatprep.subr.bf16.mxu1 %v11649_v23  ;;  %v1390_v23 = vld [vmem:[#allocation7 + $0x540] sm:$0xff]  ;;  %v1395_v21 = vld [vmem:[#allocation7 + $0x568] sm:$0xff]  ;;  %16071 = vst [vmem:[#allocation208_spill] sm:$0xff] %v11681_v47 }
 0x221   : > { %16068 = vst [vmem:[#allocation205_spill] sm:$0xff] %v11673_v63  ;;  %v1394_v43 = vld [vmem:[#allocation7 + $0x560] sm:$0xff]  ;;  %16070 = vst [vmem:[#allocation207_spill] sm:$0xff] %v11679_v25  ;;  %v11687_v33 = vcombine.high %v1391_v55, %v1395_v21  ;;  %v11693_v13 = vcombine.low %v1391_v55, %v1395_v21 }
 0x222   : > { %v11685_v4 = vcombine.high %v1390_v23, %v1394_v43  ;;  %v11691_v16 = vcombine.low %v1390_v23, %v1394_v43 }
 0x223   : > { %5290 = vmatpush1.bf16.msra.mxu0 %v11655_v44  ;;  %5454 = vmatpush1.bf16.msra.mxu1 %v11657_v60  ;;  %16073 = vst [vmem:[#allocation210_spill] sm:$0xff] %v11687_v33  ;;  %v1399_v60 = vld [vmem:[#allocation7 + $0x588] sm:$0xff]  ;;  %16075 = vst [vmem:[#allocation212_spill] sm:$0xff] %v11693_v13 }
 0x224   : > { %5291 = vmatprep.subr.bf16.mxu0 %v11661_v10  ;;  %5455 = vmatprep.subr.bf16.mxu1 %v11663_v56  ;;  %16072 = vst [vmem:[#allocation209_spill] sm:$0xff] %v11685_v4  ;;  %v1398_v56 = vld [vmem:[#allocation7 + $0x580] sm:$0xff]  ;;  %v1403_v44 = vld [vmem:[#allocation7 + $0x5a8] sm:$0xff]  ;;  %16074 = vst [vmem:[#allocation211_spill] sm:$0xff] %v11691_v16 }
 0x225   : > { %v1402_v10 = vld [vmem:[#allocation7 + $0x5a0] sm:$0xff]  ;;  %v11699_v1 = vcombine.high %v1399_v60, %v1403_v44  ;;  %v11705_v21 = vcombine.low %v1399_v60, %v1403_v44 }
 0x226   : > { %v11697_v14 = vcombine.high %v1398_v56, %v1402_v10  ;;  %v11703_v43 = vcombine.low %v1398_v56, %v1402_v10 }
 0x227   : > { %5292 = vmatpush1.bf16.msra.mxu0 %v11667_v52  ;;  %5456 = vmatpush1.bf16.msra.mxu1 %v11669_v59  ;;  %16077 = vst [vmem:[#allocation214_spill] sm:$0xff] %v11699_v1  ;;  %v1407_v59 = vld [vmem:[#allocation7 + $0x5c8] sm:$0xff]  ;;  %16079 = vst [vmem:[#allocation216_spill] sm:$0xff] %v11705_v21 }
 0x228   : > { %5293 = vmatprep.subr.bf16.mxu0 %v11673_v63  ;;  %5457 = vmatprep.subr.bf16.mxu1 %v11675_v17  ;;  %16076 = vst [vmem:[#allocation213_spill] sm:$0xff] %v11697_v14  ;;  %v1406_v17 = vld [vmem:[#allocation7 + $0x5c0] sm:$0xff]  ;;  %v1411_v52 = vld [vmem:[#allocation7 + $0x5e8] sm:$0xff]  ;;  %16078 = vst [vmem:[#allocation215_spill] sm:$0xff] %v11703_v43 }
 0x229   : > { %v1410_v63 = vld [vmem:[#allocation7 + $0x5e0] sm:$0xff]  ;;  %v11711_v23 = vcombine.high %v1407_v59, %v1411_v52  ;;  %v11717_v44 = vcombine.low %v1407_v59, %v1411_v52 }
 0x22a   : > { %v11709_v55 = vcombine.high %v1406_v17, %v1410_v63  ;;  %v11715_v10 = vcombine.low %v1406_v17, %v1410_v63 }
 0x22b   : > { %5294 = vmatpush1.bf16.msra.mxu0 %v11679_v25  ;;  %5458 = vmatpush1.bf16.msra.mxu1 %v11681_v47  ;;  %16081 = vst [vmem:[#allocation218_spill] sm:$0xff] %v11711_v23  ;;  %v1415_v47 = vld [vmem:[#allocation7 + $0x608] sm:$0xff]  ;;  %16083 = vst [vmem:[#allocation220_spill] sm:$0xff] %v11717_v44 }
 0x22c   : > { %5295 = vmatprep.subr.bf16.mxu0 %v11685_v4  ;;  %5459 = vmatprep.subr.bf16.mxu1 %v11687_v33  ;;  %16080 = vst [vmem:[#allocation217_spill] sm:$0xff] %v11709_v55  ;;  %v1414_v33 = vld [vmem:[#allocation7 + $0x600] sm:$0xff]  ;;  %v1419_v25 = vld [vmem:[#allocation7 + $0x628] sm:$0xff]  ;;  %16082 = vst [vmem:[#allocation219_spill] sm:$0xff] %v11715_v10 }
 0x22d   : > { %v1418_v4 = vld [vmem:[#allocation7 + $0x620] sm:$0xff]  ;;  %v11723_v56 = vcombine.high %v1415_v47, %v1419_v25  ;;  %v11729_v52 = vcombine.low %v1415_v47, %v1419_v25 }
 0x22e   : > { %v11721_v60 = vcombine.high %v1414_v33, %v1418_v4  ;;  %v11727_v63 = vcombine.low %v1414_v33, %v1418_v4 }
 0x22f   : > { %5296 = vmatpush1.bf16.msra.mxu0 %v11691_v16  ;;  %5460 = vmatpush1.bf16.msra.mxu1 %v11693_v13  ;;  %16085 = vst [vmem:[#allocation222_spill] sm:$0xff] %v11723_v56  ;;  %v1423_v13 = vld [vmem:[#allocation7 + $0x648] sm:$0xff]  ;;  %16087 = vst [vmem:[#allocation224_spill] sm:$0xff] %v11729_v52 }
 0x230   : > { %5297 = vmatprep.subr.bf16.mxu0 %v11697_v14  ;;  %5461 = vmatprep.subr.bf16.mxu1 %v11699_v1  ;;  %16084 = vst [vmem:[#allocation221_spill] sm:$0xff] %v11721_v60  ;;  %v1422_v1 = vld [vmem:[#allocation7 + $0x640] sm:$0xff]  ;;  %v1427_v16 = vld [vmem:[#allocation7 + $0x668] sm:$0xff]  ;;  %16086 = vst [vmem:[#allocation223_spill] sm:$0xff] %v11727_v63 }
 0x231   : > { %v1426_v14 = vld [vmem:[#allocation7 + $0x660] sm:$0xff]  ;;  %v11735_v17 = vcombine.high %v1423_v13, %v1427_v16  ;;  %v11741_v25 = vcombine.low %v1423_v13, %v1427_v16 }
 0x232   : > { %v11733_v59 = vcombine.high %v1422_v1, %v1426_v14  ;;  %v11739_v4 = vcombine.low %v1422_v1, %v1426_v14 }
 0x233   : > { %5298 = vmatpush1.bf16.msra.mxu0 %v11703_v43  ;;  %5462 = vmatpush1.bf16.msra.mxu1 %v11705_v21  ;;  %16089 = vst [vmem:[#allocation226_spill] sm:$0xff] %v11735_v17  ;;  %v1431_v21 = vld [vmem:[#allocation7 + $0x688] sm:$0xff]  ;;  %16091 = vst [vmem:[#allocation228_spill] sm:$0xff] %v11741_v25 }
 0x234   : > { %5299 = vmatprep.subr.bf16.mxu0 %v11709_v55  ;;  %5463 = vmatprep.subr.bf16.mxu1 %v11711_v23  ;;  %16088 = vst [vmem:[#allocation225_spill] sm:$0xff] %v11733_v59  ;;  %v1430_v23 = vld [vmem:[#allocation7 + $0x680] sm:$0xff]  ;;  %v1435_v43 = vld [vmem:[#allocation7 + $0x6a8] sm:$0xff]  ;;  %16090 = vst [vmem:[#allocation227_spill] sm:$0xff] %v11739_v4 }
 0x235   : > { %v1434_v55 = vld [vmem:[#allocation7 + $0x6a0] sm:$0xff]  ;;  %v11747_v33 = vcombine.high %v1431_v21, %v1435_v43  ;;  %v11753_v16 = vcombine.low %v1431_v21, %v1435_v43 }
 0x236   : > { %v11745_v47 = vcombine.high %v1430_v23, %v1434_v55  ;;  %v11751_v14 = vcombine.low %v1430_v23, %v1434_v55 }
 0x237   : > { %5300 = vmatpush1.bf16.msra.mxu0 %v11715_v10  ;;  %5464 = vmatpush1.bf16.msra.mxu1 %v11717_v44  ;;  %16093 = vst [vmem:[#allocation230_spill] sm:$0xff] %v11747_v33  ;;  %v1439_v44 = vld [vmem:[#allocation7 + $0x6c8] sm:$0xff]  ;;  %16095 = vst [vmem:[#allocation232_spill] sm:$0xff] %v11753_v16 }
 0x238   : > { %5301 = vmatprep.subr.bf16.mxu0 %v11721_v60  ;;  %5465 = vmatprep.subr.bf16.mxu1 %v11723_v56  ;;  %16092 = vst [vmem:[#allocation229_spill] sm:$0xff] %v11745_v47  ;;  %v1438_v56 = vld [vmem:[#allocation7 + $0x6c0] sm:$0xff]  ;;  %v1443_v10 = vld [vmem:[#allocation7 + $0x6e8] sm:$0xff]  ;;  %16094 = vst [vmem:[#allocation231_spill] sm:$0xff] %v11751_v14 }
 0x239   : > { %v1442_v60 = vld [vmem:[#allocation7 + $0x6e0] sm:$0xff]  ;;  %v11759_v1 = vcombine.high %v1439_v44, %v1443_v10  ;;  %v11765_v43 = vcombine.low %v1439_v44, %v1443_v10 }
 0x23a   : > { %v11757_v13 = vcombine.high %v1438_v56, %v1442_v60  ;;  %v11763_v55 = vcombine.low %v1438_v56, %v1442_v60 }
 0x23b   : > { %5302 = vmatpush1.bf16.msra.mxu0 %v11727_v63  ;;  %5466 = vmatpush1.bf16.msra.mxu1 %v11729_v52  ;;  %16097 = vst [vmem:[#allocation234_spill] sm:$0xff] %v11759_v1  ;;  %v1447_v52 = vld [vmem:[#allocation7 + $0x708] sm:$0xff]  ;;  %16099 = vst [vmem:[#allocation236_spill] sm:$0xff] %v11765_v43 }
 0x23c   : > { %5303 = vmatprep.subr.bf16.mxu0 %v11733_v59  ;;  %5467 = vmatprep.subr.bf16.mxu1 %v11735_v17  ;;  %16096 = vst [vmem:[#allocation233_spill] sm:$0xff] %v11757_v13  ;;  %v1446_v17 = vld [vmem:[#allocation7 + $0x700] sm:$0xff]  ;;  %v1451_v63 = vld [vmem:[#allocation7 + $0x728] sm:$0xff]  ;;  %16098 = vst [vmem:[#allocation235_spill] sm:$0xff] %v11763_v55 }
 0x23d   : > { %v1450_v59 = vld [vmem:[#allocation7 + $0x720] sm:$0xff]  ;;  %v11771_v23 = vcombine.high %v1447_v52, %v1451_v63  ;;  %v11777_v10 = vcombine.low %v1447_v52, %v1451_v63 }
 0x23e   : > { %v11769_v21 = vcombine.high %v1446_v17, %v1450_v59  ;;  %v11775_v60 = vcombine.low %v1446_v17, %v1450_v59 }
 0x23f   : > { %5304 = vmatpush1.bf16.msra.mxu0 %v11739_v4  ;;  %5468 = vmatpush1.bf16.msra.mxu1 %v11741_v25  ;;  %16101 = vst [vmem:[#allocation238_spill] sm:$0xff] %v11771_v23  ;;  %v1455_v25 = vld [vmem:[#allocation7 + $0x748] sm:$0xff]  ;;  %16103 = vst [vmem:[#allocation240_spill] sm:$0xff] %v11777_v10 }
 0x240   : > { %5305 = vmatprep.subr.bf16.mxu0 %v11745_v47  ;;  %5469 = vmatprep.subr.bf16.mxu1 %v11747_v33  ;;  %16100 = vst [vmem:[#allocation237_spill] sm:$0xff] %v11769_v21  ;;  %v1454_v33 = vld [vmem:[#allocation7 + $0x740] sm:$0xff]  ;;  %v1459_v4 = vld [vmem:[#allocation7 + $0x768] sm:$0xff]  ;;  %16102 = vst [vmem:[#allocation239_spill] sm:$0xff] %v11775_v60 }
 0x241   : > { %v1458_v47 = vld [vmem:[#allocation7 + $0x760] sm:$0xff]  ;;  %v11783_v56 = vcombine.high %v1455_v25, %v1459_v4  ;;  %v11791_v52 = vcombine.low %v1455_v25, %v1459_v4 }
 0x242   : > { %v11781_v44 = vcombine.high %v1454_v33, %v1458_v47  ;;  %v11789_v63 = vcombine.low %v1454_v33, %v1458_v47  ;;  %v16111_v47 = vsub.s32 5, %v11596_v11 }
 0x243   : > { %5306 = vmatpush1.bf16.msra.mxu0 %v11751_v14  ;;  %5470 = vmatpush1.bf16.msra.mxu1 %v11753_v16  ;;  %16105 = vst [vmem:[#allocation242_spill] sm:$0xff] %v11783_v56  ;;  %v1463_v16 = vld [vmem:[#allocation7 + $0x788] sm:$0xff]  ;;  %16107 = vst [vmem:[#allocation244_spill] sm:$0xff] %v11791_v52 }
 0x244   : > { %5307 = vmatprep.subr.bf16.mxu0 %v11757_v13  ;;  %5471 = vmatprep.subr.bf16.mxu1 %v11759_v1  ;;  %16104 = vst [vmem:[#allocation241_spill] sm:$0xff] %v11781_v44  ;;  %v1462_v1 = vld [vmem:[#allocation7 + $0x780] sm:$0xff]  ;;  %v1467_v14 = vld [vmem:[#allocation7 + $0x7a8] sm:$0xff]  ;;  %16106 = vst [vmem:[#allocation243_spill] sm:$0xff] %v11789_v63  ;;  %v593_v4 = vrot.slane %v11601_v40, %v16111_v47 }
 0x245   : > { %v1466_v13 = vld [vmem:[#allocation7 + $0x7a0] sm:$0xff]  ;;  %v11797_v17 = vcombine.high %v1463_v16, %v1467_v14  ;;  %v11809_v33 = vcombine.low %v1463_v16, %v1467_v14  ;;  %v1483_v47 = vld [vmem:[#allocation7 + $0x828] sm:$0xff] }
 0x246   : > { %v11795_v59 = vcombine.high %v1462_v1, %v1466_v13  ;;  %v11807_v25 = vcombine.low %v1462_v1, %v1466_v13  ;;  %v11821_v13 = vadd.f32 %v11590_v5, %v593_v4 }
 0x247   : > { %5308 = vmatpush1.bf16.msra.mxu0 %v11763_v55  ;;  %5472 = vmatpush1.bf16.msra.mxu1 %v11765_v43  ;;  %16109 = vst [vmem:[#allocation246_spill] sm:$0xff] %v11797_v17  ;;  %v1474_v55 = vld [vmem:[#allocation7 + $0x7e0] sm:$0xff]  ;;  %v1475_v43 = vld [vmem:[#allocation7 + $0x7e8] sm:$0xff]  ;;  %16113 = vst [vmem:[#allocation248_spill] sm:$0xff] %v11809_v33 }
 0x248   : > { %5309 = vmatprep.subr.bf16.mxu0 %v11769_v21  ;;  %5473 = vmatprep.subr.bf16.mxu1 %v11771_v23  ;;  %16108 = vst [vmem:[#allocation245_spill] sm:$0xff] %v11795_v59  ;;  %v1470_v23 = vld [vmem:[#allocation7 + $0x7c0] sm:$0xff]  ;;  %v1471_v21 = vld [vmem:[#allocation7 + $0x7c8] sm:$0xff]  ;;  %16112 = vst [vmem:[#allocation247_spill] sm:$0xff] %v11807_v25 }
 0x249   : > { %16117 = vst [vmem:[#allocation252_spill] sm:$0xff] %v11821_v13  ;;  %v11827_v16 = vcombine.low %v1470_v23, %v1474_v55  ;;  %v11829_v1 = vcombine.low %v1471_v21, %v1475_v43 }
 0x24b   : > { %5310 = vmatpush1.bf16.msra.mxu0 %v11775_v60  ;;  %5474 = vmatpush1.bf16.msra.mxu1 %v11777_v10  ;;  %v16110_v60 = vsub.s32 2, %v11596_v11  ;;  %16118 = vst [vmem:[#allocation253_spill] sm:$0xff] %v11827_v16  ;;  %16119 = vst [vmem:[#allocation254_spill] sm:$0xff] %v11829_v1 }
 0x24c   : > { %5311 = vmatprep.subr.bf16.mxu0 %v11781_v44  ;;  %5475 = vmatprep.subr.bf16.mxu1 %v11783_v56  ;;  %v11813_v56 = vcombine.high %v1470_v23, %v1474_v55  ;;  %v11815_v44 = vcombine.high %v1471_v21, %v1475_v43  ;;  %v1486_v43 = vld [vmem:[#allocation7 + $0x840] sm:$0xff] }
 0x24d   : > { %v581_v10 = vrot.slane %v11601_v40, %v16110_v60  ;;  %v1478_v60 = vld [vmem:[#allocation7 + $0x800] sm:$0xff] }
 0x24e   : > { %16114 = vst [vmem:[#allocation249_spill] sm:$0xff] %v11813_v56  ;;  %16115 = vst [vmem:[#allocation250_spill] sm:$0xff] %v11815_v44  ;;  %v11837_v5 = vcombine.high %v1478_v60, %v1482_v9  ;;  %v1490_v23 = vld [vmem:[#allocation7 + $0x860] sm:$0xff] }
 0x24f   : > { %5312 = vmatpush1.bf16.msra.mxu0 %v11789_v63  ;;  %5476 = vmatpush1.bf16.msra.mxu1 %v11791_v52  ;;  %v11818_v63 = vadd.f32 %v11554_v36, %v581_v10  ;;  %v11839_v10 = vcombine.high %v1479_v6, %v1483_v47 }
 0x250   : > { %5313 = vmatprep.subr.bf16.mxu0 %v11795_v59  ;;  %5477 = vmatprep.subr.bf16.mxu1 %v11797_v17  ;;  %16120 = vst [vmem:[#allocation255_spill] sm:$0xff] %v11837_v5 }
 0x251   : > { %16116 = vst [vmem:[#allocation251_spill] sm:$0xff] %v11818_v63  ;;  %v2670_v17 = vadd.f32 %v11621_v30, %v11818_v63  ;;  %16121 = vst [vmem:[#allocation256_spill] sm:$0xff] %v11839_v10  ;;  %v1491_v30 = vld [vmem:[#allocation7 + $0x868] sm:$0xff] }
 0x253   : > { %5314 = vmatpush1.bf16.msra.mxu0 %v11807_v25  ;;  %5478 = vmatpush1.bf16.msra.mxu1 %v11809_v33  ;;  %v11825_v14 = vpop.f32.mrb[12].mxu0  ;;  %v11833_v59 = vpop.f32.mrb[12].mxu1  ;;  %v1487_v33 = vld [vmem:[#allocation7 + $0x848] sm:$0xff]  ;;  %v11850_v3 = vpack.c.bf16 %v2670_v17, %v2670_v17 }
 0x254   : > { %v2622_v36 = vpop.f32.mrb[13].mxu0  ;;  %5315 = vmatprep.subr.bf16.mxu0 %v11813_v56  ;;  %5479 = vmatprep.subr.bf16.mxu1 %v11815_v44  ;;  %v11842_v55 = vpop.f32.mrb[13].mxu1  ;;  %v11848_v44 = vcombine.low %v1478_v60, %v1482_v9  ;;  %v1495_v9 = vld [vmem:[#allocation7 + $0x888] sm:$0xff]  ;;  %v11868_v17 = vcombine.low %v1487_v33, %v1491_v30 }
 0x255   : > { %v2673_v4 = vadd.f32 %v2622_v36, %v11821_v13  ;;  %v2624_v21 = vpop.f32.mrb[14].mxu0  ;;  %v2665_v25 = vpop.f32.mrb[14].mxu1  ;;  %v11853_v36 = vcombine.low %v1479_v6, %v1483_v47  ;;  %v11864_v6 = vcombine.low %v1486_v43, %v1490_v23  ;;  %v1610_v13 = vld [vmem:[#allocation7 + $0xc20] sm:$0xff] }
 0x256   : > { %v2625_v63 = vpop.f32.mrb[15].mxu0  ;;  %16122 = vst [vmem:[#allocation257_spill] sm:$0xff] %v11848_v44  ;;  %v2666_v56 = vpop.f32.mrb[15].mxu1  ;;  %v11856_v21 = vcombine.high %v1486_v43, %v1490_v23  ;;  %v1494_v25 = vld [vmem:[#allocation7 + $0x880] sm:$0xff]  ;;  %16127 = vst [vmem:[#allocation262_spill] sm:$0xff] %v11868_v17 }
 0x257   : > { %v11844_v52 = vpack.c.bf16 %v2673_v4, %v2673_v4  ;;  %5316 = vmatpush1.bf16.msra.mxu0 %v11827_v16  ;;  %5480 = vmatpush1.bf16.msra.mxu1 %v11829_v1  ;;  %16123 = vst [vmem:[#allocation258_spill] sm:$0xff] %v11853_v36  ;;  %v11858_v63 = vcombine.high %v1487_v33, %v1491_v30  ;;  %v1498_v4 = vld [vmem:[#allocation7 + $0x8a0] sm:$0xff]  ;;  %v1499_v56 = vld [vmem:[#allocation7 + $0x8a8] sm:$0xff]  ;;  %16126 = vst [vmem:[#allocation261_spill] sm:$0xff] %v11864_v6 }
 0x258   : > { %5326 = vmatprep.subr.bf16.mxu0 %v11837_v5  ;;  %5490 = vmatprep.subr.bf16.mxu1 %v11839_v10  ;;  %16124 = vst [vmem:[#allocation259_spill] sm:$0xff] %v11856_v21  ;;  %v11870_v60 = vcombine.high %v1494_v25, %v1498_v4  ;;  %v11874_v47 = vcombine.high %v1495_v9, %v1499_v56  ;;  %v1502_v10 = vld [vmem:[#allocation7 + $0x8c0] sm:$0xff]  ;;  %v1503_v5 = vld [vmem:[#allocation7 + $0x8c8] sm:$0xff] }
 0x259   : > { %16125 = vst [vmem:[#allocation260_spill] sm:$0xff] %v11858_v63  ;;  %v1507_v1 = vld [vmem:[#allocation7 + $0x8e8] sm:$0xff]  ;;  %v11877_v43 = vcombine.low %v1494_v25, %v1498_v4  ;;  %v11881_v33 = vcombine.low %v1495_v9, %v1499_v56 }
 0x25a   : > { %5318 = vmatmul.mubr.bf16.vlgmr.msra.gmra.mrb[16].mxu0 %v11850_v3  ;;  %5482 = vmatmul.mubr.bf16.vlgmr.msra.gmra.mrb[16].mxu1 %v11850_v3  ;;  %16128 = vst [vmem:[#allocation263_spill] sm:$0xff] %v11870_v60  ;;  %16129 = vst [vmem:[#allocation264_spill] sm:$0xff] %v11874_v47  ;;  %v11886_v30 = vcombine.high %v1503_v5, %v1507_v1  ;;  %v1515_v16 = vld [vmem:[#allocation7 + $0x928] sm:$0xff]  ;;  %v11893_v4 = vcombine.low %v1503_v5, %v1507_v1 }
 0x25b   : > { %5327 = vmatpush1.bf16.msra.mxu0 %v11848_v44  ;;  %5358 = vmatprep.mubr.bf16.mxu0 %v11844_v52  ;;  %v1506_v44 = vld [vmem:[#allocation7 + $0x8e0] sm:$0xff]  ;;  %16130 = vst [vmem:[#allocation265_spill] sm:$0xff] %v11877_v43  ;;  %16131 = vst [vmem:[#allocation266_spill] sm:$0xff] %v11881_v33 }
 0x25c   : > { %5491 = vmatpush1.bf16.msra.mxu1 %v11853_v36  ;;  %5522 = vmatprep.mubr.bf16.mxu1 %v11844_v52  ;;  %v11883_v23 = vcombine.high %v1502_v10, %v1506_v44  ;;  %16133 = vst [vmem:[#allocation268_spill] sm:$0xff] %v11886_v30  ;;  %v1511_v36 = vld [vmem:[#allocation7 + $0x908] sm:$0xff]  ;;  %v11889_v25 = vcombine.low %v1502_v10, %v1506_v44  ;;  %16135 = vst [vmem:[#allocation270_spill] sm:$0xff] %v11893_v4 }
 0x25d   : > { %5328 = vmatprep.subr.bf16.mxu0 %v11856_v21  ;;  %5492 = vmatprep.subr.bf16.mxu1 %v11858_v63  ;;  %v1510_v63 = vld [vmem:[#allocation7 + $0x900] sm:$0xff]  ;;  %v11898_v56 = vcombine.high %v1511_v36, %v1515_v16  ;;  %v11905_v1 = vcombine.low %v1511_v36, %v1515_v16 }
 0x25e   : > { %16132 = vst [vmem:[#allocation267_spill] sm:$0xff] %v11883_v23  ;;  %v1514_v21 = vld [vmem:[#allocation7 + $0x920] sm:$0xff]  ;;  %16134 = vst [vmem:[#allocation269_spill] sm:$0xff] %v11889_v25 }
 0x25f   : > { %5329 = vmatpush1.bf16.msra.mxu0 %v11864_v6  ;;  %v11895_v9 = vcombine.high %v1510_v63, %v1514_v21  ;;  %16137 = vst [vmem:[#allocation272_spill] sm:$0xff] %v11898_v56  ;;  %v1523_v6 = vld [vmem:[#allocation7 + $0x968] sm:$0xff]  ;;  %v11901_v44 = vcombine.low %v1510_v63, %v1514_v21  ;;  %16139 = vst [vmem:[#allocation274_spill] sm:$0xff] %v11905_v1 }
 0x260   : > { %5493 = vmatpush1.bf16.msra.mxu1 %v11868_v17  ;;  %5330 = vmatprep.subr.bf16.mxu0 %v11870_v60  ;;  %v1522_v60 = vld [vmem:[#allocation7 + $0x960] sm:$0xff]  ;;  %v1519_v17 = vld [vmem:[#allocation7 + $0x948] sm:$0xff] }
 0x261   : > { %5494 = vmatprep.subr.bf16.mxu1 %v11874_v47  ;;  %16136 = vst [vmem:[#allocation271_spill] sm:$0xff] %v11895_v9  ;;  %v1518_v47 = vld [vmem:[#allocation7 + $0x940] sm:$0xff]  ;;  %16138 = vst [vmem:[#allocation273_spill] sm:$0xff] %v11901_v44  ;;  %v11910_v10 = vcombine.high %v1519_v17, %v1523_v6  ;;  %v11917_v16 = vcombine.low %v1519_v17, %v1523_v6 }
 0x262   : > { %v11907_v5 = vcombine.high %v1518_v47, %v1522_v60  ;;  %v11913_v21 = vcombine.low %v1518_v47, %v1522_v60 }
 0x263   : > { %5331 = vmatpush1.bf16.msra.mxu0 %v11877_v43  ;;  %16141 = vst [vmem:[#allocation276_spill] sm:$0xff] %v11910_v10  ;;  %v1531_v43 = vld [vmem:[#allocation7 + $0x9a8] sm:$0xff]  ;;  %16143 = vst [vmem:[#allocation278_spill] sm:$0xff] %v11917_v16 }
 0x264   : > { %5495 = vmatpush1.bf16.msra.mxu1 %v11881_v33  ;;  %5332 = vmatprep.subr.bf16.mxu0 %v11883_v23  ;;  %16140 = vst [vmem:[#allocation275_spill] sm:$0xff] %v11907_v5  ;;  %v1530_v23 = vld [vmem:[#allocation7 + $0x9a0] sm:$0xff]  ;;  %v1527_v33 = vld [vmem:[#allocation7 + $0x988] sm:$0xff]  ;;  %16142 = vst [vmem:[#allocation277_spill] sm:$0xff] %v11913_v21 }
 0x265   : > { %5496 = vmatprep.subr.bf16.mxu1 %v11886_v30  ;;  %v1526_v30 = vld [vmem:[#allocation7 + $0x980] sm:$0xff]  ;;  %v11922_v63 = vcombine.high %v1527_v33, %v1531_v43  ;;  %v11929_v6 = vcombine.low %v1527_v33, %v1531_v43 }
 0x266   : > { %v11919_v36 = vcombine.high %v1526_v30, %v1530_v23  ;;  %v11925_v60 = vcombine.low %v1526_v30, %v1530_v23 }
 0x267   : > { %5333 = vmatpush1.bf16.msra.mxu0 %v11889_v25  ;;  %16145 = vst [vmem:[#allocation280_spill] sm:$0xff] %v11922_v63  ;;  %v1539_v25 = vld [vmem:[#allocation7 + $0x9e8] sm:$0xff]  ;;  %16147 = vst [vmem:[#allocation282_spill] sm:$0xff] %v11929_v6 }
 0x268   : > { %5497 = vmatpush1.bf16.msra.mxu1 %v11893_v4  ;;  %5334 = vmatprep.subr.bf16.mxu0 %v11895_v9  ;;  %16144 = vst [vmem:[#allocation279_spill] sm:$0xff] %v11919_v36  ;;  %v1538_v9 = vld [vmem:[#allocation7 + $0x9e0] sm:$0xff]  ;;  %v1535_v4 = vld [vmem:[#allocation7 + $0x9c8] sm:$0xff]  ;;  %16146 = vst [vmem:[#allocation281_spill] sm:$0xff] %v11925_v60 }
 0x269   : > { %5498 = vmatprep.subr.bf16.mxu1 %v11898_v56  ;;  %v1534_v56 = vld [vmem:[#allocation7 + $0x9c0] sm:$0xff]  ;;  %v11934_v47 = vcombine.high %v1535_v4, %v1539_v25  ;;  %v11941_v43 = vcombine.low %v1535_v4, %v1539_v25 }
 0x26a   : > { %v11931_v17 = vcombine.high %v1534_v56, %v1538_v9  ;;  %v11937_v23 = vcombine.low %v1534_v56, %v1538_v9 }
 0x26b   : > { %5335 = vmatpush1.bf16.msra.mxu0 %v11901_v44  ;;  %16149 = vst [vmem:[#allocation284_spill] sm:$0xff] %v11934_v47  ;;  %v1547_v44 = vld [vmem:[#allocation7 + $0xa28] sm:$0xff]  ;;  %16151 = vst [vmem:[#allocation286_spill] sm:$0xff] %v11941_v43 }
 0x26c   : > { %5499 = vmatpush1.bf16.msra.mxu1 %v11905_v1  ;;  %5336 = vmatprep.subr.bf16.mxu0 %v11907_v5  ;;  %16148 = vst [vmem:[#allocation283_spill] sm:$0xff] %v11931_v17  ;;  %v1546_v5 = vld [vmem:[#allocation7 + $0xa20] sm:$0xff]  ;;  %v1543_v1 = vld [vmem:[#allocation7 + $0xa08] sm:$0xff]  ;;  %16150 = vst [vmem:[#allocation285_spill] sm:$0xff] %v11937_v23 }
 0x26d   : > { %5500 = vmatprep.subr.bf16.mxu1 %v11910_v10  ;;  %v1542_v10 = vld [vmem:[#allocation7 + $0xa00] sm:$0xff]  ;;  %v11946_v30 = vcombine.high %v1543_v1, %v1547_v44  ;;  %v11953_v25 = vcombine.low %v1543_v1, %v1547_v44 }
 0x26e   : > { %v11943_v33 = vcombine.high %v1542_v10, %v1546_v5  ;;  %v11949_v9 = vcombine.low %v1542_v10, %v1546_v5 }
 0x26f   : > { %5337 = vmatpush1.bf16.msra.mxu0 %v11913_v21  ;;  %16153 = vst [vmem:[#allocation288_spill] sm:$0xff] %v11946_v30  ;;  %v1555_v21 = vld [vmem:[#allocation7 + $0xa68] sm:$0xff]  ;;  %16155 = vst [vmem:[#allocation290_spill] sm:$0xff] %v11953_v25 }
 0x270   : > { %5501 = vmatpush1.bf16.msra.mxu1 %v11917_v16  ;;  %5338 = vmatprep.subr.bf16.mxu0 %v11919_v36  ;;  %16152 = vst [vmem:[#allocation287_spill] sm:$0xff] %v11943_v33  ;;  %v1554_v36 = vld [vmem:[#allocation7 + $0xa60] sm:$0xff]  ;;  %v1551_v16 = vld [vmem:[#allocation7 + $0xa48] sm:$0xff]  ;;  %16154 = vst [vmem:[#allocation289_spill] sm:$0xff] %v11949_v9 }
 0x271   : > { %5502 = vmatprep.subr.bf16.mxu1 %v11922_v63  ;;  %v1550_v63 = vld [vmem:[#allocation7 + $0xa40] sm:$0xff]  ;;  %v11958_v56 = vcombine.high %v1551_v16, %v1555_v21  ;;  %v11965_v44 = vcombine.low %v1551_v16, %v1555_v21 }
 0x272   : > { %v11955_v4 = vcombine.high %v1550_v63, %v1554_v36  ;;  %v11961_v5 = vcombine.low %v1550_v63, %v1554_v36 }
 0x273   : > { %5339 = vmatpush1.bf16.msra.mxu0 %v11925_v60  ;;  %16157 = vst [vmem:[#allocation292_spill] sm:$0xff] %v11958_v56  ;;  %v1563_v60 = vld [vmem:[#allocation7 + $0xaa8] sm:$0xff]  ;;  %16159 = vst [vmem:[#allocation294_spill] sm:$0xff] %v11965_v44 }
 0x274   : > { %5503 = vmatpush1.bf16.msra.mxu1 %v11929_v6  ;;  %5340 = vmatprep.subr.bf16.mxu0 %v11931_v17  ;;  %16156 = vst [vmem:[#allocation291_spill] sm:$0xff] %v11955_v4  ;;  %v1562_v17 = vld [vmem:[#allocation7 + $0xaa0] sm:$0xff]  ;;  %v1559_v6 = vld [vmem:[#allocation7 + $0xa88] sm:$0xff]  ;;  %16158 = vst [vmem:[#allocation293_spill] sm:$0xff] %v11961_v5 }
 0x275   : > { %5504 = vmatprep.subr.bf16.mxu1 %v11934_v47  ;;  %v1558_v47 = vld [vmem:[#allocation7 + $0xa80] sm:$0xff]  ;;  %v11970_v10 = vcombine.high %v1559_v6, %v1563_v60  ;;  %v11977_v21 = vcombine.low %v1559_v6, %v1563_v60 }
 0x276   : > { %v11967_v1 = vcombine.high %v1558_v47, %v1562_v17  ;;  %v11973_v36 = vcombine.low %v1558_v47, %v1562_v17 }
 0x277   : > { %5341 = vmatpush1.bf16.msra.mxu0 %v11937_v23  ;;  %16161 = vst [vmem:[#allocation296_spill] sm:$0xff] %v11970_v10  ;;  %v1571_v23 = vld [vmem:[#allocation7 + $0xae8] sm:$0xff]  ;;  %16163 = vst [vmem:[#allocation298_spill] sm:$0xff] %v11977_v21 }
 0x278   : > { %5505 = vmatpush1.bf16.msra.mxu1 %v11941_v43  ;;  %5342 = vmatprep.subr.bf16.mxu0 %v11943_v33  ;;  %16160 = vst [vmem:[#allocation295_spill] sm:$0xff] %v11967_v1  ;;  %v1570_v33 = vld [vmem:[#allocation7 + $0xae0] sm:$0xff]  ;;  %v1567_v43 = vld [vmem:[#allocation7 + $0xac8] sm:$0xff]  ;;  %16162 = vst [vmem:[#allocation297_spill] sm:$0xff] %v11973_v36 }
 0x279   : > { %5506 = vmatprep.subr.bf16.mxu1 %v11946_v30  ;;  %v1566_v30 = vld [vmem:[#allocation7 + $0xac0] sm:$0xff]  ;;  %v11982_v63 = vcombine.high %v1567_v43, %v1571_v23  ;;  %v11989_v60 = vcombine.low %v1567_v43, %v1571_v23 }
 0x27a   : > { %v11979_v16 = vcombine.high %v1566_v30, %v1570_v33  ;;  %v11985_v17 = vcombine.low %v1566_v30, %v1570_v33 }
 0x27b   : > { %5343 = vmatpush1.bf16.msra.mxu0 %v11949_v9  ;;  %16165 = vst [vmem:[#allocation300_spill] sm:$0xff] %v11982_v63  ;;  %v1579_v9 = vld [vmem:[#allocation7 + $0xb28] sm:$0xff]  ;;  %16167 = vst [vmem:[#allocation302_spill] sm:$0xff] %v11989_v60 }
 0x27c   : > { %5507 = vmatpush1.bf16.msra.mxu1 %v11953_v25  ;;  %5344 = vmatprep.subr.bf16.mxu0 %v11955_v4  ;;  %16164 = vst [vmem:[#allocation299_spill] sm:$0xff] %v11979_v16  ;;  %v1578_v4 = vld [vmem:[#allocation7 + $0xb20] sm:$0xff]  ;;  %v1575_v25 = vld [vmem:[#allocation7 + $0xb08] sm:$0xff]  ;;  %16166 = vst [vmem:[#allocation301_spill] sm:$0xff] %v11985_v17 }
 0x27d   : > { %5508 = vmatprep.subr.bf16.mxu1 %v11958_v56  ;;  %v1574_v56 = vld [vmem:[#allocation7 + $0xb00] sm:$0xff]  ;;  %v11994_v47 = vcombine.high %v1575_v25, %v1579_v9  ;;  %v12001_v23 = vcombine.low %v1575_v25, %v1579_v9 }
 0x27e   : > { %v11991_v6 = vcombine.high %v1574_v56, %v1578_v4  ;;  %v11997_v33 = vcombine.low %v1574_v56, %v1578_v4  ;;  %v16178_v4 = vsub.s32 4, %v11596_v11 }
 0x27f   : > { %5345 = vmatpush1.bf16.msra.mxu0 %v11961_v5  ;;  %16169 = vst [vmem:[#allocation304_spill] sm:$0xff] %v11994_v47  ;;  %v1587_v5 = vld [vmem:[#allocation7 + $0xb68] sm:$0xff]  ;;  %16171 = vst [vmem:[#allocation306_spill] sm:$0xff] %v12001_v23 }
 0x280   : > { %5509 = vmatpush1.bf16.msra.mxu1 %v11965_v44  ;;  %5346 = vmatprep.subr.bf16.mxu0 %v11967_v1  ;;  %16168 = vst [vmem:[#allocation303_spill] sm:$0xff] %v11991_v6  ;;  %v1586_v1 = vld [vmem:[#allocation7 + $0xb60] sm:$0xff]  ;;  %v1583_v44 = vld [vmem:[#allocation7 + $0xb48] sm:$0xff]  ;;  %16170 = vst [vmem:[#allocation305_spill] sm:$0xff] %v11997_v33 }
 0x281   : > { %5510 = vmatprep.subr.bf16.mxu1 %v11970_v10  ;;  %v1582_v10 = vld [vmem:[#allocation7 + $0xb40] sm:$0xff]  ;;  %v12006_v30 = vcombine.high %v1583_v44, %v1587_v5  ;;  %v12015_v9 = vcombine.low %v1583_v44, %v1587_v5 }
 0x282   : > { %v12003_v43 = vcombine.high %v1582_v10, %v1586_v1  ;;  %v12011_v56 = vcombine.low %v1582_v10, %v1586_v1  ;;  %v1599_v1 = vld [vmem:[#allocation7 + $0xbc8] sm:$0xff] }
 0x283   : > { %5347 = vmatpush1.bf16.msra.mxu0 %v11973_v36  ;;  %16173 = vst [vmem:[#allocation308_spill] sm:$0xff] %v12006_v30  ;;  %v1591_v36 = vld [vmem:[#allocation7 + $0xb88] sm:$0xff]  ;;  %16175 = vst [vmem:[#allocation310_spill] sm:$0xff] %v12015_v9 }
 0x284   : > { %5511 = vmatpush1.bf16.msra.mxu1 %v11977_v21  ;;  %5348 = vmatprep.subr.bf16.mxu0 %v11979_v16  ;;  %16172 = vst [vmem:[#allocation307_spill] sm:$0xff] %v12003_v43  ;;  %v1594_v16 = vld [vmem:[#allocation7 + $0xba0] sm:$0xff]  ;;  %16174 = vst [vmem:[#allocation309_spill] sm:$0xff] %v12011_v56  ;;  %v1603_v10 = vld [vmem:[#allocation7 + $0xbe8] sm:$0xff] }
 0x285   : > { %5512 = vmatprep.subr.bf16.mxu1 %v11982_v63  ;;  %v1590_v63 = vld [vmem:[#allocation7 + $0xb80] sm:$0xff] }
 0x286   : > { %v12017_v25 = vcombine.high %v1590_v63, %v1594_v16  ;;  %v1598_v21 = vld [vmem:[#allocation7 + $0xbc0] sm:$0xff]  ;;  %v12029_v5 = vcombine.low %v1590_v63, %v1594_v16  ;;  %v1611_v16 = vld [vmem:[#allocation7 + $0xc28] sm:$0xff] }
 0x287   : > { %5349 = vmatpush1.bf16.msra.mxu0 %v11985_v17  ;;  %v1595_v17 = vld [vmem:[#allocation7 + $0xba8] sm:$0xff] }
 0x288   : > { %5513 = vmatpush1.bf16.msra.mxu1 %v11989_v60  ;;  %5350 = vmatprep.subr.bf16.mxu0 %v11991_v6  ;;  %16176 = vst [vmem:[#allocation311_spill] sm:$0xff] %v12017_v25  ;;  %v1602_v6 = vld [vmem:[#allocation7 + $0xbe0] sm:$0xff]  ;;  %16180 = vst [vmem:[#allocation313_spill] sm:$0xff] %v12029_v5  ;;  %v12033_v44 = vcombine.low %v1591_v36, %v1595_v17 }
 0x289   : > { %5514 = vmatprep.subr.bf16.mxu1 %v11994_v47  ;;  %v12020_v47 = vcombine.high %v1591_v36, %v1595_v17  ;;  %v1606_v60 = vld [vmem:[#allocation7 + $0xc00] sm:$0xff]  ;;  %v12047_v36 = vcombine.low %v1598_v21, %v1602_v6 }
 0x28a   : > { %16181 = vst [vmem:[#allocation314_spill] sm:$0xff] %v12033_v44 }
 0x28b   : > { %5351 = vmatpush1.bf16.msra.mxu0 %v11997_v33  ;;  %16177 = vst [vmem:[#allocation312_spill] sm:$0xff] %v12020_v47  ;;  %v589_v33 = vrot.slane %v11601_v40, %v16178_v4  ;;  %v12038_v4 = vcombine.high %v1599_v1, %v1603_v10  ;;  %16186 = vst [vmem:[#allocation319_spill] sm:$0xff] %v12047_v36 }
 0x28c   : > { %5515 = vmatpush1.bf16.msra.mxu1 %v12001_v23  ;;  %5352 = vmatprep.subr.bf16.mxu0 %v12003_v43  ;;  %v16179_v23 = vsub.s32 7, %v11596_v11 }
 0x28d   : > { %5516 = vmatprep.subr.bf16.mxu1 %v12006_v30  ;;  %v12035_v30 = vcombine.high %v1598_v21, %v1602_v6  ;;  %16183 = vst [vmem:[#allocation316_spill] sm:$0xff] %v12038_v4  ;;  %v1614_v21 = vld [vmem:[#allocation7 + $0xc40] sm:$0xff] }
 0x28e   : > { %v601_v43 = vrot.slane %v11601_v40, %v16179_v23  ;;  %v12041_v40 = vadd.f32 %v11588_v51, %v589_v33  ;;  %v1607_v23 = vld [vmem:[#allocation7 + $0xc08] sm:$0xff]  ;;  %v12055_v51 = vcombine.high %v1606_v60, %v1610_v13  ;;  %v1618_v6 = vld [vmem:[#allocation7 + $0xc60] sm:$0xff] }
 0x28f   : > { %5353 = vmatpush1.bf16.msra.mxu0 %v12011_v56  ;;  %16182 = vst [vmem:[#allocation315_spill] sm:$0xff] %v12035_v30  ;;  %v12058_v33 = vcombine.high %v1607_v23, %v1611_v16 }
 0x290   : > { %5517 = vmatpush1.bf16.msra.mxu1 %v12015_v9  ;;  %5354 = vmatprep.subr.bf16.mxu0 %v12017_v25  ;;  %16184 = vst [vmem:[#allocation317_spill] sm:$0xff] %v12041_v40  ;;  %v12044_v63 = vadd.f32 %v11594_v37, %v601_v43  ;;  %v2672_v17 = vadd.f32 %v11825_v14, %v12041_v40  ;;  %16188 = vst [vmem:[#allocation321_spill] sm:$0xff] %v12055_v51  ;;  %v1615_v43 = vld [vmem:[#allocation7 + $0xc48] sm:$0xff] }
 0x291   : > { %5518 = vmatprep.subr.bf16.mxu1 %v12020_v47  ;;  %v12053_v47 = vcombine.low %v1599_v1, %v1603_v10  ;;  %16189 = vst [vmem:[#allocation322_spill] sm:$0xff] %v12058_v33  ;;  %v12063_v14 = vcombine.low %v1606_v60, %v1610_v13  ;;  %v12069_v1 = vcombine.low %v1607_v23, %v1611_v16  ;;  %v1623_v60 = vld [vmem:[#allocation7 + $0xc88] sm:$0xff] }
 0x292   : > { %16185 = vst [vmem:[#allocation318_spill] sm:$0xff] %v12044_v63  ;;  %v2675_v37 = vadd.f32 %v11842_v55, %v12044_v63  ;;  %v12072_v10 = vcombine.high %v1614_v21, %v1618_v6  ;;  %v1622_v55 = vld [vmem:[#allocation7 + $0xc80] sm:$0xff]  ;;  %v12081_v23 = vcombine.low %v1614_v21, %v1618_v6  ;;  %v1631_v21 = vld [vmem:[#allocation7 + $0xcc8] sm:$0xff] }
 0x293   : > { %5355 = vmatpush1.bf16.msra.mxu0 %v12029_v5  ;;  %16187 = vst [vmem:[#allocation320_spill] sm:$0xff] %v12053_v47  ;;  %16190 = vst [vmem:[#allocation323_spill] sm:$0xff] %v12063_v14  ;;  %v1626_v63 = vld [vmem:[#allocation7 + $0xca0] sm:$0xff]  ;;  %v1635_v6 = vld [vmem:[#allocation7 + $0xce8] sm:$0xff] }
 0x294   : > { %5519 = vmatpush1.bf16.msra.mxu1 %v12033_v44  ;;  %5356 = vmatprep.subr.bf16.mxu0 %v12035_v30  ;;  %v1619_v44 = vld [vmem:[#allocation7 + $0xc68] sm:$0xff]  ;;  %v12065_v30 = vpack.c.bf16 %v2672_v17, %v2672_v17  ;;  %16191 = vst [vmem:[#allocation324_spill] sm:$0xff] %v12069_v1  ;;  %16192 = vst [vmem:[#allocation325_spill] sm:$0xff] %v12072_v10 }
 0x295   : > { %5520 = vmatprep.subr.bf16.mxu1 %v12038_v4  ;;  %v12074_v4 = vpack.c.bf16 %v2675_v37, %v2675_v37  ;;  %v12077_v13 = vcombine.high %v1615_v43, %v1619_v44  ;;  %v1627_v17 = vld [vmem:[#allocation7 + $0xca8] sm:$0xff]  ;;  %16194 = vst [vmem:[#allocation327_spill] sm:$0xff] %v12081_v23  ;;  %v12085_v16 = vcombine.low %v1615_v43, %v1619_v44 }
 0x296   : > { %v12087_v37 = vcombine.high %v1622_v55, %v1626_v63  ;;  %v12099_v44 = vcombine.low %v1623_v60, %v1627_v17  ;;  %v1643_v40 = vld [vmem:[#allocation7 + $0xd28] sm:$0xff] }
 0x297   : > { %5357 = vmatpush1.bf16.msra.mxu0 %v12047_v36  ;;  %16193 = vst [vmem:[#allocation326_spill] sm:$0xff] %v12077_v13  ;;  %16195 = vst [vmem:[#allocation328_spill] sm:$0xff] %v12085_v16  ;;  %v1639_v36 = vld [vmem:[#allocation7 + $0xd08] sm:$0xff] }
 0x298   : > { %5521 = vmatpush1.bf16.msra.mxu1 %v12053_v47  ;;  %5367 = vmatprep.subr.bf16.mxu0 %v12055_v51  ;;  %16196 = vst [vmem:[#allocation329_spill] sm:$0xff] %v12087_v37  ;;  %v1630_v51 = vld [vmem:[#allocation7 + $0xcc0] sm:$0xff]  ;;  %16199 = vst [vmem:[#allocation332_spill] sm:$0xff] %v12099_v44 }
 0x299   : > { %5531 = vmatprep.subr.bf16.mxu1 %v12058_v33  ;;  %v12091_v33 = vcombine.high %v1623_v60, %v1627_v17  ;;  %v1634_v47 = vld [vmem:[#allocation7 + $0xce0] sm:$0xff]  ;;  %v12116_v17 = vcombine.high %v1639_v36, %v1643_v40 }
 0x29a   : > { %5359 = vmatmul.mubr.bf16.vlgmr.msra.gmra.mrb[16].mxu0 %v12065_v30  ;;  %v12101_v43 = vcombine.high %v1630_v51, %v1634_v47 }
 0x29b   : > { %5523 = vmatmul.mubr.bf16.vlgmr.msra.gmra.mrb[16].mxu1 %v12065_v30  ;;  %5368 = vmatpush1.bf16.msra.mxu0 %v12063_v14  ;;  %16197 = vst [vmem:[#allocation330_spill] sm:$0xff] %v12091_v33  ;;  %v12095_v14 = vcombine.low %v1622_v55, %v1626_v63  ;;  %v12107_v63 = vcombine.low %v1630_v51, %v1634_v47  ;;  %16205 = vst [vmem:[#allocation338_spill] sm:$0xff] %v12116_v17 }
 0x29c   : > { %5399 = vmatprep.mubr.bf16.mxu0 %v12074_v4  ;;  %5532 = vmatpush1.bf16.msra.mxu1 %v12069_v1  ;;  %16200 = vst [vmem:[#allocation333_spill] sm:$0xff] %v12101_v43  ;;  %v1638_v1 = vld [vmem:[#allocation7 + $0xd00] sm:$0xff]  ;;  %v12111_v55 = vcombine.low %v1631_v21, %v1635_v6  ;;  %v12123_v51 = vcombine.low %v1639_v36, %v1643_v40 }
 0x29d   : > { %5563 = vmatprep.mubr.bf16.mxu1 %v12074_v4  ;;  %5369 = vmatprep.subr.bf16.mxu0 %v12072_v10  ;;  %16198 = vst [vmem:[#allocation331_spill] sm:$0xff] %v12095_v14  ;;  %v12104_v10 = vcombine.high %v1631_v21, %v1635_v6  ;;  %16202 = vst [vmem:[#allocation335_spill] sm:$0xff] %v12107_v63 }
 0x29e   : > { %5533 = vmatprep.subr.bf16.mxu1 %v12077_v13  ;;  %v1642_v13 = vld [vmem:[#allocation7 + $0xd20] sm:$0xff]  ;;  %16203 = vst [vmem:[#allocation336_spill] sm:$0xff] %v12111_v55  ;;  %16207 = vst [vmem:[#allocation340_spill] sm:$0xff] %v12123_v51 }
 0x29f   : > { %5370 = vmatpush1.bf16.msra.mxu0 %v12081_v23  ;;  %16201 = vst [vmem:[#allocation334_spill] sm:$0xff] %v12104_v10  ;;  %v12113_v60 = vcombine.high %v1638_v1, %v1642_v13  ;;  %v1651_v23 = vld [vmem:[#allocation7 + $0xd68] sm:$0xff]  ;;  %v12119_v47 = vcombine.low %v1638_v1, %v1642_v13 }
 0x2a0   : > { %5534 = vmatpush1.bf16.msra.mxu1 %v12085_v16  ;;  %5371 = vmatprep.subr.bf16.mxu0 %v12087_v37  ;;  %v1650_v37 = vld [vmem:[#allocation7 + $0xd60] sm:$0xff]  ;;  %v1647_v16 = vld [vmem:[#allocation7 + $0xd48] sm:$0xff] }
 0x2a1   : > { %5535 = vmatprep.subr.bf16.mxu1 %v12091_v33  ;;  %16204 = vst [vmem:[#allocation337_spill] sm:$0xff] %v12113_v60  ;;  %v1646_v33 = vld [vmem:[#allocation7 + $0xd40] sm:$0xff]  ;;  %16206 = vst [vmem:[#allocation339_spill] sm:$0xff] %v12119_v47  ;;  %v12128_v6 = vcombine.high %v1647_v16, %v1651_v23  ;;  %v12135_v40 = vcombine.low %v1647_v16, %v1651_v23 }
 0x2a2   : > { %v12125_v21 = vcombine.high %v1646_v33, %v1650_v37  ;;  %v12131_v1 = vcombine.low %v1646_v33, %v1650_v37 }
 0x2a3   : > { %5372 = vmatpush1.bf16.msra.mxu0 %v12095_v14  ;;  %16209 = vst [vmem:[#allocation342_spill] sm:$0xff] %v12128_v6  ;;  %v1659_v14 = vld [vmem:[#allocation7 + $0xda8] sm:$0xff]  ;;  %16211 = vst [vmem:[#allocation344_spill] sm:$0xff] %v12135_v40 }
 0x2a4   : > { %5536 = vmatpush1.bf16.msra.mxu1 %v12099_v44  ;;  %5373 = vmatprep.subr.bf16.mxu0 %v12101_v43  ;;  %16208 = vst [vmem:[#allocation341_spill] sm:$0xff] %v12125_v21  ;;  %v1658_v43 = vld [vmem:[#allocation7 + $0xda0] sm:$0xff]  ;;  %v1655_v44 = vld [vmem:[#allocation7 + $0xd88] sm:$0xff]  ;;  %16210 = vst [vmem:[#allocation343_spill] sm:$0xff] %v12131_v1 }
 0x2a5   : > { %5537 = vmatprep.subr.bf16.mxu1 %v12104_v10  ;;  %v1654_v10 = vld [vmem:[#allocation7 + $0xd80] sm:$0xff]  ;;  %v12140_v13 = vcombine.high %v1655_v44, %v1659_v14  ;;  %v12147_v23 = vcombine.low %v1655_v44, %v1659_v14 }
 0x2a6   : > { %v12137_v36 = vcombine.high %v1654_v10, %v1658_v43  ;;  %v12143_v33 = vcombine.low %v1654_v10, %v1658_v43 }
 0x2a7   : > { %5374 = vmatpush1.bf16.msra.mxu0 %v12107_v63  ;;  %16213 = vst [vmem:[#allocation346_spill] sm:$0xff] %v12140_v13  ;;  %v1667_v63 = vld [vmem:[#allocation7 + $0xde8] sm:$0xff]  ;;  %16215 = vst [vmem:[#allocation348_spill] sm:$0xff] %v12147_v23 }
 0x2a8   : > { %5538 = vmatpush1.bf16.msra.mxu1 %v12111_v55  ;;  %5375 = vmatprep.subr.bf16.mxu0 %v12113_v60  ;;  %16212 = vst [vmem:[#allocation345_spill] sm:$0xff] %v12137_v36  ;;  %v1666_v60 = vld [vmem:[#allocation7 + $0xde0] sm:$0xff]  ;;  %v1663_v55 = vld [vmem:[#allocation7 + $0xdc8] sm:$0xff]  ;;  %16214 = vst [vmem:[#allocation347_spill] sm:$0xff] %v12143_v33 }
 0x2a9   : > { %5539 = vmatprep.subr.bf16.mxu1 %v12116_v17  ;;  %v1662_v17 = vld [vmem:[#allocation7 + $0xdc0] sm:$0xff]  ;;  %v12152_v37 = vcombine.high %v1663_v55, %v1667_v63  ;;  %v12159_v14 = vcombine.low %v1663_v55, %v1667_v63 }
 0x2aa   : > { %v12149_v16 = vcombine.high %v1662_v17, %v1666_v60  ;;  %v12155_v10 = vcombine.low %v1662_v17, %v1666_v60 }
 0x2ab   : > { %5376 = vmatpush1.bf16.msra.mxu0 %v12119_v47  ;;  %16217 = vst [vmem:[#allocation350_spill] sm:$0xff] %v12152_v37  ;;  %v1675_v47 = vld [vmem:[#allocation7 + $0xe28] sm:$0xff]  ;;  %16219 = vst [vmem:[#allocation352_spill] sm:$0xff] %v12159_v14 }
 0x2ac   : > { %5540 = vmatpush1.bf16.msra.mxu1 %v12123_v51  ;;  %5377 = vmatprep.subr.bf16.mxu0 %v12125_v21  ;;  %16216 = vst [vmem:[#allocation349_spill] sm:$0xff] %v12149_v16  ;;  %v1674_v21 = vld [vmem:[#allocation7 + $0xe20] sm:$0xff]  ;;  %v1671_v51 = vld [vmem:[#allocation7 + $0xe08] sm:$0xff]  ;;  %16218 = vst [vmem:[#allocation351_spill] sm:$0xff] %v12155_v10 }
 0x2ad   : > { %5541 = vmatprep.subr.bf16.mxu1 %v12128_v6  ;;  %v1670_v6 = vld [vmem:[#allocation7 + $0xe00] sm:$0xff]  ;;  %v12164_v43 = vcombine.high %v1671_v51, %v1675_v47  ;;  %v12171_v63 = vcombine.low %v1671_v51, %v1675_v47 }
 0x2ae   : > { %v12161_v44 = vcombine.high %v1670_v6, %v1674_v21  ;;  %v12167_v60 = vcombine.low %v1670_v6, %v1674_v21 }
 0x2af   : > { %5378 = vmatpush1.bf16.msra.mxu0 %v12131_v1  ;;  %16221 = vst [vmem:[#allocation354_spill] sm:$0xff] %v12164_v43  ;;  %v1683_v1 = vld [vmem:[#allocation7 + $0xe68] sm:$0xff]  ;;  %16223 = vst [vmem:[#allocation356_spill] sm:$0xff] %v12171_v63 }
 0x2b0   : > { %5542 = vmatpush1.bf16.msra.mxu1 %v12135_v40  ;;  %5379 = vmatprep.subr.bf16.mxu0 %v12137_v36  ;;  %16220 = vst [vmem:[#allocation353_spill] sm:$0xff] %v12161_v44  ;;  %v1682_v36 = vld [vmem:[#allocation7 + $0xe60] sm:$0xff]  ;;  %v1679_v40 = vld [vmem:[#allocation7 + $0xe48] sm:$0xff]  ;;  %16222 = vst [vmem:[#allocation355_spill] sm:$0xff] %v12167_v60 }
 0x2b1   : > { %5543 = vmatprep.subr.bf16.mxu1 %v12140_v13  ;;  %v1678_v13 = vld [vmem:[#allocation7 + $0xe40] sm:$0xff]  ;;  %v12176_v17 = vcombine.high %v1679_v40, %v1683_v1  ;;  %v12183_v47 = vcombine.low %v1679_v40, %v1683_v1 }
 0x2b2   : > { %v12173_v55 = vcombine.high %v1678_v13, %v1682_v36  ;;  %v12179_v21 = vcombine.low %v1678_v13, %v1682_v36 }
 0x2b3   : > { %5380 = vmatpush1.bf16.msra.mxu0 %v12143_v33  ;;  %16225 = vst [vmem:[#allocation358_spill] sm:$0xff] %v12176_v17  ;;  %v1691_v33 = vld [vmem:[#allocation7 + $0xea8] sm:$0xff]  ;;  %16227 = vst [vmem:[#allocation360_spill] sm:$0xff] %v12183_v47 }
 0x2b4   : > { %5544 = vmatpush1.bf16.msra.mxu1 %v12147_v23  ;;  %5381 = vmatprep.subr.bf16.mxu0 %v12149_v16  ;;  %16224 = vst [vmem:[#allocation357_spill] sm:$0xff] %v12173_v55  ;;  %v1690_v16 = vld [vmem:[#allocation7 + $0xea0] sm:$0xff]  ;;  %v1687_v23 = vld [vmem:[#allocation7 + $0xe88] sm:$0xff]  ;;  %16226 = vst [vmem:[#allocation359_spill] sm:$0xff] %v12179_v21 }
 0x2b5   : > { %5545 = vmatprep.subr.bf16.mxu1 %v12152_v37  ;;  %v1686_v37 = vld [vmem:[#allocation7 + $0xe80] sm:$0xff]  ;;  %v12188_v6 = vcombine.high %v1687_v23, %v1691_v33  ;;  %v12195_v1 = vcombine.low %v1687_v23, %v1691_v33 }
 0x2b6   : > { %v12185_v51 = vcombine.high %v1686_v37, %v1690_v16  ;;  %v12191_v36 = vcombine.low %v1686_v37, %v1690_v16 }
 0x2b7   : > { %5382 = vmatpush1.bf16.msra.mxu0 %v12155_v10  ;;  %16229 = vst [vmem:[#allocation362_spill] sm:$0xff] %v12188_v6  ;;  %v1699_v10 = vld [vmem:[#allocation7 + $0xee8] sm:$0xff]  ;;  %16231 = vst [vmem:[#allocation364_spill] sm:$0xff] %v12195_v1 }
 0x2b8   : > { %5546 = vmatpush1.bf16.msra.mxu1 %v12159_v14  ;;  %5383 = vmatprep.subr.bf16.mxu0 %v12161_v44  ;;  %16228 = vst [vmem:[#allocation361_spill] sm:$0xff] %v12185_v51  ;;  %v1698_v44 = vld [vmem:[#allocation7 + $0xee0] sm:$0xff]  ;;  %v1695_v14 = vld [vmem:[#allocation7 + $0xec8] sm:$0xff]  ;;  %16230 = vst [vmem:[#allocation363_spill] sm:$0xff] %v12191_v36 }
 0x2b9   : > { %5547 = vmatprep.subr.bf16.mxu1 %v12164_v43  ;;  %v1694_v43 = vld [vmem:[#allocation7 + $0xec0] sm:$0xff]  ;;  %v12200_v13 = vcombine.high %v1695_v14, %v1699_v10  ;;  %v12207_v33 = vcombine.low %v1695_v14, %v1699_v10 }
 0x2ba   : > { %v12197_v40 = vcombine.high %v1694_v43, %v1698_v44  ;;  %v12203_v16 = vcombine.low %v1694_v43, %v1698_v44 }
 0x2bb   : > { %5384 = vmatpush1.bf16.msra.mxu0 %v12167_v60  ;;  %16233 = vst [vmem:[#allocation366_spill] sm:$0xff] %v12200_v13  ;;  %v1707_v60 = vld [vmem:[#allocation7 + $0xf28] sm:$0xff]  ;;  %16235 = vst [vmem:[#allocation368_spill] sm:$0xff] %v12207_v33 }
 0x2bc   : > { %5548 = vmatpush1.bf16.msra.mxu1 %v12171_v63  ;;  %5385 = vmatprep.subr.bf16.mxu0 %v12173_v55  ;;  %16232 = vst [vmem:[#allocation365_spill] sm:$0xff] %v12197_v40  ;;  %v1706_v55 = vld [vmem:[#allocation7 + $0xf20] sm:$0xff]  ;;  %v1703_v63 = vld [vmem:[#allocation7 + $0xf08] sm:$0xff]  ;;  %16234 = vst [vmem:[#allocation367_spill] sm:$0xff] %v12203_v16 }
 0x2bd   : > { %5549 = vmatprep.subr.bf16.mxu1 %v12176_v17  ;;  %v1702_v17 = vld [vmem:[#allocation7 + $0xf00] sm:$0xff]  ;;  %v12212_v37 = vcombine.high %v1703_v63, %v1707_v60  ;;  %v12219_v10 = vcombine.low %v1703_v63, %v1707_v60 }
 0x2be   : > { %v12209_v23 = vcombine.high %v1702_v17, %v1706_v55  ;;  %v12215_v44 = vcombine.low %v1702_v17, %v1706_v55 }
 0x2bf   : > { %5386 = vmatpush1.bf16.msra.mxu0 %v12179_v21  ;;  %16237 = vst [vmem:[#allocation370_spill] sm:$0xff] %v12212_v37  ;;  %v1715_v21 = vld [vmem:[#allocation7 + $0xf68] sm:$0xff]  ;;  %16239 = vst [vmem:[#allocation372_spill] sm:$0xff] %v12219_v10 }
 0x2c0   : > { %5550 = vmatpush1.bf16.msra.mxu1 %v12183_v47  ;;  %5387 = vmatprep.subr.bf16.mxu0 %v12185_v51  ;;  %16236 = vst [vmem:[#allocation369_spill] sm:$0xff] %v12209_v23  ;;  %v1714_v51 = vld [vmem:[#allocation7 + $0xf60] sm:$0xff]  ;;  %v1711_v47 = vld [vmem:[#allocation7 + $0xf48] sm:$0xff]  ;;  %16238 = vst [vmem:[#allocation371_spill] sm:$0xff] %v12215_v44 }
 0x2c1   : > { %5551 = vmatprep.subr.bf16.mxu1 %v12188_v6  ;;  %v1710_v6 = vld [vmem:[#allocation7 + $0xf40] sm:$0xff]  ;;  %v12224_v43 = vcombine.high %v1711_v47, %v1715_v21  ;;  %v12232_v60 = vcombine.low %v1711_v47, %v1715_v21 }
 0x2c2   : > { %v12221_v14 = vcombine.high %v1710_v6, %v1714_v51  ;;  %v12228_v55 = vcombine.low %v1710_v6, %v1714_v51  ;;  %v1727_v51 = vld [vmem:[#allocation7 + $0xfc8] sm:$0xff] }
 0x2c3   : > { %5388 = vmatpush1.bf16.msra.mxu0 %v12191_v36  ;;  %16241 = vst [vmem:[#allocation374_spill] sm:$0xff] %v12224_v43  ;;  %v1719_v36 = vld [vmem:[#allocation7 + $0xf88] sm:$0xff]  ;;  %16243 = vst [vmem:[#allocation376_spill] sm:$0xff] %v12232_v60 }
 0x2c4   : > { %5552 = vmatpush1.bf16.msra.mxu1 %v12195_v1  ;;  %5389 = vmatprep.subr.bf16.mxu0 %v12197_v40  ;;  %16240 = vst [vmem:[#allocation373_spill] sm:$0xff] %v12221_v14  ;;  %v1722_v40 = vld [vmem:[#allocation7 + $0xfa0] sm:$0xff]  ;;  %16242 = vst [vmem:[#allocation375_spill] sm:$0xff] %v12228_v55  ;;  %v1731_v6 = vld [vmem:[#allocation7 + $0xfe8] sm:$0xff] }
 0x2c5   : > { %5553 = vmatprep.subr.bf16.mxu1 %v12200_v13  ;;  %v1718_v13 = vld [vmem:[#allocation7 + $0xf80] sm:$0xff] }
 0x2c6   : > { %v12234_v63 = vcombine.high %v1718_v13, %v1722_v40  ;;  %v1730_v1 = vld [vmem:[#allocation7 + $0xfe0] sm:$0xff] }
 0x2c7   : > { %5390 = vmatpush1.bf16.msra.mxu0 %v12203_v16  ;;  %v1723_v16 = vld [vmem:[#allocation7 + $0xfa8] sm:$0xff] }
 0x2c8   : > { %5554 = vmatpush1.bf16.msra.mxu1 %v12207_v33  ;;  %5391 = vmatprep.subr.bf16.mxu0 %v12209_v23  ;;  %16244 = vst [vmem:[#allocation377_spill] sm:$0xff] %v12234_v63  ;;  %v12237_v17 = vcombine.high %v1719_v36, %v1723_v16  ;;  %v10186_v23 = vld [vmem:[#allocation6] sm:$0xff]  ;;  %v16246_v33 = vsub.s32 6, %v11596_v11  ;;  %v12246_v21 = vcombine.low %v1719_v36, %v1723_v16 }
 0x2c9   : > { %5555 = vmatprep.subr.bf16.mxu1 %v12212_v37  ;;  %v1726_v37 = vld [vmem:[#allocation7 + $0xfc0] sm:$0xff]  ;;  %v12263_v16 = vcombine.low %v1727_v51, %v1731_v6 }
 0x2ca   : > { %16245 = vst [vmem:[#allocation378_spill] sm:$0xff] %v12237_v17  ;;  %16247 = vst [vmem:[#allocation379_spill] sm:$0xff] %v12246_v21  ;;  %v12248_v47 = vcombine.high %v1726_v37, %v1730_v1 }
 0x2cb   : > { %5392 = vmatpush1.bf16.msra.mxu0 %v12215_v44  ;;  %v597_v44 = vrot.slane %v10186_v23, %v16246_v33  ;;  %v1228_v33 = vld [vmem:[#allocation7 + $0x30] sm:$0xff]  ;;  %16252 = vst [vmem:[#allocation384_spill] sm:$0xff] %v12263_v16 }
 0x2cc   : > { %5556 = vmatpush1.bf16.msra.mxu1 %v12219_v10  ;;  %5393 = vmatprep.subr.bf16.mxu0 %v12221_v14  ;;  %v12242_v10 = vcombine.low %v1718_v13, %v1722_v40  ;;  %16248 = vst [vmem:[#allocation380_spill] sm:$0xff] %v12248_v47  ;;  %v1224_v14 = vld [vmem:[#allocation7 + $0x10] sm:$0xff]  ;;  %v1229_v40 = vld [vmem:[#allocation7 + $0x38] sm:$0xff]  ;;  %v12257_v13 = vcombine.low %v1726_v37, %v1730_v1 }
 0x2cd   : > { %5557 = vmatprep.subr.bf16.mxu1 %v12224_v43  ;;  %v12251_v43 = vcombine.high %v1727_v51, %v1731_v6  ;;  %v12254_v23 = vadd.f32 %v11592_v32, %v597_v44  ;;  %v1232_v44 = vld [vmem:[#allocation7 + $0x50] sm:$0xff]  ;;  %v12271_v1 = vcombine.low %v1224_v14, %v1228_v33  ;;  %v1233_v37 = vld [vmem:[#allocation7 + $0x58] sm:$0xff] }
 0x2ce   : > { %16251 = vst [vmem:[#allocation383_spill] sm:$0xff] %v12257_v13 }
 0x2cf   : > { %5394 = vmatpush1.bf16.msra.mxu0 %v12228_v55  ;;  %16249 = vst [vmem:[#allocation381_spill] sm:$0xff] %v12251_v43  ;;  %16250 = vst [vmem:[#allocation382_spill] sm:$0xff] %v12254_v23  ;;  %v1225_v55 = vld [vmem:[#allocation7 + $0x18] sm:$0xff]  ;;  %v2674_v36 = vadd.f32 %v11833_v59, %v12254_v23 }
 0x2d0   : > { %5558 = vmatpush1.bf16.msra.mxu1 %v12232_v60  ;;  %5395 = vmatprep.subr.bf16.mxu0 %v12234_v63  ;;  %v12268_v32 = vcombine.high %v1225_v55, %v1229_v40  ;;  %v1236_v63 = vld [vmem:[#allocation7 + $0x70] sm:$0xff]  ;;  %16255 = vst [vmem:[#allocation387_spill] sm:$0xff] %v12271_v1  ;;  %v1237_v59 = vld [vmem:[#allocation7 + $0x78] sm:$0xff]  ;;  %v12277_v51 = vcombine.low %v1225_v55, %v1229_v40 }
 0x2d1   : > { %5559 = vmatprep.subr.bf16.mxu1 %v12237_v17  ;;  %v12265_v17 = vcombine.high %v1224_v14, %v1228_v33  ;;  %v12273_v23 = vpack.c.bf16 %v2674_v36, %v2674_v36  ;;  %v12280_v6 = vcombine.high %v1232_v44, %v1236_v63  ;;  %v12283_v14 = vcombine.high %v1233_v37, %v1237_v59  ;;  %v1241_v33 = vld [vmem:[#allocation7 + $0x98] sm:$0xff] }
 0x2d2   : > { %16254 = vst [vmem:[#allocation386_spill] sm:$0xff] %v12268_v32  ;;  %16256 = vst [vmem:[#allocation388_spill] sm:$0xff] %v12277_v51  ;;  %v12287_v36 = vcombine.low %v1232_v44, %v1236_v63  ;;  %v12291_v55 = vcombine.low %v1233_v37, %v1237_v59  ;;  %v1249_v63 = vld [vmem:[#allocation7 + $0xd8] sm:$0xff] }
 0x2d3   : > { %5396 = vmatpush1.bf16.msra.mxu0 %v12242_v10  ;;  %16253 = vst [vmem:[#allocation385_spill] sm:$0xff] %v12265_v17  ;;  %16257 = vst [vmem:[#allocation389_spill] sm:$0xff] %v12280_v6  ;;  %v1253_v44 = vld [vmem:[#allocation7 + $0xf8] sm:$0xff] }
 0x2d4   : > { %5560 = vmatpush1.bf16.msra.mxu1 %v12246_v21  ;;  %5397 = vmatprep.subr.bf16.mxu0 %v12248_v47  ;;  %v1244_v47 = vld [vmem:[#allocation7 + $0xb0] sm:$0xff]  ;;  %16258 = vst [vmem:[#allocation390_spill] sm:$0xff] %v12283_v14  ;;  %16259 = vst [vmem:[#allocation391_spill] sm:$0xff] %v12287_v36  ;;  %v12310_v59 = vcombine.high %v1249_v63, %v1253_v44  ;;  %v1261_v21 = vld [vmem:[#allocation7 + $0x138] sm:$0xff] }
 0x2d5   : > { %5561 = vmatprep.subr.bf16.mxu1 %v12251_v43  ;;  %v1240_v43 = vld [vmem:[#allocation7 + $0x90] sm:$0xff]  ;;  %16260 = vst [vmem:[#allocation392_spill] sm:$0xff] %v12291_v55 }
 0x2d6   : > { %v12293_v40 = vcombine.high %v1240_v43, %v1244_v47  ;;  %16266 = vst [vmem:[#allocation398_spill] sm:$0xff] %v12310_v59 }
 0x2d7   : > { %5398 = vmatpush1.bf16.msra.mxu0 %v12257_v13  ;;  %v1245_v13 = vld [vmem:[#allocation7 + $0xb8] sm:$0xff] }
 0x2d8   : > { %5562 = vmatpush1.bf16.msra.mxu1 %v12263_v16  ;;  %5572 = vmatprep.subr.bf16.mxu0 %v12265_v17  ;;  %16261 = vst [vmem:[#allocation393_spill] sm:$0xff] %v12293_v40  ;;  %v1248_v17 = vld [vmem:[#allocation7 + $0xd0] sm:$0xff]  ;;  %v12305_v37 = vcombine.low %v1241_v33, %v1245_v13 }
 0x2d9   : > { %5736 = vmatprep.subr.bf16.mxu1 %v12268_v32  ;;  %v12297_v32 = vcombine.high %v1241_v33, %v1245_v13  ;;  %v1252_v16 = vld [vmem:[#allocation7 + $0xf0] sm:$0xff] }
 0x2da   : > { %5400 = vmatmul.mubr.bf16.vlgmr.msra.gmra.mrb[16].mxu0 %v12273_v23  ;;  %16264 = vst [vmem:[#allocation396_spill] sm:$0xff] %v12305_v37 }
 0x2db   : > { %5564 = vmatmul.mubr.bf16.vlgmr.msra.gmra.mrb[16].mxu1 %v12273_v23  ;;  %5573 = vmatpush1.bf16.msra.mxu0 %v12271_v1  ;;  %16262 = vst [vmem:[#allocation394_spill] sm:$0xff] %v12297_v32  ;;  %v12301_v1 = vcombine.low %v1240_v43, %v1244_v47  ;;  %v12313_v43 = vcombine.low %v1248_v17, %v1252_v16 }
 0x2dc   : > { %5604 = vmatprep.mubr.bf16.mxu0 %v11625_v20  ;;  %5737 = vmatpush1.bf16.msra.mxu1 %v12277_v51  ;;  %v1257_v51 = vld [vmem:[#allocation7 + $0x118] sm:$0xff]  ;;  %v12317_v47 = vcombine.low %v1249_v63, %v1253_v44 }
 0x2dd   : > { %5768 = vmatprep.mubr.bf16.mxu1 %v11625_v20  ;;  %5574 = vmatprep.subr.bf16.mxu0 %v12280_v6  ;;  %16263 = vst [vmem:[#allocation395_spill] sm:$0xff] %v12301_v1  ;;  %v12307_v20 = vcombine.high %v1248_v17, %v1252_v16  ;;  %v1256_v6 = vld [vmem:[#allocation7 + $0x110] sm:$0xff]  ;;  %16267 = vst [vmem:[#allocation399_spill] sm:$0xff] %v12313_v43  ;;  %v12322_v33 = vcombine.high %v1257_v51, %v1261_v21 }
 0x2de   : > { %5738 = vmatprep.subr.bf16.mxu1 %v12283_v14  ;;  %v1260_v14 = vld [vmem:[#allocation7 + $0x130] sm:$0xff]  ;;  %16268 = vst [vmem:[#allocation400_spill] sm:$0xff] %v12317_v47  ;;  %v12329_v16 = vcombine.low %v1257_v51, %v1261_v21 }
 0x2df   : > { %5575 = vmatpush1.bf16.msra.mxu0 %v12287_v36  ;;  %16265 = vst [vmem:[#allocation397_spill] sm:$0xff] %v12307_v20  ;;  %v12319_v13 = vcombine.high %v1256_v6, %v1260_v14  ;;  %16270 = vst [vmem:[#allocation402_spill] sm:$0xff] %v12322_v33  ;;  %v1269_v36 = vld [vmem:[#allocation7 + $0x178] sm:$0xff]  ;;  %v12325_v17 = vcombine.low %v1256_v6, %v1260_v14 }
 0x2e0   : > { %5739 = vmatpush1.bf16.msra.mxu1 %v12291_v55  ;;  %5576 = vmatprep.subr.bf16.mxu0 %v12293_v40  ;;  %v1268_v40 = vld [vmem:[#allocation7 + $0x170] sm:$0xff]  ;;  %v1265_v55 = vld [vmem:[#allocation7 + $0x158] sm:$0xff]  ;;  %16272 = vst [vmem:[#allocation404_spill] sm:$0xff] %v12329_v16 }
 0x2e1   : > { %5740 = vmatprep.subr.bf16.mxu1 %v12297_v32  ;;  %16269 = vst [vmem:[#allocation401_spill] sm:$0xff] %v12319_v13  ;;  %v1264_v32 = vld [vmem:[#allocation7 + $0x150] sm:$0xff]  ;;  %16271 = vst [vmem:[#allocation403_spill] sm:$0xff] %v12325_v17  ;;  %v12334_v44 = vcombine.high %v1265_v55, %v1269_v36  ;;  %v12341_v21 = vcombine.low %v1265_v55, %v1269_v36 }
 0x2e2   : > { %v12331_v63 = vcombine.high %v1264_v32, %v1268_v40  ;;  %v12337_v6 = vcombine.low %v1264_v32, %v1268_v40 }
 0x2e3   : > { %5577 = vmatpush1.bf16.msra.mxu0 %v12301_v1  ;;  %16274 = vst [vmem:[#allocation406_spill] sm:$0xff] %v12334_v44  ;;  %v1277_v1 = vld [vmem:[#allocation7 + $0x1b8] sm:$0xff]  ;;  %16276 = vst [vmem:[#allocation408_spill] sm:$0xff] %v12341_v21 }
 0x2e4   : > { %5741 = vmatpush1.bf16.msra.mxu1 %v12305_v37  ;;  %5578 = vmatprep.subr.bf16.mxu0 %v12307_v20  ;;  %16273 = vst [vmem:[#allocation405_spill] sm:$0xff] %v12331_v63  ;;  %v1276_v20 = vld [vmem:[#allocation7 + $0x1b0] sm:$0xff]  ;;  %v1273_v37 = vld [vmem:[#allocation7 + $0x198] sm:$0xff]  ;;  %16275 = vst [vmem:[#allocation407_spill] sm:$0xff] %v12337_v6 }
 0x2e5   : > { %5742 = vmatprep.subr.bf16.mxu1 %v12310_v59  ;;  %v1272_v59 = vld [vmem:[#allocation7 + $0x190] sm:$0xff]  ;;  %v12346_v14 = vcombine.high %v1273_v37, %v1277_v1  ;;  %v12353_v36 = vcombine.low %v1273_v37, %v1277_v1 }
 0x2e6   : > { %v12343_v51 = vcombine.high %v1272_v59, %v1276_v20  ;;  %v12349_v32 = vcombine.low %v1272_v59, %v1276_v20 }
 0x2e7   : > { %5579 = vmatpush1.bf16.msra.mxu0 %v12313_v43  ;;  %16278 = vst [vmem:[#allocation410_spill] sm:$0xff] %v12346_v14  ;;  %v1285_v43 = vld [vmem:[#allocation7 + $0x1f8] sm:$0xff]  ;;  %16280 = vst [vmem:[#allocation412_spill] sm:$0xff] %v12353_v36 }
 0x2e8   : > { %5743 = vmatpush1.bf16.msra.mxu1 %v12317_v47  ;;  %5580 = vmatprep.subr.bf16.mxu0 %v12319_v13  ;;  %16277 = vst [vmem:[#allocation409_spill] sm:$0xff] %v12343_v51  ;;  %v1284_v13 = vld [vmem:[#allocation7 + $0x1f0] sm:$0xff]  ;;  %v1281_v47 = vld [vmem:[#allocation7 + $0x1d8] sm:$0xff]  ;;  %16279 = vst [vmem:[#allocation411_spill] sm:$0xff] %v12349_v32 }
 0x2e9   : > { %5744 = vmatprep.subr.bf16.mxu1 %v12322_v33  ;;  %v1280_v33 = vld [vmem:[#allocation7 + $0x1d0] sm:$0xff]  ;;  %v12358_v40 = vcombine.high %v1281_v47, %v1285_v43  ;;  %v12365_v1 = vcombine.low %v1281_v47, %v1285_v43 }
 0x2ea   : > { %v12355_v55 = vcombine.high %v1280_v33, %v1284_v13  ;;  %v12361_v20 = vcombine.low %v1280_v33, %v1284_v13 }
 0x2eb   : > { %5581 = vmatpush1.bf16.msra.mxu0 %v12325_v17  ;;  %16282 = vst [vmem:[#allocation414_spill] sm:$0xff] %v12358_v40  ;;  %v1293_v17 = vld [vmem:[#allocation7 + $0x238] sm:$0xff]  ;;  %16284 = vst [vmem:[#allocation416_spill] sm:$0xff] %v12365_v1 }
 0x2ec   : > { %5745 = vmatpush1.bf16.msra.mxu1 %v12329_v16  ;;  %5582 = vmatprep.subr.bf16.mxu0 %v12331_v63  ;;  %16281 = vst [vmem:[#allocation413_spill] sm:$0xff] %v12355_v55  ;;  %v1292_v63 = vld [vmem:[#allocation7 + $0x230] sm:$0xff]  ;;  %v1289_v16 = vld [vmem:[#allocation7 + $0x218] sm:$0xff]  ;;  %16283 = vst [vmem:[#allocation415_spill] sm:$0xff] %v12361_v20 }
 0x2ed   : > { %5746 = vmatprep.subr.bf16.mxu1 %v12334_v44  ;;  %v1288_v44 = vld [vmem:[#allocation7 + $0x210] sm:$0xff]  ;;  %v12370_v59 = vcombine.high %v1289_v16, %v1293_v17  ;;  %v12377_v43 = vcombine.low %v1289_v16, %v1293_v17 }
 0x2ee   : > { %v12367_v37 = vcombine.high %v1288_v44, %v1292_v63  ;;  %v12373_v13 = vcombine.low %v1288_v44, %v1292_v63 }
 0x2ef   : > { %5583 = vmatpush1.bf16.msra.mxu0 %v12337_v6  ;;  %16286 = vst [vmem:[#allocation418_spill] sm:$0xff] %v12370_v59  ;;  %v1301_v6 = vld [vmem:[#allocation7 + $0x278] sm:$0xff]  ;;  %16288 = vst [vmem:[#allocation420_spill] sm:$0xff] %v12377_v43 }
 0x2f0   : > { %5747 = vmatpush1.bf16.msra.mxu1 %v12341_v21  ;;  %5584 = vmatprep.subr.bf16.mxu0 %v12343_v51  ;;  %16285 = vst [vmem:[#allocation417_spill] sm:$0xff] %v12367_v37  ;;  %v1300_v51 = vld [vmem:[#allocation7 + $0x270] sm:$0xff]  ;;  %v1297_v21 = vld [vmem:[#allocation7 + $0x258] sm:$0xff]  ;;  %16287 = vst [vmem:[#allocation419_spill] sm:$0xff] %v12373_v13 }
 0x2f1   : > { %5748 = vmatprep.subr.bf16.mxu1 %v12346_v14  ;;  %v1296_v14 = vld [vmem:[#allocation7 + $0x250] sm:$0xff]  ;;  %v12382_v33 = vcombine.high %v1297_v21, %v1301_v6  ;;  %v12389_v17 = vcombine.low %v1297_v21, %v1301_v6 }
 0x2f2   : > { %v12379_v47 = vcombine.high %v1296_v14, %v1300_v51  ;;  %v12385_v63 = vcombine.low %v1296_v14, %v1300_v51 }
 0x2f3   : > { %5585 = vmatpush1.bf16.msra.mxu0 %v12349_v32  ;;  %16290 = vst [vmem:[#allocation422_spill] sm:$0xff] %v12382_v33  ;;  %v1309_v32 = vld [vmem:[#allocation7 + $0x2b8] sm:$0xff]  ;;  %16292 = vst [vmem:[#allocation424_spill] sm:$0xff] %v12389_v17 }
 0x2f4   : > { %5749 = vmatpush1.bf16.msra.mxu1 %v12353_v36  ;;  %5586 = vmatprep.subr.bf16.mxu0 %v12355_v55  ;;  %16289 = vst [vmem:[#allocation421_spill] sm:$0xff] %v12379_v47  ;;  %v1308_v55 = vld [vmem:[#allocation7 + $0x2b0] sm:$0xff]  ;;  %v1305_v36 = vld [vmem:[#allocation7 + $0x298] sm:$0xff]  ;;  %16291 = vst [vmem:[#allocation423_spill] sm:$0xff] %v12385_v63 }
 0x2f5   : > { %5750 = vmatprep.subr.bf16.mxu1 %v12358_v40  ;;  %v1304_v40 = vld [vmem:[#allocation7 + $0x290] sm:$0xff]  ;;  %v12394_v44 = vcombine.high %v1305_v36, %v1309_v32  ;;  %v12401_v6 = vcombine.low %v1305_v36, %v1309_v32 }
 0x2f6   : > { %v12391_v16 = vcombine.high %v1304_v40, %v1308_v55  ;;  %v12397_v51 = vcombine.low %v1304_v40, %v1308_v55 }
 0x2f7   : > { %5587 = vmatpush1.bf16.msra.mxu0 %v12361_v20  ;;  %16294 = vst [vmem:[#allocation426_spill] sm:$0xff] %v12394_v44  ;;  %v1317_v20 = vld [vmem:[#allocation7 + $0x2f8] sm:$0xff]  ;;  %16296 = vst [vmem:[#allocation428_spill] sm:$0xff] %v12401_v6 }
 0x2f8   : > { %5751 = vmatpush1.bf16.msra.mxu1 %v12365_v1  ;;  %5588 = vmatprep.subr.bf16.mxu0 %v12367_v37  ;;  %16293 = vst [vmem:[#allocation425_spill] sm:$0xff] %v12391_v16  ;;  %v1316_v37 = vld [vmem:[#allocation7 + $0x2f0] sm:$0xff]  ;;  %v1313_v1 = vld [vmem:[#allocation7 + $0x2d8] sm:$0xff]  ;;  %16295 = vst [vmem:[#allocation427_spill] sm:$0xff] %v12397_v51 }
 0x2f9   : > { %5752 = vmatprep.subr.bf16.mxu1 %v12370_v59  ;;  %v1312_v59 = vld [vmem:[#allocation7 + $0x2d0] sm:$0xff]  ;;  %v12406_v14 = vcombine.high %v1313_v1, %v1317_v20  ;;  %v12413_v32 = vcombine.low %v1313_v1, %v1317_v20 }
 0x2fa   : > { %v12403_v21 = vcombine.high %v1312_v59, %v1316_v37  ;;  %v12409_v55 = vcombine.low %v1312_v59, %v1316_v37 }
 0x2fb   : > { %5589 = vmatpush1.bf16.msra.mxu0 %v12373_v13  ;;  %16298 = vst [vmem:[#allocation430_spill] sm:$0xff] %v12406_v14  ;;  %v1325_v13 = vld [vmem:[#allocation7 + $0x338] sm:$0xff]  ;;  %16300 = vst [vmem:[#allocation432_spill] sm:$0xff] %v12413_v32 }
 0x2fc   : > { %5753 = vmatpush1.bf16.msra.mxu1 %v12377_v43  ;;  %5590 = vmatprep.subr.bf16.mxu0 %v12379_v47  ;;  %16297 = vst [vmem:[#allocation429_spill] sm:$0xff] %v12403_v21  ;;  %v1324_v47 = vld [vmem:[#allocation7 + $0x330] sm:$0xff]  ;;  %v1321_v43 = vld [vmem:[#allocation7 + $0x318] sm:$0xff]  ;;  %16299 = vst [vmem:[#allocation431_spill] sm:$0xff] %v12409_v55 }
 0x2fd   : > { %5754 = vmatprep.subr.bf16.mxu1 %v12382_v33  ;;  %v1320_v33 = vld [vmem:[#allocation7 + $0x310] sm:$0xff]  ;;  %v12418_v40 = vcombine.high %v1321_v43, %v1325_v13  ;;  %v12425_v20 = vcombine.low %v1321_v43, %v1325_v13 }
 0x2fe   : > { %v12415_v36 = vcombine.high %v1320_v33, %v1324_v47  ;;  %v12421_v37 = vcombine.low %v1320_v33, %v1324_v47 }
 0x2ff   : > { %5591 = vmatpush1.bf16.msra.mxu0 %v12385_v63  ;;  %16302 = vst [vmem:[#allocation434_spill] sm:$0xff] %v12418_v40  ;;  %v1333_v63 = vld [vmem:[#allocation7 + $0x378] sm:$0xff]  ;;  %16304 = vst [vmem:[#allocation436_spill] sm:$0xff] %v12425_v20 }
 0x300   : > { %5755 = vmatpush1.bf16.msra.mxu1 %v12389_v17  ;;  %5592 = vmatprep.subr.bf16.mxu0 %v12391_v16  ;;  %16301 = vst [vmem:[#allocation433_spill] sm:$0xff] %v12415_v36  ;;  %v1332_v16 = vld [vmem:[#allocation7 + $0x370] sm:$0xff]  ;;  %v1329_v17 = vld [vmem:[#allocation7 + $0x358] sm:$0xff]  ;;  %16303 = vst [vmem:[#allocation435_spill] sm:$0xff] %v12421_v37 }
 0x301   : > { %5756 = vmatprep.subr.bf16.mxu1 %v12394_v44  ;;  %v1328_v44 = vld [vmem:[#allocation7 + $0x350] sm:$0xff]  ;;  %v12430_v59 = vcombine.high %v1329_v17, %v1333_v63  ;;  %v12437_v13 = vcombine.low %v1329_v17, %v1333_v63 }
 0x302   : > { %v12427_v1 = vcombine.high %v1328_v44, %v1332_v16  ;;  %v12433_v47 = vcombine.low %v1328_v44, %v1332_v16 }
 0x303   : > { %5593 = vmatpush1.bf16.msra.mxu0 %v12397_v51  ;;  %16306 = vst [vmem:[#allocation438_spill] sm:$0xff] %v12430_v59  ;;  %v1341_v51 = vld [vmem:[#allocation7 + $0x3b8] sm:$0xff]  ;;  %16308 = vst [vmem:[#allocation440_spill] sm:$0xff] %v12437_v13 }
 0x304   : > { %5757 = vmatpush1.bf16.msra.mxu1 %v12401_v6  ;;  %5594 = vmatprep.subr.bf16.mxu0 %v12403_v21  ;;  %16305 = vst [vmem:[#allocation437_spill] sm:$0xff] %v12427_v1  ;;  %v1340_v21 = vld [vmem:[#allocation7 + $0x3b0] sm:$0xff]  ;;  %v1337_v6 = vld [vmem:[#allocation7 + $0x398] sm:$0xff]  ;;  %16307 = vst [vmem:[#allocation439_spill] sm:$0xff] %v12433_v47 }
 0x305   : > { %5758 = vmatprep.subr.bf16.mxu1 %v12406_v14  ;;  %v1336_v14 = vld [vmem:[#allocation7 + $0x390] sm:$0xff]  ;;  %v12442_v33 = vcombine.high %v1337_v6, %v1341_v51  ;;  %v12449_v63 = vcombine.low %v1337_v6, %v1341_v51 }
 0x306   : > { %v12439_v43 = vcombine.high %v1336_v14, %v1340_v21  ;;  %v12445_v16 = vcombine.low %v1336_v14, %v1340_v21 }
 0x307   : > { %5595 = vmatpush1.bf16.msra.mxu0 %v12409_v55  ;;  %16310 = vst [vmem:[#allocation442_spill] sm:$0xff] %v12442_v33  ;;  %v1349_v55 = vld [vmem:[#allocation7 + $0x3f8] sm:$0xff]  ;;  %16312 = vst [vmem:[#allocation444_spill] sm:$0xff] %v12449_v63 }
 0x308   : > { %5759 = vmatpush1.bf16.msra.mxu1 %v12413_v32  ;;  %5596 = vmatprep.subr.bf16.mxu0 %v12415_v36  ;;  %16309 = vst [vmem:[#allocation441_spill] sm:$0xff] %v12439_v43  ;;  %v1348_v36 = vld [vmem:[#allocation7 + $0x3f0] sm:$0xff]  ;;  %v1345_v32 = vld [vmem:[#allocation7 + $0x3d8] sm:$0xff]  ;;  %16311 = vst [vmem:[#allocation443_spill] sm:$0xff] %v12445_v16 }
 0x309   : > { %5760 = vmatprep.subr.bf16.mxu1 %v12418_v40  ;;  %v1344_v40 = vld [vmem:[#allocation7 + $0x3d0] sm:$0xff]  ;;  %v12454_v44 = vcombine.high %v1345_v32, %v1349_v55  ;;  %v12461_v51 = vcombine.low %v1345_v32, %v1349_v55 }
 0x30a   : > { %v12451_v17 = vcombine.high %v1344_v40, %v1348_v36  ;;  %v12457_v21 = vcombine.low %v1344_v40, %v1348_v36  ;;  %v1361_v36 = vld [vmem:[#allocation7 + $0x458] sm:$0xff] }
 0x30b   : > { %5597 = vmatpush1.bf16.msra.mxu0 %v12421_v37  ;;  %16314 = vst [vmem:[#allocation446_spill] sm:$0xff] %v12454_v44  ;;  %v1357_v37 = vld [vmem:[#allocation7 + $0x438] sm:$0xff]  ;;  %16316 = vst [vmem:[#allocation448_spill] sm:$0xff] %v12461_v51 }
 0x30c   : > { %5761 = vmatpush1.bf16.msra.mxu1 %v12425_v20  ;;  %5598 = vmatprep.subr.bf16.mxu0 %v12427_v1  ;;  %16313 = vst [vmem:[#allocation445_spill] sm:$0xff] %v12451_v17  ;;  %v1356_v1 = vld [vmem:[#allocation7 + $0x430] sm:$0xff]  ;;  %v1353_v20 = vld [vmem:[#allocation7 + $0x418] sm:$0xff]  ;;  %16315 = vst [vmem:[#allocation447_spill] sm:$0xff] %v12457_v21 }
 0x30d   : > { %5762 = vmatprep.subr.bf16.mxu1 %v12430_v59  ;;  %v1352_v59 = vld [vmem:[#allocation7 + $0x410] sm:$0xff]  ;;  %v12466_v14 = vcombine.high %v1353_v20, %v1357_v37  ;;  %v1365_v40 = vld [vmem:[#allocation7 + $0x478] sm:$0xff]  ;;  %v12473_v55 = vcombine.low %v1353_v20, %v1357_v37 }
 0x30e   : > { %v12463_v6 = vcombine.high %v1352_v59, %v1356_v1  ;;  %v12487_v37 = vcombine.low %v1361_v36, %v1365_v40 }
 0x30f   : > { %5599 = vmatpush1.bf16.msra.mxu0 %v12433_v47  ;;  %16318 = vst [vmem:[#allocation450_spill] sm:$0xff] %v12466_v14  ;;  %16320 = vst [vmem:[#allocation452_spill] sm:$0xff] %v12473_v55 }
 0x310   : > { %5763 = vmatpush1.bf16.msra.mxu1 %v12437_v13  ;;  %5600 = vmatprep.subr.bf16.mxu0 %v12439_v43  ;;  %16317 = vst [vmem:[#allocation449_spill] sm:$0xff] %v12463_v6  ;;  %v1364_v43 = vld [vmem:[#allocation7 + $0x470] sm:$0xff]  ;;  %v12469_v13 = vcombine.low %v1352_v59, %v1356_v1  ;;  %v1369_v1 = vld [vmem:[#allocation7 + $0x498] sm:$0xff]  ;;  %16324 = vst [vmem:[#allocation456_spill] sm:$0xff] %v12487_v37 }
 0x311   : > { %5764 = vmatprep.subr.bf16.mxu1 %v12442_v33  ;;  %v1360_v33 = vld [vmem:[#allocation7 + $0x450] sm:$0xff]  ;;  %v1373_v59 = vld [vmem:[#allocation7 + $0x4b8] sm:$0xff] }
 0x312   : > { %16319 = vst [vmem:[#allocation451_spill] sm:$0xff] %v12469_v13  ;;  %v12476_v32 = vcombine.high %v1360_v33, %v1364_v43 }
 0x313   : > { %5601 = vmatpush1.bf16.msra.mxu0 %v12445_v16  ;;  %v1676_v16 = vld [vmem:[#allocation7 + $0xe30] sm:$0xff] }
 0x314   : > { %5765 = vmatpush1.bf16.msra.mxu1 %v12449_v63  ;;  %5602 = vmatprep.subr.bf16.mxu0 %v12451_v17  ;;  %16321 = vst [vmem:[#allocation453_spill] sm:$0xff] %v12476_v32  ;;  %v1372_v17 = vld [vmem:[#allocation7 + $0x4b0] sm:$0xff]  ;;  %v12479_v63 = vcombine.high %v1361_v36, %v1365_v40  ;;  %v12501_v36 = vcombine.low %v1369_v1, %v1373_v59 }
 0x315   : > { %5766 = vmatprep.subr.bf16.mxu1 %v12454_v44  ;;  %v1368_v44 = vld [vmem:[#allocation7 + $0x490] sm:$0xff] }
 0x316   : > { %16322 = vst [vmem:[#allocation454_spill] sm:$0xff] %v12479_v63  ;;  %v12489_v20 = vcombine.high %v1368_v44, %v1372_v17  ;;  %16328 = vst [vmem:[#allocation460_spill] sm:$0xff] %v12501_v36 }
 0x317   : > { %5603 = vmatpush1.bf16.msra.mxu0 %v12457_v21  ;;  %v1389_v21 = vld [vmem:[#allocation7 + $0x538] sm:$0xff] }
 0x318   : > { %5767 = vmatpush1.bf16.msra.mxu1 %v12461_v51  ;;  %5613 = vmatprep.subr.bf16.mxu0 %v12463_v6  ;;  %v12483_v51 = vcombine.low %v1360_v33, %v1364_v43  ;;  %16325 = vst [vmem:[#allocation457_spill] sm:$0xff] %v12489_v20  ;;  %v1376_v6 = vld [vmem:[#allocation7 + $0x4d0] sm:$0xff]  ;;  %v1377_v43 = vld [vmem:[#allocation7 + $0x4d8] sm:$0xff] }
 0x319   : > { %5777 = vmatprep.subr.bf16.mxu1 %v12466_v14  ;;  %v12493_v14 = vcombine.high %v1369_v1, %v1373_v59  ;;  %v1381_v33 = vld [vmem:[#allocation7 + $0x4f8] sm:$0xff] }
 0x31a   : > { %5605 = vmatmul.mubr.bf16.vlgmr.msra.gmra.mrb[20].mxu0 %v11627_v0  ;;  %16323 = vst [vmem:[#allocation455_spill] sm:$0xff] %v12483_v51  ;;  %v12506_v40 = vcombine.high %v1377_v43, %v1381_v33 }
 0x31b   : > { %5769 = vmatmul.mubr.bf16.vlgmr.msra.gmra.mrb[20].mxu1 %v11627_v0  ;;  %5614 = vmatpush1.bf16.msra.mxu0 %v12469_v13  ;;  %16326 = vst [vmem:[#allocation458_spill] sm:$0xff] %v12493_v14  ;;  %v1380_v0 = vld [vmem:[#allocation7 + $0x4f0] sm:$0xff]  ;;  %v12497_v13 = vcombine.low %v1368_v44, %v1372_v17  ;;  %v12513_v44 = vcombine.low %v1377_v43, %v1381_v33 }
 0x31c   : > { %5645 = vmatprep.mubr.bf16.mxu0 %v11635_v26  ;;  %5778 = vmatpush1.bf16.msra.mxu1 %v12473_v55  ;;  %16330 = vst [vmem:[#allocation462_spill] sm:$0xff] %v12506_v40  ;;  %v1385_v55 = vld [vmem:[#allocation7 + $0x518] sm:$0xff]  ;;  %v12509_v17 = vcombine.low %v1376_v6, %v1380_v0 }
 0x31d   : > { %5809 = vmatprep.mubr.bf16.mxu1 %v11635_v26  ;;  %5615 = vmatprep.subr.bf16.mxu0 %v12476_v32  ;;  %16327 = vst [vmem:[#allocation459_spill] sm:$0xff] %v12497_v13  ;;  %v12503_v26 = vcombine.high %v1376_v6, %v1380_v0  ;;  %v1384_v32 = vld [vmem:[#allocation7 + $0x510] sm:$0xff]  ;;  %16332 = vst [vmem:[#allocation464_spill] sm:$0xff] %v12513_v44  ;;  %v12518_v59 = vcombine.high %v1385_v55, %v1389_v21 }
 0x31e   : > { %5779 = vmatprep.subr.bf16.mxu1 %v12479_v63  ;;  %v1388_v63 = vld [vmem:[#allocation7 + $0x530] sm:$0xff]  ;;  %16331 = vst [vmem:[#allocation463_spill] sm:$0xff] %v12509_v17  ;;  %v12525_v0 = vcombine.low %v1385_v55, %v1389_v21 }
 0x31f   : > { %5616 = vmatpush1.bf16.msra.mxu0 %v12483_v51  ;;  %16329 = vst [vmem:[#allocation461_spill] sm:$0xff] %v12503_v26  ;;  %v12515_v1 = vcombine.high %v1384_v32, %v1388_v63  ;;  %16334 = vst [vmem:[#allocation466_spill] sm:$0xff] %v12518_v59  ;;  %v1397_v51 = vld [vmem:[#allocation7 + $0x578] sm:$0xff]  ;;  %v12521_v6 = vcombine.low %v1384_v32, %v1388_v63 }
 0x320   : > { %5780 = vmatpush1.bf16.msra.mxu1 %v12487_v37  ;;  %5617 = vmatprep.subr.bf16.mxu0 %v12489_v20  ;;  %v1396_v20 = vld [vmem:[#allocation7 + $0x570] sm:$0xff]  ;;  %v1393_v37 = vld [vmem:[#allocation7 + $0x558] sm:$0xff]  ;;  %16336 = vst [vmem:[#allocation468_spill] sm:$0xff] %v12525_v0 }
 0x321   : > { %5781 = vmatprep.subr.bf16.mxu1 %v12493_v14  ;;  %16333 = vst [vmem:[#allocation465_spill] sm:$0xff] %v12515_v1  ;;  %v1392_v14 = vld [vmem:[#allocation7 + $0x550] sm:$0xff]  ;;  %16335 = vst [vmem:[#allocation467_spill] sm:$0xff] %v12521_v6  ;;  %v12530_v33 = vcombine.high %v1393_v37, %v1397_v51  ;;  %v12537_v21 = vcombine.low %v1393_v37, %v1397_v51 }
 0x322   : > { %v12527_v43 = vcombine.high %v1392_v14, %v1396_v20  ;;  %v12533_v63 = vcombine.low %v1392_v14, %v1396_v20 }
 0x323   : > { %5618 = vmatpush1.bf16.msra.mxu0 %v12497_v13  ;;  %16338 = vst [vmem:[#allocation470_spill] sm:$0xff] %v12530_v33  ;;  %v1405_v13 = vld [vmem:[#allocation7 + $0x5b8] sm:$0xff]  ;;  %16340 = vst [vmem:[#allocation472_spill] sm:$0xff] %v12537_v21 }
 0x324   : > { %5782 = vmatpush1.bf16.msra.mxu1 %v12501_v36  ;;  %5619 = vmatprep.subr.bf16.mxu0 %v12503_v26  ;;  %16337 = vst [vmem:[#allocation469_spill] sm:$0xff] %v12527_v43  ;;  %v1404_v26 = vld [vmem:[#allocation7 + $0x5b0] sm:$0xff]  ;;  %v1401_v36 = vld [vmem:[#allocation7 + $0x598] sm:$0xff]  ;;  %16339 = vst [vmem:[#allocation471_spill] sm:$0xff] %v12533_v63 }
 0x325   : > { %5783 = vmatprep.subr.bf16.mxu1 %v12506_v40  ;;  %v1400_v40 = vld [vmem:[#allocation7 + $0x590] sm:$0xff]  ;;  %v12542_v32 = vcombine.high %v1401_v36, %v1405_v13  ;;  %v12549_v51 = vcombine.low %v1401_v36, %v1405_v13 }
 0x326   : > { %v12539_v55 = vcombine.high %v1400_v40, %v1404_v26  ;;  %v12545_v14 = vcombine.low %v1400_v40, %v1404_v26 }
 0x327   : > { %5620 = vmatpush1.bf16.msra.mxu0 %v12509_v17  ;;  %16342 = vst [vmem:[#allocation474_spill] sm:$0xff] %v12542_v32  ;;  %v1413_v17 = vld [vmem:[#allocation7 + $0x5f8] sm:$0xff]  ;;  %16344 = vst [vmem:[#allocation476_spill] sm:$0xff] %v12549_v51 }
 0x328   : > { %5784 = vmatpush1.bf16.msra.mxu1 %v12513_v44  ;;  %5621 = vmatprep.subr.bf16.mxu0 %v12515_v1  ;;  %16341 = vst [vmem:[#allocation473_spill] sm:$0xff] %v12539_v55  ;;  %v1412_v1 = vld [vmem:[#allocation7 + $0x5f0] sm:$0xff]  ;;  %v1409_v44 = vld [vmem:[#allocation7 + $0x5d8] sm:$0xff]  ;;  %16343 = vst [vmem:[#allocation475_spill] sm:$0xff] %v12545_v14 }
 0x329   : > { %5785 = vmatprep.subr.bf16.mxu1 %v12518_v59  ;;  %v1408_v59 = vld [vmem:[#allocation7 + $0x5d0] sm:$0xff]  ;;  %v12554_v20 = vcombine.high %v1409_v44, %v1413_v17  ;;  %v12561_v13 = vcombine.low %v1409_v44, %v1413_v17 }
 0x32a   : > { %v12551_v37 = vcombine.high %v1408_v59, %v1412_v1  ;;  %v12557_v26 = vcombine.low %v1408_v59, %v1412_v1 }
 0x32b   : > { %5622 = vmatpush1.bf16.msra.mxu0 %v12521_v6  ;;  %16346 = vst [vmem:[#allocation478_spill] sm:$0xff] %v12554_v20  ;;  %v1421_v6 = vld [vmem:[#allocation7 + $0x638] sm:$0xff]  ;;  %16348 = vst [vmem:[#allocation480_spill] sm:$0xff] %v12561_v13 }
 0x32c   : > { %5786 = vmatpush1.bf16.msra.mxu1 %v12525_v0  ;;  %5623 = vmatprep.subr.bf16.mxu0 %v12527_v43  ;;  %16345 = vst [vmem:[#allocation477_spill] sm:$0xff] %v12551_v37  ;;  %v1420_v43 = vld [vmem:[#allocation7 + $0x630] sm:$0xff]  ;;  %v1417_v0 = vld [vmem:[#allocation7 + $0x618] sm:$0xff]  ;;  %16347 = vst [vmem:[#allocation479_spill] sm:$0xff] %v12557_v26 }
 0x32d   : > { %5787 = vmatprep.subr.bf16.mxu1 %v12530_v33  ;;  %v1416_v33 = vld [vmem:[#allocation7 + $0x610] sm:$0xff]  ;;  %v12566_v40 = vcombine.high %v1417_v0, %v1421_v6  ;;  %v12573_v17 = vcombine.low %v1417_v0, %v1421_v6 }
 0x32e   : > { %v12563_v36 = vcombine.high %v1416_v33, %v1420_v43  ;;  %v12569_v1 = vcombine.low %v1416_v33, %v1420_v43 }
 0x32f   : > { %5624 = vmatpush1.bf16.msra.mxu0 %v12533_v63  ;;  %16350 = vst [vmem:[#allocation482_spill] sm:$0xff] %v12566_v40  ;;  %v1429_v63 = vld [vmem:[#allocation7 + $0x678] sm:$0xff]  ;;  %16352 = vst [vmem:[#allocation484_spill] sm:$0xff] %v12573_v17 }
 0x330   : > { %5788 = vmatpush1.bf16.msra.mxu1 %v12537_v21  ;;  %5625 = vmatprep.subr.bf16.mxu0 %v12539_v55  ;;  %16349 = vst [vmem:[#allocation481_spill] sm:$0xff] %v12563_v36  ;;  %v1428_v55 = vld [vmem:[#allocation7 + $0x670] sm:$0xff]  ;;  %v1425_v21 = vld [vmem:[#allocation7 + $0x658] sm:$0xff]  ;;  %16351 = vst [vmem:[#allocation483_spill] sm:$0xff] %v12569_v1 }
 0x331   : > { %5789 = vmatprep.subr.bf16.mxu1 %v12542_v32  ;;  %v1424_v32 = vld [vmem:[#allocation7 + $0x650] sm:$0xff]  ;;  %v12578_v59 = vcombine.high %v1425_v21, %v1429_v63  ;;  %v12585_v6 = vcombine.low %v1425_v21, %v1429_v63 }
 0x332   : > { %v12575_v44 = vcombine.high %v1424_v32, %v1428_v55  ;;  %v12581_v43 = vcombine.low %v1424_v32, %v1428_v55 }
 0x333   : > { %5626 = vmatpush1.bf16.msra.mxu0 %v12545_v14  ;;  %16354 = vst [vmem:[#allocation486_spill] sm:$0xff] %v12578_v59  ;;  %v1437_v14 = vld [vmem:[#allocation7 + $0x6b8] sm:$0xff]  ;;  %16356 = vst [vmem:[#allocation488_spill] sm:$0xff] %v12585_v6 }
 0x334   : > { %5790 = vmatpush1.bf16.msra.mxu1 %v12549_v51  ;;  %5627 = vmatprep.subr.bf16.mxu0 %v12551_v37  ;;  %16353 = vst [vmem:[#allocation485_spill] sm:$0xff] %v12575_v44  ;;  %v1436_v37 = vld [vmem:[#allocation7 + $0x6b0] sm:$0xff]  ;;  %v1433_v51 = vld [vmem:[#allocation7 + $0x698] sm:$0xff]  ;;  %16355 = vst [vmem:[#allocation487_spill] sm:$0xff] %v12581_v43 }
 0x335   : > { %5791 = vmatprep.subr.bf16.mxu1 %v12554_v20  ;;  %v1432_v20 = vld [vmem:[#allocation7 + $0x690] sm:$0xff]  ;;  %v12590_v33 = vcombine.high %v1433_v51, %v1437_v14  ;;  %v12597_v63 = vcombine.low %v1433_v51, %v1437_v14 }
 0x336   : > { %v12587_v0 = vcombine.high %v1432_v20, %v1436_v37  ;;  %v12593_v55 = vcombine.low %v1432_v20, %v1436_v37 }
 0x337   : > { %5628 = vmatpush1.bf16.msra.mxu0 %v12557_v26  ;;  %16358 = vst [vmem:[#allocation490_spill] sm:$0xff] %v12590_v33  ;;  %v1445_v26 = vld [vmem:[#allocation7 + $0x6f8] sm:$0xff]  ;;  %16360 = vst [vmem:[#allocation492_spill] sm:$0xff] %v12597_v63 }
 0x338   : > { %5792 = vmatpush1.bf16.msra.mxu1 %v12561_v13  ;;  %5629 = vmatprep.subr.bf16.mxu0 %v12563_v36  ;;  %16357 = vst [vmem:[#allocation489_spill] sm:$0xff] %v12587_v0  ;;  %v1444_v36 = vld [vmem:[#allocation7 + $0x6f0] sm:$0xff]  ;;  %v1441_v13 = vld [vmem:[#allocation7 + $0x6d8] sm:$0xff]  ;;  %16359 = vst [vmem:[#allocation491_spill] sm:$0xff] %v12593_v55 }
 0x339   : > { %5793 = vmatprep.subr.bf16.mxu1 %v12566_v40  ;;  %v1440_v40 = vld [vmem:[#allocation7 + $0x6d0] sm:$0xff]  ;;  %v12602_v32 = vcombine.high %v1441_v13, %v1445_v26  ;;  %v12609_v14 = vcombine.low %v1441_v13, %v1445_v26 }
 0x33a   : > { %v12599_v21 = vcombine.high %v1440_v40, %v1444_v36  ;;  %v12605_v37 = vcombine.low %v1440_v40, %v1444_v36 }
 0x33b   : > { %5630 = vmatpush1.bf16.msra.mxu0 %v12569_v1  ;;  %16362 = vst [vmem:[#allocation494_spill] sm:$0xff] %v12602_v32  ;;  %v1453_v1 = vld [vmem:[#allocation7 + $0x738] sm:$0xff]  ;;  %16364 = vst [vmem:[#allocation496_spill] sm:$0xff] %v12609_v14 }
 0x33c   : > { %5794 = vmatpush1.bf16.msra.mxu1 %v12573_v17  ;;  %5631 = vmatprep.subr.bf16.mxu0 %v12575_v44  ;;  %16361 = vst [vmem:[#allocation493_spill] sm:$0xff] %v12599_v21  ;;  %v1452_v44 = vld [vmem:[#allocation7 + $0x730] sm:$0xff]  ;;  %v1449_v17 = vld [vmem:[#allocation7 + $0x718] sm:$0xff]  ;;  %16363 = vst [vmem:[#allocation495_spill] sm:$0xff] %v12605_v37 }
 0x33d   : > { %5795 = vmatprep.subr.bf16.mxu1 %v12578_v59  ;;  %v1448_v59 = vld [vmem:[#allocation7 + $0x710] sm:$0xff]  ;;  %v12614_v20 = vcombine.high %v1449_v17, %v1453_v1  ;;  %v12621_v26 = vcombine.low %v1449_v17, %v1453_v1 }
 0x33e   : > { %v12611_v51 = vcombine.high %v1448_v59, %v1452_v44  ;;  %v12617_v36 = vcombine.low %v1448_v59, %v1452_v44 }
 0x33f   : > { %5632 = vmatpush1.bf16.msra.mxu0 %v12581_v43  ;;  %16366 = vst [vmem:[#allocation498_spill] sm:$0xff] %v12614_v20  ;;  %v1461_v43 = vld [vmem:[#allocation7 + $0x778] sm:$0xff]  ;;  %16368 = vst [vmem:[#allocation500_spill] sm:$0xff] %v12621_v26 }
 0x340   : > { %5796 = vmatpush1.bf16.msra.mxu1 %v12585_v6  ;;  %5633 = vmatprep.subr.bf16.mxu0 %v12587_v0  ;;  %16365 = vst [vmem:[#allocation497_spill] sm:$0xff] %v12611_v51  ;;  %v1460_v0 = vld [vmem:[#allocation7 + $0x770] sm:$0xff]  ;;  %v1457_v6 = vld [vmem:[#allocation7 + $0x758] sm:$0xff]  ;;  %16367 = vst [vmem:[#allocation499_spill] sm:$0xff] %v12617_v36 }
 0x341   : > { %5797 = vmatprep.subr.bf16.mxu1 %v12590_v33  ;;  %v1456_v33 = vld [vmem:[#allocation7 + $0x750] sm:$0xff]  ;;  %v12626_v40 = vcombine.high %v1457_v6, %v1461_v43  ;;  %v12633_v1 = vcombine.low %v1457_v6, %v1461_v43 }
 0x342   : > { %v12623_v13 = vcombine.high %v1456_v33, %v1460_v0  ;;  %v12629_v44 = vcombine.low %v1456_v33, %v1460_v0 }
 0x343   : > { %5634 = vmatpush1.bf16.msra.mxu0 %v12593_v55  ;;  %16370 = vst [vmem:[#allocation502_spill] sm:$0xff] %v12626_v40  ;;  %v1469_v55 = vld [vmem:[#allocation7 + $0x7b8] sm:$0xff]  ;;  %16372 = vst [vmem:[#allocation504_spill] sm:$0xff] %v12633_v1 }
 0x344   : > { %5798 = vmatpush1.bf16.msra.mxu1 %v12597_v63  ;;  %5635 = vmatprep.subr.bf16.mxu0 %v12599_v21  ;;  %16369 = vst [vmem:[#allocation501_spill] sm:$0xff] %v12623_v13  ;;  %v1468_v21 = vld [vmem:[#allocation7 + $0x7b0] sm:$0xff]  ;;  %v1465_v63 = vld [vmem:[#allocation7 + $0x798] sm:$0xff]  ;;  %16371 = vst [vmem:[#allocation503_spill] sm:$0xff] %v12629_v44 }
 0x345   : > { %5799 = vmatprep.subr.bf16.mxu1 %v12602_v32  ;;  %v1464_v32 = vld [vmem:[#allocation7 + $0x790] sm:$0xff]  ;;  %v12638_v59 = vcombine.high %v1465_v63, %v1469_v55  ;;  %v12645_v43 = vcombine.low %v1465_v63, %v1469_v55 }
 0x346   : > { %v12635_v17 = vcombine.high %v1464_v32, %v1468_v21  ;;  %v12641_v0 = vcombine.low %v1464_v32, %v1468_v21 }
 0x347   : > { %5636 = vmatpush1.bf16.msra.mxu0 %v12605_v37  ;;  %16374 = vst [vmem:[#allocation506_spill] sm:$0xff] %v12638_v59  ;;  %v1477_v37 = vld [vmem:[#allocation7 + $0x7f8] sm:$0xff]  ;;  %16376 = vst [vmem:[#allocation508_spill] sm:$0xff] %v12645_v43 }
 0x348   : > { %5800 = vmatpush1.bf16.msra.mxu1 %v12609_v14  ;;  %5637 = vmatprep.subr.bf16.mxu0 %v12611_v51  ;;  %16373 = vst [vmem:[#allocation505_spill] sm:$0xff] %v12635_v17  ;;  %v1476_v51 = vld [vmem:[#allocation7 + $0x7f0] sm:$0xff]  ;;  %v1473_v14 = vld [vmem:[#allocation7 + $0x7d8] sm:$0xff]  ;;  %16375 = vst [vmem:[#allocation507_spill] sm:$0xff] %v12641_v0 }
 0x349   : > { %5801 = vmatprep.subr.bf16.mxu1 %v12614_v20  ;;  %v1472_v20 = vld [vmem:[#allocation7 + $0x7d0] sm:$0xff]  ;;  %v12650_v33 = vcombine.high %v1473_v14, %v1477_v37  ;;  %v12657_v55 = vcombine.low %v1473_v14, %v1477_v37 }
 0x34a   : > { %v12647_v6 = vcombine.high %v1472_v20, %v1476_v51  ;;  %v12653_v21 = vcombine.low %v1472_v20, %v1476_v51  ;;  %v1489_v51 = vld [vmem:[#allocation7 + $0x858] sm:$0xff] }
 0x34b   : > { %5638 = vmatpush1.bf16.msra.mxu0 %v12617_v36  ;;  %16378 = vst [vmem:[#allocation510_spill] sm:$0xff] %v12650_v33  ;;  %v1485_v36 = vld [vmem:[#allocation7 + $0x838] sm:$0xff]  ;;  %16380 = vst [vmem:[#allocation512_spill] sm:$0xff] %v12657_v55 }
 0x34c   : > { %5802 = vmatpush1.bf16.msra.mxu1 %v12621_v26  ;;  %5639 = vmatprep.subr.bf16.mxu0 %v12623_v13  ;;  %16377 = vst [vmem:[#allocation509_spill] sm:$0xff] %v12647_v6  ;;  %v1484_v13 = vld [vmem:[#allocation7 + $0x830] sm:$0xff]  ;;  %v1481_v26 = vld [vmem:[#allocation7 + $0x818] sm:$0xff]  ;;  %16379 = vst [vmem:[#allocation511_spill] sm:$0xff] %v12653_v21 }
 0x34d   : > { %5803 = vmatprep.subr.bf16.mxu1 %v12626_v40  ;;  %v1480_v40 = vld [vmem:[#allocation7 + $0x810] sm:$0xff]  ;;  %v12662_v32 = vcombine.high %v1481_v26, %v1485_v36  ;;  %v1493_v20 = vld [vmem:[#allocation7 + $0x878] sm:$0xff]  ;;  %v12669_v37 = vcombine.low %v1481_v26, %v1485_v36 }
 0x34e   : > { %v12659_v63 = vcombine.high %v1480_v40, %v1484_v13  ;;  %v12683_v36 = vcombine.low %v1489_v51, %v1493_v20 }
 0x34f   : > { %5640 = vmatpush1.bf16.msra.mxu0 %v12629_v44  ;;  %16382 = vst [vmem:[#allocation514_spill] sm:$0xff] %v12662_v32  ;;  %16384 = vst [vmem:[#allocation516_spill] sm:$0xff] %v12669_v37 }
 0x350   : > { %5804 = vmatpush1.bf16.msra.mxu1 %v12633_v1  ;;  %5641 = vmatprep.subr.bf16.mxu0 %v12635_v17  ;;  %16381 = vst [vmem:[#allocation513_spill] sm:$0xff] %v12659_v63  ;;  %v1492_v17 = vld [vmem:[#allocation7 + $0x870] sm:$0xff]  ;;  %v12665_v1 = vcombine.low %v1480_v40, %v1484_v13  ;;  %v1497_v13 = vld [vmem:[#allocation7 + $0x898] sm:$0xff]  ;;  %16388 = vst [vmem:[#allocation520_spill] sm:$0xff] %v12683_v36 }
 0x351   : > { %5805 = vmatprep.subr.bf16.mxu1 %v12638_v59  ;;  %v1488_v59 = vld [vmem:[#allocation7 + $0x850] sm:$0xff]  ;;  %v1501_v40 = vld [vmem:[#allocation7 + $0x8b8] sm:$0xff] }
 0x352   : > { %16383 = vst [vmem:[#allocation515_spill] sm:$0xff] %v12665_v1  ;;  %v12672_v14 = vcombine.high %v1488_v59, %v1492_v17 }
 0x353   : > { %5642 = vmatpush1.bf16.msra.mxu0 %v12641_v0 }
 0x354   : > { %5806 = vmatpush1.bf16.msra.mxu1 %v12645_v43  ;;  %5643 = vmatprep.subr.bf16.mxu0 %v12647_v6  ;;  %16385 = vst [vmem:[#allocation517_spill] sm:$0xff] %v12672_v14  ;;  %v1500_v6 = vld [vmem:[#allocation7 + $0x8b0] sm:$0xff]  ;;  %v12675_v43 = vcombine.high %v1489_v51, %v1493_v20  ;;  %v12697_v51 = vcombine.low %v1497_v13, %v1501_v40 }
 0x355   : > { %5807 = vmatprep.subr.bf16.mxu1 %v12650_v33  ;;  %v1496_v33 = vld [vmem:[#allocation7 + $0x890] sm:$0xff] }
 0x356   : > { %16386 = vst [vmem:[#allocation518_spill] sm:$0xff] %v12675_v43  ;;  %v12685_v26 = vcombine.high %v1496_v33, %v1500_v6  ;;  %16392 = vst [vmem:[#allocation524_spill] sm:$0xff] %v12697_v51 }
 0x357   : > { %5644 = vmatpush1.bf16.msra.mxu0 %v12653_v21  ;;  %v1517_v21 = vld [vmem:[#allocation7 + $0x938] sm:$0xff] }
 0x358   : > { %5808 = vmatpush1.bf16.msra.mxu1 %v12657_v55  ;;  %5654 = vmatprep.subr.bf16.mxu0 %v12659_v63  ;;  %v12679_v55 = vcombine.low %v1488_v59, %v1492_v17  ;;  %16389 = vst [vmem:[#allocation521_spill] sm:$0xff] %v12685_v26  ;;  %v1504_v63 = vld [vmem:[#allocation7 + $0x8d0] sm:$0xff]  ;;  %v1505_v17 = vld [vmem:[#allocation7 + $0x8d8] sm:$0xff] }
 0x359   : > { %5818 = vmatprep.subr.bf16.mxu1 %v12662_v32  ;;  %v12689_v32 = vcombine.high %v1497_v13, %v1501_v40  ;;  %v1509_v59 = vld [vmem:[#allocation7 + $0x8f8] sm:$0xff] }
 0x35a   : > { %5646 = vmatmul.mubr.bf16.vlgmr.msra.gmra.mrb[20].mxu0 %v11850_v3  ;;  %16387 = vst [vmem:[#allocation519_spill] sm:$0xff] %v12679_v55  ;;  %v12702_v20 = vcombine.high %v1505_v17, %v1509_v59 }
 0x35b   : > { %5810 = vmatmul.mubr.bf16.vlgmr.msra.gmra.mrb[20].mxu1 %v11850_v3  ;;  %5655 = vmatpush1.bf16.msra.mxu0 %v12665_v1  ;;  %16390 = vst [vmem:[#allocation522_spill] sm:$0xff] %v12689_v32  ;;  %v1508_v3 = vld [vmem:[#allocation7 + $0x8f0] sm:$0xff]  ;;  %v12693_v1 = vcombine.low %v1496_v33, %v1500_v6  ;;  %v12709_v33 = vcombine.low %v1505_v17, %v1509_v59 }
 0x35c   : > { %5686 = vmatprep.mubr.bf16.mxu0 %v11844_v52  ;;  %5819 = vmatpush1.bf16.msra.mxu1 %v12669_v37  ;;  %16394 = vst [vmem:[#allocation526_spill] sm:$0xff] %v12702_v20  ;;  %v1513_v37 = vld [vmem:[#allocation7 + $0x918] sm:$0xff]  ;;  %v12705_v6 = vcombine.low %v1504_v63, %v1508_v3 }
 0x35d   : > { %5850 = vmatprep.mubr.bf16.mxu1 %v11844_v52  ;;  %5656 = vmatprep.subr.bf16.mxu0 %v12672_v14  ;;  %16391 = vst [vmem:[#allocation523_spill] sm:$0xff] %v12693_v1  ;;  %v12699_v52 = vcombine.high %v1504_v63, %v1508_v3  ;;  %v1512_v14 = vld [vmem:[#allocation7 + $0x910] sm:$0xff]  ;;  %16396 = vst [vmem:[#allocation528_spill] sm:$0xff] %v12709_v33  ;;  %v12714_v40 = vcombine.high %v1513_v37, %v1517_v21 }
 0x35e   : > { %5820 = vmatprep.subr.bf16.mxu1 %v12675_v43  ;;  %v1516_v43 = vld [vmem:[#allocation7 + $0x930] sm:$0xff]  ;;  %16395 = vst [vmem:[#allocation527_spill] sm:$0xff] %v12705_v6  ;;  %v12721_v3 = vcombine.low %v1513_v37, %v1517_v21 }
 0x35f   : > { %5657 = vmatpush1.bf16.msra.mxu0 %v12679_v55  ;;  %16393 = vst [vmem:[#allocation525_spill] sm:$0xff] %v12699_v52  ;;  %v12711_v13 = vcombine.high %v1512_v14, %v1516_v43  ;;  %16398 = vst [vmem:[#allocation530_spill] sm:$0xff] %v12714_v40  ;;  %v1525_v55 = vld [vmem:[#allocation7 + $0x978] sm:$0xff]  ;;  %v12717_v63 = vcombine.low %v1512_v14, %v1516_v43 }
 0x360   : > { %5821 = vmatpush1.bf16.msra.mxu1 %v12683_v36  ;;  %5658 = vmatprep.subr.bf16.mxu0 %v12685_v26  ;;  %v1524_v26 = vld [vmem:[#allocation7 + $0x970] sm:$0xff]  ;;  %v1521_v36 = vld [vmem:[#allocation7 + $0x958] sm:$0xff]  ;;  %16400 = vst [vmem:[#allocation532_spill] sm:$0xff] %v12721_v3 }
 0x361   : > { %5822 = vmatprep.subr.bf16.mxu1 %v12689_v32  ;;  %16397 = vst [vmem:[#allocation529_spill] sm:$0xff] %v12711_v13  ;;  %v1520_v32 = vld [vmem:[#allocation7 + $0x950] sm:$0xff]  ;;  %16399 = vst [vmem:[#allocation531_spill] sm:$0xff] %v12717_v63  ;;  %v12726_v59 = vcombine.high %v1521_v36, %v1525_v55  ;;  %v12733_v21 = vcombine.low %v1521_v36, %v1525_v55 }
 0x362   : > { %v12723_v17 = vcombine.high %v1520_v32, %v1524_v26  ;;  %v12729_v43 = vcombine.low %v1520_v32, %v1524_v26 }
 0x363   : > { %5659 = vmatpush1.bf16.msra.mxu0 %v12693_v1  ;;  %16402 = vst [vmem:[#allocation534_spill] sm:$0xff] %v12726_v59  ;;  %v1533_v1 = vld [vmem:[#allocation7 + $0x9b8] sm:$0xff]  ;;  %16404 = vst [vmem:[#allocation536_spill] sm:$0xff] %v12733_v21 }
 0x364   : > { %5823 = vmatpush1.bf16.msra.mxu1 %v12697_v51  ;;  %5660 = vmatprep.subr.bf16.mxu0 %v12699_v52  ;;  %16401 = vst [vmem:[#allocation533_spill] sm:$0xff] %v12723_v17  ;;  %v1532_v52 = vld [vmem:[#allocation7 + $0x9b0] sm:$0xff]  ;;  %v1529_v51 = vld [vmem:[#allocation7 + $0x998] sm:$0xff]  ;;  %16403 = vst [vmem:[#allocation535_spill] sm:$0xff] %v12729_v43 }
 0x365   : > { %5824 = vmatprep.subr.bf16.mxu1 %v12702_v20  ;;  %v1528_v20 = vld [vmem:[#allocation7 + $0x990] sm:$0xff]  ;;  %v12738_v14 = vcombine.high %v1529_v51, %v1533_v1  ;;  %v12745_v55 = vcombine.low %v1529_v51, %v1533_v1 }
 0x366   : > { %v12735_v37 = vcombine.high %v1528_v20, %v1532_v52  ;;  %v12741_v32 = vcombine.low %v1528_v20, %v1532_v52 }
 0x367   : > { %5661 = vmatpush1.bf16.msra.mxu0 %v12705_v6  ;;  %16406 = vst [vmem:[#allocation538_spill] sm:$0xff] %v12738_v14  ;;  %v1541_v6 = vld [vmem:[#allocation7 + $0x9f8] sm:$0xff]  ;;  %16408 = vst [vmem:[#allocation540_spill] sm:$0xff] %v12745_v55 }
 0x368   : > { %5825 = vmatpush1.bf16.msra.mxu1 %v12709_v33  ;;  %5662 = vmatprep.subr.bf16.mxu0 %v12711_v13  ;;  %16405 = vst [vmem:[#allocation537_spill] sm:$0xff] %v12735_v37  ;;  %v1540_v13 = vld [vmem:[#allocation7 + $0x9f0] sm:$0xff]  ;;  %v1537_v33 = vld [vmem:[#allocation7 + $0x9d8] sm:$0xff]  ;;  %16407 = vst [vmem:[#allocation539_spill] sm:$0xff] %v12741_v32 }
 0x369   : > { %5826 = vmatprep.subr.bf16.mxu1 %v12714_v40  ;;  %v1536_v40 = vld [vmem:[#allocation7 + $0x9d0] sm:$0xff]  ;;  %v12750_v26 = vcombine.high %v1537_v33, %v1541_v6  ;;  %v12757_v1 = vcombine.low %v1537_v33, %v1541_v6 }
 0x36a   : > { %v12747_v36 = vcombine.high %v1536_v40, %v1540_v13  ;;  %v12753_v52 = vcombine.low %v1536_v40, %v1540_v13 }
 0x36b   : > { %5663 = vmatpush1.bf16.msra.mxu0 %v12717_v63  ;;  %16410 = vst [vmem:[#allocation542_spill] sm:$0xff] %v12750_v26  ;;  %v1549_v63 = vld [vmem:[#allocation7 + $0xa38] sm:$0xff]  ;;  %16412 = vst [vmem:[#allocation544_spill] sm:$0xff] %v12757_v1 }
 0x36c   : > { %5827 = vmatpush1.bf16.msra.mxu1 %v12721_v3  ;;  %5664 = vmatprep.subr.bf16.mxu0 %v12723_v17  ;;  %16409 = vst [vmem:[#allocation541_spill] sm:$0xff] %v12747_v36  ;;  %v1548_v17 = vld [vmem:[#allocation7 + $0xa30] sm:$0xff]  ;;  %v1545_v3 = vld [vmem:[#allocation7 + $0xa18] sm:$0xff]  ;;  %16411 = vst [vmem:[#allocation543_spill] sm:$0xff] %v12753_v52 }
 0x36d   : > { %5828 = vmatprep.subr.bf16.mxu1 %v12726_v59  ;;  %v1544_v59 = vld [vmem:[#allocation7 + $0xa10] sm:$0xff]  ;;  %v12762_v20 = vcombine.high %v1545_v3, %v1549_v63  ;;  %v12769_v6 = vcombine.low %v1545_v3, %v1549_v63 }
 0x36e   : > { %v12759_v51 = vcombine.high %v1544_v59, %v1548_v17  ;;  %v12765_v13 = vcombine.low %v1544_v59, %v1548_v17 }
 0x36f   : > { %5665 = vmatpush1.bf16.msra.mxu0 %v12729_v43  ;;  %16414 = vst [vmem:[#allocation546_spill] sm:$0xff] %v12762_v20  ;;  %v1557_v43 = vld [vmem:[#allocation7 + $0xa78] sm:$0xff]  ;;  %16416 = vst [vmem:[#allocation548_spill] sm:$0xff] %v12769_v6 }
 0x370   : > { %5829 = vmatpush1.bf16.msra.mxu1 %v12733_v21  ;;  %5666 = vmatprep.subr.bf16.mxu0 %v12735_v37  ;;  %16413 = vst [vmem:[#allocation545_spill] sm:$0xff] %v12759_v51  ;;  %v1556_v37 = vld [vmem:[#allocation7 + $0xa70] sm:$0xff]  ;;  %v1553_v21 = vld [vmem:[#allocation7 + $0xa58] sm:$0xff]  ;;  %16415 = vst [vmem:[#allocation547_spill] sm:$0xff] %v12765_v13 }
 0x371   : > { %5830 = vmatprep.subr.bf16.mxu1 %v12738_v14  ;;  %v1552_v14 = vld [vmem:[#allocation7 + $0xa50] sm:$0xff]  ;;  %v12774_v40 = vcombine.high %v1553_v21, %v1557_v43  ;;  %v12781_v63 = vcombine.low %v1553_v21, %v1557_v43 }
 0x372   : > { %v12771_v33 = vcombine.high %v1552_v14, %v1556_v37  ;;  %v12777_v17 = vcombine.low %v1552_v14, %v1556_v37 }
 0x373   : > { %5667 = vmatpush1.bf16.msra.mxu0 %v12741_v32  ;;  %16418 = vst [vmem:[#allocation550_spill] sm:$0xff] %v12774_v40  ;;  %v1565_v32 = vld [vmem:[#allocation7 + $0xab8] sm:$0xff]  ;;  %16420 = vst [vmem:[#allocation552_spill] sm:$0xff] %v12781_v63 }
 0x374   : > { %5831 = vmatpush1.bf16.msra.mxu1 %v12745_v55  ;;  %5668 = vmatprep.subr.bf16.mxu0 %v12747_v36  ;;  %16417 = vst [vmem:[#allocation549_spill] sm:$0xff] %v12771_v33  ;;  %v1564_v36 = vld [vmem:[#allocation7 + $0xab0] sm:$0xff]  ;;  %v1561_v55 = vld [vmem:[#allocation7 + $0xa98] sm:$0xff]  ;;  %16419 = vst [vmem:[#allocation551_spill] sm:$0xff] %v12777_v17 }
 0x375   : > { %5832 = vmatprep.subr.bf16.mxu1 %v12750_v26  ;;  %v1560_v26 = vld [vmem:[#allocation7 + $0xa90] sm:$0xff]  ;;  %v12786_v59 = vcombine.high %v1561_v55, %v1565_v32  ;;  %v12793_v43 = vcombine.low %v1561_v55, %v1565_v32 }
 0x376   : > { %v12783_v3 = vcombine.high %v1560_v26, %v1564_v36  ;;  %v12789_v37 = vcombine.low %v1560_v26, %v1564_v36 }
 0x377   : > { %5669 = vmatpush1.bf16.msra.mxu0 %v12753_v52  ;;  %16422 = vst [vmem:[#allocation554_spill] sm:$0xff] %v12786_v59  ;;  %v1573_v52 = vld [vmem:[#allocation7 + $0xaf8] sm:$0xff]  ;;  %16424 = vst [vmem:[#allocation556_spill] sm:$0xff] %v12793_v43 }
 0x378   : > { %5833 = vmatpush1.bf16.msra.mxu1 %v12757_v1  ;;  %5670 = vmatprep.subr.bf16.mxu0 %v12759_v51  ;;  %16421 = vst [vmem:[#allocation553_spill] sm:$0xff] %v12783_v3  ;;  %v1572_v51 = vld [vmem:[#allocation7 + $0xaf0] sm:$0xff]  ;;  %v1569_v1 = vld [vmem:[#allocation7 + $0xad8] sm:$0xff]  ;;  %16423 = vst [vmem:[#allocation555_spill] sm:$0xff] %v12789_v37 }
 0x379   : > { %5834 = vmatprep.subr.bf16.mxu1 %v12762_v20  ;;  %v1568_v20 = vld [vmem:[#allocation7 + $0xad0] sm:$0xff]  ;;  %v12798_v14 = vcombine.high %v1569_v1, %v1573_v52  ;;  %v12805_v32 = vcombine.low %v1569_v1, %v1573_v52 }
 0x37a   : > { %v12795_v21 = vcombine.high %v1568_v20, %v1572_v51  ;;  %v12801_v36 = vcombine.low %v1568_v20, %v1572_v51 }
 0x37b   : > { %5671 = vmatpush1.bf16.msra.mxu0 %v12765_v13  ;;  %16426 = vst [vmem:[#allocation558_spill] sm:$0xff] %v12798_v14  ;;  %v1581_v13 = vld [vmem:[#allocation7 + $0xb38] sm:$0xff]  ;;  %16428 = vst [vmem:[#allocation560_spill] sm:$0xff] %v12805_v32 }
 0x37c   : > { %5835 = vmatpush1.bf16.msra.mxu1 %v12769_v6  ;;  %5672 = vmatprep.subr.bf16.mxu0 %v12771_v33  ;;  %16425 = vst [vmem:[#allocation557_spill] sm:$0xff] %v12795_v21  ;;  %v1580_v33 = vld [vmem:[#allocation7 + $0xb30] sm:$0xff]  ;;  %v1577_v6 = vld [vmem:[#allocation7 + $0xb18] sm:$0xff]  ;;  %16427 = vst [vmem:[#allocation559_spill] sm:$0xff] %v12801_v36 }
 0x37d   : > { %5836 = vmatprep.subr.bf16.mxu1 %v12774_v40  ;;  %v1576_v40 = vld [vmem:[#allocation7 + $0xb10] sm:$0xff]  ;;  %v12810_v26 = vcombine.high %v1577_v6, %v1581_v13  ;;  %v12817_v52 = vcombine.low %v1577_v6, %v1581_v13 }
 0x37e   : > { %v12807_v55 = vcombine.high %v1576_v40, %v1580_v33  ;;  %v12813_v51 = vcombine.low %v1576_v40, %v1580_v33 }
 0x37f   : > { %5673 = vmatpush1.bf16.msra.mxu0 %v12777_v17  ;;  %16430 = vst [vmem:[#allocation562_spill] sm:$0xff] %v12810_v26  ;;  %v1589_v17 = vld [vmem:[#allocation7 + $0xb78] sm:$0xff]  ;;  %16432 = vst [vmem:[#allocation564_spill] sm:$0xff] %v12817_v52 }
 0x380   : > { %5837 = vmatpush1.bf16.msra.mxu1 %v12781_v63  ;;  %5674 = vmatprep.subr.bf16.mxu0 %v12783_v3  ;;  %16429 = vst [vmem:[#allocation561_spill] sm:$0xff] %v12807_v55  ;;  %v1588_v3 = vld [vmem:[#allocation7 + $0xb70] sm:$0xff]  ;;  %v1585_v63 = vld [vmem:[#allocation7 + $0xb58] sm:$0xff]  ;;  %16431 = vst [vmem:[#allocation563_spill] sm:$0xff] %v12813_v51 }
 0x381   : > { %5838 = vmatprep.subr.bf16.mxu1 %v12786_v59  ;;  %v1584_v59 = vld [vmem:[#allocation7 + $0xb50] sm:$0xff]  ;;  %v12822_v20 = vcombine.high %v1585_v63, %v1589_v17  ;;  %v12829_v13 = vcombine.low %v1585_v63, %v1589_v17 }
 0x382   : > { %v12819_v1 = vcombine.high %v1584_v59, %v1588_v3  ;;  %v12825_v33 = vcombine.low %v1584_v59, %v1588_v3 }
 0x383   : > { %5675 = vmatpush1.bf16.msra.mxu0 %v12789_v37  ;;  %16434 = vst [vmem:[#allocation566_spill] sm:$0xff] %v12822_v20  ;;  %v1597_v37 = vld [vmem:[#allocation7 + $0xbb8] sm:$0xff]  ;;  %16436 = vst [vmem:[#allocation568_spill] sm:$0xff] %v12829_v13 }
 0x384   : > { %5839 = vmatpush1.bf16.msra.mxu1 %v12793_v43  ;;  %5676 = vmatprep.subr.bf16.mxu0 %v12795_v21  ;;  %16433 = vst [vmem:[#allocation565_spill] sm:$0xff] %v12819_v1  ;;  %v1596_v21 = vld [vmem:[#allocation7 + $0xbb0] sm:$0xff]  ;;  %v1593_v43 = vld [vmem:[#allocation7 + $0xb98] sm:$0xff]  ;;  %16435 = vst [vmem:[#allocation567_spill] sm:$0xff] %v12825_v33 }
 0x385   : > { %5840 = vmatprep.subr.bf16.mxu1 %v12798_v14  ;;  %v1592_v14 = vld [vmem:[#allocation7 + $0xb90] sm:$0xff]  ;;  %v12834_v40 = vcombine.high %v1593_v43, %v1597_v37  ;;  %v12841_v17 = vcombine.low %v1593_v43, %v1597_v37 }
 0x386   : > { %v12831_v6 = vcombine.high %v1592_v14, %v1596_v21  ;;  %v12837_v3 = vcombine.low %v1592_v14, %v1596_v21 }
 0x387   : > { %5677 = vmatpush1.bf16.msra.mxu0 %v12801_v36  ;;  %16438 = vst [vmem:[#allocation570_spill] sm:$0xff] %v12834_v40  ;;  %v1605_v36 = vld [vmem:[#allocation7 + $0xbf8] sm:$0xff]  ;;  %16440 = vst [vmem:[#allocation572_spill] sm:$0xff] %v12841_v17 }
 0x388   : > { %5841 = vmatpush1.bf16.msra.mxu1 %v12805_v32  ;;  %5678 = vmatprep.subr.bf16.mxu0 %v12807_v55  ;;  %16437 = vst [vmem:[#allocation569_spill] sm:$0xff] %v12831_v6  ;;  %v1604_v55 = vld [vmem:[#allocation7 + $0xbf0] sm:$0xff]  ;;  %v1601_v32 = vld [vmem:[#allocation7 + $0xbd8] sm:$0xff]  ;;  %16439 = vst [vmem:[#allocation571_spill] sm:$0xff] %v12837_v3 }
 0x389   : > { %5842 = vmatprep.subr.bf16.mxu1 %v12810_v26  ;;  %v1600_v26 = vld [vmem:[#allocation7 + $0xbd0] sm:$0xff]  ;;  %v12846_v59 = vcombine.high %v1601_v32, %v1605_v36  ;;  %v12853_v37 = vcombine.low %v1601_v32, %v1605_v36 }
 0x38a   : > { %v12843_v63 = vcombine.high %v1600_v26, %v1604_v55  ;;  %v12849_v21 = vcombine.low %v1600_v26, %v1604_v55  ;;  %v1617_v55 = vld [vmem:[#allocation7 + $0xc58] sm:$0xff] }
 0x38b   : > { %5679 = vmatpush1.bf16.msra.mxu0 %v12813_v51  ;;  %16442 = vst [vmem:[#allocation574_spill] sm:$0xff] %v12846_v59  ;;  %v1613_v51 = vld [vmem:[#allocation7 + $0xc38] sm:$0xff]  ;;  %16444 = vst [vmem:[#allocation576_spill] sm:$0xff] %v12853_v37 }
 0x38c   : > { %5843 = vmatpush1.bf16.msra.mxu1 %v12817_v52  ;;  %5680 = vmatprep.subr.bf16.mxu0 %v12819_v1  ;;  %16441 = vst [vmem:[#allocation573_spill] sm:$0xff] %v12843_v63  ;;  %v1612_v1 = vld [vmem:[#allocation7 + $0xc30] sm:$0xff]  ;;  %v1609_v52 = vld [vmem:[#allocation7 + $0xc18] sm:$0xff]  ;;  %16443 = vst [vmem:[#allocation575_spill] sm:$0xff] %v12849_v21 }
 0x38d   : > { %5844 = vmatprep.subr.bf16.mxu1 %v12822_v20  ;;  %v1608_v20 = vld [vmem:[#allocation7 + $0xc10] sm:$0xff]  ;;  %v12858_v14 = vcombine.high %v1609_v52, %v1613_v51  ;;  %v1621_v26 = vld [vmem:[#allocation7 + $0xc78] sm:$0xff]  ;;  %v12865_v36 = vcombine.low %v1609_v52, %v1613_v51 }
 0x38e   : > { %v12855_v43 = vcombine.high %v1608_v20, %v1612_v1  ;;  %v12879_v51 = vcombine.low %v1617_v55, %v1621_v26 }
 0x38f   : > { %5681 = vmatpush1.bf16.msra.mxu0 %v12825_v33  ;;  %16446 = vst [vmem:[#allocation578_spill] sm:$0xff] %v12858_v14  ;;  %16448 = vst [vmem:[#allocation580_spill] sm:$0xff] %v12865_v36 }
 0x390   : > { %5845 = vmatpush1.bf16.msra.mxu1 %v12829_v13  ;;  %5682 = vmatprep.subr.bf16.mxu0 %v12831_v6  ;;  %16445 = vst [vmem:[#allocation577_spill] sm:$0xff] %v12855_v43  ;;  %v1620_v6 = vld [vmem:[#allocation7 + $0xc70] sm:$0xff]  ;;  %v12861_v13 = vcombine.low %v1608_v20, %v1612_v1  ;;  %v1625_v1 = vld [vmem:[#allocation7 + $0xc98] sm:$0xff]  ;;  %16452 = vst [vmem:[#allocation584_spill] sm:$0xff] %v12879_v51 }
 0x391   : > { %5846 = vmatprep.subr.bf16.mxu1 %v12834_v40  ;;  %v1616_v40 = vld [vmem:[#allocation7 + $0xc50] sm:$0xff]  ;;  %v1629_v20 = vld [vmem:[#allocation7 + $0xcb8] sm:$0xff] }
 0x392   : > { %16447 = vst [vmem:[#allocation579_spill] sm:$0xff] %v12861_v13  ;;  %v12868_v32 = vcombine.high %v1616_v40, %v1620_v6 }
 0x393   : > { %5683 = vmatpush1.bf16.msra.mxu0 %v12837_v3 }
 0x394   : > { %5847 = vmatpush1.bf16.msra.mxu1 %v12841_v17  ;;  %5684 = vmatprep.subr.bf16.mxu0 %v12843_v63  ;;  %16449 = vst [vmem:[#allocation581_spill] sm:$0xff] %v12868_v32  ;;  %v1628_v63 = vld [vmem:[#allocation7 + $0xcb0] sm:$0xff]  ;;  %v12871_v17 = vcombine.high %v1617_v55, %v1621_v26  ;;  %v12893_v55 = vcombine.low %v1625_v1, %v1629_v20 }
 0x395   : > { %5848 = vmatprep.subr.bf16.mxu1 %v12846_v59  ;;  %v1624_v59 = vld [vmem:[#allocation7 + $0xc90] sm:$0xff] }
 0x396   : > { %16450 = vst [vmem:[#allocation582_spill] sm:$0xff] %v12871_v17  ;;  %v12881_v52 = vcombine.high %v1624_v59, %v1628_v63  ;;  %16456 = vst [vmem:[#allocation588_spill] sm:$0xff] %v12893_v55 }
 0x397   : > { %5685 = vmatpush1.bf16.msra.mxu0 %v12849_v21  ;;  %v1645_v21 = vld [vmem:[#allocation7 + $0xd38] sm:$0xff] }
 0x398   : > { %5849 = vmatpush1.bf16.msra.mxu1 %v12853_v37  ;;  %5695 = vmatprep.subr.bf16.mxu0 %v12855_v43  ;;  %v12875_v37 = vcombine.low %v1616_v40, %v1620_v6  ;;  %16453 = vst [vmem:[#allocation585_spill] sm:$0xff] %v12881_v52  ;;  %v1632_v43 = vld [vmem:[#allocation7 + $0xcd0] sm:$0xff]  ;;  %v1633_v6 = vld [vmem:[#allocation7 + $0xcd8] sm:$0xff] }
 0x399   : > { %5859 = vmatprep.subr.bf16.mxu1 %v12858_v14  ;;  %v12885_v14 = vcombine.high %v1625_v1, %v1629_v20  ;;  %v1637_v40 = vld [vmem:[#allocation7 + $0xcf8] sm:$0xff] }
 0x39a   : > { %5687 = vmatmul.mubr.bf16.vlgmr.msra.gmra.mrb[20].mxu0 %v12065_v30  ;;  %16451 = vst [vmem:[#allocation583_spill] sm:$0xff] %v12875_v37  ;;  %v12898_v26 = vcombine.high %v1633_v6, %v1637_v40 }
 0x39b   : > { %5851 = vmatmul.mubr.bf16.vlgmr.msra.gmra.mrb[20].mxu1 %v12065_v30  ;;  %5696 = vmatpush1.bf16.msra.mxu0 %v12861_v13  ;;  %16454 = vst [vmem:[#allocation586_spill] sm:$0xff] %v12885_v14  ;;  %v1636_v30 = vld [vmem:[#allocation7 + $0xcf0] sm:$0xff]  ;;  %v12889_v13 = vcombine.low %v1624_v59, %v1628_v63  ;;  %v12905_v59 = vcombine.low %v1633_v6, %v1637_v40 }
 0x39c   : > { %5727 = vmatprep.mubr.bf16.mxu0 %v12074_v4  ;;  %5860 = vmatpush1.bf16.msra.mxu1 %v12865_v36  ;;  %16458 = vst [vmem:[#allocation590_spill] sm:$0xff] %v12898_v26  ;;  %v1641_v36 = vld [vmem:[#allocation7 + $0xd18] sm:$0xff]  ;;  %v12901_v63 = vcombine.low %v1632_v43, %v1636_v30 }
 0x39d   : > { %5891 = vmatprep.mubr.bf16.mxu1 %v12074_v4  ;;  %5697 = vmatprep.subr.bf16.mxu0 %v12868_v32  ;;  %16455 = vst [vmem:[#allocation587_spill] sm:$0xff] %v12889_v13  ;;  %v12895_v4 = vcombine.high %v1632_v43, %v1636_v30  ;;  %v1640_v32 = vld [vmem:[#allocation7 + $0xd10] sm:$0xff]  ;;  %16460 = vst [vmem:[#allocation592_spill] sm:$0xff] %v12905_v59  ;;  %v12910_v20 = vcombine.high %v1641_v36, %v1645_v21 }
 0x39e   : > { %5861 = vmatprep.subr.bf16.mxu1 %v12871_v17  ;;  %v1644_v17 = vld [vmem:[#allocation7 + $0xd30] sm:$0xff]  ;;  %16459 = vst [vmem:[#allocation591_spill] sm:$0xff] %v12901_v63  ;;  %v12917_v30 = vcombine.low %v1641_v36, %v1645_v21 }
 0x39f   : > { %5698 = vmatpush1.bf16.msra.mxu0 %v12875_v37  ;;  %16457 = vst [vmem:[#allocation589_spill] sm:$0xff] %v12895_v4  ;;  %v12907_v1 = vcombine.high %v1640_v32, %v1644_v17  ;;  %16462 = vst [vmem:[#allocation594_spill] sm:$0xff] %v12910_v20  ;;  %v1653_v37 = vld [vmem:[#allocation7 + $0xd78] sm:$0xff]  ;;  %v12913_v43 = vcombine.low %v1640_v32, %v1644_v17 }
 0x3a0   : > { %5862 = vmatpush1.bf16.msra.mxu1 %v12879_v51  ;;  %5699 = vmatprep.subr.bf16.mxu0 %v12881_v52  ;;  %v1652_v52 = vld [vmem:[#allocation7 + $0xd70] sm:$0xff]  ;;  %v1649_v51 = vld [vmem:[#allocation7 + $0xd58] sm:$0xff]  ;;  %16464 = vst [vmem:[#allocation596_spill] sm:$0xff] %v12917_v30 }
 0x3a1   : > { %5863 = vmatprep.subr.bf16.mxu1 %v12885_v14  ;;  %16461 = vst [vmem:[#allocation593_spill] sm:$0xff] %v12907_v1  ;;  %v1648_v14 = vld [vmem:[#allocation7 + $0xd50] sm:$0xff]  ;;  %16463 = vst [vmem:[#allocation595_spill] sm:$0xff] %v12913_v43  ;;  %v12922_v40 = vcombine.high %v1649_v51, %v1653_v37  ;;  %v12929_v21 = vcombine.low %v1649_v51, %v1653_v37 }
 0x3a2   : > { %v12919_v6 = vcombine.high %v1648_v14, %v1652_v52  ;;  %v12925_v17 = vcombine.low %v1648_v14, %v1652_v52  ;;  %v1665_v52 = vld [vmem:[#allocation7 + $0xdd8] sm:$0xff] }
 0x3a3   : > { %5700 = vmatpush1.bf16.msra.mxu0 %v12889_v13  ;;  %16466 = vst [vmem:[#allocation598_spill] sm:$0xff] %v12922_v40  ;;  %v1661_v13 = vld [vmem:[#allocation7 + $0xdb8] sm:$0xff]  ;;  %16468 = vst [vmem:[#allocation600_spill] sm:$0xff] %v12929_v21 }
 0x3a4   : > { %5864 = vmatpush1.bf16.msra.mxu1 %v12893_v55  ;;  %5701 = vmatprep.subr.bf16.mxu0 %v12895_v4  ;;  %16465 = vst [vmem:[#allocation597_spill] sm:$0xff] %v12919_v6  ;;  %v1660_v4 = vld [vmem:[#allocation7 + $0xdb0] sm:$0xff]  ;;  %v1657_v55 = vld [vmem:[#allocation7 + $0xd98] sm:$0xff]  ;;  %16467 = vst [vmem:[#allocation599_spill] sm:$0xff] %v12925_v17 }
 0x3a5   : > { %5865 = vmatprep.subr.bf16.mxu1 %v12898_v26  ;;  %v1656_v26 = vld [vmem:[#allocation7 + $0xd90] sm:$0xff]  ;;  %v12949_v3 = vcombine.low %v1657_v55, %v1661_v13 }
 0x3a6   : > { %v12931_v36 = vcombine.high %v1656_v26, %v1660_v4  ;;  %v12945_v51 = vcombine.low %v1656_v26, %v1660_v4  ;;  %v1677_v4 = vld [vmem:[#allocation7 + $0xe38] sm:$0xff] }
 0x3a7   : > { %5702 = vmatpush1.bf16.msra.mxu0 %v12901_v63  ;;  %16472 = vst [vmem:[#allocation604_spill] sm:$0xff] %v12949_v3 }
 0x3a8   : > { %5866 = vmatpush1.bf16.msra.mxu1 %v12905_v59  ;;  %5703 = vmatprep.subr.bf16.mxu0 %v12907_v1  ;;  %16469 = vst [vmem:[#allocation601_spill] sm:$0xff] %v12931_v36  ;;  %v1664_v1 = vld [vmem:[#allocation7 + $0xdd0] sm:$0xff]  ;;  %16471 = vst [vmem:[#allocation603_spill] sm:$0xff] %v12945_v51 }
 0x3a9   : > { %5867 = vmatprep.subr.bf16.mxu1 %v12910_v20  ;;  %v12936_v20 = vcombine.high %v1657_v55, %v1661_v13  ;;  %v1668_v59 = vld [vmem:[#allocation7 + $0xdf0] sm:$0xff] }
 0x3aa   : > { %v12951_v33 = vcombine.high %v1664_v1, %v1668_v59  ;;  %v12957_v26 = vcombine.low %v1664_v1, %v1668_v59 }
 0x3ab   : > { %5704 = vmatpush1.bf16.msra.mxu0 %v12913_v43  ;;  %16470 = vst [vmem:[#allocation602_spill] sm:$0xff] %v12936_v20 }
 0x3ac   : > { %5868 = vmatpush1.bf16.msra.mxu1 %v12917_v30  ;;  %5705 = vmatprep.subr.bf16.mxu0 %v12919_v6  ;;  %v1669_v30 = vld [vmem:[#allocation7 + $0xdf8] sm:$0xff]  ;;  %16473 = vst [vmem:[#allocation605_spill] sm:$0xff] %v12951_v33  ;;  %16475 = vst [vmem:[#allocation607_spill] sm:$0xff] %v12957_v26 }
 0x3ad   : > { %v12933_v32 = vpop.f32.mrb[16].mxu0  ;;  %5869 = vmatprep.subr.bf16.mxu1 %v12922_v40  ;;  %v12954_v44 = vcombine.high %v1665_v52, %v1669_v30  ;;  %v12961_v13 = vcombine.low %v1665_v52, %v1669_v30 }
 0x3ae   : > { %v12938_v63 = vpop.f32.mrb[16].mxu1  ;;  %v12940_v14 = vpop.f32.mrb[17].mxu0 }
 0x3af   : > { %v12942_v43 = vpop.f32.mrb[17].mxu1  ;;  %v5405_v37 = vpop.f32.mrb[18].mxu0  ;;  %5706 = vmatpush1.bf16.msra.mxu0 %v12925_v17  ;;  %16474 = vst [vmem:[#allocation606_spill] sm:$0xff] %v12954_v44  ;;  %v1673_v17 = vld [vmem:[#allocation7 + $0xe18] sm:$0xff]  ;;  %16476 = vst [vmem:[#allocation608_spill] sm:$0xff] %v12961_v13 }
 0x3b0   : > { %v5569_v6 = vpop.f32.mrb[18].mxu1  ;;  %5870 = vmatpush1.bf16.msra.mxu1 %v12929_v21  ;;  %v5406_v40 = vpop.f32.mrb[19].mxu0  ;;  %5707 = vmatprep.subr.bf16.mxu0 %v12931_v36  ;;  %v1672_v37 = vld [vmem:[#allocation7 + $0xe10] sm:$0xff]  ;;  %v1685_v36 = vld [vmem:[#allocation7 + $0xe78] sm:$0xff]  ;;  %v12973_v1 = vcombine.low %v1673_v17, %v1677_v4  ;;  %v13040_v21 = vld [vmem:[#allocation9] sm:$0xff] }
 0x3b1   : > { %v5570_v0 = vpop.f32.mrb[19].mxu1  ;;  %5871 = vmatprep.subr.bf16.mxu1 %v12936_v20  ;;  %v12963_v55 = vcombine.high %v1672_v37, %v1676_v16  ;;  %v1680_v6 = vld [vmem:[#allocation7 + $0xe50] sm:$0xff]  ;;  %v1681_v20 = vld [vmem:[#allocation7 + $0xe58] sm:$0xff]  ;;  %v12969_v59 = vcombine.low %v1672_v37, %v1676_v16 }
 0x3b2   : > { %v12966_v0 = vcombine.high %v1673_v17, %v1677_v4  ;;  %v1684_v40 = vld [vmem:[#allocation7 + $0xe70] sm:$0xff]  ;;  %16480 = vst [vmem:[#allocation612_spill] sm:$0xff] %v12973_v1  ;;  %v12978_v52 = vcombine.high %v1681_v20, %v1685_v36  ;;  %v12985_v17 = vcombine.low %v1681_v20, %v1685_v36 }
 0x3b3   : > { %5708 = vmatpush1.bf16.msra.mxu0 %v12945_v51  ;;  %16477 = vst [vmem:[#allocation609_spill] sm:$0xff] %v12963_v55  ;;  %16479 = vst [vmem:[#allocation611_spill] sm:$0xff] %v12969_v59  ;;  %v12975_v30 = vcombine.high %v1680_v6, %v1684_v40  ;;  %v1693_v51 = vld [vmem:[#allocation7 + $0xeb8] sm:$0xff]  ;;  %v12981_v16 = vcombine.low %v1680_v6, %v1684_v40 }
 0x3b4   : > { %5872 = vmatpush1.bf16.msra.mxu1 %v12949_v3  ;;  %5709 = vmatprep.subr.bf16.mxu0 %v12951_v33  ;;  %16478 = vst [vmem:[#allocation610_spill] sm:$0xff] %v12966_v0  ;;  %16482 = vst [vmem:[#allocation614_spill] sm:$0xff] %v12978_v52  ;;  %v1692_v33 = vld [vmem:[#allocation7 + $0xeb0] sm:$0xff]  ;;  %v1689_v3 = vld [vmem:[#allocation7 + $0xe98] sm:$0xff] }
 0x3b5   : > { %5873 = vmatprep.subr.bf16.mxu1 %v12954_v44  ;;  %16481 = vst [vmem:[#allocation613_spill] sm:$0xff] %v12975_v30  ;;  %v1688_v44 = vld [vmem:[#allocation7 + $0xe90] sm:$0xff]  ;;  %16483 = vst [vmem:[#allocation615_spill] sm:$0xff] %v12981_v16  ;;  %v12990_v4 = vcombine.high %v1689_v3, %v1693_v51  ;;  %v12997_v20 = vcombine.low %v1689_v3, %v1693_v51 }
 0x3b6   : > { %16484 = vst [vmem:[#allocation616_spill] sm:$0xff] %v12985_v17  ;;  %v12987_v37 = vcombine.high %v1688_v44, %v1692_v33  ;;  %v12993_v6 = vcombine.low %v1688_v44, %v1692_v33 }
 0x3b7   : > { %5710 = vmatpush1.bf16.msra.mxu0 %v12957_v26  ;;  %16486 = vst [vmem:[#allocation618_spill] sm:$0xff] %v12990_v4  ;;  %v1701_v26 = vld [vmem:[#allocation7 + $0xef8] sm:$0xff]  ;;  %16488 = vst [vmem:[#allocation620_spill] sm:$0xff] %v12997_v20 }
 0x3b8   : > { %5874 = vmatpush1.bf16.msra.mxu1 %v12961_v13  ;;  %5711 = vmatprep.subr.bf16.mxu0 %v12963_v55  ;;  %16485 = vst [vmem:[#allocation617_spill] sm:$0xff] %v12987_v37  ;;  %v1700_v55 = vld [vmem:[#allocation7 + $0xef0] sm:$0xff]  ;;  %v1697_v13 = vld [vmem:[#allocation7 + $0xed8] sm:$0xff]  ;;  %16487 = vst [vmem:[#allocation619_spill] sm:$0xff] %v12993_v6 }
 0x3b9   : > { %5875 = vmatprep.subr.bf16.mxu1 %v12966_v0  ;;  %v1696_v0 = vld [vmem:[#allocation7 + $0xed0] sm:$0xff]  ;;  %v13002_v40 = vcombine.high %v1697_v13, %v1701_v26  ;;  %v13009_v33 = vcombine.low %v1697_v13, %v1701_v26 }
 0x3ba   : > { %v12999_v36 = vcombine.high %v1696_v0, %v1700_v55  ;;  %v13005_v44 = vcombine.low %v1696_v0, %v1700_v55 }
 0x3bb   : > { %5712 = vmatpush1.bf16.msra.mxu0 %v12969_v59  ;;  %16490 = vst [vmem:[#allocation622_spill] sm:$0xff] %v13002_v40  ;;  %v1709_v59 = vld [vmem:[#allocation7 + $0xf38] sm:$0xff]  ;;  %16492 = vst [vmem:[#allocation624_spill] sm:$0xff] %v13009_v33 }
 0x3bc   : > { %5876 = vmatpush1.bf16.msra.mxu1 %v12973_v1  ;;  %5713 = vmatprep.subr.bf16.mxu0 %v12975_v30  ;;  %16489 = vst [vmem:[#allocation621_spill] sm:$0xff] %v12999_v36  ;;  %v1708_v30 = vld [vmem:[#allocation7 + $0xf30] sm:$0xff]  ;;  %v1705_v1 = vld [vmem:[#allocation7 + $0xf18] sm:$0xff]  ;;  %16491 = vst [vmem:[#allocation623_spill] sm:$0xff] %v13005_v44 }
 0x3bd   : > { %5877 = vmatprep.subr.bf16.mxu1 %v12978_v52  ;;  %v1704_v52 = vld [vmem:[#allocation7 + $0xf10] sm:$0xff]  ;;  %v13014_v51 = vcombine.high %v1705_v1, %v1709_v59  ;;  %v13021_v26 = vcombine.low %v1705_v1, %v1709_v59 }
 0x3be   : > { %v13011_v3 = vcombine.high %v1704_v52, %v1708_v30  ;;  %v13017_v55 = vcombine.low %v1704_v52, %v1708_v30 }
 0x3bf   : > { %5714 = vmatpush1.bf16.msra.mxu0 %v12981_v16  ;;  %16494 = vst [vmem:[#allocation626_spill] sm:$0xff] %v13014_v51  ;;  %v1717_v16 = vld [vmem:[#allocation7 + $0xf78] sm:$0xff]  ;;  %16496 = vst [vmem:[#allocation628_spill] sm:$0xff] %v13021_v26 }
 0x3c0   : > { %5878 = vmatpush1.bf16.msra.mxu1 %v12985_v17  ;;  %5715 = vmatprep.subr.bf16.mxu0 %v12987_v37  ;;  %16493 = vst [vmem:[#allocation625_spill] sm:$0xff] %v13011_v3  ;;  %v1716_v37 = vld [vmem:[#allocation7 + $0xf70] sm:$0xff]  ;;  %v1713_v17 = vld [vmem:[#allocation7 + $0xf58] sm:$0xff]  ;;  %16495 = vst [vmem:[#allocation627_spill] sm:$0xff] %v13017_v55 }
 0x3c1   : > { %5879 = vmatprep.subr.bf16.mxu1 %v12990_v4  ;;  %v1712_v4 = vld [vmem:[#allocation7 + $0xf50] sm:$0xff]  ;;  %v13026_v0 = vcombine.high %v1713_v17, %v1717_v16  ;;  %v13033_v59 = vcombine.low %v1713_v17, %v1717_v16 }
 0x3c2   : > { %v13023_v13 = vcombine.high %v1712_v4, %v1716_v37  ;;  %v13029_v30 = vcombine.low %v1712_v4, %v1716_v37 }
 0x3c3   : > { %5716 = vmatpush1.bf16.msra.mxu0 %v12993_v6  ;;  %16498 = vst [vmem:[#allocation630_spill] sm:$0xff] %v13026_v0  ;;  %v1725_v6 = vld [vmem:[#allocation7 + $0xfb8] sm:$0xff]  ;;  %16500 = vst [vmem:[#allocation632_spill] sm:$0xff] %v13033_v59 }
 0x3c4   : > { %5880 = vmatpush1.bf16.msra.mxu1 %v12997_v20  ;;  %5717 = vmatprep.subr.bf16.mxu0 %v12999_v36  ;;  %16497 = vst [vmem:[#allocation629_spill] sm:$0xff] %v13023_v13  ;;  %v1724_v36 = vld [vmem:[#allocation7 + $0xfb0] sm:$0xff]  ;;  %v1721_v20 = vld [vmem:[#allocation7 + $0xf98] sm:$0xff]  ;;  %16499 = vst [vmem:[#allocation631_spill] sm:$0xff] %v13029_v30 }
 0x3c5   : > { %5881 = vmatprep.subr.bf16.mxu1 %v13002_v40  ;;  %v1720_v40 = vld [vmem:[#allocation7 + $0xf90] sm:$0xff]  ;;  %v13038_v52 = vcombine.high %v1721_v20, %v1725_v6  ;;  %v13047_v16 = vcombine.low %v1721_v20, %v1725_v6 }
 0x3c6   : > { %v13035_v1 = vcombine.high %v1720_v40, %v1724_v36  ;;  %v13043_v37 = vcombine.low %v1720_v40, %v1724_v36  ;;  %v9996_v20 = vld [vmem:[#allocation10 + $0x4] ss:$8 sps:$4 sm:$0xff]  }
 0x3c7   : > { %5718 = vmatpush1.bf16.msra.mxu0 %v13005_v44  ;;  %16502 = vst [vmem:[#allocation634_spill] sm:$0xff] %v13038_v52  ;;  %v1733_v44 = vld [vmem:[#allocation7 + $0xff8] sm:$0xff]  ;;  %16503 = vst [vmem:[#allocation635_spill] sm:$0xff] %v13047_v16 }
 0x3c8   : > { %5882 = vmatpush1.bf16.msra.mxu1 %v13009_v33  ;;  %5719 = vmatprep.subr.bf16.mxu0 %v13011_v3  ;;  %16501 = vst [vmem:[#allocation633_spill] sm:$0xff] %v13035_v1  ;;  %v1732_v3 = vld [vmem:[#allocation7 + $0xff0] sm:$0xff]  ;;  %v1729_v33 = vld [vmem:[#allocation7 + $0xfd8] sm:$0xff] }
 0x3c9   : > { %5883 = vmatprep.subr.bf16.mxu1 %v13014_v51  ;;  %v1728_v51 = vld [vmem:[#allocation7 + $0xfd0] sm:$0xff]  ;;  %v13052_v4 = vcombine.high %v1729_v33, %v1733_v44  ;;  %v13068_v6 = vcombine.low %v1729_v33, %v1733_v44  ;;  %v10002_v44 = vld [vmem:[#allocation10 + $0x14] ss:$8 sps:$4 sm:$0xff]  }
 0x3ca   : > { %v13049_v17 = vcombine.high %v1728_v51, %v1732_v3  ;;  %v13064_v40 = vcombine.low %v1728_v51, %v1732_v3  ;;  %v9994_v3 = vld [vmem:[#allocation10] ss:$8 sps:$4 sm:$0xff]  }
 0x3cb   : > { %5720 = vmatpush1.bf16.msra.mxu0 %v13017_v55  ;;  %16505 = vst [vmem:[#allocation637_spill] sm:$0xff] %v13052_v4  ;;  %16510 = vst [vmem:[#allocation641_spill] sm:$0xff] %v13068_v6  ;;  %v9997_v51 = vld [vmem:[#allocation10 + $0x100] ss:$8 sps:$4 sm:$0xff]  }
 0x3cc   : > { %5884 = vmatpush1.bf16.msra.mxu1 %v13021_v26  ;;  %5721 = vmatprep.subr.bf16.mxu0 %v13023_v13  ;;  %16504 = vst [vmem:[#allocation636_spill] sm:$0xff] %v13049_v17  ;;  %16509 = vst [vmem:[#allocation640_spill] sm:$0xff] %v13064_v40 }
 0x3cd   : > { %5885 = vmatprep.subr.bf16.mxu1 %v13026_v0  ;;  %v13056_v0 = vrot.slane %v13040_v21, %v11604_v29 }
 0x3cf   : > { %5722 = vmatpush1.bf16.msra.mxu0 %v13029_v30  ;;  %16506 = vst [vmem:[#allocation638_spill] sm:$0xff] %v13056_v0  ;;  %v16507_v30 = vsub.s32 3, %v11596_v11 }
 0x3d0   : > { %5886 = vmatpush1.bf16.msra.mxu1 %v13033_v59  ;;  %5723 = vmatprep.subr.bf16.mxu0 %v13035_v1  ;;  %v9743_v1 = vadd.f32 %v12940_v14, %v13056_v0  ;;  %v10000_v14 = vld [vmem:[#allocation10 + $0x10] ss:$8 sps:$4 sm:$0xff]   ;;  %v10101_v0 = vld [vmem:[#allocation10 + $0x314] ss:$8 sps:$4 sm:$0xff]  }
 0x3d1   : > { %5887 = vmatprep.subr.bf16.mxu1 %v13038_v52  ;;  %v13061_v36 = vrot.slane %v13040_v21, %v16507_v30  ;;  %v9999_v52 = vld [vmem:[#allocation10 + $0x104] ss:$8 sps:$4 sm:$0xff]  }
 0x3d2   : > { %v5901_v33 = vpack.c.bf16 %v9743_v1, %v9743_v1  ;;  %v10009_v1 = vld [vmem:[#allocation10 + $0x120] ss:$8 sps:$4 sm:$0xff]  }
 0x3d3   : > { %16508 = vst [vmem:[#allocation639_spill] sm:$0xff] %v13061_v36  ;;  %5724 = vmatpush1.bf16.msra.mxu0 %v13043_v37  ;;  %v9745_v30 = vadd.f32 %v12942_v43, %v13061_v36  ;;  %v10003_v43 = vld [vmem:[#allocation10 + $0x110] ss:$8 sps:$4 sm:$0xff]  }
 0x3d4   : > { %5888 = vmatpush1.bf16.msra.mxu1 %v13047_v16  ;;  %5725 = vmatprep.subr.bf16.mxu0 %v13049_v17 }
 0x3d5   : > { %5889 = vmatprep.subr.bf16.mxu1 %v13052_v4  ;;  %v10005_v4 = vld [vmem:[#allocation10 + $0x114] ss:$8 sps:$4 sm:$0xff]   ;;  %v5903_v17 = vpack.c.bf16 %v9745_v30, %v9745_v30 }
 0x3d6   : > { %v10017_v30 = vld [vmem:[#allocation10 + $0x134] ss:$8 sps:$4 sm:$0xff]  }
 0x3d7   : > { %5726 = vmatpush1.bf16.msra.mxu0 %v13064_v40  ;;  %v10008_v40 = vld [vmem:[#allocation10 + $0x24] ss:$8 sps:$4 sm:$0xff]  }
 0x3d8   : > { %5890 = vmatpush1.bf16.msra.mxu1 %v13068_v6  ;;  %6548 = vmatprep.subr.bf16.mxu0 %v9996_v20  ;;  %v10011_v6 = vld [vmem:[#allocation10 + $0x124] ss:$8 sps:$4 sm:$0xff]   ;;  %v10014_v20 = vld [vmem:[#allocation10 + $0x34] ss:$8 sps:$4 sm:$0xff]  }
 0x3d9   : > { %6589 = vmatprep.subr.bf16.mxu1 %v9999_v52  ;;  %v10006_v52 = vld [vmem:[#allocation10 + $0x20] ss:$8 sps:$4 sm:$0xff]  }
 0x3da   : > { %5728 = vmatmul.mubr.bf16.vlgmr.msra.gmra.mrb[20].mxu0 %v12273_v23 }
 0x3db   : > { %5892 = vmatmul.mubr.bf16.vlgmr.msra.gmra.mrb[20].mxu1 %v12273_v23  ;;  %6549 = vmatpush1.bf16.msra.mxu0 %v9994_v3  ;;  %v10012_v23 = vld [vmem:[#allocation10 + $0x30] ss:$8 sps:$4 sm:$0xff]  }
 0x3dc   : > { %6580 = vmatprep.mubr.bf16.mxu0 %v5901_v33  ;;  %6590 = vmatpush1.bf16.msra.mxu1 %v9997_v51  ;;  %v10015_v3 = vld [vmem:[#allocation10 + $0x130] ss:$8 sps:$4 sm:$0xff]   ;;  %v10020_v51 = vld [vmem:[#allocation10 + $0x44] ss:$8 sps:$4 sm:$0xff]  }
 0x3dd   : > { %6621 = vmatprep.mubr.bf16.mxu1 %v5903_v17  ;;  %6550 = vmatprep.subr.bf16.mxu0 %v10002_v44  ;;  %v10023_v33 = vld [vmem:[#allocation10 + $0x144] ss:$8 sps:$4 sm:$0xff]   ;;  %v10018_v17 = vld [vmem:[#allocation10 + $0x40] ss:$8 sps:$4 sm:$0xff]   ;;  %v10026_v44 = vld [vmem:[#allocation10 + $0x54] ss:$8 sps:$4 sm:$0xff]  }
 0x3de   : > { %6591 = vmatprep.subr.bf16.mxu1 %v10005_v4  ;;  %v10021_v4 = vld [vmem:[#allocation10 + $0x140] ss:$8 sps:$4 sm:$0xff]  }
 0x3df   : > { %6551 = vmatpush1.bf16.msra.mxu0 %v10000_v14  ;;  %v10024_v14 = vld [vmem:[#allocation10 + $0x50] ss:$8 sps:$4 sm:$0xff]  }
 0x3e0   : > { %6592 = vmatpush1.bf16.msra.mxu1 %v10003_v43  ;;  %6552 = vmatprep.subr.bf16.mxu0 %v10008_v40  ;;  %v10029_v40 = vld [vmem:[#allocation10 + $0x154] ss:$8 sps:$4 sm:$0xff]   ;;  %v10032_v43 = vld [vmem:[#allocation10 + $0x64] ss:$8 sps:$4 sm:$0xff]  }
 0x3e1   : > { %6593 = vmatprep.subr.bf16.mxu1 %v10011_v6  ;;  %v10027_v6 = vld [vmem:[#allocation10 + $0x150] ss:$8 sps:$4 sm:$0xff]  }
 0x3e3   : > { %6553 = vmatpush1.bf16.msra.mxu0 %v10006_v52  ;;  %v10035_v52 = vld [vmem:[#allocation10 + $0x164] ss:$8 sps:$4 sm:$0xff]  }
 0x3e4   : > { %6594 = vmatpush1.bf16.msra.mxu1 %v10009_v1  ;;  %6554 = vmatprep.subr.bf16.mxu0 %v10014_v20  ;;  %v10030_v1 = vld [vmem:[#allocation10 + $0x60] ss:$8 sps:$4 sm:$0xff]  }
 0x3e5   : > { %6595 = vmatprep.subr.bf16.mxu1 %v10017_v30  ;;  %v10033_v20 = vld [vmem:[#allocation10 + $0x160] ss:$8 sps:$4 sm:$0xff]   ;;  %v10038_v30 = vld [vmem:[#allocation10 + $0x74] ss:$8 sps:$4 sm:$0xff]  }
 0x3e7   : > { %6555 = vmatpush1.bf16.msra.mxu0 %v10012_v23  ;;  %v10041_v23 = vld [vmem:[#allocation10 + $0x174] ss:$8 sps:$4 sm:$0xff]  }
 0x3e8   : > { %6596 = vmatpush1.bf16.msra.mxu1 %v10015_v3  ;;  %6556 = vmatprep.subr.bf16.mxu0 %v10020_v51  ;;  %v10036_v3 = vld [vmem:[#allocation10 + $0x70] ss:$8 sps:$4 sm:$0xff]  }
 0x3e9   : > { %6597 = vmatprep.subr.bf16.mxu1 %v10023_v33  ;;  %v10039_v51 = vld [vmem:[#allocation10 + $0x170] ss:$8 sps:$4 sm:$0xff]   ;;  %v10044_v33 = vld [vmem:[#allocation10 + $0x84] ss:$8 sps:$4 sm:$0xff]  }
 0x3eb   : > { %6557 = vmatpush1.bf16.msra.mxu0 %v10018_v17  ;;  %v10047_v17 = vld [vmem:[#allocation10 + $0x184] ss:$8 sps:$4 sm:$0xff]  }
 0x3ec   : > { %6598 = vmatpush1.bf16.msra.mxu1 %v10021_v4  ;;  %6558 = vmatprep.subr.bf16.mxu0 %v10026_v44  ;;  %v10042_v4 = vld [vmem:[#allocation10 + $0x80] ss:$8 sps:$4 sm:$0xff]  }
 0x3ed   : > { %6599 = vmatprep.subr.bf16.mxu1 %v10029_v40  ;;  %v10045_v44 = vld [vmem:[#allocation10 + $0x180] ss:$8 sps:$4 sm:$0xff]   ;;  %v10050_v40 = vld [vmem:[#allocation10 + $0x94] ss:$8 sps:$4 sm:$0xff]  }
 0x3ef   : > { %6559 = vmatpush1.bf16.msra.mxu0 %v10024_v14  ;;  %v10053_v14 = vld [vmem:[#allocation10 + $0x194] ss:$8 sps:$4 sm:$0xff]  }
 0x3f0   : > { %6600 = vmatpush1.bf16.msra.mxu1 %v10027_v6  ;;  %6560 = vmatprep.subr.bf16.mxu0 %v10032_v43  ;;  %v10048_v6 = vld [vmem:[#allocation10 + $0x90] ss:$8 sps:$4 sm:$0xff]  }
 0x3f1   : > { %6601 = vmatprep.subr.bf16.mxu1 %v10035_v52  ;;  %v10051_v43 = vld [vmem:[#allocation10 + $0x190] ss:$8 sps:$4 sm:$0xff]   ;;  %v10056_v52 = vld [vmem:[#allocation10 + $0xa4] ss:$8 sps:$4 sm:$0xff]  }
 0x3f3   : > { %6561 = vmatpush1.bf16.msra.mxu0 %v10030_v1  ;;  %v10059_v1 = vld [vmem:[#allocation10 + $0x1a4] ss:$8 sps:$4 sm:$0xff]  }
 0x3f4   : > { %6602 = vmatpush1.bf16.msra.mxu1 %v10033_v20  ;;  %6562 = vmatprep.subr.bf16.mxu0 %v10038_v30  ;;  %v10054_v20 = vld [vmem:[#allocation10 + $0xa0] ss:$8 sps:$4 sm:$0xff]  }
 0x3f5   : > { %6603 = vmatprep.subr.bf16.mxu1 %v10041_v23  ;;  %v10057_v30 = vld [vmem:[#allocation10 + $0x1a0] ss:$8 sps:$4 sm:$0xff]   ;;  %v10062_v23 = vld [vmem:[#allocation10 + $0xb4] ss:$8 sps:$4 sm:$0xff]  }
 0x3f7   : > { %6563 = vmatpush1.bf16.msra.mxu0 %v10036_v3  ;;  %v10065_v3 = vld [vmem:[#allocation10 + $0x1b4] ss:$8 sps:$4 sm:$0xff]  }
 0x3f8   : > { %6604 = vmatpush1.bf16.msra.mxu1 %v10039_v51  ;;  %6564 = vmatprep.subr.bf16.mxu0 %v10044_v33  ;;  %v10060_v51 = vld [vmem:[#allocation10 + $0xb0] ss:$8 sps:$4 sm:$0xff]  }
 0x3f9   : > { %6605 = vmatprep.subr.bf16.mxu1 %v10047_v17  ;;  %v10063_v33 = vld [vmem:[#allocation10 + $0x1b0] ss:$8 sps:$4 sm:$0xff]   ;;  %v10068_v17 = vld [vmem:[#allocation10 + $0xc4] ss:$8 sps:$4 sm:$0xff]  }
 0x3fb   : > { %6565 = vmatpush1.bf16.msra.mxu0 %v10042_v4  ;;  %v10071_v4 = vld [vmem:[#allocation10 + $0x1c4] ss:$8 sps:$4 sm:$0xff]  }
 0x3fc   : > { %6606 = vmatpush1.bf16.msra.mxu1 %v10045_v44  ;;  %6566 = vmatprep.subr.bf16.mxu0 %v10050_v40  ;;  %v10066_v44 = vld [vmem:[#allocation10 + $0xc0] ss:$8 sps:$4 sm:$0xff]  }
 0x3fd   : > { %6607 = vmatprep.subr.bf16.mxu1 %v10053_v14  ;;  %v10069_v40 = vld [vmem:[#allocation10 + $0x1c0] ss:$8 sps:$4 sm:$0xff]   ;;  %v10074_v14 = vld [vmem:[#allocation10 + $0xd4] ss:$8 sps:$4 sm:$0xff]  }
 0x3ff   : > { %6567 = vmatpush1.bf16.msra.mxu0 %v10048_v6  ;;  %v10077_v6 = vld [vmem:[#allocation10 + $0x1d4] ss:$8 sps:$4 sm:$0xff]  }
 0x400   : > { %6608 = vmatpush1.bf16.msra.mxu1 %v10051_v43  ;;  %6568 = vmatprep.subr.bf16.mxu0 %v10056_v52  ;;  %v10072_v43 = vld [vmem:[#allocation10 + $0xd0] ss:$8 sps:$4 sm:$0xff]  }
 0x401   : > { %6609 = vmatprep.subr.bf16.mxu1 %v10059_v1  ;;  %v10075_v52 = vld [vmem:[#allocation10 + $0x1d0] ss:$8 sps:$4 sm:$0xff]   ;;  %v10080_v1 = vld [vmem:[#allocation10 + $0xe4] ss:$8 sps:$4 sm:$0xff]  }
 0x403   : > { %6569 = vmatpush1.bf16.msra.mxu0 %v10054_v20  ;;  %v10083_v20 = vld [vmem:[#allocation10 + $0x1e4] ss:$8 sps:$4 sm:$0xff]  }
 0x404   : > { %6610 = vmatpush1.bf16.msra.mxu1 %v10057_v30  ;;  %6570 = vmatprep.subr.bf16.mxu0 %v10062_v23  ;;  %v10078_v30 = vld [vmem:[#allocation10 + $0xe0] ss:$8 sps:$4 sm:$0xff]   ;;  %v13081_v23 = vrot.slane %v13040_v21, %v11599_v48 }
 0x405   : > { %6611 = vmatprep.subr.bf16.mxu1 %v10065_v3  ;;  %v10081_v3 = vld [vmem:[#allocation10 + $0x1e0] ss:$8 sps:$4 sm:$0xff]  }
 0x407   : > { %6571 = vmatpush1.bf16.msra.mxu0 %v10060_v51  ;;  %v10086_v51 = vld [vmem:[#allocation10 + $0xf4] ss:$8 sps:$4 sm:$0xff]  }
 0x408   : > { %6612 = vmatpush1.bf16.msra.mxu1 %v10063_v33  ;;  %6572 = vmatprep.subr.bf16.mxu0 %v10068_v17  ;;  %v16511_v33 = vsub.s32 2, %v11596_v11 }
 0x409   : > { %6613 = vmatprep.subr.bf16.mxu1 %v10071_v4  ;;  %v10089_v4 = vld [vmem:[#allocation10 + $0x1f4] ss:$8 sps:$4 sm:$0xff]  }
 0x40a   : > { %v13086_v17 = vrot.slane %v13040_v21, %v16511_v33 }
 0x40b   : > { %6573 = vmatpush1.bf16.msra.mxu0 %v10066_v44  ;;  %v10084_v44 = vld [vmem:[#allocation10 + $0xf0] ss:$8 sps:$4 sm:$0xff]  }
 0x40c   : > { %6614 = vmatpush1.bf16.msra.mxu1 %v10069_v40  ;;  %6574 = vmatprep.subr.bf16.mxu0 %v10074_v14  ;;  %16512 = vst [vmem:[#allocation642_spill] sm:$0xff] %v13086_v17  ;;  %v9742_v40 = vadd.f32 %v12933_v32, %v13081_v23  ;;  %v10087_v14 = vld [vmem:[#allocation10 + $0x1f0] ss:$8 sps:$4 sm:$0xff]  }
 0x40d   : > { %6615 = vmatprep.subr.bf16.mxu1 %v10077_v6  ;;  %v10092_v6 = vld [vmem:[#allocation10 + $0x204] ss:$8 sps:$4 sm:$0xff]   ;;  %v10096_v32 = vld [vmem:[#allocation10 + $0x210] ss:$8 sps:$4 sm:$0xff]  }
 0x40e   : > { %v5900_v33 = vpack.c.bf16 %v9742_v40, %v9742_v40  ;;  %v10110_v40 = vld [vmem:[#allocation10 + $0x234] ss:$8 sps:$4 sm:$0xff]  }
 0x40f   : > { %6575 = vmatpush1.bf16.msra.mxu0 %v10072_v43  ;;  %v9744_v43 = vadd.f32 %v12938_v63, %v13086_v17  ;;  %v10104_v63 = vld [vmem:[#allocation10 + $0x224] ss:$8 sps:$4 sm:$0xff]  }
 0x410   : > { %6616 = vmatpush1.bf16.msra.mxu1 %v10075_v52  ;;  %6576 = vmatprep.subr.bf16.mxu0 %v10080_v1  ;;  %v10095_v52 = vld [vmem:[#allocation10 + $0x304] ss:$8 sps:$4 sm:$0xff]   ;;  %v10090_v1 = vld [vmem:[#allocation10 + $0x200] ss:$8 sps:$4 sm:$0xff]  }
 0x411   : > { %6617 = vmatprep.subr.bf16.mxu1 %v10083_v20  ;;  %v10093_v20 = vld [vmem:[#allocation10 + $0x300] ss:$8 sps:$4 sm:$0xff]   ;;  %v5902_v36 = vpack.c.bf16 %v9744_v43, %v9744_v43  ;;  %v10116_v43 = vld [vmem:[#allocation10 + $0x244] ss:$8 sps:$4 sm:$0xff]  }
 0x413   : > { %6577 = vmatpush1.bf16.msra.mxu0 %v10078_v30  ;;  %v10098_v30 = vld [vmem:[#allocation10 + $0x214] ss:$8 sps:$4 sm:$0xff]  }
 0x414   : > { %6618 = vmatpush1.bf16.msra.mxu1 %v10081_v3  ;;  %6578 = vmatprep.subr.bf16.mxu0 %v10086_v51  ;;  %v10099_v3 = vld [vmem:[#allocation10 + $0x310] ss:$8 sps:$4 sm:$0xff]   ;;  %v10107_v51 = vld [vmem:[#allocation10 + $0x324] ss:$8 sps:$4 sm:$0xff]  }
 0x415   : > { %6619 = vmatprep.subr.bf16.mxu1 %v10089_v4  ;;  %v10102_v4 = vld [vmem:[#allocation10 + $0x220] ss:$8 sps:$4 sm:$0xff]  }
 0x417   : > { %6579 = vmatpush1.bf16.msra.mxu0 %v10084_v44  ;;  %v10105_v44 = vld [vmem:[#allocation10 + $0x320] ss:$8 sps:$4 sm:$0xff]  }
 0x418   : > { %6620 = vmatpush1.bf16.msra.mxu1 %v10087_v14  ;;  %6630 = vmatprep.subr.bf16.mxu0 %v10092_v6  ;;  %v10113_v14 = vld [vmem:[#allocation10 + $0x334] ss:$8 sps:$4 sm:$0xff]   ;;  %v10108_v6 = vld [vmem:[#allocation10 + $0x230] ss:$8 sps:$4 sm:$0xff]  }
 0x419   : > { %6671 = vmatprep.subr.bf16.mxu1 %v10095_v52  ;;  %v10119_v52 = vld [vmem:[#allocation10 + $0x344] ss:$8 sps:$4 sm:$0xff]  }
 0x41a   : > { %6581 = vmatmul.mubr.bf16.vlgmr.msra.gmra.mrb[24].mxu0 %v5900_v33  ;;  %v10122_v33 = vld [vmem:[#allocation10 + $0x254] ss:$8 sps:$4 sm:$0xff]  }
 0x41b   : > { %6622 = vmatmul.mubr.bf16.vlgmr.msra.gmra.mrb[24].mxu1 %v5902_v36  ;;  %6631 = vmatpush1.bf16.msra.mxu0 %v10090_v1  ;;  %v10111_v36 = vld [vmem:[#allocation10 + $0x330] ss:$8 sps:$4 sm:$0xff]   ;;  %v10114_v1 = vld [vmem:[#allocation10 + $0x240] ss:$8 sps:$4 sm:$0xff]  }
 0x41c   : > { %6672 = vmatpush1.bf16.msra.mxu1 %v10093_v20  ;;  %6632 = vmatprep.subr.bf16.mxu0 %v10098_v30  ;;  %v10125_v20 = vld [vmem:[#allocation10 + $0x354] ss:$8 sps:$4 sm:$0xff]   ;;  %v10120_v30 = vld [vmem:[#allocation10 + $0x250] ss:$8 sps:$4 sm:$0xff]  }
 0x41d   : > { %6673 = vmatprep.subr.bf16.mxu1 %v10101_v0  ;;  %v10117_v0 = vld [vmem:[#allocation10 + $0x340] ss:$8 sps:$4 sm:$0xff]  }
 0x41f   : > { %6633 = vmatpush1.bf16.msra.mxu0 %v10096_v32  ;;  %v10123_v32 = vld [vmem:[#allocation10 + $0x350] ss:$8 sps:$4 sm:$0xff]  }
 0x420   : > { %6674 = vmatpush1.bf16.msra.mxu1 %v10099_v3  ;;  %6634 = vmatprep.subr.bf16.mxu0 %v10104_v63  ;;  %v10128_v3 = vld [vmem:[#allocation10 + $0x264] ss:$8 sps:$4 sm:$0xff]  }
 0x421   : > { %6675 = vmatprep.subr.bf16.mxu1 %v10107_v51  ;;  %v10131_v63 = vld [vmem:[#allocation10 + $0x364] ss:$8 sps:$4 sm:$0xff]   ;;  %v10126_v51 = vld [vmem:[#allocation10 + $0x260] ss:$8 sps:$4 sm:$0xff]  }
 0x423   : > { %6635 = vmatpush1.bf16.msra.mxu0 %v10102_v4  ;;  %v10129_v4 = vld [vmem:[#allocation10 + $0x360] ss:$8 sps:$4 sm:$0xff]  }
 0x424   : > { %6676 = vmatpush1.bf16.msra.mxu1 %v10105_v44  ;;  %6636 = vmatprep.subr.bf16.mxu0 %v10110_v40  ;;  %v10134_v44 = vld [vmem:[#allocation10 + $0x274] ss:$8 sps:$4 sm:$0xff]  }
 0x425   : > { %6677 = vmatprep.subr.bf16.mxu1 %v10113_v14  ;;  %v10137_v40 = vld [vmem:[#allocation10 + $0x374] ss:$8 sps:$4 sm:$0xff]   ;;  %v10132_v14 = vld [vmem:[#allocation10 + $0x270] ss:$8 sps:$4 sm:$0xff]  }
 0x427   : > { %6637 = vmatpush1.bf16.msra.mxu0 %v10108_v6  ;;  %v10135_v6 = vld [vmem:[#allocation10 + $0x370] ss:$8 sps:$4 sm:$0xff]  }
 0x428   : > { %6678 = vmatpush1.bf16.msra.mxu1 %v10111_v36  ;;  %6638 = vmatprep.subr.bf16.mxu0 %v10116_v43  ;;  %v10140_v36 = vld [vmem:[#allocation10 + $0x284] ss:$8 sps:$4 sm:$0xff]  }
 0x429   : > { %6679 = vmatprep.subr.bf16.mxu1 %v10119_v52  ;;  %v10143_v43 = vld [vmem:[#allocation10 + $0x384] ss:$8 sps:$4 sm:$0xff]   ;;  %v10138_v52 = vld [vmem:[#allocation10 + $0x280] ss:$8 sps:$4 sm:$0xff]  }
 0x42b   : > { %6639 = vmatpush1.bf16.msra.mxu0 %v10114_v1  ;;  %v10141_v1 = vld [vmem:[#allocation10 + $0x380] ss:$8 sps:$4 sm:$0xff]  }
 0x42c   : > { %6680 = vmatpush1.bf16.msra.mxu1 %v10117_v0  ;;  %6640 = vmatprep.subr.bf16.mxu0 %v10122_v33  ;;  %v10146_v0 = vld [vmem:[#allocation10 + $0x294] ss:$8 sps:$4 sm:$0xff]  }
 0x42d   : > { %6681 = vmatprep.subr.bf16.mxu1 %v10125_v20  ;;  %v10149_v33 = vld [vmem:[#allocation10 + $0x394] ss:$8 sps:$4 sm:$0xff]   ;;  %v10144_v20 = vld [vmem:[#allocation10 + $0x290] ss:$8 sps:$4 sm:$0xff]  }
 0x42f   : > { %6641 = vmatpush1.bf16.msra.mxu0 %v10120_v30  ;;  %v10147_v30 = vld [vmem:[#allocation10 + $0x390] ss:$8 sps:$4 sm:$0xff]  }
 0x430   : > { %6682 = vmatpush1.bf16.msra.mxu1 %v10123_v32  ;;  %6642 = vmatprep.subr.bf16.mxu0 %v10128_v3  ;;  %v10152_v32 = vld [vmem:[#allocation10 + $0x2a4] ss:$8 sps:$4 sm:$0xff]  }
 0x431   : > { %6683 = vmatprep.subr.bf16.mxu1 %v10131_v63  ;;  %v10155_v3 = vld [vmem:[#allocation10 + $0x3a4] ss:$8 sps:$4 sm:$0xff]   ;;  %v10150_v63 = vld [vmem:[#allocation10 + $0x2a0] ss:$8 sps:$4 sm:$0xff]  }
 0x433   : > { %6643 = vmatpush1.bf16.msra.mxu0 %v10126_v51  ;;  %v10153_v51 = vld [vmem:[#allocation10 + $0x3a0] ss:$8 sps:$4 sm:$0xff]  }
 0x434   : > { %6684 = vmatpush1.bf16.msra.mxu1 %v10129_v4  ;;  %6644 = vmatprep.subr.bf16.mxu0 %v10134_v44  ;;  %v10158_v4 = vld [vmem:[#allocation10 + $0x2b4] ss:$8 sps:$4 sm:$0xff]  }
 0x435   : > { %6685 = vmatprep.subr.bf16.mxu1 %v10137_v40  ;;  %v10161_v44 = vld [vmem:[#allocation10 + $0x3b4] ss:$8 sps:$4 sm:$0xff]   ;;  %v10156_v40 = vld [vmem:[#allocation10 + $0x2b0] ss:$8 sps:$4 sm:$0xff]  }
 0x437   : > { %6645 = vmatpush1.bf16.msra.mxu0 %v10132_v14  ;;  %v10159_v14 = vld [vmem:[#allocation10 + $0x3b0] ss:$8 sps:$4 sm:$0xff]  }
 0x438   : > { %6686 = vmatpush1.bf16.msra.mxu1 %v10135_v6  ;;  %6646 = vmatprep.subr.bf16.mxu0 %v10140_v36  ;;  %v10164_v6 = vld [vmem:[#allocation10 + $0x2c4] ss:$8 sps:$4 sm:$0xff]  }
 0x439   : > { %6687 = vmatprep.subr.bf16.mxu1 %v10143_v43  ;;  %v10167_v36 = vld [vmem:[#allocation10 + $0x3c4] ss:$8 sps:$4 sm:$0xff]   ;;  %v10162_v43 = vld [vmem:[#allocation10 + $0x2c0] ss:$8 sps:$4 sm:$0xff]  }
 0x43b   : > { %6647 = vmatpush1.bf16.msra.mxu0 %v10138_v52  ;;  %v10165_v52 = vld [vmem:[#allocation10 + $0x3c0] ss:$8 sps:$4 sm:$0xff]  }
 0x43c   : > { %6688 = vmatpush1.bf16.msra.mxu1 %v10141_v1  ;;  %6648 = vmatprep.subr.bf16.mxu0 %v10146_v0  ;;  %v10170_v1 = vld [vmem:[#allocation10 + $0x2d4] ss:$8 sps:$4 sm:$0xff]  }
 0x43d   : > { %6689 = vmatprep.subr.bf16.mxu1 %v10149_v33  ;;  %v10173_v0 = vld [vmem:[#allocation10 + $0x3d4] ss:$8 sps:$4 sm:$0xff]   ;;  %v10168_v33 = vld [vmem:[#allocation10 + $0x2d0] ss:$8 sps:$4 sm:$0xff]  }
 0x43f   : > { %6649 = vmatpush1.bf16.msra.mxu0 %v10144_v20  ;;  %v10171_v20 = vld [vmem:[#allocation10 + $0x3d0] ss:$8 sps:$4 sm:$0xff]  }
 0x440   : > { %6690 = vmatpush1.bf16.msra.mxu1 %v10147_v30  ;;  %6650 = vmatprep.subr.bf16.mxu0 %v10152_v32  ;;  %v10176_v30 = vld [vmem:[#allocation10 + $0x2e4] ss:$8 sps:$4 sm:$0xff]  }
 0x441   : > { %6691 = vmatprep.subr.bf16.mxu1 %v10155_v3  ;;  %v10179_v32 = vld [vmem:[#allocation10 + $0x3e4] ss:$8 sps:$4 sm:$0xff]   ;;  %v10174_v3 = vld [vmem:[#allocation10 + $0x2e0] ss:$8 sps:$4 sm:$0xff]  }
 0x443   : > { %6651 = vmatpush1.bf16.msra.mxu0 %v10150_v63  ;;  %v10177_v63 = vld [vmem:[#allocation10 + $0x3e0] ss:$8 sps:$4 sm:$0xff]  }
 0x444   : > { %6692 = vmatpush1.bf16.msra.mxu1 %v10153_v51  ;;  %6652 = vmatprep.subr.bf16.mxu0 %v10158_v4  ;;  %v10182_v51 = vld [vmem:[#allocation10 + $0x2f4] ss:$8 sps:$4 sm:$0xff]  }
 0x445   : > { %6693 = vmatprep.subr.bf16.mxu1 %v10161_v44  ;;  %v10185_v4 = vld [vmem:[#allocation10 + $0x3f4] ss:$8 sps:$4 sm:$0xff]   ;;  %v10180_v44 = vld [vmem:[#allocation10 + $0x2f0] ss:$8 sps:$4 sm:$0xff]  }
 0x447   : > { %6653 = vmatpush1.bf16.msra.mxu0 %v10156_v40  ;;  %v10183_v40 = vld [vmem:[#allocation10 + $0x3f0] ss:$8 sps:$4 sm:$0xff]  }
 0x448   : > { %6694 = vmatpush1.bf16.msra.mxu1 %v10159_v14  ;;  %6654 = vmatprep.subr.bf16.mxu0 %v10164_v6  ;;  %v16513_v14 = vsub.s32 4, %v11596_v11 }
 0x449   : > { %6695 = vmatprep.subr.bf16.mxu1 %v10167_v36  ;;  %v16514_v36 = vsub.s32 6, %v11596_v11 }
 0x44a   : > { %v13097_v6 = vrot.slane %v13040_v21, %v16513_v14 }
 0x44b   : > { %6655 = vmatpush1.bf16.msra.mxu0 %v10162_v43  ;;  %v13102_v43 = vrot.slane %v13040_v21, %v16514_v36 }
 0x44c   : > { %6696 = vmatpush1.bf16.msra.mxu1 %v10165_v52  ;;  %6656 = vmatprep.subr.bf16.mxu0 %v10170_v1  ;;  %v16515_v52 = vsub.s32 5, %v11596_v11 }
 0x44d   : > { %6697 = vmatprep.subr.bf16.mxu1 %v10173_v0  ;;  %v16516_v0 = vsub.s32 7, %v11596_v11 }
 0x44e   : > { %v13107_v1 = vrot.slane %v13040_v21, %v16515_v52 }
 0x44f   : > { %6657 = vmatpush1.bf16.msra.mxu0 %v10168_v33  ;;  %v13112_v33 = vrot.slane %v13040_v21, %v16516_v0 }
 0x450   : > { %6698 = vmatpush1.bf16.msra.mxu1 %v10171_v20  ;;  %6658 = vmatprep.subr.bf16.mxu0 %v10176_v30 }
 0x451   : > { %6699 = vmatprep.subr.bf16.mxu1 %v10179_v32 }
 0x453   : > { %6659 = vmatpush1.bf16.msra.mxu0 %v10174_v3 }
 0x454   : > { %6700 = vmatpush1.bf16.msra.mxu1 %v10177_v63  ;;  %6660 = vmatprep.subr.bf16.mxu0 %v10182_v51 }
 0x455   : > { %6701 = vmatprep.subr.bf16.mxu1 %v10185_v4 }
 0x457   : > { %6661 = vmatpush1.bf16.msra.mxu0 %v10180_v44 }
 0x458   : > { %6702 = vmatpush1.bf16.msra.mxu1 %v10183_v40  ;;  %6718 = vmatprep.subr.bf16.mxu0 %v10968_v7 }
 0x459   : > { %6759 = vmatprep.subr.bf16.mxu1 %v10970_v8 }
 0x4ad   : > { %v5729_v20 = vpop.f32.mrb[20].mxu0 }
 0x4ae   : > { %v9746_v30 = vadd.f32 %v5729_v20, %v13097_v6  ;;  %v5893_v32 = vpop.f32.mrb[20].mxu1  ;;  %v5731_v3 = vpop.f32.mrb[21].mxu0  ;;  %v16518_v20 = vld [vmem:[#allocation23_spill] sm:$0xff] }
 0x4af   : > { %v9748_v63 = vadd.f32 %v5893_v32, %v13102_v43  ;;  %v9747_v51 = vadd.f32 %v5731_v3, %v13107_v1  ;;  %v5895_v4 = vpop.f32.mrb[21].mxu1  ;;  %v5733_v44 = vpop.f32.mrb[22].mxu0  ;;  %v16520_v32 = vld [vmem:[#allocation25_spill] sm:$0xff]  ;;  %v16521_v3 = vld [vmem:[#allocation26_spill] sm:$0xff] }
 0x4b0   : > { %v9749_v40 = vadd.f32 %v5895_v4, %v13112_v33  ;;  %v5897_v14 = vpop.f32.mrb[22].mxu1  ;;  %v5734_v36 = vpop.f32.mrb[23].mxu0  ;;  %v5904_v8 = vpack.c.bf16 %v9746_v30, %v9746_v30  ;;  %v16519_v30 = vld [vmem:[#allocation24_spill] sm:$0xff]  ;;  %v16524_v4 = vld [vmem:[#allocation29_spill] sm:$0xff]  ;;  %v16525_v44 = vld [vmem:[#allocation30_spill] sm:$0xff] }
 0x4b1   : > { %v5905_v52 = vpack.c.bf16 %v9747_v51, %v9747_v51  ;;  %v5898_v11 = vpop.f32.mrb[23].mxu1  ;;  %v5906_v0 = vpack.c.bf16 %v9748_v63, %v9748_v63  ;;  %v16522_v63 = vld [vmem:[#allocation27_spill] sm:$0xff]  ;;  %v16523_v51 = vld [vmem:[#allocation28_spill] sm:$0xff]  ;;  %v16528_v36 = vld [vmem:[#allocation33_spill] sm:$0xff] }
 0x4b2   : > { %v5907_v21 = vpack.c.bf16 %v9749_v40, %v9749_v40  ;;  %v16526_v40 = vld [vmem:[#allocation31_spill] sm:$0xff]  ;;  %v16527_v14 = vld [vmem:[#allocation32_spill] sm:$0xff] }
 0x4b3   : > { %6662 = vmatprep.mubr.bf16.mxu0 %v5905_v52  ;;  %v16529_v52 = vld [vmem:[#allocation34_spill] sm:$0xff]  ;;  %v16530_v11 = vld [vmem:[#allocation35_spill] sm:$0xff] }
 0x4b4   : > { %6703 = vmatprep.mubr.bf16.mxu1 %v5907_v21  ;;  %6663 = vmatmul.mubr.bf16.vlgmr.msra.gmra.mrb[28].mxu0 %v5904_v8  ;;  %v16517_v8 = vld [vmem:[#allocation22_spill] sm:$0xff]  ;;  %v16531_v21 = vld [vmem:[#allocation36_spill] sm:$0xff] }
 0x4b5   : > { %6704 = vmatmul.mubr.bf16.vlgmr.msra.gmra.mrb[28].mxu1 %v5906_v0  ;;  %6719 = vmatpush1.bf16.msra.mxu0 %v10973_v15  ;;  %v16532_v0 = vld [vmem:[#allocation37_spill] sm:$0xff] }
 0x4b6   : > { %6760 = vmatpush1.bf16.msra.mxu1 %v10976_v18  ;;  %6720 = vmatprep.subr.bf16.mxu0 %v10978_v19 }
 0x4b7   : > { %6761 = vmatprep.subr.bf16.mxu1 %v10981_v22 }
 0x4b9   : > { %6721 = vmatpush1.bf16.msra.mxu0 %v10988_v24 }
 0x4ba   : > { %6762 = vmatpush1.bf16.msra.mxu1 %v10992_v27  ;;  %6722 = vmatprep.subr.bf16.mxu0 %v10994_v28 }
 0x4bb   : > { %6763 = vmatprep.subr.bf16.mxu1 %v10997_v31 }
 0x4bd   : > { %6723 = vmatpush1.bf16.msra.mxu0 %v11002_v12 }
 0x4be   : > { %6764 = vmatpush1.bf16.msra.mxu1 %v11006_v34  ;;  %6724 = vmatprep.subr.bf16.mxu0 %v11008_v35 }
 0x4bf   : > { %6765 = vmatprep.subr.bf16.mxu1 %v11011_v38 }
 0x4c1   : > { %6725 = vmatpush1.bf16.msra.mxu0 %v11014_v39 }
 0x4c2   : > { %6766 = vmatpush1.bf16.msra.mxu1 %v11018_v41  ;;  %6726 = vmatprep.subr.bf16.mxu0 %v11020_v42 }
 0x4c3   : > { %6767 = vmatprep.subr.bf16.mxu1 %v11023_v45 }
 0x4c5   : > { %6727 = vmatpush1.bf16.msra.mxu0 %v11026_v46 }
 0x4c6   : > { %6768 = vmatpush1.bf16.msra.mxu1 %v11030_v49  ;;  %6728 = vmatprep.subr.bf16.mxu0 %v11032_v50 }
 0x4c7   : > { %6769 = vmatprep.subr.bf16.mxu1 %v11035_v53 }
 0x4c9   : > { %6729 = vmatpush1.bf16.msra.mxu0 %v11038_v54 }
 0x4ca   : > { %6770 = vmatpush1.bf16.msra.mxu1 %v11042_v57  ;;  %6730 = vmatprep.subr.bf16.mxu0 %v11044_v58  ;;  %v10188_v58 = vld [vmem:[%s10966_s15 + $0x8] sm:$0xff] }
 0x4cb   : > { %6771 = vmatprep.subr.bf16.mxu1 %v11047_v61 }
 0x4cd   : > { %6731 = vmatpush1.bf16.msra.mxu0 %v11050_v62  ;;  %v10187_v62 = vld [vmem:[%s10966_s15] sm:$0xff] }
 0x4ce   : > { %6772 = vmatpush1.bf16.msra.mxu1 %v11054_v2  ;;  %6732 = vmatprep.subr.bf16.mxu0 %v16517_v8  ;;  %v16551_v8 = vld [vmem:[#allocation56_spill] sm:$0xff]  ;;  %v16554_v2 = vld [vmem:[#allocation59_spill] sm:$0xff] }
 0x4cf   : > { %6773 = vmatprep.subr.bf16.mxu1 %v16518_v20 }
 0x4d1   : > { %6733 = vmatpush1.bf16.msra.mxu0 %v16519_v30  ;;  %v16550_v30 = vld [vmem:[#allocation55_spill] sm:$0xff] }
 0x4d2   : > { %6774 = vmatpush1.bf16.msra.mxu1 %v16520_v32  ;;  %6734 = vmatprep.subr.bf16.mxu0 %v16521_v3 }
 0x4d3   : > { %6775 = vmatprep.subr.bf16.mxu1 %v16522_v63  ;;  %v16533_v63 = vld [vmem:[#allocation38_spill] sm:$0xff] }
 0x4d5   : > { %6735 = vmatpush1.bf16.msra.mxu0 %v16523_v51  ;;  %v16534_v51 = vld [vmem:[#allocation39_spill] sm:$0xff] }
 0x4d6   : > { %6776 = vmatpush1.bf16.msra.mxu1 %v16524_v4  ;;  %6736 = vmatprep.subr.bf16.mxu0 %v16525_v44  ;;  %v16535_v4 = vld [vmem:[#allocation40_spill] sm:$0xff]  ;;  %v16536_v44 = vld [vmem:[#allocation41_spill] sm:$0xff] }
 0x4d7   : > { %6777 = vmatprep.subr.bf16.mxu1 %v16526_v40  ;;  %v16537_v40 = vld [vmem:[#allocation42_spill] sm:$0xff] }
 0x4d9   : > { %6737 = vmatpush1.bf16.msra.mxu0 %v16527_v14  ;;  %v16538_v14 = vld [vmem:[#allocation43_spill] sm:$0xff] }
 0x4da   : > { %6778 = vmatpush1.bf16.msra.mxu1 %v16528_v36  ;;  %6738 = vmatprep.subr.bf16.mxu0 %v16529_v52  ;;  %v16539_v36 = vld [vmem:[#allocation44_spill] sm:$0xff]  ;;  %v16540_v52 = vld [vmem:[#allocation45_spill] sm:$0xff] }
 0x4db   : > { %6779 = vmatprep.subr.bf16.mxu1 %v16530_v11  ;;  %v16541_v11 = vld [vmem:[#allocation46_spill] sm:$0xff] }
 0x4dd   : > { %6739 = vmatpush1.bf16.msra.mxu0 %v16531_v21  ;;  %v16542_v21 = vld [vmem:[#allocation47_spill] sm:$0xff] }
 0x4de   : > { %6780 = vmatpush1.bf16.msra.mxu1 %v16532_v0  ;;  %6740 = vmatprep.subr.bf16.mxu0 %v16533_v63  ;;  %v16543_v0 = vld [vmem:[#allocation48_spill] sm:$0xff]  ;;  %v16544_v63 = vld [vmem:[#allocation49_spill] sm:$0xff] }
 0x4df   : > { %6781 = vmatprep.subr.bf16.mxu1 %v16534_v51  ;;  %v16545_v51 = vld [vmem:[#allocation50_spill] sm:$0xff] }
 0x4e1   : > { %6741 = vmatpush1.bf16.msra.mxu0 %v16535_v4  ;;  %v16546_v4 = vld [vmem:[#allocation51_spill] sm:$0xff] }
 0x4e2   : > { %6782 = vmatpush1.bf16.msra.mxu1 %v16536_v44  ;;  %6742 = vmatprep.subr.bf16.mxu0 %v16537_v40  ;;  %v16547_v40 = vld [vmem:[#allocation52_spill] sm:$0xff] }
 0x4e3   : > { %6783 = vmatprep.subr.bf16.mxu1 %v16538_v14 }
 0x4e5   : > { %6743 = vmatpush1.bf16.msra.mxu0 %v16539_v36  ;;  %v16548_v36 = vld [vmem:[#allocation53_spill] sm:$0xff] }
 0x4e6   : > { %6784 = vmatpush1.bf16.msra.mxu1 %v16540_v52  ;;  %6744 = vmatprep.subr.bf16.mxu0 %v16541_v11  ;;  %v16549_v52 = vld [vmem:[#allocation54_spill] sm:$0xff] }
 0x4e7   : > { %6785 = vmatprep.subr.bf16.mxu1 %v16542_v21 }
 0x4e9   : > { %6745 = vmatpush1.bf16.msra.mxu0 %v16543_v0 }
 0x4ea   : > { %6786 = vmatpush1.bf16.msra.mxu1 %v16544_v63  ;;  %6746 = vmatprep.subr.bf16.mxu0 %v16545_v51 }
 0x4eb   : > { %6787 = vmatprep.subr.bf16.mxu1 %v16546_v4  ;;  %v16552_v4 = vld [vmem:[#allocation57_spill] sm:$0xff] }
 0x4ed   : > { %v6582_v44 = vpop.f32.mrb[24].mxu0  ;;  %6747 = vmatpush1.bf16.msra.mxu0 %v16547_v40  ;;  %v16553_v40 = vld [vmem:[#allocation58_spill] sm:$0xff] }
 0x4ee   : > { %v6623_v14 = vpop.f32.mrb[24].mxu1  ;;  %v6584_v3 = vpop.f32.mrb[25].mxu0  ;;  %6788 = vmatpush1.bf16.msra.mxu1 %v16548_v36  ;;  %6748 = vmatprep.subr.bf16.mxu0 %v16549_v52  ;;  %v492_v52 = vld [vmem:[#allocation12] sm:$0x3] }
 0x4ef   : > { %v6624_v11 = vadd.f32 %v6623_v14, %v6582_v44  ;;  %v6625_v32 = vpop.f32.mrb[25].mxu1  ;;  %v6586_v21 = vpop.f32.mrb[26].mxu0  ;;  %6789 = vmatprep.subr.bf16.mxu1 %v16550_v30 }
 0x4f0   : > { %v6626_v0 = vadd.f32 %v6625_v32, %v6584_v3  ;;  %v6627_v63 = vpop.f32.mrb[26].mxu1  ;;  %v6587_v20 = vpop.f32.mrb[27].mxu0 }
 0x4f1   : > { %v6628_v51 = vpop.f32.mrb[27].mxu1  ;;  %6749 = vmatpush1.bf16.msra.mxu0 %v16551_v8  ;;  %v13183_v20 = vrot.slane %v492_v52, %v11599_v48 }
 0x4f2   : > { %6790 = vmatpush1.bf16.msra.mxu1 %v16552_v4  ;;  %6800 = vmatprep.subr.bf16.mxu0 %v16553_v40  ;;  %v13186_v40 = vrot.slane %v492_v52, %v11604_v29  ;;  %v16563_v29 = vld [vmem:[#allocation64_spill] sm:$0xff]  ;;  %v16566_v52 = vld [vmem:[#allocation67_spill] sm:$0xff] }
 0x4f3   : > { %6841 = vmatprep.subr.bf16.mxu1 %v16554_v2  ;;  %16555 = vst [vmem:[#allocation643_spill] sm:$0xff] %v13183_v20 }
 0x4f4   : > { %16556 = vst [vmem:[#allocation644_spill] sm:$0xff] %v13186_v40 }
 0x587   : > { %v6664_v36 = vpop.f32.mrb[28].mxu0 }
 0x588   : > { %v6665_v44 = vadd.f32 %v6664_v36, %v6624_v11  ;;  %v6705_v14 = vpop.f32.mrb[28].mxu1  ;;  %v6666_v21 = vpop.f32.mrb[29].mxu0 }
 0x589   : > { %v6667_v30 = vadd.f32 %v6666_v21, %v6626_v0  ;;  %v6707_v32 = vpop.f32.mrb[29].mxu1  ;;  %v6668_v3 = vpop.f32.mrb[30].mxu0  ;;  %v16569_v21 = vld [vmem:[#allocation70_spill] sm:$0xff] }
 0x58a   : > { %v6706_v63 = vadd.f32 %v6705_v14, %v6665_v44  ;;  %v6709_v51 = vpop.f32.mrb[30].mxu1  ;;  %v6669_v4 = vpop.f32.mrb[31].mxu0  ;;  %v16567_v44 = vld [vmem:[#allocation68_spill] sm:$0xff]  ;;  %v16568_v14 = vld [vmem:[#allocation69_spill] sm:$0xff] }
 0x58b   : > { %v6708_v2 = vadd.f32 %v6707_v32, %v6667_v30  ;;  %v6710_v8 = vpop.f32.mrb[31].mxu1  ;;  %v16565_v30 = vld [vmem:[#allocation66_spill] sm:$0xff]  ;;  %v16570_v32 = vld [vmem:[#allocation71_spill] sm:$0xff]  ;;  %v16571_v3 = vld [vmem:[#allocation72_spill] sm:$0xff] }
 0x58c   : > { %v6712_v61 = vadd.f32 %v10187_v62, %v6706_v63  ;;  %v16561_v62 = vld [vmem:[#allocation62_spill] sm:$0xff]  ;;  %v16564_v8 = vld [vmem:[#allocation65_spill] sm:$0xff] }
 0x58d   : > { %v6713_v36 = vadd.f32 %v10188_v58, %v6708_v2  ;;  %v16559_v58 = vld [vmem:[#allocation60_spill] sm:$0xff]  ;;  %v16562_v2 = vld [vmem:[#allocation63_spill] sm:$0xff]  ;;  %v16572_v63 = vld [vmem:[#allocation73_spill] sm:$0xff] }
 0x58e   : > { %v13191_v11 = vadd.f32 %v6712_v61, %v13183_v20  ;;  %v16560_v61 = vld [vmem:[#allocation61_spill] sm:$0xff]  ;;  %v16573_v51 = vld [vmem:[#allocation74_spill] sm:$0xff] }
 0x58f   : > { %v13194_v0 = vadd.f32 %v6713_v36, %v13186_v40  ;;  %v16574_v36 = vld [vmem:[#allocation75_spill] sm:$0xff] }
 0x590   : > { %16557 = vst [vmem:[#allocation645_spill] sm:$0xff] %v13191_v11  ;;  %v13200_v4 = vpack.c.bf16 %v13191_v11, %v13191_v11 }
 0x591   : > { %16558 = vst [vmem:[#allocation646_spill] sm:$0xff] %v13194_v0  ;;  %v6717_v48 = vpack.c.bf16 %v13194_v0, %v13194_v0  ;;  %v16752_v0 = vld [vmem:[#allocation253_spill] sm:$0xff] }
 0x593   : > { %6750 = vmatprep.mubr.bf16.mxu0 %v6717_v48  ;;  %6791 = vmatprep.mubr.bf16.mxu1 %v6717_v48 }
 0x594   : > { %6751 = vmatmul.mubr.bf16.vlgmr.msra.gmra.mrb[32].mxu0 %v13200_v4  ;;  %6792 = vmatmul.mubr.bf16.vlgmr.msra.gmra.mrb[32].mxu1 %v13200_v4 }
 0x595   : > { %6801 = vmatpush1.bf16.msra.mxu0 %v16559_v58  ;;  %6842 = vmatpush1.bf16.msra.mxu1 %v16560_v61 }
 0x596   : > { %6832 = vmatprep.mubr.bf16.mxu0 %v6717_v48  ;;  %6873 = vmatprep.mubr.bf16.mxu1 %v6717_v48  ;;  %v16575_v48 = vld [vmem:[#allocation76_spill] sm:$0xff] }
 0x597   : > { %6802 = vmatprep.subr.bf16.mxu0 %v16561_v62  ;;  %6843 = vmatprep.subr.bf16.mxu1 %v16562_v2 }
 0x599   : > { %6803 = vmatpush1.bf16.msra.mxu0 %v16563_v29  ;;  %6844 = vmatpush1.bf16.msra.mxu1 %v16564_v8 }
 0x59a   : > { %6804 = vmatprep.subr.bf16.mxu0 %v16565_v30  ;;  %6845 = vmatprep.subr.bf16.mxu1 %v16566_v52  ;;  %v16576_v30 = vld [vmem:[#allocation77_spill] sm:$0xff]  ;;  %v16577_v52 = vld [vmem:[#allocation78_spill] sm:$0xff] }
 0x59d   : > { %6805 = vmatpush1.bf16.msra.mxu0 %v16567_v44  ;;  %6846 = vmatpush1.bf16.msra.mxu1 %v16568_v14  ;;  %v16578_v44 = vld [vmem:[#allocation79_spill] sm:$0xff]  ;;  %v16579_v14 = vld [vmem:[#allocation80_spill] sm:$0xff] }
 0x59e   : > { %6806 = vmatprep.subr.bf16.mxu0 %v16569_v21  ;;  %6847 = vmatprep.subr.bf16.mxu1 %v16570_v32  ;;  %v16580_v21 = vld [vmem:[#allocation81_spill] sm:$0xff]  ;;  %v16581_v32 = vld [vmem:[#allocation82_spill] sm:$0xff] }
 0x5a1   : > { %6807 = vmatpush1.bf16.msra.mxu0 %v16571_v3  ;;  %6848 = vmatpush1.bf16.msra.mxu1 %v16572_v63  ;;  %v16582_v3 = vld [vmem:[#allocation83_spill] sm:$0xff]  ;;  %v16583_v63 = vld [vmem:[#allocation84_spill] sm:$0xff] }
 0x5a2   : > { %6808 = vmatprep.subr.bf16.mxu0 %v16573_v51  ;;  %6849 = vmatprep.subr.bf16.mxu1 %v16574_v36  ;;  %v16584_v51 = vld [vmem:[#allocation85_spill] sm:$0xff]  ;;  %v16585_v36 = vld [vmem:[#allocation86_spill] sm:$0xff] }
 0x5a5   : > { %6809 = vmatpush1.bf16.msra.mxu0 %v16575_v48  ;;  %6850 = vmatpush1.bf16.msra.mxu1 %v16576_v30  ;;  %v16586_v48 = vld [vmem:[#allocation87_spill] sm:$0xff]  ;;  %v16587_v30 = vld [vmem:[#allocation88_spill] sm:$0xff] }
 0x5a6   : > { %6810 = vmatprep.subr.bf16.mxu0 %v16577_v52  ;;  %6851 = vmatprep.subr.bf16.mxu1 %v16578_v44  ;;  %v16588_v52 = vld [vmem:[#allocation89_spill] sm:$0xff]  ;;  %v16589_v44 = vld [vmem:[#allocation90_spill] sm:$0xff] }
 0x5a9   : > { %6811 = vmatpush1.bf16.msra.mxu0 %v16579_v14  ;;  %6852 = vmatpush1.bf16.msra.mxu1 %v16580_v21  ;;  %v16590_v14 = vld [vmem:[#allocation91_spill] sm:$0xff]  ;;  %v16591_v21 = vld [vmem:[#allocation92_spill] sm:$0xff] }
 0x5aa   : > { %6812 = vmatprep.subr.bf16.mxu0 %v16581_v32  ;;  %6853 = vmatprep.subr.bf16.mxu1 %v16582_v3  ;;  %v16592_v32 = vld [vmem:[#allocation93_spill] sm:$0xff]  ;;  %v16593_v3 = vld [vmem:[#allocation94_spill] sm:$0xff] }
 0x5ad   : > { %6813 = vmatpush1.bf16.msra.mxu0 %v16583_v63  ;;  %6854 = vmatpush1.bf16.msra.mxu1 %v16584_v51  ;;  %v16594_v63 = vld [vmem:[#allocation95_spill] sm:$0xff]  ;;  %v16595_v51 = vld [vmem:[#allocation96_spill] sm:$0xff] }
 0x5ae   : > { %6814 = vmatprep.subr.bf16.mxu0 %v16585_v36  ;;  %6855 = vmatprep.subr.bf16.mxu1 %v16586_v48  ;;  %v16596_v36 = vld [vmem:[#allocation97_spill] sm:$0xff]  ;;  %v16597_v48 = vld [vmem:[#allocation98_spill] sm:$0xff] }
 0x5b1   : > { %6815 = vmatpush1.bf16.msra.mxu0 %v16587_v30  ;;  %6856 = vmatpush1.bf16.msra.mxu1 %v16588_v52  ;;  %v16598_v30 = vld [vmem:[#allocation99_spill] sm:$0xff]  ;;  %v16599_v52 = vld [vmem:[#allocation100_spill] sm:$0xff] }
 0x5b2   : > { %6816 = vmatprep.subr.bf16.mxu0 %v16589_v44  ;;  %6857 = vmatprep.subr.bf16.mxu1 %v16590_v14  ;;  %v16600_v44 = vld [vmem:[#allocation101_spill] sm:$0xff]  ;;  %v16601_v14 = vld [vmem:[#allocation102_spill] sm:$0xff] }
 0x5b5   : > { %6817 = vmatpush1.bf16.msra.mxu0 %v16591_v21  ;;  %6858 = vmatpush1.bf16.msra.mxu1 %v16592_v32  ;;  %v16602_v21 = vld [vmem:[#allocation103_spill] sm:$0xff]  ;;  %v16603_v32 = vld [vmem:[#allocation104_spill] sm:$0xff] }
 0x5b6   : > { %6818 = vmatprep.subr.bf16.mxu0 %v16593_v3  ;;  %6859 = vmatprep.subr.bf16.mxu1 %v16594_v63  ;;  %v16604_v3 = vld [vmem:[#allocation105_spill] sm:$0xff]  ;;  %v16605_v63 = vld [vmem:[#allocation106_spill] sm:$0xff] }
 0x5b9   : > { %6819 = vmatpush1.bf16.msra.mxu0 %v16595_v51  ;;  %6860 = vmatpush1.bf16.msra.mxu1 %v16596_v36  ;;  %v16606_v51 = vld [vmem:[#allocation107_spill] sm:$0xff]  ;;  %v16607_v36 = vld [vmem:[#allocation108_spill] sm:$0xff] }
 0x5ba   : > { %6820 = vmatprep.subr.bf16.mxu0 %v16597_v48  ;;  %6861 = vmatprep.subr.bf16.mxu1 %v16598_v30  ;;  %v16608_v48 = vld [vmem:[#allocation109_spill] sm:$0xff]  ;;  %v16609_v30 = vld [vmem:[#allocation110_spill] sm:$0xff] }
 0x5bd   : > { %6821 = vmatpush1.bf16.msra.mxu0 %v16599_v52  ;;  %6862 = vmatpush1.bf16.msra.mxu1 %v16600_v44  ;;  %v16610_v52 = vld [vmem:[#allocation111_spill] sm:$0xff]  ;;  %v16611_v44 = vld [vmem:[#allocation112_spill] sm:$0xff] }
 0x5be   : > { %6822 = vmatprep.subr.bf16.mxu0 %v16601_v14  ;;  %6863 = vmatprep.subr.bf16.mxu1 %v16602_v21  ;;  %v16612_v14 = vld [vmem:[#allocation113_spill] sm:$0xff]  ;;  %v16613_v21 = vld [vmem:[#allocation114_spill] sm:$0xff] }
 0x5c1   : > { %6823 = vmatpush1.bf16.msra.mxu0 %v16603_v32  ;;  %6864 = vmatpush1.bf16.msra.mxu1 %v16604_v3  ;;  %v16614_v32 = vld [vmem:[#allocation115_spill] sm:$0xff]  ;;  %v16615_v3 = vld [vmem:[#allocation116_spill] sm:$0xff] }
 0x5c2   : > { %6824 = vmatprep.subr.bf16.mxu0 %v16605_v63  ;;  %6865 = vmatprep.subr.bf16.mxu1 %v16606_v51  ;;  %v16616_v63 = vld [vmem:[#allocation117_spill] sm:$0xff]  ;;  %v16617_v51 = vld [vmem:[#allocation118_spill] sm:$0xff] }
 0x5c5   : > { %6825 = vmatpush1.bf16.msra.mxu0 %v16607_v36  ;;  %6866 = vmatpush1.bf16.msra.mxu1 %v16608_v48  ;;  %v16618_v36 = vld [vmem:[#allocation119_spill] sm:$0xff]  ;;  %v16619_v48 = vld [vmem:[#allocation120_spill] sm:$0xff] }
 0x5c6   : > { %6826 = vmatprep.subr.bf16.mxu0 %v16609_v30  ;;  %6867 = vmatprep.subr.bf16.mxu1 %v16610_v52  ;;  %v16620_v30 = vld [vmem:[#allocation121_spill] sm:$0xff]  ;;  %v16621_v52 = vld [vmem:[#allocation122_spill] sm:$0xff] }
 0x5c9   : > { %6827 = vmatpush1.bf16.msra.mxu0 %v16611_v44  ;;  %6868 = vmatpush1.bf16.msra.mxu1 %v16612_v14  ;;  %v16622_v44 = vld [vmem:[#allocation123_spill] sm:$0xff] }
 0x5ca   : > { %6828 = vmatprep.subr.bf16.mxu0 %v16613_v21  ;;  %6869 = vmatprep.subr.bf16.mxu1 %v16614_v32  ;;  %v16623_v32 = vld [vmem:[#allocation124_spill] sm:$0xff]  ;;  %v16632_v21 = vld [vmem:[#allocation133_spill] sm:$0xff] }
 0x5cd   : > { %6829 = vmatpush1.bf16.msra.mxu0 %v16615_v3  ;;  %6870 = vmatpush1.bf16.msra.mxu1 %v16616_v63  ;;  %v16624_v3 = vld [vmem:[#allocation125_spill] sm:$0xff]  ;;  %v16625_v63 = vld [vmem:[#allocation126_spill] sm:$0xff] }
 0x5ce   : > { %6830 = vmatprep.subr.bf16.mxu0 %v16617_v51  ;;  %6871 = vmatprep.subr.bf16.mxu1 %v16618_v36  ;;  %v16626_v51 = vld [vmem:[#allocation127_spill] sm:$0xff]  ;;  %v16627_v36 = vld [vmem:[#allocation128_spill] sm:$0xff] }
 0x5d1   : > { %6831 = vmatpush1.bf16.msra.mxu0 %v16619_v48  ;;  %6872 = vmatpush1.bf16.msra.mxu1 %v16620_v30  ;;  %v16628_v48 = vld [vmem:[#allocation129_spill] sm:$0xff]  ;;  %v16629_v30 = vld [vmem:[#allocation130_spill] sm:$0xff] }
 0x5d2   : > { %6898 = vmatprep.subr.bf16.mxu0 %v16621_v52  ;;  %7062 = vmatprep.subr.bf16.mxu1 %v16622_v44  ;;  %v16630_v52 = vld [vmem:[#allocation131_spill] sm:$0xff]  ;;  %v16631_v44 = vld [vmem:[#allocation132_spill] sm:$0xff] }
 0x5d4   : > { %6833 = vmatmul.mubr.bf16.vlgmr.msra.gmra.mrb[36].mxu0 %v13200_v4  ;;  %6874 = vmatmul.mubr.bf16.vlgmr.msra.gmra.mrb[36].mxu1 %v13200_v4  ;;  %v16633_v4 = vld [vmem:[#allocation134_spill] sm:$0xff] }
 0x5d5   : > { %6899 = vmatpush1.bf16.msra.mxu0 %v16623_v32  ;;  %7063 = vmatpush1.bf16.msra.mxu1 %v16624_v3  ;;  %v16634_v32 = vld [vmem:[#allocation135_spill] sm:$0xff]  ;;  %v16635_v3 = vld [vmem:[#allocation136_spill] sm:$0xff] }
 0x5d6   : > { %6900 = vmatprep.subr.bf16.mxu0 %v16625_v63  ;;  %7064 = vmatprep.subr.bf16.mxu1 %v16626_v51  ;;  %v16636_v63 = vld [vmem:[#allocation137_spill] sm:$0xff]  ;;  %v16637_v51 = vld [vmem:[#allocation138_spill] sm:$0xff] }
 0x5d9   : > { %6901 = vmatpush1.bf16.msra.mxu0 %v16627_v36  ;;  %7065 = vmatpush1.bf16.msra.mxu1 %v16628_v48  ;;  %v16638_v36 = vld [vmem:[#allocation139_spill] sm:$0xff]  ;;  %v16639_v48 = vld [vmem:[#allocation140_spill] sm:$0xff] }
 0x5da   : > { %6902 = vmatprep.subr.bf16.mxu0 %v16629_v30  ;;  %7066 = vmatprep.subr.bf16.mxu1 %v16630_v52  ;;  %v16640_v30 = vld [vmem:[#allocation141_spill] sm:$0xff]  ;;  %v16641_v52 = vld [vmem:[#allocation142_spill] sm:$0xff] }
 0x5dd   : > { %6903 = vmatpush1.bf16.msra.mxu0 %v16631_v44  ;;  %7067 = vmatpush1.bf16.msra.mxu1 %v16632_v21  ;;  %v16642_v44 = vld [vmem:[#allocation143_spill] sm:$0xff]  ;;  %v16643_v21 = vld [vmem:[#allocation144_spill] sm:$0xff] }
 0x5de   : > { %6904 = vmatprep.subr.bf16.mxu0 %v16633_v4  ;;  %7068 = vmatprep.subr.bf16.mxu1 %v16634_v32  ;;  %v16644_v4 = vld [vmem:[#allocation145_spill] sm:$0xff]  ;;  %v16645_v32 = vld [vmem:[#allocation146_spill] sm:$0xff] }
 0x5e1   : > { %6905 = vmatpush1.bf16.msra.mxu0 %v16635_v3  ;;  %7069 = vmatpush1.bf16.msra.mxu1 %v16636_v63  ;;  %v16646_v3 = vld [vmem:[#allocation147_spill] sm:$0xff]  ;;  %v16647_v63 = vld [vmem:[#allocation148_spill] sm:$0xff] }
 0x5e2   : > { %6906 = vmatprep.subr.bf16.mxu0 %v16637_v51  ;;  %7070 = vmatprep.subr.bf16.mxu1 %v16638_v36  ;;  %v16648_v51 = vld [vmem:[#allocation149_spill] sm:$0xff]  ;;  %v16649_v36 = vld [vmem:[#allocation150_spill] sm:$0xff] }
 0x5e5   : > { %6907 = vmatpush1.bf16.msra.mxu0 %v16639_v48  ;;  %7071 = vmatpush1.bf16.msra.mxu1 %v16640_v30  ;;  %v16650_v48 = vld [vmem:[#allocation151_spill] sm:$0xff]  ;;  %v16651_v30 = vld [vmem:[#allocation152_spill] sm:$0xff] }
 0x5e6   : > { %6908 = vmatprep.subr.bf16.mxu0 %v16641_v52  ;;  %7072 = vmatprep.subr.bf16.mxu1 %v16642_v44  ;;  %v16652_v52 = vld [vmem:[#allocation155_spill] sm:$0xff]  ;;  %v16653_v44 = vld [vmem:[#allocation156_spill] sm:$0xff] }
 0x5e9   : > { %6909 = vmatpush1.bf16.msra.mxu0 %v16643_v21  ;;  %7073 = vmatpush1.bf16.msra.mxu1 %v16644_v4  ;;  %v16654_v21 = vld [vmem:[#allocation157_spill] sm:$0xff]  ;;  %v16655_v4 = vld [vmem:[#allocation158_spill] sm:$0xff] }
 0x5ea   : > { %6910 = vmatprep.subr.bf16.mxu0 %v16645_v32  ;;  %7074 = vmatprep.subr.bf16.mxu1 %v16646_v3  ;;  %v16656_v32 = vld [vmem:[#allocation159_spill] sm:$0xff]  ;;  %v16657_v3 = vld [vmem:[#allocation160_spill] sm:$0xff] }
 0x5ed   : > { %6911 = vmatpush1.bf16.msra.mxu0 %v16647_v63  ;;  %7075 = vmatpush1.bf16.msra.mxu1 %v16648_v51  ;;  %v16658_v63 = vld [vmem:[#allocation161_spill] sm:$0xff]  ;;  %v16659_v51 = vld [vmem:[#allocation162_spill] sm:$0xff] }
 0x5ee   : > { %6912 = vmatprep.subr.bf16.mxu0 %v16649_v36  ;;  %7076 = vmatprep.subr.bf16.mxu1 %v16650_v48  ;;  %v16660_v36 = vld [vmem:[#allocation163_spill] sm:$0xff]  ;;  %v16661_v48 = vld [vmem:[#allocation164_spill] sm:$0xff] }
 0x5f1   : > { %6913 = vmatpush1.bf16.msra.mxu0 %v16651_v30  ;;  %7077 = vmatpush1.bf16.msra.mxu1 %v16652_v52  ;;  %v16662_v30 = vld [vmem:[#allocation165_spill] sm:$0xff]  ;;  %v16663_v52 = vld [vmem:[#allocation166_spill] sm:$0xff] }
 0x5f2   : > { %6914 = vmatprep.subr.bf16.mxu0 %v16653_v44  ;;  %7078 = vmatprep.subr.bf16.mxu1 %v16654_v21  ;;  %v16664_v44 = vld [vmem:[#allocation167_spill] sm:$0xff]  ;;  %v16665_v21 = vld [vmem:[#allocation168_spill] sm:$0xff] }
 0x5f5   : > { %6915 = vmatpush1.bf16.msra.mxu0 %v16655_v4  ;;  %7079 = vmatpush1.bf16.msra.mxu1 %v16656_v32  ;;  %v16666_v4 = vld [vmem:[#allocation169_spill] sm:$0xff]  ;;  %v16667_v32 = vld [vmem:[#allocation170_spill] sm:$0xff] }
 0x5f6   : > { %6916 = vmatprep.subr.bf16.mxu0 %v16657_v3  ;;  %7080 = vmatprep.subr.bf16.mxu1 %v16658_v63  ;;  %v16668_v3 = vld [vmem:[#allocation171_spill] sm:$0xff]  ;;  %v16669_v63 = vld [vmem:[#allocation172_spill] sm:$0xff] }
 0x5f9   : > { %6917 = vmatpush1.bf16.msra.mxu0 %v16659_v51  ;;  %7081 = vmatpush1.bf16.msra.mxu1 %v16660_v36  ;;  %v16670_v51 = vld [vmem:[#allocation173_spill] sm:$0xff]  ;;  %v16671_v36 = vld [vmem:[#allocation174_spill] sm:$0xff] }
 0x5fa   : > { %6918 = vmatprep.subr.bf16.mxu0 %v16661_v48  ;;  %7082 = vmatprep.subr.bf16.mxu1 %v16662_v30  ;;  %v16672_v48 = vld [vmem:[#allocation175_spill] sm:$0xff]  ;;  %v16673_v30 = vld [vmem:[#allocation176_spill] sm:$0xff] }
 0x5fd   : > { %6919 = vmatpush1.bf16.msra.mxu0 %v16663_v52  ;;  %7083 = vmatpush1.bf16.msra.mxu1 %v16664_v44  ;;  %v16674_v52 = vld [vmem:[#allocation177_spill] sm:$0xff]  ;;  %v16675_v44 = vld [vmem:[#allocation178_spill] sm:$0xff] }
 0x5fe   : > { %6920 = vmatprep.subr.bf16.mxu0 %v16665_v21  ;;  %7084 = vmatprep.subr.bf16.mxu1 %v16666_v4  ;;  %v16676_v21 = vld [vmem:[#allocation179_spill] sm:$0xff]  ;;  %v16677_v4 = vld [vmem:[#allocation180_spill] sm:$0xff] }
 0x601   : > { %6921 = vmatpush1.bf16.msra.mxu0 %v16667_v32  ;;  %7085 = vmatpush1.bf16.msra.mxu1 %v16668_v3  ;;  %v16678_v32 = vld [vmem:[#allocation181_spill] sm:$0xff]  ;;  %v16679_v3 = vld [vmem:[#allocation182_spill] sm:$0xff] }
 0x602   : > { %6922 = vmatprep.subr.bf16.mxu0 %v16669_v63  ;;  %7086 = vmatprep.subr.bf16.mxu1 %v16670_v51  ;;  %v16680_v63 = vld [vmem:[#allocation183_spill] sm:$0xff]  ;;  %v16681_v51 = vld [vmem:[#allocation184_spill] sm:$0xff] }
 0x605   : > { %6923 = vmatpush1.bf16.msra.mxu0 %v16671_v36  ;;  %7087 = vmatpush1.bf16.msra.mxu1 %v16672_v48  ;;  %v16682_v36 = vld [vmem:[#allocation185_spill] sm:$0xff]  ;;  %v16683_v48 = vld [vmem:[#allocation186_spill] sm:$0xff] }
 0x606   : > { %6924 = vmatprep.subr.bf16.mxu0 %v16673_v30  ;;  %7088 = vmatprep.subr.bf16.mxu1 %v16674_v52  ;;  %v16684_v30 = vld [vmem:[#allocation187_spill] sm:$0xff]  ;;  %v16685_v52 = vld [vmem:[#allocation188_spill] sm:$0xff] }
 0x609   : > { %6925 = vmatpush1.bf16.msra.mxu0 %v16675_v44  ;;  %7089 = vmatpush1.bf16.msra.mxu1 %v16676_v21  ;;  %v16686_v44 = vld [vmem:[#allocation189_spill] sm:$0xff] }
 0x60a   : > { %6926 = vmatprep.subr.bf16.mxu0 %v16677_v4  ;;  %7090 = vmatprep.subr.bf16.mxu1 %v16678_v32  ;;  %v16687_v32 = vld [vmem:[#allocation190_spill] sm:$0xff] }
 0x60d   : > { %6927 = vmatpush1.bf16.msra.mxu0 %v16679_v3  ;;  %7091 = vmatpush1.bf16.msra.mxu1 %v16680_v63  ;;  %v16688_v63 = vld [vmem:[#allocation191_spill] sm:$0xff] }
 0x60e   : > { %6928 = vmatprep.subr.bf16.mxu0 %v16681_v51  ;;  %7092 = vmatprep.subr.bf16.mxu1 %v16682_v36  ;;  %v16689_v36 = vld [vmem:[#allocation192_spill] sm:$0xff] }
 0x611   : > { %6929 = vmatpush1.bf16.msra.mxu0 %v16683_v48  ;;  %7093 = vmatpush1.bf16.msra.mxu1 %v16684_v30 }
 0x612   : > { %6939 = vmatprep.subr.bf16.mxu0 %v16685_v52  ;;  %7103 = vmatprep.subr.bf16.mxu1 %v16686_v44 }
 0x667   : > { %v6752_v21 = vpop.f32.mrb[32].mxu0  ;;  %v13334_v4 = vpop.f32.mrb[32].mxu1 }
 0x668   : > { %v6882_v14 = vadd.f32 %v6752_v21, %v16687_v32  ;;  %v6754_v3 = vpop.f32.mrb[33].mxu0  ;;  %v6795_v8 = vpop.f32.mrb[33].mxu1  ;;  %v16690_v21 = vld [vmem:[#allocation153_spill] sm:$0xff] }
 0x669   : > { %v6883_v29 = vadd.f32 %v6754_v3, %v16688_v63  ;;  %v6756_v51 = vpop.f32.mrb[34].mxu0  ;;  %v6797_v2 = vpop.f32.mrb[34].mxu1  ;;  %v6885_v62 = vadd.f32 %v6795_v8, %v16689_v36  ;;  %v16694_v8 = vld [vmem:[#allocation195_spill] sm:$0xff]  ;;  %v16697_v3 = vld [vmem:[#allocation198_spill] sm:$0xff] }
 0x66a   : > { %v6757_v48 = vpop.f32.mrb[35].mxu0  ;;  %v6798_v61 = vpop.f32.mrb[35].mxu1  ;;  %v13341_v52 = vpack.c.bf16 %v6882_v14, %v6882_v14  ;;  %v16691_v2 = vld [vmem:[#allocation154_spill] sm:$0xff]  ;;  %v16696_v14 = vld [vmem:[#allocation197_spill] sm:$0xff]  ;;  %v16698_v51 = vld [vmem:[#allocation199_spill] sm:$0xff] }
 0x66b   : > { %v13339_v30 = vpack.c.bf16 %v6883_v29, %v6883_v29  ;;  %v13345_v44 = vpack.c.bf16 %v6885_v62, %v6885_v62  ;;  %v16692_v61 = vld [vmem:[#allocation193_spill] sm:$0xff]  ;;  %v16693_v29 = vld [vmem:[#allocation194_spill] sm:$0xff]  ;;  %v16695_v62 = vld [vmem:[#allocation196_spill] sm:$0xff] }
 0x66c   : > { %v16699_v48 = vld [vmem:[#allocation200_spill] sm:$0xff]  ;;  %v16702_v36 = vld [vmem:[#allocation203_spill] sm:$0xff] }
 0x66d   : > { %6930 = vmatprep.mubr.bf16.mxu0 %v13339_v30  ;;  %7094 = vmatprep.mubr.bf16.mxu1 %v13339_v30 }
 0x66e   : > { %6931 = vmatmul.mubr.bf16.vlgmr.msra.gmra.mrb[40].mxu0 %v13341_v52  ;;  %7095 = vmatmul.mubr.bf16.vlgmr.msra.gmra.mrb[40].mxu1 %v13341_v52 }
 0x66f   : > { %6940 = vmatpush1.bf16.msra.mxu0 %v16690_v21  ;;  %7104 = vmatpush1.bf16.msra.mxu1 %v16691_v2  ;;  %v16700_v2 = vld [vmem:[#allocation201_spill] sm:$0xff]  ;;  %v16701_v21 = vld [vmem:[#allocation202_spill] sm:$0xff] }
 0x670   : > { %6971 = vmatprep.mubr.bf16.mxu0 %v13345_v44  ;;  %7135 = vmatprep.mubr.bf16.mxu1 %v13345_v44 }
 0x671   : > { %6941 = vmatprep.subr.bf16.mxu0 %v16692_v61  ;;  %7105 = vmatprep.subr.bf16.mxu1 %v16693_v29  ;;  %v16703_v61 = vld [vmem:[#allocation204_spill] sm:$0xff]  ;;  %v16704_v29 = vld [vmem:[#allocation205_spill] sm:$0xff] }
 0x673   : > { %6942 = vmatpush1.bf16.msra.mxu0 %v16694_v8  ;;  %7106 = vmatpush1.bf16.msra.mxu1 %v16695_v62  ;;  %v16705_v8 = vld [vmem:[#allocation206_spill] sm:$0xff]  ;;  %v16706_v62 = vld [vmem:[#allocation207_spill] sm:$0xff] }
 0x674   : > { %6943 = vmatprep.subr.bf16.mxu0 %v16696_v14  ;;  %7107 = vmatprep.subr.bf16.mxu1 %v16697_v3  ;;  %v16707_v14 = vld [vmem:[#allocation208_spill] sm:$0xff]  ;;  %v16708_v3 = vld [vmem:[#allocation209_spill] sm:$0xff] }
 0x677   : > { %6944 = vmatpush1.bf16.msra.mxu0 %v16698_v51  ;;  %7108 = vmatpush1.bf16.msra.mxu1 %v16699_v48  ;;  %v16709_v51 = vld [vmem:[#allocation210_spill] sm:$0xff]  ;;  %v16710_v48 = vld [vmem:[#allocation211_spill] sm:$0xff] }
 0x678   : > { %6945 = vmatprep.subr.bf16.mxu0 %v16700_v2  ;;  %7109 = vmatprep.subr.bf16.mxu1 %v16701_v21  ;;  %v16711_v2 = vld [vmem:[#allocation212_spill] sm:$0xff]  ;;  %v16712_v21 = vld [vmem:[#allocation213_spill] sm:$0xff] }
 0x67b   : > { %6946 = vmatpush1.bf16.msra.mxu0 %v16702_v36  ;;  %7110 = vmatpush1.bf16.msra.mxu1 %v16703_v61  ;;  %v16713_v36 = vld [vmem:[#allocation214_spill] sm:$0xff]  ;;  %v16714_v61 = vld [vmem:[#allocation215_spill] sm:$0xff] }
 0x67c   : > { %6947 = vmatprep.subr.bf16.mxu0 %v16704_v29  ;;  %7111 = vmatprep.subr.bf16.mxu1 %v16705_v8  ;;  %v16715_v29 = vld [vmem:[#allocation216_spill] sm:$0xff]  ;;  %v16716_v8 = vld [vmem:[#allocation217_spill] sm:$0xff] }
 0x67f   : > { %6948 = vmatpush1.bf16.msra.mxu0 %v16706_v62  ;;  %7112 = vmatpush1.bf16.msra.mxu1 %v16707_v14  ;;  %v16717_v62 = vld [vmem:[#allocation218_spill] sm:$0xff]  ;;  %v16718_v14 = vld [vmem:[#allocation219_spill] sm:$0xff] }
 0x680   : > { %6949 = vmatprep.subr.bf16.mxu0 %v16708_v3  ;;  %7113 = vmatprep.subr.bf16.mxu1 %v16709_v51  ;;  %v16719_v3 = vld [vmem:[#allocation220_spill] sm:$0xff]  ;;  %v16720_v51 = vld [vmem:[#allocation221_spill] sm:$0xff] }
 0x683   : > { %6950 = vmatpush1.bf16.msra.mxu0 %v16710_v48  ;;  %7114 = vmatpush1.bf16.msra.mxu1 %v16711_v2  ;;  %v16721_v48 = vld [vmem:[#allocation222_spill] sm:$0xff]  ;;  %v16722_v2 = vld [vmem:[#allocation223_spill] sm:$0xff] }
 0x684   : > { %6951 = vmatprep.subr.bf16.mxu0 %v16712_v21  ;;  %7115 = vmatprep.subr.bf16.mxu1 %v16713_v36  ;;  %v16723_v21 = vld [vmem:[#allocation224_spill] sm:$0xff]  ;;  %v16724_v36 = vld [vmem:[#allocation225_spill] sm:$0xff] }
 0x687   : > { %6952 = vmatpush1.bf16.msra.mxu0 %v16714_v61  ;;  %7116 = vmatpush1.bf16.msra.mxu1 %v16715_v29  ;;  %v16725_v61 = vld [vmem:[#allocation226_spill] sm:$0xff]  ;;  %v16726_v29 = vld [vmem:[#allocation227_spill] sm:$0xff] }
 0x688   : > { %6953 = vmatprep.subr.bf16.mxu0 %v16716_v8  ;;  %7117 = vmatprep.subr.bf16.mxu1 %v16717_v62  ;;  %v16727_v8 = vld [vmem:[#allocation228_spill] sm:$0xff]  ;;  %v16728_v62 = vld [vmem:[#allocation229_spill] sm:$0xff] }
 0x68b   : > { %6954 = vmatpush1.bf16.msra.mxu0 %v16718_v14  ;;  %7118 = vmatpush1.bf16.msra.mxu1 %v16719_v3  ;;  %v16729_v14 = vld [vmem:[#allocation230_spill] sm:$0xff]  ;;  %v16730_v3 = vld [vmem:[#allocation231_spill] sm:$0xff] }
 0x68c   : > { %6955 = vmatprep.subr.bf16.mxu0 %v16720_v51  ;;  %7119 = vmatprep.subr.bf16.mxu1 %v16721_v48  ;;  %v16731_v51 = vld [vmem:[#allocation232_spill] sm:$0xff]  ;;  %v16732_v48 = vld [vmem:[#allocation233_spill] sm:$0xff] }
 0x68f   : > { %6956 = vmatpush1.bf16.msra.mxu0 %v16722_v2  ;;  %7120 = vmatpush1.bf16.msra.mxu1 %v16723_v21  ;;  %v16733_v2 = vld [vmem:[#allocation234_spill] sm:$0xff]  ;;  %v16734_v21 = vld [vmem:[#allocation235_spill] sm:$0xff] }
 0x690   : > { %6957 = vmatprep.subr.bf16.mxu0 %v16724_v36  ;;  %7121 = vmatprep.subr.bf16.mxu1 %v16725_v61  ;;  %v16735_v36 = vld [vmem:[#allocation236_spill] sm:$0xff]  ;;  %v16736_v61 = vld [vmem:[#allocation237_spill] sm:$0xff] }
 0x693   : > { %6958 = vmatpush1.bf16.msra.mxu0 %v16726_v29  ;;  %7122 = vmatpush1.bf16.msra.mxu1 %v16727_v8  ;;  %v16737_v29 = vld [vmem:[#allocation238_spill] sm:$0xff]  ;;  %v16738_v8 = vld [vmem:[#allocation239_spill] sm:$0xff] }
 0x694   : > { %6959 = vmatprep.subr.bf16.mxu0 %v16728_v62  ;;  %7123 = vmatprep.subr.bf16.mxu1 %v16729_v14  ;;  %v16739_v62 = vld [vmem:[#allocation240_spill] sm:$0xff]  ;;  %v16740_v14 = vld [vmem:[#allocation241_spill] sm:$0xff] }
 0x697   : > { %6960 = vmatpush1.bf16.msra.mxu0 %v16730_v3  ;;  %7124 = vmatpush1.bf16.msra.mxu1 %v16731_v51  ;;  %v16741_v3 = vld [vmem:[#allocation242_spill] sm:$0xff]  ;;  %v16742_v51 = vld [vmem:[#allocation243_spill] sm:$0xff] }
 0x698   : > { %6961 = vmatprep.subr.bf16.mxu0 %v16732_v48  ;;  %7125 = vmatprep.subr.bf16.mxu1 %v16733_v2  ;;  %v16743_v48 = vld [vmem:[#allocation244_spill] sm:$0xff]  ;;  %v16744_v2 = vld [vmem:[#allocation245_spill] sm:$0xff] }
 0x69b   : > { %6962 = vmatpush1.bf16.msra.mxu0 %v16734_v21  ;;  %7126 = vmatpush1.bf16.msra.mxu1 %v16735_v36  ;;  %v16745_v21 = vld [vmem:[#allocation246_spill] sm:$0xff] }
 0x69c   : > { %6963 = vmatprep.subr.bf16.mxu0 %v16736_v61  ;;  %7127 = vmatprep.subr.bf16.mxu1 %v16737_v29  ;;  %v16746_v29 = vld [vmem:[#allocation247_spill] sm:$0xff] }
 0x69f   : > { %6964 = vmatpush1.bf16.msra.mxu0 %v16738_v8  ;;  %7128 = vmatpush1.bf16.msra.mxu1 %v16739_v62  ;;  %v16747_v8 = vld [vmem:[#allocation248_spill] sm:$0xff]  ;;  %v16748_v62 = vld [vmem:[#allocation251_spill] sm:$0xff] }
 0x6a0   : > { %6965 = vmatprep.subr.bf16.mxu0 %v16740_v14  ;;  %7129 = vmatprep.subr.bf16.mxu1 %v16741_v3  ;;  %v6884_v14 = vadd.f32 %v13334_v4, %v16748_v62  ;;  %v16754_v4 = vld [vmem:[#allocation255_spill] sm:$0xff]  ;;  %v16755_v62 = vld [vmem:[#allocation256_spill] sm:$0xff] }
 0x6a3   : > { %6966 = vmatpush1.bf16.msra.mxu0 %v16742_v51  ;;  %7130 = vmatpush1.bf16.msra.mxu1 %v16743_v48  ;;  %v16749_v51 = vld [vmem:[#allocation249_spill] sm:$0xff]  ;;  %v16750_v48 = vld [vmem:[#allocation250_spill] sm:$0xff] }
 0x6a4   : > { %6967 = vmatprep.subr.bf16.mxu0 %v16744_v2  ;;  %7131 = vmatprep.subr.bf16.mxu1 %v16745_v21  ;;  %v16751_v2 = vld [vmem:[#allocation252_spill] sm:$0xff] }
 0x6a7   : > { %v13407_v36 = vpop.f32.mrb[36].mxu0  ;;  %v13409_v61 = vpop.f32.mrb[36].mxu1  ;;  %6968 = vmatpush1.bf16.msra.mxu0 %v16746_v29  ;;  %7132 = vmatpush1.bf16.msra.mxu1 %v16747_v8  ;;  %v16753_v29 = vld [vmem:[#allocation254_spill] sm:$0xff]  ;;  %v13422_v8 = vpack.c.bf16 %v6884_v14, %v6884_v14  ;;  %v16760_v14 = vld [vmem:[#allocation261_spill] sm:$0xff] }
 0x6a8   : > { %v6836_v3 = vpop.f32.mrb[37].mxu0  ;;  %v13415_v63 = vpop.f32.mrb[37].mxu1  ;;  %6969 = vmatprep.subr.bf16.mxu0 %v16749_v51  ;;  %7133 = vmatprep.subr.bf16.mxu1 %v16750_v48 }
 0x6a9   : > { %v6887_v21 = vadd.f32 %v6836_v3, %v16751_v2  ;;  %v6838_v32 = vpop.f32.mrb[38].mxu0  ;;  %v6879_v58 = vpop.f32.mrb[38].mxu1  ;;  %v16762_v3 = vld [vmem:[#allocation263_spill] sm:$0xff] }
 0x6aa   : > { %v6839_v40 = vpop.f32.mrb[39].mxu0  ;;  %v6880_v20 = vpop.f32.mrb[39].mxu1  ;;  %v16756_v32 = vld [vmem:[#allocation257_spill] sm:$0xff]  ;;  %v16759_v58 = vld [vmem:[#allocation260_spill] sm:$0xff] }
 0x6ab   : > { %6970 = vmatpush1.bf16.msra.mxu0 %v16752_v0  ;;  %7134 = vmatpush1.bf16.msra.mxu1 %v16753_v29  ;;  %v13426_v11 = vpack.c.bf16 %v6887_v21, %v6887_v21  ;;  %v16757_v40 = vld [vmem:[#allocation258_spill] sm:$0xff]  ;;  %v16758_v20 = vld [vmem:[#allocation259_spill] sm:$0xff]  ;;  %v16768_v0 = vld [vmem:[#allocation269_spill] sm:$0xff] }
 0x6ac   : > { %6980 = vmatprep.subr.bf16.mxu0 %v16754_v4  ;;  %7144 = vmatprep.subr.bf16.mxu1 %v16755_v62  ;;  %v16761_v21 = vld [vmem:[#allocation262_spill] sm:$0xff]  ;;  %v16763_v62 = vld [vmem:[#allocation264_spill] sm:$0xff]  ;;  %v16764_v4 = vld [vmem:[#allocation265_spill] sm:$0xff] }
 0x6ad   : > { %v16766_v29 = vld [vmem:[#allocation267_spill] sm:$0xff] }
 0x6ae   : > { %6972 = vmatmul.mubr.bf16.vlgmr.msra.gmra.mrb[40].mxu0 %v13422_v8  ;;  %7136 = vmatmul.mubr.bf16.vlgmr.msra.gmra.mrb[40].mxu1 %v13422_v8 }
 0x6af   : > { %6981 = vmatpush1.bf16.msra.mxu0 %v16756_v32  ;;  %7012 = vmatprep.mubr.bf16.mxu0 %v13426_v11  ;;  %v16765_v32 = vld [vmem:[#allocation266_spill] sm:$0xff] }
 0x6b0   : > { %7145 = vmatpush1.bf16.msra.mxu1 %v16757_v40  ;;  %7176 = vmatprep.mubr.bf16.mxu1 %v13426_v11  ;;  %v16767_v40 = vld [vmem:[#allocation268_spill] sm:$0xff] }
 0x6b1   : > { %6982 = vmatprep.subr.bf16.mxu0 %v16758_v20  ;;  %7146 = vmatprep.subr.bf16.mxu1 %v16759_v58  ;;  %v16769_v20 = vld [vmem:[#allocation270_spill] sm:$0xff]  ;;  %v16770_v58 = vld [vmem:[#allocation271_spill] sm:$0xff] }
 0x6b3   : > { %6983 = vmatpush1.bf16.msra.mxu0 %v16760_v14  ;;  %v16771_v14 = vld [vmem:[#allocation272_spill] sm:$0xff] }
 0x6b4   : > { %7147 = vmatpush1.bf16.msra.mxu1 %v16761_v21  ;;  %6984 = vmatprep.subr.bf16.mxu0 %v16762_v3  ;;  %v16772_v21 = vld [vmem:[#allocation273_spill] sm:$0xff]  ;;  %v16773_v3 = vld [vmem:[#allocation274_spill] sm:$0xff] }
 0x6b5   : > { %7148 = vmatprep.subr.bf16.mxu1 %v16763_v62  ;;  %v16774_v62 = vld [vmem:[#allocation275_spill] sm:$0xff] }
 0x6b7   : > { %6985 = vmatpush1.bf16.msra.mxu0 %v16764_v4  ;;  %v16775_v4 = vld [vmem:[#allocation276_spill] sm:$0xff] }
 0x6b8   : > { %7149 = vmatpush1.bf16.msra.mxu1 %v16765_v32  ;;  %6986 = vmatprep.subr.bf16.mxu0 %v16766_v29  ;;  %v16776_v32 = vld [vmem:[#allocation277_spill] sm:$0xff]  ;;  %v16777_v29 = vld [vmem:[#allocation278_spill] sm:$0xff] }
 0x6b9   : > { %7150 = vmatprep.subr.bf16.mxu1 %v16767_v40  ;;  %v16778_v40 = vld [vmem:[#allocation279_spill] sm:$0xff] }
 0x6bb   : > { %6987 = vmatpush1.bf16.msra.mxu0 %v16768_v0  ;;  %v16779_v0 = vld [vmem:[#allocation280_spill] sm:$0xff] }
 0x6bc   : > { %7151 = vmatpush1.bf16.msra.mxu1 %v16769_v20  ;;  %6988 = vmatprep.subr.bf16.mxu0 %v16770_v58  ;;  %v16780_v20 = vld [vmem:[#allocation281_spill] sm:$0xff]  ;;  %v16781_v58 = vld [vmem:[#allocation282_spill] sm:$0xff] }
 0x6bd   : > { %7152 = vmatprep.subr.bf16.mxu1 %v16771_v14  ;;  %v16782_v14 = vld [vmem:[#allocation283_spill] sm:$0xff] }
 0x6bf   : > { %6989 = vmatpush1.bf16.msra.mxu0 %v16772_v21  ;;  %v16783_v21 = vld [vmem:[#allocation284_spill] sm:$0xff] }
 0x6c0   : > { %7153 = vmatpush1.bf16.msra.mxu1 %v16773_v3  ;;  %6990 = vmatprep.subr.bf16.mxu0 %v16774_v62  ;;  %v16784_v3 = vld [vmem:[#allocation285_spill] sm:$0xff]  ;;  %v16785_v62 = vld [vmem:[#allocation286_spill] sm:$0xff] }
 0x6c1   : > { %7154 = vmatprep.subr.bf16.mxu1 %v16775_v4  ;;  %v16786_v4 = vld [vmem:[#allocation287_spill] sm:$0xff] }
 0x6c3   : > { %6991 = vmatpush1.bf16.msra.mxu0 %v16776_v32  ;;  %v16787_v32 = vld [vmem:[#allocation288_spill] sm:$0xff] }
 0x6c4   : > { %7155 = vmatpush1.bf16.msra.mxu1 %v16777_v29  ;;  %6992 = vmatprep.subr.bf16.mxu0 %v16778_v40  ;;  %v16788_v29 = vld [vmem:[#allocation289_spill] sm:$0xff]  ;;  %v16789_v40 = vld [vmem:[#allocation290_spill] sm:$0xff] }
 0x6c5   : > { %7156 = vmatprep.subr.bf16.mxu1 %v16779_v0  ;;  %v16790_v0 = vld [vmem:[#allocation291_spill] sm:$0xff] }
 0x6c7   : > { %6993 = vmatpush1.bf16.msra.mxu0 %v16780_v20  ;;  %v16791_v20 = vld [vmem:[#allocation292_spill] sm:$0xff] }
 0x6c8   : > { %7157 = vmatpush1.bf16.msra.mxu1 %v16781_v58  ;;  %6994 = vmatprep.subr.bf16.mxu0 %v16782_v14  ;;  %v16792_v58 = vld [vmem:[#allocation293_spill] sm:$0xff]  ;;  %v16793_v14 = vld [vmem:[#allocation294_spill] sm:$0xff] }
 0x6c9   : > { %7158 = vmatprep.subr.bf16.mxu1 %v16783_v21  ;;  %v16794_v21 = vld [vmem:[#allocation295_spill] sm:$0xff] }
 0x6cb   : > { %6995 = vmatpush1.bf16.msra.mxu0 %v16784_v3  ;;  %v16795_v3 = vld [vmem:[#allocation296_spill] sm:$0xff] }
 0x6cc   : > { %7159 = vmatpush1.bf16.msra.mxu1 %v16785_v62  ;;  %6996 = vmatprep.subr.bf16.mxu0 %v16786_v4  ;;  %v16796_v62 = vld [vmem:[#allocation297_spill] sm:$0xff]  ;;  %v16797_v4 = vld [vmem:[#allocation298_spill] sm:$0xff] }
 0x6cd   : > { %7160 = vmatprep.subr.bf16.mxu1 %v16787_v32  ;;  %v16798_v32 = vld [vmem:[#allocation299_spill] sm:$0xff] }
 0x6cf   : > { %6997 = vmatpush1.bf16.msra.mxu0 %v16788_v29  ;;  %v16799_v29 = vld [vmem:[#allocation300_spill] sm:$0xff] }
 0x6d0   : > { %7161 = vmatpush1.bf16.msra.mxu1 %v16789_v40  ;;  %6998 = vmatprep.subr.bf16.mxu0 %v16790_v0  ;;  %v16800_v40 = vld [vmem:[#allocation301_spill] sm:$0xff]  ;;  %v16801_v0 = vld [vmem:[#allocation302_spill] sm:$0xff] }
 0x6d1   : > { %7162 = vmatprep.subr.bf16.mxu1 %v16791_v20  ;;  %v16802_v20 = vld [vmem:[#allocation303_spill] sm:$0xff] }
 0x6d3   : > { %6999 = vmatpush1.bf16.msra.mxu0 %v16792_v58  ;;  %v16803_v58 = vld [vmem:[#allocation304_spill] sm:$0xff] }
 0x6d4   : > { %7163 = vmatpush1.bf16.msra.mxu1 %v16793_v14  ;;  %7000 = vmatprep.subr.bf16.mxu0 %v16794_v21  ;;  %v16804_v14 = vld [vmem:[#allocation305_spill] sm:$0xff]  ;;  %v16805_v21 = vld [vmem:[#allocation306_spill] sm:$0xff] }
 0x6d5   : > { %7164 = vmatprep.subr.bf16.mxu1 %v16795_v3  ;;  %v16806_v3 = vld [vmem:[#allocation307_spill] sm:$0xff] }
 0x6d7   : > { %7001 = vmatpush1.bf16.msra.mxu0 %v16796_v62  ;;  %v16807_v62 = vld [vmem:[#allocation308_spill] sm:$0xff] }
 0x6d8   : > { %7165 = vmatpush1.bf16.msra.mxu1 %v16797_v4  ;;  %7002 = vmatprep.subr.bf16.mxu0 %v16798_v32 }
 0x6d9   : > { %7166 = vmatprep.subr.bf16.mxu1 %v16799_v29 }
 0x6db   : > { %7003 = vmatpush1.bf16.msra.mxu0 %v16800_v40  ;;  %v16808_v40 = vld [vmem:[#allocation312_spill] sm:$0xff] }
 0x6dc   : > { %7167 = vmatpush1.bf16.msra.mxu1 %v16801_v0  ;;  %7004 = vmatprep.subr.bf16.mxu0 %v16802_v20  ;;  %v16809_v20 = vld [vmem:[#allocation317_spill] sm:$0xff]  ;;  %v16814_v0 = vld [vmem:[#allocation319_spill] sm:$0xff] }
 0x6dd   : > { %7168 = vmatprep.subr.bf16.mxu1 %v16803_v58  ;;  %v6886_v58 = vadd.f32 %v13407_v36, %v16809_v20 }
 0x6df   : > { %7005 = vmatpush1.bf16.msra.mxu0 %v16804_v14  ;;  %v16810_v14 = vld [vmem:[#allocation314_spill] sm:$0xff] }
 0x6e0   : > { %7169 = vmatpush1.bf16.msra.mxu1 %v16805_v21  ;;  %7006 = vmatprep.subr.bf16.mxu0 %v16806_v3  ;;  %v16811_v21 = vld [vmem:[#allocation315_spill] sm:$0xff]  ;;  %v16812_v3 = vld [vmem:[#allocation316_spill] sm:$0xff] }
 0x6e1   : > { %7170 = vmatprep.subr.bf16.mxu1 %v16807_v62  ;;  %v16813_v62 = vld [vmem:[#allocation318_spill] sm:$0xff] }
 0x6e3   : > { %7007 = vmatpush1.bf16.msra.mxu0 %v12011_v56  ;;  %v6889_v56 = vadd.f32 %v13415_v63, %v16813_v62  ;;  %v16819_v63 = vld [vmem:[#allocation324_spill] sm:$0xff]  ;;  %v16826_v62 = vld [vmem:[#allocation331_spill] sm:$0xff] }
 0x6e4   : > { %7171 = vmatpush1.bf16.msra.mxu1 %v12015_v9  ;;  %7008 = vmatprep.subr.bf16.mxu0 %v12017_v25  ;;  %v13497_v9 = vpack.c.bf16 %v6886_v58, %v6886_v58  ;;  %v16815_v25 = vld [vmem:[#allocation320_spill] sm:$0xff]  ;;  %v16820_v58 = vld [vmem:[#allocation325_spill] sm:$0xff] }
 0x6e5   : > { %7172 = vmatprep.subr.bf16.mxu1 %v16808_v40  ;;  %v16816_v40 = vld [vmem:[#allocation321_spill] sm:$0xff]  ;;  %v13502_v36 = vpack.c.bf16 %v6889_v56, %v6889_v56  ;;  %v16823_v56 = vld [vmem:[#allocation328_spill] sm:$0xff] }
 0x6e7   : > { %7009 = vmatpush1.bf16.msra.mxu0 %v12029_v5  ;;  %v16817_v5 = vld [vmem:[#allocation322_spill] sm:$0xff] }
 0x6e8   : > { %7173 = vmatpush1.bf16.msra.mxu1 %v16810_v14  ;;  %7010 = vmatprep.subr.bf16.mxu0 %v16811_v21  ;;  %v16828_v21 = vld [vmem:[#allocation333_spill] sm:$0xff]  ;;  %v16830_v14 = vld [vmem:[#allocation335_spill] sm:$0xff] }
 0x6e9   : > { %7174 = vmatprep.subr.bf16.mxu1 %v16812_v3  ;;  %v16818_v3 = vld [vmem:[#allocation323_spill] sm:$0xff] }
 0x6eb   : > { %7011 = vmatpush1.bf16.msra.mxu0 %v16814_v0  ;;  %v16825_v0 = vld [vmem:[#allocation330_spill] sm:$0xff] }
 0x6ec   : > { %7175 = vmatpush1.bf16.msra.mxu1 %v16815_v25  ;;  %7021 = vmatprep.subr.bf16.mxu0 %v16816_v40  ;;  %v16821_v25 = vld [vmem:[#allocation326_spill] sm:$0xff]  ;;  %v16822_v40 = vld [vmem:[#allocation327_spill] sm:$0xff] }
 0x6ed   : > { %7185 = vmatprep.subr.bf16.mxu1 %v16817_v5  ;;  %v16824_v5 = vld [vmem:[#allocation329_spill] sm:$0xff] }
 0x6ee   : > { %7013 = vmatmul.mubr.bf16.vlgmr.msra.gmra.mrb[40].mxu0 %v13497_v9 }
 0x6ef   : > { %7177 = vmatmul.mubr.bf16.vlgmr.msra.gmra.mrb[40].mxu1 %v13497_v9  ;;  %7022 = vmatpush1.bf16.msra.mxu0 %v16818_v3  ;;  %v16827_v3 = vld [vmem:[#allocation332_spill] sm:$0xff] }
 0x6f0   : > { %7053 = vmatprep.mubr.bf16.mxu0 %v13502_v36  ;;  %7186 = vmatpush1.bf16.msra.mxu1 %v16819_v63  ;;  %v16829_v63 = vld [vmem:[#allocation334_spill] sm:$0xff] }
 0x6f1   : > { %7217 = vmatprep.mubr.bf16.mxu1 %v13502_v36  ;;  %7023 = vmatprep.subr.bf16.mxu0 %v16820_v58  ;;  %v16831_v58 = vld [vmem:[#allocation336_spill] sm:$0xff] }
 0x6f2   : > { %7187 = vmatprep.subr.bf16.mxu1 %v16821_v25  ;;  %v16832_v25 = vld [vmem:[#allocation337_spill] sm:$0xff] }
 0x6f3   : > { %7024 = vmatpush1.bf16.msra.mxu0 %v16822_v40  ;;  %v16833_v40 = vld [vmem:[#allocation338_spill] sm:$0xff] }
 0x6f4   : > { %7188 = vmatpush1.bf16.msra.mxu1 %v16823_v56  ;;  %7025 = vmatprep.subr.bf16.mxu0 %v16824_v5  ;;  %v16834_v56 = vld [vmem:[#allocation339_spill] sm:$0xff]  ;;  %v16835_v5 = vld [vmem:[#allocation340_spill] sm:$0xff] }
 0x6f5   : > { %7189 = vmatprep.subr.bf16.mxu1 %v16825_v0  ;;  %v16836_v0 = vld [vmem:[#allocation341_spill] sm:$0xff] }
 0x6f7   : > { %7026 = vmatpush1.bf16.msra.mxu0 %v16826_v62  ;;  %v16837_v62 = vld [vmem:[#allocation342_spill] sm:$0xff] }
 0x6f8   : > { %7190 = vmatpush1.bf16.msra.mxu1 %v16827_v3  ;;  %7027 = vmatprep.subr.bf16.mxu0 %v16828_v21  ;;  %v16838_v3 = vld [vmem:[#allocation343_spill] sm:$0xff]  ;;  %v16839_v21 = vld [vmem:[#allocation344_spill] sm:$0xff] }
 0x6f9   : > { %7191 = vmatprep.subr.bf16.mxu1 %v16829_v63  ;;  %v16840_v63 = vld [vmem:[#allocation345_spill] sm:$0xff] }
 0x6fb   : > { %7028 = vmatpush1.bf16.msra.mxu0 %v16830_v14  ;;  %v16841_v14 = vld [vmem:[#allocation346_spill] sm:$0xff] }
 0x6fc   : > { %7192 = vmatpush1.bf16.msra.mxu1 %v16831_v58  ;;  %7029 = vmatprep.subr.bf16.mxu0 %v16832_v25  ;;  %v16842_v58 = vld [vmem:[#allocation347_spill] sm:$0xff]  ;;  %v16843_v25 = vld [vmem:[#allocation348_spill] sm:$0xff] }
 0x6fd   : > { %7193 = vmatprep.subr.bf16.mxu1 %v16833_v40  ;;  %v16844_v40 = vld [vmem:[#allocation349_spill] sm:$0xff] }
 0x6ff   : > { %7030 = vmatpush1.bf16.msra.mxu0 %v16834_v56  ;;  %v16845_v56 = vld [vmem:[#allocation350_spill] sm:$0xff] }
 0x700   : > { %7194 = vmatpush1.bf16.msra.mxu1 %v16835_v5  ;;  %7031 = vmatprep.subr.bf16.mxu0 %v16836_v0  ;;  %v16846_v5 = vld [vmem:[#allocation351_spill] sm:$0xff]  ;;  %v16847_v0 = vld [vmem:[#allocation352_spill] sm:$0xff] }
 0x701   : > { %7195 = vmatprep.subr.bf16.mxu1 %v16837_v62  ;;  %v16848_v62 = vld [vmem:[#allocation353_spill] sm:$0xff] }
 0x703   : > { %7032 = vmatpush1.bf16.msra.mxu0 %v16838_v3  ;;  %v16849_v3 = vld [vmem:[#allocation354_spill] sm:$0xff] }
 0x704   : > { %7196 = vmatpush1.bf16.msra.mxu1 %v16839_v21  ;;  %7033 = vmatprep.subr.bf16.mxu0 %v16840_v63  ;;  %v16850_v21 = vld [vmem:[#allocation355_spill] sm:$0xff]  ;;  %v16851_v63 = vld [vmem:[#allocation356_spill] sm:$0xff] }
 0x705   : > { %7197 = vmatprep.subr.bf16.mxu1 %v16841_v14  ;;  %v16852_v14 = vld [vmem:[#allocation357_spill] sm:$0xff] }
 0x707   : > { %7034 = vmatpush1.bf16.msra.mxu0 %v16842_v58  ;;  %v16853_v58 = vld [vmem:[#allocation358_spill] sm:$0xff] }
 0x708   : > { %7198 = vmatpush1.bf16.msra.mxu1 %v16843_v25  ;;  %7035 = vmatprep.subr.bf16.mxu0 %v16844_v40  ;;  %v16854_v25 = vld [vmem:[#allocation359_spill] sm:$0xff]  ;;  %v16855_v40 = vld [vmem:[#allocation360_spill] sm:$0xff] }
 0x709   : > { %7199 = vmatprep.subr.bf16.mxu1 %v16845_v56  ;;  %v16856_v56 = vld [vmem:[#allocation361_spill] sm:$0xff] }
 0x70b   : > { %7036 = vmatpush1.bf16.msra.mxu0 %v16846_v5  ;;  %v16857_v5 = vld [vmem:[#allocation362_spill] sm:$0xff] }
 0x70c   : > { %7200 = vmatpush1.bf16.msra.mxu1 %v16847_v0  ;;  %7037 = vmatprep.subr.bf16.mxu0 %v16848_v62  ;;  %v16858_v0 = vld [vmem:[#allocation363_spill] sm:$0xff]  ;;  %v16859_v62 = vld [vmem:[#allocation364_spill] sm:$0xff] }
 0x70d   : > { %7201 = vmatprep.subr.bf16.mxu1 %v16849_v3  ;;  %v16860_v3 = vld [vmem:[#allocation365_spill] sm:$0xff] }
 0x70f   : > { %7038 = vmatpush1.bf16.msra.mxu0 %v16850_v21  ;;  %v16861_v21 = vld [vmem:[#allocation366_spill] sm:$0xff] }
 0x710   : > { %7202 = vmatpush1.bf16.msra.mxu1 %v16851_v63  ;;  %7039 = vmatprep.subr.bf16.mxu0 %v16852_v14  ;;  %v16862_v63 = vld [vmem:[#allocation367_spill] sm:$0xff]  ;;  %v16863_v14 = vld [vmem:[#allocation368_spill] sm:$0xff] }
 0x711   : > { %7203 = vmatprep.subr.bf16.mxu1 %v16853_v58  ;;  %v16864_v58 = vld [vmem:[#allocation369_spill] sm:$0xff] }
 0x713   : > { %7040 = vmatpush1.bf16.msra.mxu0 %v16854_v25  ;;  %v16865_v25 = vld [vmem:[#allocation370_spill] sm:$0xff] }
 0x714   : > { %7204 = vmatpush1.bf16.msra.mxu1 %v16855_v40  ;;  %7041 = vmatprep.subr.bf16.mxu0 %v16856_v56  ;;  %v16866_v40 = vld [vmem:[#allocation371_spill] sm:$0xff]  ;;  %v16867_v56 = vld [vmem:[#allocation372_spill] sm:$0xff] }
 0x715   : > { %7205 = vmatprep.subr.bf16.mxu1 %v16857_v5  ;;  %v16868_v5 = vld [vmem:[#allocation373_spill] sm:$0xff] }
 0x717   : > { %7042 = vmatpush1.bf16.msra.mxu0 %v16858_v0  ;;  %v16869_v0 = vld [vmem:[#allocation374_spill] sm:$0xff] }
 0x718   : > { %7206 = vmatpush1.bf16.msra.mxu1 %v16859_v62  ;;  %7043 = vmatprep.subr.bf16.mxu0 %v16860_v3  ;;  %v16870_v62 = vld [vmem:[#allocation375_spill] sm:$0xff] }
 0x719   : > { %7207 = vmatprep.subr.bf16.mxu1 %v16861_v21  ;;  %v16871_v21 = vld [vmem:[#allocation377_spill] sm:$0xff] }
 0x71b   : > { %7044 = vmatpush1.bf16.msra.mxu0 %v16862_v63  ;;  %v16872_v63 = vld [vmem:[#allocation378_spill] sm:$0xff] }
 0x71c   : > { %7208 = vmatpush1.bf16.msra.mxu1 %v16863_v14  ;;  %7045 = vmatprep.subr.bf16.mxu0 %v16864_v58  ;;  %v16873_v58 = vld [vmem:[#allocation382_spill] sm:$0xff] }
 0x71d   : > { %7209 = vmatprep.subr.bf16.mxu1 %v16865_v25  ;;  %v6888_v25 = vadd.f32 %v13409_v61, %v16873_v58  ;;  %v16881_v61 = vld [vmem:[#allocation387_spill] sm:$0xff]  ;;  %v16891_v58 = vld [vmem:[#allocation397_spill] sm:$0xff] }
 0x71f   : > { %7046 = vmatpush1.bf16.msra.mxu0 %v16866_v40  ;;  %v16874_v40 = vld [vmem:[#allocation379_spill] sm:$0xff] }
 0x720   : > { %7210 = vmatpush1.bf16.msra.mxu1 %v16867_v56  ;;  %7047 = vmatprep.subr.bf16.mxu0 %v16868_v5  ;;  %v16875_v56 = vld [vmem:[#allocation380_spill] sm:$0xff]  ;;  %v16876_v5 = vld [vmem:[#allocation381_spill] sm:$0xff] }
 0x721   : > { %7211 = vmatprep.subr.bf16.mxu1 %v16869_v0  ;;  %v16877_v0 = vld [vmem:[#allocation383_spill] sm:$0xff] }
 0x723   : > { %7048 = vmatpush1.bf16.msra.mxu0 %v16870_v62  ;;  %v13571_v62 = vpack.c.bf16 %v6888_v25, %v6888_v25  ;;  %v16883_v25 = vld [vmem:[#allocation389_spill] sm:$0xff] }
 0x724   : > { %7212 = vmatpush1.bf16.msra.mxu1 %v12232_v60  ;;  %7049 = vmatprep.subr.bf16.mxu0 %v16871_v21  ;;  %v16878_v60 = vld [vmem:[#allocation384_spill] sm:$0xff]  ;;  %v16879_v21 = vld [vmem:[#allocation385_spill] sm:$0xff] }
 0x725   : > { %7213 = vmatprep.subr.bf16.mxu1 %v16872_v63  ;;  %v16880_v63 = vld [vmem:[#allocation386_spill] sm:$0xff] }
 0x727   : > { %7050 = vmatpush1.bf16.msra.mxu0 %v12242_v10 }
 0x728   : > { %7214 = vmatpush1.bf16.msra.mxu1 %v16874_v40  ;;  %7051 = vmatprep.subr.bf16.mxu0 %v16875_v56  ;;  %v16882_v56 = vld [vmem:[#allocation388_spill] sm:$0xff]  ;;  %v16889_v40 = vld [vmem:[#allocation395_spill] sm:$0xff] }
 0x729   : > { %7215 = vmatprep.subr.bf16.mxu1 %v16876_v5  ;;  %v16888_v5 = vld [vmem:[#allocation394_spill] sm:$0xff] }
 0x72b   : > { %7052 = vmatpush1.bf16.msra.mxu0 %v16877_v0  ;;  %v16884_v0 = vld [vmem:[#allocation390_spill] sm:$0xff] }
 0x72c   : > { %7216 = vmatpush1.bf16.msra.mxu1 %v16878_v60  ;;  %7226 = vmatprep.subr.bf16.mxu0 %v16879_v21  ;;  %v16885_v60 = vld [vmem:[#allocation391_spill] sm:$0xff]  ;;  %v16886_v21 = vld [vmem:[#allocation392_spill] sm:$0xff] }
 0x72d   : > { %7390 = vmatprep.subr.bf16.mxu1 %v16880_v63  ;;  %v16887_v63 = vld [vmem:[#allocation393_spill] sm:$0xff] }
 0x72e   : > { %7054 = vmatmul.mubr.bf16.vlgmr.msra.gmra.mrb[40].mxu0 %v13571_v62 }
 0x72f   : > { %7218 = vmatmul.mubr.bf16.vlgmr.msra.gmra.mrb[40].mxu1 %v13571_v62  ;;  %7227 = vmatpush1.bf16.msra.mxu0 %v16881_v61  ;;  %v16890_v61 = vld [vmem:[#allocation396_spill] sm:$0xff] }
 0x730   : > { %7258 = vmatprep.mubr.bf16.mxu0 %v13339_v30  ;;  %7391 = vmatpush1.bf16.msra.mxu1 %v16882_v56  ;;  %v16892_v56 = vld [vmem:[#allocation398_spill] sm:$0xff] }
 0x731   : > { %7422 = vmatprep.mubr.bf16.mxu1 %v13339_v30  ;;  %7228 = vmatprep.subr.bf16.mxu0 %v16883_v25  ;;  %v16893_v30 = vld [vmem:[#allocation399_spill] sm:$0xff]  ;;  %v16894_v25 = vld [vmem:[#allocation400_spill] sm:$0xff] }
 0x732   : > { %7392 = vmatprep.subr.bf16.mxu1 %v16884_v0  ;;  %v16895_v0 = vld [vmem:[#allocation401_spill] sm:$0xff] }
 0x733   : > { %7229 = vmatpush1.bf16.msra.mxu0 %v16885_v60  ;;  %v16896_v60 = vld [vmem:[#allocation402_spill] sm:$0xff] }
 0x734   : > { %7393 = vmatpush1.bf16.msra.mxu1 %v16886_v21  ;;  %7230 = vmatprep.subr.bf16.mxu0 %v16887_v63  ;;  %v16897_v21 = vld [vmem:[#allocation403_spill] sm:$0xff]  ;;  %v16898_v63 = vld [vmem:[#allocation404_spill] sm:$0xff] }
 0x735   : > { %7394 = vmatprep.subr.bf16.mxu1 %v16888_v5  ;;  %v16899_v5 = vld [vmem:[#allocation405_spill] sm:$0xff] }
 0x737   : > { %7231 = vmatpush1.bf16.msra.mxu0 %v16889_v40  ;;  %v16900_v40 = vld [vmem:[#allocation406_spill] sm:$0xff] }
 0x738   : > { %7395 = vmatpush1.bf16.msra.mxu1 %v16890_v61  ;;  %7232 = vmatprep.subr.bf16.mxu0 %v16891_v58  ;;  %v16901_v61 = vld [vmem:[#allocation407_spill] sm:$0xff]  ;;  %v16902_v58 = vld [vmem:[#allocation408_spill] sm:$0xff] }
 0x739   : > { %7396 = vmatprep.subr.bf16.mxu1 %v16892_v56  ;;  %v16903_v56 = vld [vmem:[#allocation409_spill] sm:$0xff] }
 0x73b   : > { %7233 = vmatpush1.bf16.msra.mxu0 %v16893_v30  ;;  %v16904_v30 = vld [vmem:[#allocation410_spill] sm:$0xff] }
 0x73c   : > { %7397 = vmatpush1.bf16.msra.mxu1 %v16894_v25  ;;  %7234 = vmatprep.subr.bf16.mxu0 %v16895_v0  ;;  %v16905_v25 = vld [vmem:[#allocation411_spill] sm:$0xff]  ;;  %v16906_v0 = vld [vmem:[#allocation412_spill] sm:$0xff] }
 0x73d   : > { %7398 = vmatprep.subr.bf16.mxu1 %v16896_v60  ;;  %v16907_v60 = vld [vmem:[#allocation413_spill] sm:$0xff] }
 0x73f   : > { %7235 = vmatpush1.bf16.msra.mxu0 %v16897_v21  ;;  %v16908_v21 = vld [vmem:[#allocation414_spill] sm:$0xff] }
 0x740   : > { %7399 = vmatpush1.bf16.msra.mxu1 %v16898_v63  ;;  %7236 = vmatprep.subr.bf16.mxu0 %v16899_v5  ;;  %v16909_v63 = vld [vmem:[#allocation415_spill] sm:$0xff]  ;;  %v16910_v5 = vld [vmem:[#allocation416_spill] sm:$0xff] }
 0x741   : > { %7400 = vmatprep.subr.bf16.mxu1 %v16900_v40  ;;  %v16911_v40 = vld [vmem:[#allocation417_spill] sm:$0xff] }
 0x743   : > { %7237 = vmatpush1.bf16.msra.mxu0 %v16901_v61  ;;  %v16912_v61 = vld [vmem:[#allocation418_spill] sm:$0xff] }
 0x744   : > { %7401 = vmatpush1.bf16.msra.mxu1 %v16902_v58  ;;  %7238 = vmatprep.subr.bf16.mxu0 %v16903_v56  ;;  %v16913_v58 = vld [vmem:[#allocation419_spill] sm:$0xff]  ;;  %v16914_v56 = vld [vmem:[#allocation420_spill] sm:$0xff] }
 0x745   : > { %7402 = vmatprep.subr.bf16.mxu1 %v16904_v30  ;;  %v16915_v30 = vld [vmem:[#allocation421_spill] sm:$0xff] }
 0x747   : > { %7239 = vmatpush1.bf16.msra.mxu0 %v16905_v25  ;;  %v16916_v25 = vld [vmem:[#allocation422_spill] sm:$0xff] }
 0x748   : > { %7403 = vmatpush1.bf16.msra.mxu1 %v16906_v0  ;;  %7240 = vmatprep.subr.bf16.mxu0 %v16907_v60  ;;  %v16917_v0 = vld [vmem:[#allocation423_spill] sm:$0xff]  ;;  %v16918_v60 = vld [vmem:[#allocation424_spill] sm:$0xff] }
 0x749   : > { %7404 = vmatprep.subr.bf16.mxu1 %v16908_v21  ;;  %v16919_v21 = vld [vmem:[#allocation425_spill] sm:$0xff] }
 0x74b   : > { %7241 = vmatpush1.bf16.msra.mxu0 %v16909_v63  ;;  %v16920_v63 = vld [vmem:[#allocation426_spill] sm:$0xff] }
 0x74c   : > { %7405 = vmatpush1.bf16.msra.mxu1 %v16910_v5  ;;  %7242 = vmatprep.subr.bf16.mxu0 %v16911_v40  ;;  %v16921_v5 = vld [vmem:[#allocation427_spill] sm:$0xff]  ;;  %v16922_v40 = vld [vmem:[#allocation428_spill] sm:$0xff] }
 0x74d   : > { %7406 = vmatprep.subr.bf16.mxu1 %v16912_v61  ;;  %v16923_v61 = vld [vmem:[#allocation429_spill] sm:$0xff] }
 0x74f   : > { %7243 = vmatpush1.bf16.msra.mxu0 %v16913_v58  ;;  %v16924_v58 = vld [vmem:[#allocation430_spill] sm:$0xff] }
 0x750   : > { %7407 = vmatpush1.bf16.msra.mxu1 %v16914_v56  ;;  %7244 = vmatprep.subr.bf16.mxu0 %v16915_v30  ;;  %v16925_v56 = vld [vmem:[#allocation431_spill] sm:$0xff]  ;;  %v16926_v30 = vld [vmem:[#allocation432_spill] sm:$0xff] }
 0x751   : > { %7408 = vmatprep.subr.bf16.mxu1 %v16916_v25  ;;  %v16927_v25 = vld [vmem:[#allocation433_spill] sm:$0xff] }
 0x753   : > { %7245 = vmatpush1.bf16.msra.mxu0 %v16917_v0  ;;  %v16928_v0 = vld [vmem:[#allocation434_spill] sm:$0xff] }
 0x754   : > { %7409 = vmatpush1.bf16.msra.mxu1 %v16918_v60  ;;  %7246 = vmatprep.subr.bf16.mxu0 %v16919_v21  ;;  %v16929_v60 = vld [vmem:[#allocation435_spill] sm:$0xff]  ;;  %v16930_v21 = vld [vmem:[#allocation436_spill] sm:$0xff] }
 0x755   : > { %7410 = vmatprep.subr.bf16.mxu1 %v16920_v63  ;;  %v16931_v63 = vld [vmem:[#allocation437_spill] sm:$0xff] }
 0x757   : > { %7247 = vmatpush1.bf16.msra.mxu0 %v16921_v5  ;;  %v16932_v5 = vld [vmem:[#allocation438_spill] sm:$0xff] }
 0x758   : > { %7411 = vmatpush1.bf16.msra.mxu1 %v16922_v40  ;;  %7248 = vmatprep.subr.bf16.mxu0 %v16923_v61  ;;  %v16933_v61 = vld [vmem:[#allocation440_spill] sm:$0xff] }
 0x759   : > { %7412 = vmatprep.subr.bf16.mxu1 %v16924_v58  ;;  %v16934_v58 = vld [vmem:[#allocation441_spill] sm:$0xff] }
 0x75b   : > { %7249 = vmatpush1.bf16.msra.mxu0 %v16925_v56  ;;  %v16935_v56 = vld [vmem:[#allocation442_spill] sm:$0xff] }
 0x75c   : > { %7413 = vmatpush1.bf16.msra.mxu1 %v16926_v30  ;;  %7250 = vmatprep.subr.bf16.mxu0 %v16927_v25  ;;  %v16936_v30 = vld [vmem:[#allocation443_spill] sm:$0xff]  ;;  %v16937_v25 = vld [vmem:[#allocation444_spill] sm:$0xff] }
 0x75d   : > { %7414 = vmatprep.subr.bf16.mxu1 %v16928_v0  ;;  %v16938_v0 = vld [vmem:[#allocation445_spill] sm:$0xff] }
 0x75f   : > { %7251 = vmatpush1.bf16.msra.mxu0 %v16929_v60  ;;  %v16939_v60 = vld [vmem:[#allocation446_spill] sm:$0xff] }
 0x760   : > { %7415 = vmatpush1.bf16.msra.mxu1 %v16930_v21  ;;  %7252 = vmatprep.subr.bf16.mxu0 %v16931_v63  ;;  %v16940_v21 = vld [vmem:[#allocation447_spill] sm:$0xff]  ;;  %v16941_v63 = vld [vmem:[#allocation448_spill] sm:$0xff] }
 0x761   : > { %7416 = vmatprep.subr.bf16.mxu1 %v16932_v5  ;;  %v16942_v5 = vld [vmem:[#allocation449_spill] sm:$0xff] }
 0x763   : > { %7253 = vmatpush1.bf16.msra.mxu0 %v12433_v47  ;;  %v16943_v47 = vld [vmem:[#allocation450_spill] sm:$0xff] }
 0x764   : > { %7417 = vmatpush1.bf16.msra.mxu1 %v16933_v61  ;;  %7254 = vmatprep.subr.bf16.mxu0 %v16934_v58  ;;  %v17099_v58 = vld [vmem:[#allocation606_spill] sm:$0xff] }
 0x765   : > { %7418 = vmatprep.subr.bf16.mxu1 %v16935_v56  ;;  %v16944_v56 = vld [vmem:[#allocation451_spill] sm:$0xff] }
 0x767   : > { %7255 = vmatpush1.bf16.msra.mxu0 %v16936_v30  ;;  %v16954_v30 = vld [vmem:[#allocation461_spill] sm:$0xff] }
 0x768   : > { %7419 = vmatpush1.bf16.msra.mxu1 %v16937_v25  ;;  %7256 = vmatprep.subr.bf16.mxu0 %v16938_v0  ;;  %v16945_v25 = vld [vmem:[#allocation452_spill] sm:$0xff]  ;;  %v16951_v0 = vld [vmem:[#allocation458_spill] sm:$0xff] }
 0x769   : > { %7420 = vmatprep.subr.bf16.mxu1 %v16939_v60  ;;  %v16946_v60 = vld [vmem:[#allocation453_spill] sm:$0xff] }
 0x76b   : > { %7257 = vmatpush1.bf16.msra.mxu0 %v16940_v21  ;;  %v16947_v21 = vld [vmem:[#allocation454_spill] sm:$0xff] }
 0x76c   : > { %7421 = vmatpush1.bf16.msra.mxu1 %v16941_v63  ;;  %7267 = vmatprep.subr.bf16.mxu0 %v16942_v5  ;;  %v16948_v63 = vld [vmem:[#allocation455_spill] sm:$0xff]  ;;  %v16949_v5 = vld [vmem:[#allocation456_spill] sm:$0xff] }
 0x76d   : > { %7431 = vmatprep.subr.bf16.mxu1 %v16943_v47  ;;  %v16950_v47 = vld [vmem:[#allocation457_spill] sm:$0xff] }
 0x76e   : > { %7259 = vmatmul.mubr.bf16.vlgmr.msra.gmra.mrb[44].mxu0 %v13341_v52 }
 0x76f   : > { %7423 = vmatmul.mubr.bf16.vlgmr.msra.gmra.mrb[44].mxu1 %v13341_v52  ;;  %7268 = vmatpush1.bf16.msra.mxu0 %v16944_v56  ;;  %v16952_v52 = vld [vmem:[#allocation459_spill] sm:$0xff]  ;;  %v16953_v56 = vld [vmem:[#allocation460_spill] sm:$0xff] }
 0x770   : > { %7299 = vmatprep.mubr.bf16.mxu0 %v13345_v44  ;;  %7432 = vmatpush1.bf16.msra.mxu1 %v16945_v25  ;;  %v16955_v25 = vld [vmem:[#allocation462_spill] sm:$0xff] }
 0x771   : > { %7463 = vmatprep.mubr.bf16.mxu1 %v13345_v44  ;;  %7269 = vmatprep.subr.bf16.mxu0 %v16946_v60  ;;  %v16956_v44 = vld [vmem:[#allocation463_spill] sm:$0xff]  ;;  %v16957_v60 = vld [vmem:[#allocation464_spill] sm:$0xff] }
 0x772   : > { %7433 = vmatprep.subr.bf16.mxu1 %v16947_v21  ;;  %v16958_v21 = vld [vmem:[#allocation465_spill] sm:$0xff] }
 0x773   : > { %7270 = vmatpush1.bf16.msra.mxu0 %v16948_v63  ;;  %v16959_v63 = vld [vmem:[#allocation466_spill] sm:$0xff] }
 0x774   : > { %7434 = vmatpush1.bf16.msra.mxu1 %v16949_v5  ;;  %7271 = vmatprep.subr.bf16.mxu0 %v16950_v47  ;;  %v16960_v5 = vld [vmem:[#allocation467_spill] sm:$0xff]  ;;  %v16961_v47 = vld [vmem:[#allocation468_spill] sm:$0xff] }
 0x775   : > { %7435 = vmatprep.subr.bf16.mxu1 %v16951_v0  ;;  %v16962_v0 = vld [vmem:[#allocation469_spill] sm:$0xff] }
 0x777   : > { %7272 = vmatpush1.bf16.msra.mxu0 %v16952_v52  ;;  %v16963_v52 = vld [vmem:[#allocation470_spill] sm:$0xff] }
 0x778   : > { %7436 = vmatpush1.bf16.msra.mxu1 %v16953_v56  ;;  %7273 = vmatprep.subr.bf16.mxu0 %v16954_v30  ;;  %v16964_v56 = vld [vmem:[#allocation471_spill] sm:$0xff]  ;;  %v16965_v30 = vld [vmem:[#allocation472_spill] sm:$0xff] }
 0x779   : > { %7437 = vmatprep.subr.bf16.mxu1 %v16955_v25  ;;  %v16966_v25 = vld [vmem:[#allocation473_spill] sm:$0xff] }
 0x77b   : > { %7274 = vmatpush1.bf16.msra.mxu0 %v16956_v44  ;;  %v16967_v44 = vld [vmem:[#allocation474_spill] sm:$0xff] }
 0x77c   : > { %7438 = vmatpush1.bf16.msra.mxu1 %v16957_v60  ;;  %7275 = vmatprep.subr.bf16.mxu0 %v16958_v21  ;;  %v16968_v60 = vld [vmem:[#allocation475_spill] sm:$0xff]  ;;  %v16969_v21 = vld [vmem:[#allocation476_spill] sm:$0xff] }
 0x77d   : > { %7439 = vmatprep.subr.bf16.mxu1 %v16959_v63  ;;  %v16970_v63 = vld [vmem:[#allocation477_spill] sm:$0xff] }
 0x77f   : > { %7276 = vmatpush1.bf16.msra.mxu0 %v16960_v5  ;;  %v16971_v5 = vld [vmem:[#allocation478_spill] sm:$0xff] }
 0x780   : > { %7440 = vmatpush1.bf16.msra.mxu1 %v16961_v47  ;;  %7277 = vmatprep.subr.bf16.mxu0 %v16962_v0  ;;  %v16972_v47 = vld [vmem:[#allocation479_spill] sm:$0xff]  ;;  %v16973_v0 = vld [vmem:[#allocation480_spill] sm:$0xff] }
 0x781   : > { %7441 = vmatprep.subr.bf16.mxu1 %v16963_v52  ;;  %v16974_v52 = vld [vmem:[#allocation481_spill] sm:$0xff] }
 0x783   : > { %7278 = vmatpush1.bf16.msra.mxu0 %v16964_v56  ;;  %v16975_v56 = vld [vmem:[#allocation482_spill] sm:$0xff] }
 0x784   : > { %7442 = vmatpush1.bf16.msra.mxu1 %v16965_v30  ;;  %7279 = vmatprep.subr.bf16.mxu0 %v16966_v25  ;;  %v16976_v30 = vld [vmem:[#allocation483_spill] sm:$0xff]  ;;  %v16977_v25 = vld [vmem:[#allocation484_spill] sm:$0xff] }
 0x785   : > { %7443 = vmatprep.subr.bf16.mxu1 %v16967_v44  ;;  %v16978_v44 = vld [vmem:[#allocation485_spill] sm:$0xff] }
 0x787   : > { %7280 = vmatpush1.bf16.msra.mxu0 %v16968_v60  ;;  %v16979_v60 = vld [vmem:[#allocation486_spill] sm:$0xff] }
 0x788   : > { %7444 = vmatpush1.bf16.msra.mxu1 %v16969_v21  ;;  %7281 = vmatprep.subr.bf16.mxu0 %v16970_v63  ;;  %v16980_v21 = vld [vmem:[#allocation487_spill] sm:$0xff]  ;;  %v16981_v63 = vld [vmem:[#allocation488_spill] sm:$0xff] }
 0x789   : > { %7445 = vmatprep.subr.bf16.mxu1 %v16971_v5  ;;  %v16982_v5 = vld [vmem:[#allocation489_spill] sm:$0xff] }
 0x78b   : > { %7282 = vmatpush1.bf16.msra.mxu0 %v16972_v47  ;;  %v16983_v47 = vld [vmem:[#allocation490_spill] sm:$0xff] }
 0x78c   : > { %7446 = vmatpush1.bf16.msra.mxu1 %v16973_v0  ;;  %7283 = vmatprep.subr.bf16.mxu0 %v16974_v52  ;;  %v16984_v0 = vld [vmem:[#allocation491_spill] sm:$0xff]  ;;  %v16985_v52 = vld [vmem:[#allocation492_spill] sm:$0xff] }
 0x78d   : > { %7447 = vmatprep.subr.bf16.mxu1 %v16975_v56  ;;  %v16986_v56 = vld [vmem:[#allocation493_spill] sm:$0xff] }
 0x78f   : > { %7284 = vmatpush1.bf16.msra.mxu0 %v16976_v30  ;;  %v16987_v30 = vld [vmem:[#allocation494_spill] sm:$0xff] }
 0x790   : > { %7448 = vmatpush1.bf16.msra.mxu1 %v16977_v25  ;;  %7285 = vmatprep.subr.bf16.mxu0 %v16978_v44  ;;  %v16988_v25 = vld [vmem:[#allocation495_spill] sm:$0xff]  ;;  %v16989_v44 = vld [vmem:[#allocation496_spill] sm:$0xff] }
 0x791   : > { %7449 = vmatprep.subr.bf16.mxu1 %v16979_v60  ;;  %v16990_v60 = vld [vmem:[#allocation497_spill] sm:$0xff] }
 0x793   : > { %7286 = vmatpush1.bf16.msra.mxu0 %v16980_v21  ;;  %v16991_v21 = vld [vmem:[#allocation498_spill] sm:$0xff] }
 0x794   : > { %7450 = vmatpush1.bf16.msra.mxu1 %v16981_v63  ;;  %7287 = vmatprep.subr.bf16.mxu0 %v16982_v5  ;;  %v16992_v63 = vld [vmem:[#allocation499_spill] sm:$0xff]  ;;  %v16993_v5 = vld [vmem:[#allocation500_spill] sm:$0xff] }
 0x795   : > { %7451 = vmatprep.subr.bf16.mxu1 %v16983_v47  ;;  %v16994_v47 = vld [vmem:[#allocation501_spill] sm:$0xff] }
 0x797   : > { %7288 = vmatpush1.bf16.msra.mxu0 %v16984_v0  ;;  %v16995_v0 = vld [vmem:[#allocation502_spill] sm:$0xff] }
 0x798   : > { %7452 = vmatpush1.bf16.msra.mxu1 %v16985_v52  ;;  %7289 = vmatprep.subr.bf16.mxu0 %v16986_v56  ;;  %v16996_v52 = vld [vmem:[#allocation503_spill] sm:$0xff]  ;;  %v16997_v56 = vld [vmem:[#allocation504_spill] sm:$0xff] }
 0x799   : > { %7453 = vmatprep.subr.bf16.mxu1 %v16987_v30  ;;  %v16998_v30 = vld [vmem:[#allocation505_spill] sm:$0xff] }
 0x79b   : > { %7290 = vmatpush1.bf16.msra.mxu0 %v16988_v25  ;;  %v16999_v25 = vld [vmem:[#allocation506_spill] sm:$0xff] }
 0x79c   : > { %7454 = vmatpush1.bf16.msra.mxu1 %v16989_v44  ;;  %7291 = vmatprep.subr.bf16.mxu0 %v16990_v60  ;;  %v17000_v44 = vld [vmem:[#allocation507_spill] sm:$0xff]  ;;  %v17001_v60 = vld [vmem:[#allocation508_spill] sm:$0xff] }
 0x79d   : > { %7455 = vmatprep.subr.bf16.mxu1 %v16991_v21  ;;  %v17002_v21 = vld [vmem:[#allocation509_spill] sm:$0xff] }
 0x79f   : > { %7292 = vmatpush1.bf16.msra.mxu0 %v16992_v63  ;;  %v17003_v63 = vld [vmem:[#allocation510_spill] sm:$0xff] }
 0x7a0   : > { %7456 = vmatpush1.bf16.msra.mxu1 %v16993_v5  ;;  %7293 = vmatprep.subr.bf16.mxu0 %v16994_v47  ;;  %v17004_v5 = vld [vmem:[#allocation511_spill] sm:$0xff]  ;;  %v17005_v47 = vld [vmem:[#allocation512_spill] sm:$0xff] }
 0x7a1   : > { %7457 = vmatprep.subr.bf16.mxu1 %v16995_v0  ;;  %v17006_v0 = vld [vmem:[#allocation513_spill] sm:$0xff] }
 0x7a3   : > { %7294 = vmatpush1.bf16.msra.mxu0 %v16996_v52  ;;  %v17007_v52 = vld [vmem:[#allocation514_spill] sm:$0xff] }
 0x7a4   : > { %7458 = vmatpush1.bf16.msra.mxu1 %v16997_v56  ;;  %7295 = vmatprep.subr.bf16.mxu0 %v16998_v30  ;;  %v17095_v30 = vld [vmem:[#allocation602_spill] sm:$0xff]  ;;  %v17097_v56 = vld [vmem:[#allocation604_spill] sm:$0xff] }
 0x7a5   : > { %7459 = vmatprep.subr.bf16.mxu1 %v16999_v25  ;;  %v17008_v25 = vld [vmem:[#allocation515_spill] sm:$0xff] }
 0x7a7   : > { %7296 = vmatpush1.bf16.msra.mxu0 %v17000_v44  ;;  %v17018_v44 = vld [vmem:[#allocation525_spill] sm:$0xff] }
 0x7a8   : > { %7460 = vmatpush1.bf16.msra.mxu1 %v17001_v60  ;;  %7297 = vmatprep.subr.bf16.mxu0 %v17002_v21  ;;  %v17009_v60 = vld [vmem:[#allocation516_spill] sm:$0xff]  ;;  %v17015_v21 = vld [vmem:[#allocation522_spill] sm:$0xff] }
 0x7a9   : > { %7461 = vmatprep.subr.bf16.mxu1 %v17003_v63  ;;  %v17010_v63 = vld [vmem:[#allocation517_spill] sm:$0xff] }
 0x7ab   : > { %7298 = vmatpush1.bf16.msra.mxu0 %v17004_v5  ;;  %v17011_v5 = vld [vmem:[#allocation518_spill] sm:$0xff] }
 0x7ac   : > { %7462 = vmatpush1.bf16.msra.mxu1 %v17005_v47  ;;  %7308 = vmatprep.subr.bf16.mxu0 %v17006_v0  ;;  %v17012_v47 = vld [vmem:[#allocation519_spill] sm:$0xff]  ;;  %v17013_v0 = vld [vmem:[#allocation520_spill] sm:$0xff] }
 0x7ad   : > { %7472 = vmatprep.subr.bf16.mxu1 %v17007_v52  ;;  %v17014_v52 = vld [vmem:[#allocation521_spill] sm:$0xff] }
 0x7ae   : > { %7300 = vmatmul.mubr.bf16.vlgmr.msra.gmra.mrb[44].mxu0 %v13422_v8 }
 0x7af   : > { %7464 = vmatmul.mubr.bf16.vlgmr.msra.gmra.mrb[44].mxu1 %v13422_v8  ;;  %7309 = vmatpush1.bf16.msra.mxu0 %v17008_v25  ;;  %v17016_v8 = vld [vmem:[#allocation523_spill] sm:$0xff]  ;;  %v17017_v25 = vld [vmem:[#allocation524_spill] sm:$0xff] }
 0x7b0   : > { %7340 = vmatprep.mubr.bf16.mxu0 %v13426_v11  ;;  %7473 = vmatpush1.bf16.msra.mxu1 %v17009_v60  ;;  %v17019_v60 = vld [vmem:[#allocation526_spill] sm:$0xff] }
 0x7b1   : > { %7504 = vmatprep.mubr.bf16.mxu1 %v13426_v11  ;;  %7310 = vmatprep.subr.bf16.mxu0 %v17010_v63  ;;  %v17020_v11 = vld [vmem:[#allocation527_spill] sm:$0xff]  ;;  %v17021_v63 = vld [vmem:[#allocation528_spill] sm:$0xff] }
 0x7b2   : > { %7474 = vmatprep.subr.bf16.mxu1 %v17011_v5  ;;  %v17022_v5 = vld [vmem:[#allocation529_spill] sm:$0xff] }
 0x7b3   : > { %7311 = vmatpush1.bf16.msra.mxu0 %v17012_v47  ;;  %v17023_v47 = vld [vmem:[#allocation530_spill] sm:$0xff] }
 0x7b4   : > { %7475 = vmatpush1.bf16.msra.mxu1 %v17013_v0  ;;  %7312 = vmatprep.subr.bf16.mxu0 %v17014_v52  ;;  %v17024_v0 = vld [vmem:[#allocation531_spill] sm:$0xff]  ;;  %v17025_v52 = vld [vmem:[#allocation532_spill] sm:$0xff] }
 0x7b5   : > { %7476 = vmatprep.subr.bf16.mxu1 %v17015_v21  ;;  %v17026_v21 = vld [vmem:[#allocation533_spill] sm:$0xff] }
 0x7b7   : > { %7313 = vmatpush1.bf16.msra.mxu0 %v17016_v8  ;;  %v17027_v8 = vld [vmem:[#allocation534_spill] sm:$0xff] }
 0x7b8   : > { %7477 = vmatpush1.bf16.msra.mxu1 %v17017_v25  ;;  %7314 = vmatprep.subr.bf16.mxu0 %v17018_v44  ;;  %v17028_v25 = vld [vmem:[#allocation535_spill] sm:$0xff]  ;;  %v17029_v44 = vld [vmem:[#allocation536_spill] sm:$0xff] }
 0x7b9   : > { %7478 = vmatprep.subr.bf16.mxu1 %v17019_v60  ;;  %v17030_v60 = vld [vmem:[#allocation537_spill] sm:$0xff] }
 0x7bb   : > { %7315 = vmatpush1.bf16.msra.mxu0 %v17020_v11  ;;  %v17031_v11 = vld [vmem:[#allocation538_spill] sm:$0xff] }
 0x7bc   : > { %7479 = vmatpush1.bf16.msra.mxu1 %v17021_v63  ;;  %7316 = vmatprep.subr.bf16.mxu0 %v17022_v5  ;;  %v17032_v63 = vld [vmem:[#allocation539_spill] sm:$0xff]  ;;  %v17033_v5 = vld [vmem:[#allocation540_spill] sm:$0xff] }
 0x7bd   : > { %7480 = vmatprep.subr.bf16.mxu1 %v17023_v47  ;;  %v17034_v47 = vld [vmem:[#allocation541_spill] sm:$0xff] }
 0x7bf   : > { %7317 = vmatpush1.bf16.msra.mxu0 %v17024_v0  ;;  %v17035_v0 = vld [vmem:[#allocation542_spill] sm:$0xff] }
 0x7c0   : > { %7481 = vmatpush1.bf16.msra.mxu1 %v17025_v52  ;;  %7318 = vmatprep.subr.bf16.mxu0 %v17026_v21  ;;  %v17036_v52 = vld [vmem:[#allocation543_spill] sm:$0xff]  ;;  %v17037_v21 = vld [vmem:[#allocation544_spill] sm:$0xff] }
 0x7c1   : > { %7482 = vmatprep.subr.bf16.mxu1 %v17027_v8  ;;  %v17038_v8 = vld [vmem:[#allocation545_spill] sm:$0xff] }
 0x7c3   : > { %7319 = vmatpush1.bf16.msra.mxu0 %v17028_v25  ;;  %v17039_v25 = vld [vmem:[#allocation546_spill] sm:$0xff] }
 0x7c4   : > { %7483 = vmatpush1.bf16.msra.mxu1 %v17029_v44  ;;  %7320 = vmatprep.subr.bf16.mxu0 %v17030_v60  ;;  %v17040_v44 = vld [vmem:[#allocation547_spill] sm:$0xff]  ;;  %v17041_v60 = vld [vmem:[#allocation548_spill] sm:$0xff] }
 0x7c5   : > { %7484 = vmatprep.subr.bf16.mxu1 %v17031_v11  ;;  %v17042_v11 = vld [vmem:[#allocation549_spill] sm:$0xff] }
 0x7c7   : > { %7321 = vmatpush1.bf16.msra.mxu0 %v17032_v63  ;;  %v17043_v63 = vld [vmem:[#allocation550_spill] sm:$0xff] }
 0x7c8   : > { %7485 = vmatpush1.bf16.msra.mxu1 %v17033_v5  ;;  %7322 = vmatprep.subr.bf16.mxu0 %v17034_v47  ;;  %v17044_v5 = vld [vmem:[#allocation551_spill] sm:$0xff]  ;;  %v17045_v47 = vld [vmem:[#allocation552_spill] sm:$0xff] }
 0x7c9   : > { %7486 = vmatprep.subr.bf16.mxu1 %v17035_v0  ;;  %v17046_v0 = vld [vmem:[#allocation553_spill] sm:$0xff] }
 0x7cb   : > { %7323 = vmatpush1.bf16.msra.mxu0 %v17036_v52  ;;  %v17047_v52 = vld [vmem:[#allocation554_spill] sm:$0xff] }
 0x7cc   : > { %7487 = vmatpush1.bf16.msra.mxu1 %v17037_v21  ;;  %7324 = vmatprep.subr.bf16.mxu0 %v17038_v8  ;;  %v17048_v21 = vld [vmem:[#allocation555_spill] sm:$0xff]  ;;  %v17049_v8 = vld [vmem:[#allocation556_spill] sm:$0xff] }
 0x7cd   : > { %7488 = vmatprep.subr.bf16.mxu1 %v17039_v25  ;;  %v17050_v25 = vld [vmem:[#allocation557_spill] sm:$0xff] }
 0x7cf   : > { %7325 = vmatpush1.bf16.msra.mxu0 %v17040_v44  ;;  %v17051_v44 = vld [vmem:[#allocation558_spill] sm:$0xff] }
 0x7d0   : > { %7489 = vmatpush1.bf16.msra.mxu1 %v17041_v60  ;;  %7326 = vmatprep.subr.bf16.mxu0 %v17042_v11  ;;  %v17052_v60 = vld [vmem:[#allocation559_spill] sm:$0xff]  ;;  %v17053_v11 = vld [vmem:[#allocation560_spill] sm:$0xff] }
 0x7d1   : > { %7490 = vmatprep.subr.bf16.mxu1 %v17043_v63  ;;  %v17054_v63 = vld [vmem:[#allocation561_spill] sm:$0xff] }
 0x7d3   : > { %7327 = vmatpush1.bf16.msra.mxu0 %v17044_v5  ;;  %v17055_v5 = vld [vmem:[#allocation562_spill] sm:$0xff] }
 0x7d4   : > { %7491 = vmatpush1.bf16.msra.mxu1 %v17045_v47  ;;  %7328 = vmatprep.subr.bf16.mxu0 %v17046_v0  ;;  %v17056_v47 = vld [vmem:[#allocation563_spill] sm:$0xff]  ;;  %v17057_v0 = vld [vmem:[#allocation564_spill] sm:$0xff] }
 0x7d5   : > { %7492 = vmatprep.subr.bf16.mxu1 %v17047_v52  ;;  %v17058_v52 = vld [vmem:[#allocation565_spill] sm:$0xff] }
 0x7d7   : > { %7329 = vmatpush1.bf16.msra.mxu0 %v17048_v21  ;;  %v17059_v21 = vld [vmem:[#allocation566_spill] sm:$0xff] }
 0x7d8   : > { %7493 = vmatpush1.bf16.msra.mxu1 %v17049_v8  ;;  %7330 = vmatprep.subr.bf16.mxu0 %v17050_v25  ;;  %v17060_v8 = vld [vmem:[#allocation567_spill] sm:$0xff]  ;;  %v17061_v25 = vld [vmem:[#allocation568_spill] sm:$0xff] }
 0x7d9   : > { %7494 = vmatprep.subr.bf16.mxu1 %v17051_v44  ;;  %v17062_v44 = vld [vmem:[#allocation569_spill] sm:$0xff] }
 0x7db   : > { %7331 = vmatpush1.bf16.msra.mxu0 %v17052_v60  ;;  %v17063_v60 = vld [vmem:[#allocation570_spill] sm:$0xff] }
 0x7dc   : > { %7495 = vmatpush1.bf16.msra.mxu1 %v17053_v11  ;;  %7332 = vmatprep.subr.bf16.mxu0 %v17054_v63  ;;  %v17064_v11 = vld [vmem:[#allocation571_spill] sm:$0xff]  ;;  %v17065_v63 = vld [vmem:[#allocation572_spill] sm:$0xff] }
 0x7dd   : > { %7496 = vmatprep.subr.bf16.mxu1 %v17055_v5  ;;  %v17066_v5 = vld [vmem:[#allocation573_spill] sm:$0xff] }
 0x7df   : > { %7333 = vmatpush1.bf16.msra.mxu0 %v17056_v47  ;;  %v17067_v47 = vld [vmem:[#allocation574_spill] sm:$0xff] }
 0x7e0   : > { %7497 = vmatpush1.bf16.msra.mxu1 %v17057_v0  ;;  %7334 = vmatprep.subr.bf16.mxu0 %v17058_v52  ;;  %v17068_v0 = vld [vmem:[#allocation575_spill] sm:$0xff]  ;;  %v17069_v52 = vld [vmem:[#allocation576_spill] sm:$0xff] }
 0x7e1   : > { %7498 = vmatprep.subr.bf16.mxu1 %v17059_v21  ;;  %v17070_v21 = vld [vmem:[#allocation577_spill] sm:$0xff] }
 0x7e3   : > { %7335 = vmatpush1.bf16.msra.mxu0 %v17060_v8  ;;  %v17071_v8 = vld [vmem:[#allocation578_spill] sm:$0xff] }
 0x7e4   : > { %7499 = vmatpush1.bf16.msra.mxu1 %v17061_v25  ;;  %7336 = vmatprep.subr.bf16.mxu0 %v17062_v44  ;;  %v17093_v25 = vld [vmem:[#allocation600_spill] sm:$0xff] }
 0x7e5   : > { %7500 = vmatprep.subr.bf16.mxu1 %v17063_v60  ;;  %v17072_v60 = vld [vmem:[#allocation579_spill] sm:$0xff] }
 0x7e7   : > { %7337 = vmatpush1.bf16.msra.mxu0 %v17064_v11  ;;  %v17082_v11 = vld [vmem:[#allocation589_spill] sm:$0xff] }
 0x7e8   : > { %7501 = vmatpush1.bf16.msra.mxu1 %v17065_v63  ;;  %7338 = vmatprep.subr.bf16.mxu0 %v17066_v5  ;;  %v17073_v63 = vld [vmem:[#allocation580_spill] sm:$0xff]  ;;  %v17079_v5 = vld [vmem:[#allocation586_spill] sm:$0xff] }
 0x7e9   : > { %7502 = vmatprep.subr.bf16.mxu1 %v17067_v47  ;;  %v17074_v47 = vld [vmem:[#allocation581_spill] sm:$0xff] }
 0x7eb   : > { %7339 = vmatpush1.bf16.msra.mxu0 %v17068_v0  ;;  %v17075_v0 = vld [vmem:[#allocation582_spill] sm:$0xff] }
 0x7ec   : > { %7503 = vmatpush1.bf16.msra.mxu1 %v17069_v52  ;;  %7349 = vmatprep.subr.bf16.mxu0 %v17070_v21  ;;  %v17076_v52 = vld [vmem:[#allocation583_spill] sm:$0xff]  ;;  %v17077_v21 = vld [vmem:[#allocation584_spill] sm:$0xff] }
 0x7ed   : > { %7513 = vmatprep.subr.bf16.mxu1 %v17071_v8  ;;  %v17078_v8 = vld [vmem:[#allocation585_spill] sm:$0xff] }
 0x7ee   : > { %7341 = vmatmul.mubr.bf16.vlgmr.msra.gmra.mrb[44].mxu0 %v13497_v9 }
 0x7ef   : > { %7505 = vmatmul.mubr.bf16.vlgmr.msra.gmra.mrb[44].mxu1 %v13497_v9  ;;  %7350 = vmatpush1.bf16.msra.mxu0 %v17072_v60  ;;  %v17080_v9 = vld [vmem:[#allocation587_spill] sm:$0xff]  ;;  %v17081_v60 = vld [vmem:[#allocation588_spill] sm:$0xff] }
 0x7f0   : > { %7381 = vmatprep.mubr.bf16.mxu0 %v13502_v36  ;;  %7514 = vmatpush1.bf16.msra.mxu1 %v17073_v63  ;;  %v17083_v63 = vld [vmem:[#allocation590_spill] sm:$0xff] }
 0x7f1   : > { %7545 = vmatprep.mubr.bf16.mxu1 %v13502_v36  ;;  %7351 = vmatprep.subr.bf16.mxu0 %v17074_v47  ;;  %v17084_v36 = vld [vmem:[#allocation591_spill] sm:$0xff]  ;;  %v17085_v47 = vld [vmem:[#allocation592_spill] sm:$0xff] }
 0x7f2   : > { %7515 = vmatprep.subr.bf16.mxu1 %v17075_v0  ;;  %v17086_v0 = vld [vmem:[#allocation593_spill] sm:$0xff] }
 0x7f3   : > { %7352 = vmatpush1.bf16.msra.mxu0 %v17076_v52  ;;  %v17087_v52 = vld [vmem:[#allocation594_spill] sm:$0xff] }
 0x7f4   : > { %7516 = vmatpush1.bf16.msra.mxu1 %v17077_v21  ;;  %7353 = vmatprep.subr.bf16.mxu0 %v17078_v8  ;;  %v17088_v21 = vld [vmem:[#allocation595_spill] sm:$0xff]  ;;  %v17089_v8 = vld [vmem:[#allocation596_spill] sm:$0xff] }
 0x7f5   : > { %7517 = vmatprep.subr.bf16.mxu1 %v17079_v5  ;;  %v17090_v5 = vld [vmem:[#allocation597_spill] sm:$0xff] }
 0x7f7   : > { %7354 = vmatpush1.bf16.msra.mxu0 %v17080_v9 }
 0x7f8   : > { %7518 = vmatpush1.bf16.msra.mxu1 %v17081_v60  ;;  %7355 = vmatprep.subr.bf16.mxu0 %v17082_v11  ;;  %v17091_v60 = vld [vmem:[#allocation598_spill] sm:$0xff] }
 0x7f9   : > { %7519 = vmatprep.subr.bf16.mxu1 %v17083_v63 }
 0x7fb   : > { %7356 = vmatpush1.bf16.msra.mxu0 %v17084_v36 }
 0x7fc   : > { %7520 = vmatpush1.bf16.msra.mxu1 %v17085_v47  ;;  %7357 = vmatprep.subr.bf16.mxu0 %v17086_v0  ;;  %v17092_v47 = vld [vmem:[#allocation599_spill] sm:$0xff] }
 0x7fd   : > { %7521 = vmatprep.subr.bf16.mxu1 %v17087_v52 }
 0x7ff   : > { %7358 = vmatpush1.bf16.msra.mxu0 %v17088_v21  ;;  %v17094_v21 = vld [vmem:[#allocation601_spill] sm:$0xff] }
 0x800   : > { %7522 = vmatpush1.bf16.msra.mxu1 %v17089_v8  ;;  %7359 = vmatprep.subr.bf16.mxu0 %v17090_v5  ;;  %v17096_v5 = vld [vmem:[#allocation603_spill] sm:$0xff] }
 0x801   : > { %v13803_v9 = vpop.f32.mrb[40].mxu0  ;;  %7523 = vmatprep.subr.bf16.mxu1 %v17091_v60  ;;  %v17098_v60 = vld [vmem:[#allocation605_spill] sm:$0xff] }
 0x802   : > { %v13806_v11 = vpop.f32.mrb[40].mxu1  ;;  %v7057_v63 = vpop.f32.mrb[41].mxu0 }
 0x803   : > { %v7221_v36 = vpop.f32.mrb[41].mxu1  ;;  %v7059_v44 = vpop.f32.mrb[42].mxu0  ;;  %7360 = vmatpush1.bf16.msra.mxu0 %v17092_v47  ;;  %v17101_v47 = vld [vmem:[#allocation608_spill] sm:$0xff] }
 0x804   : > { %v7223_v0 = vpop.f32.mrb[42].mxu1  ;;  %7524 = vmatpush1.bf16.msra.mxu1 %v17093_v25  ;;  %v7060_v52 = vpop.f32.mrb[43].mxu0  ;;  %7361 = vmatprep.subr.bf16.mxu0 %v17094_v21  ;;  %v17100_v44 = vld [vmem:[#allocation607_spill] sm:$0xff] }
 0x805   : > { %v7224_v8 = vpop.f32.mrb[43].mxu1  ;;  %7525 = vmatprep.subr.bf16.mxu1 %v17095_v30  ;;  %v17102_v0 = vld [vmem:[#allocation609_spill] sm:$0xff]  ;;  %v17103_v52 = vld [vmem:[#allocation610_spill] sm:$0xff]  ;;  %v17104_v21 = vld [vmem:[#allocation611_spill] sm:$0xff] }
 0x806   : > { %v17105_v8 = vld [vmem:[#allocation612_spill] sm:$0xff]  ;;  %v17106_v30 = vld [vmem:[#allocation613_spill] sm:$0xff] }
 0x807   : > { %7362 = vmatpush1.bf16.msra.mxu0 %v17096_v5  ;;  %v17107_v5 = vld [vmem:[#allocation614_spill] sm:$0xff] }
 0x808   : > { %7526 = vmatpush1.bf16.msra.mxu1 %v17097_v56  ;;  %7363 = vmatprep.subr.bf16.mxu0 %v17098_v60  ;;  %v17108_v56 = vld [vmem:[#allocation615_spill] sm:$0xff]  ;;  %v17109_v60 = vld [vmem:[#allocation616_spill] sm:$0xff] }
 0x809   : > { %7527 = vmatprep.subr.bf16.mxu1 %v17099_v58  ;;  %v17110_v58 = vld [vmem:[#allocation617_spill] sm:$0xff] }
 0x80b   : > { %7364 = vmatpush1.bf16.msra.mxu0 %v17100_v44  ;;  %v17111_v44 = vld [vmem:[#allocation618_spill] sm:$0xff] }
 0x80c   : > { %7528 = vmatpush1.bf16.msra.mxu1 %v17101_v47  ;;  %7365 = vmatprep.subr.bf16.mxu0 %v17102_v0  ;;  %v17112_v47 = vld [vmem:[#allocation619_spill] sm:$0xff]  ;;  %v17113_v0 = vld [vmem:[#allocation620_spill] sm:$0xff] }
 0x80d   : > { %7529 = vmatprep.subr.bf16.mxu1 %v17103_v52  ;;  %v17114_v52 = vld [vmem:[#allocation621_spill] sm:$0xff] }
 0x80f   : > { %7366 = vmatpush1.bf16.msra.mxu0 %v17104_v21  ;;  %v17115_v21 = vld [vmem:[#allocation622_spill] sm:$0xff] }
 0x810   : > { %7530 = vmatpush1.bf16.msra.mxu1 %v17105_v8  ;;  %7367 = vmatprep.subr.bf16.mxu0 %v17106_v30  ;;  %v17116_v8 = vld [vmem:[#allocation623_spill] sm:$0xff]  ;;  %v17117_v30 = vld [vmem:[#allocation624_spill] sm:$0xff] }
 0x811   : > { %7531 = vmatprep.subr.bf16.mxu1 %v17107_v5  ;;  %v17118_v5 = vld [vmem:[#allocation625_spill] sm:$0xff] }
 0x813   : > { %7368 = vmatpush1.bf16.msra.mxu0 %v17108_v56  ;;  %v17119_v56 = vld [vmem:[#allocation626_spill] sm:$0xff] }
 0x814   : > { %7532 = vmatpush1.bf16.msra.mxu1 %v17109_v60  ;;  %7369 = vmatprep.subr.bf16.mxu0 %v17110_v58 }
 0x815   : > { %7533 = vmatprep.subr.bf16.mxu1 %v17111_v44 }
 0x817   : > { %7370 = vmatpush1.bf16.msra.mxu0 %v17112_v47  ;;  %v17120_v47 = vld [vmem:[#allocation630_spill] sm:$0xff] }
 0x818   : > { %7534 = vmatpush1.bf16.msra.mxu1 %v17113_v0  ;;  %7371 = vmatprep.subr.bf16.mxu0 %v17114_v52  ;;  %v17121_v0 = vld [vmem:[#allocation631_spill] sm:$0xff] }
 0x819   : > { %7535 = vmatprep.subr.bf16.mxu1 %v17115_v21  ;;  %v17122_v21 = vld [vmem:[#allocation633_spill] sm:$0xff] }
 0x81b   : > { %7372 = vmatpush1.bf16.msra.mxu0 %v17116_v8  ;;  %v17123_v8 = vld [vmem:[#allocation634_spill] sm:$0xff] }
 0x81c   : > { %7536 = vmatpush1.bf16.msra.mxu1 %v17117_v30  ;;  %7373 = vmatprep.subr.bf16.mxu0 %v17118_v5  ;;  %v17127_v5 = vld [vmem:[#allocation639_spill] sm:$0xff]  ;;  %v17128_v30 = vld [vmem:[#allocation640_spill] sm:$0xff] }
 0x81d   : > { %7537 = vmatprep.subr.bf16.mxu1 %v17119_v56  ;;  %v17124_v56 = vld [vmem:[#allocation636_spill] sm:$0xff] }
 0x81f   : > { %7374 = vmatpush1.bf16.msra.mxu0 %v13017_v55  ;;  %v17125_v55 = vld [vmem:[#allocation637_spill] sm:$0xff] }
 0x820   : > { %7538 = vmatpush1.bf16.msra.mxu1 %v13021_v26  ;;  %7375 = vmatprep.subr.bf16.mxu0 %v13023_v13  ;;  %v17126_v26 = vld [vmem:[#allocation638_spill] sm:$0xff] }
 0x821   : > { %7539 = vmatprep.subr.bf16.mxu1 %v17120_v47  ;;  %v9751_v13 = vadd.f32 %v7057_v63, %v17126_v26  ;;  %v9753_v47 = vadd.f32 %v7221_v36, %v17127_v5  ;;  %v10192_v63 = vld [vmem:[#allocation10 + $0x100] ss:$8 sps:$4 sm:$0xff]   ;;  %v10193_v36 = vld [vmem:[#allocation10 + $0x14] ss:$8 sps:$4 sm:$0xff]  }
 0x823   : > { %7376 = vmatpush1.bf16.msra.mxu0 %v17121_v0  ;;  %v17129_v0 = vld [vmem:[#allocation641_spill] sm:$0xff] }
 0x824   : > { %7540 = vmatpush1.bf16.msra.mxu1 %v13033_v59  ;;  %7377 = vmatprep.subr.bf16.mxu0 %v17122_v21  ;;  %v10189_v59 = vld [vmem:[#allocation10 + $0x4] ss:$8 sps:$4 sm:$0xff]  }
 0x825   : > { %7541 = vmatprep.subr.bf16.mxu1 %v17123_v8  ;;  %v10190_v21 = vld [vmem:[#allocation10 + $0x104] ss:$8 sps:$4 sm:$0xff]   ;;  %v7555_v8 = vpack.c.bf16 %v9751_v13, %v9751_v13 }
 0x826   : > { %v10197_v13 = vld [vmem:[#allocation10 + $0x24] ss:$8 sps:$4 sm:$0xff]  }
 0x827   : > { %7378 = vmatpush1.bf16.msra.mxu0 %v13043_v37 }
 0x828   : > { %7542 = vmatpush1.bf16.msra.mxu1 %v13047_v16  ;;  %7379 = vmatprep.subr.bf16.mxu0 %v17124_v56  ;;  %v7557_v16 = vpack.c.bf16 %v9753_v47, %v9753_v47  ;;  %v10191_v56 = vld [vmem:[#allocation10] ss:$8 sps:$4 sm:$0xff]  }
 0x829   : > { %7543 = vmatprep.subr.bf16.mxu1 %v17125_v55  ;;  %v10199_v47 = vld [vmem:[#allocation10 + $0x20] ss:$8 sps:$4 sm:$0xff]  }
 0x82b   : > { %7380 = vmatpush1.bf16.msra.mxu0 %v17128_v30  ;;  %v10194_v30 = vld [vmem:[#allocation10 + $0x114] ss:$8 sps:$4 sm:$0xff]  }
 0x82c   : > { %7544 = vmatpush1.bf16.msra.mxu1 %v17129_v0  ;;  %7562 = vmatprep.subr.bf16.mxu0 %v10189_v59  ;;  %v10195_v0 = vld [vmem:[#allocation10 + $0x10] ss:$8 sps:$4 sm:$0xff]  }
 0x82d   : > { %7603 = vmatprep.subr.bf16.mxu1 %v10190_v21  ;;  %v10196_v59 = vld [vmem:[#allocation10 + $0x110] ss:$8 sps:$4 sm:$0xff]   ;;  %v10198_v21 = vld [vmem:[#allocation10 + $0x124] ss:$8 sps:$4 sm:$0xff]  }
 0x82e   : > { %7382 = vmatmul.mubr.bf16.vlgmr.msra.gmra.mrb[44].mxu0 %v13571_v62 }
 0x82f   : > { %7546 = vmatmul.mubr.bf16.vlgmr.msra.gmra.mrb[44].mxu1 %v13571_v62  ;;  %7563 = vmatpush1.bf16.msra.mxu0 %v10191_v56  ;;  %v10200_v62 = vld [vmem:[#allocation10 + $0x120] ss:$8 sps:$4 sm:$0xff]   ;;  %v10201_v56 = vld [vmem:[#allocation10 + $0x34] ss:$8 sps:$4 sm:$0xff]  }
 0x830   : > { %7594 = vmatprep.mubr.bf16.mxu0 %v7555_v8  ;;  %7604 = vmatpush1.bf16.msra.mxu1 %v10192_v63  ;;  %v10202_v8 = vld [vmem:[#allocation10 + $0x134] ss:$8 sps:$4 sm:$0xff]   ;;  %v10204_v63 = vld [vmem:[#allocation10 + $0x130] ss:$8 sps:$4 sm:$0xff]  }
 0x831   : > { %7635 = vmatprep.mubr.bf16.mxu1 %v7557_v16  ;;  %7564 = vmatprep.subr.bf16.mxu0 %v10193_v36  ;;  %v10203_v16 = vld [vmem:[#allocation10 + $0x30] ss:$8 sps:$4 sm:$0xff]   ;;  %v10207_v36 = vld [vmem:[#allocation10 + $0x40] ss:$8 sps:$4 sm:$0xff]  }
 0x832   : > { %7605 = vmatprep.subr.bf16.mxu1 %v10194_v30  ;;  %v10205_v30 = vld [vmem:[#allocation10 + $0x44] ss:$8 sps:$4 sm:$0xff]  }
 0x833   : > { %7565 = vmatpush1.bf16.msra.mxu0 %v10195_v0  ;;  %v10206_v0 = vld [vmem:[#allocation10 + $0x144] ss:$8 sps:$4 sm:$0xff]  }
 0x834   : > { %7606 = vmatpush1.bf16.msra.mxu1 %v10196_v59  ;;  %7566 = vmatprep.subr.bf16.mxu0 %v10197_v13  ;;  %v10208_v59 = vld [vmem:[#allocation10 + $0x140] ss:$8 sps:$4 sm:$0xff]   ;;  %v10209_v13 = vld [vmem:[#allocation10 + $0x54] ss:$8 sps:$4 sm:$0xff]  }
 0x835   : > { %7607 = vmatprep.subr.bf16.mxu1 %v10198_v21  ;;  %v10210_v21 = vld [vmem:[#allocation10 + $0x154] ss:$8 sps:$4 sm:$0xff]  }
 0x837   : > { %7567 = vmatpush1.bf16.msra.mxu0 %v10199_v47  ;;  %v10211_v47 = vld [vmem:[#allocation10 + $0x50] ss:$8 sps:$4 sm:$0xff]  }
 0x838   : > { %7608 = vmatpush1.bf16.msra.mxu1 %v10200_v62  ;;  %7568 = vmatprep.subr.bf16.mxu0 %v10201_v56  ;;  %v10212_v62 = vld [vmem:[#allocation10 + $0x150] ss:$8 sps:$4 sm:$0xff]   ;;  %v10213_v56 = vld [vmem:[#allocation10 + $0x64] ss:$8 sps:$4 sm:$0xff]  }
 0x839   : > { %7609 = vmatprep.subr.bf16.mxu1 %v10202_v8  ;;  %v10214_v8 = vld [vmem:[#allocation10 + $0x164] ss:$8 sps:$4 sm:$0xff]  }
 0x83b   : > { %7569 = vmatpush1.bf16.msra.mxu0 %v10203_v16  ;;  %v10215_v16 = vld [vmem:[#allocation10 + $0x60] ss:$8 sps:$4 sm:$0xff]  }
 0x83c   : > { %7610 = vmatpush1.bf16.msra.mxu1 %v10204_v63  ;;  %7570 = vmatprep.subr.bf16.mxu0 %v10205_v30  ;;  %v10216_v63 = vld [vmem:[#allocation10 + $0x160] ss:$8 sps:$4 sm:$0xff]   ;;  %v10217_v30 = vld [vmem:[#allocation10 + $0x74] ss:$8 sps:$4 sm:$0xff]  }
 0x83d   : > { %7611 = vmatprep.subr.bf16.mxu1 %v10206_v0  ;;  %v10218_v0 = vld [vmem:[#allocation10 + $0x174] ss:$8 sps:$4 sm:$0xff]  }
 0x83f   : > { %7571 = vmatpush1.bf16.msra.mxu0 %v10207_v36  ;;  %v10219_v36 = vld [vmem:[#allocation10 + $0x70] ss:$8 sps:$4 sm:$0xff]  }
 0x840   : > { %7612 = vmatpush1.bf16.msra.mxu1 %v10208_v59  ;;  %7572 = vmatprep.subr.bf16.mxu0 %v10209_v13  ;;  %v10220_v59 = vld [vmem:[#allocation10 + $0x170] ss:$8 sps:$4 sm:$0xff]   ;;  %v10221_v13 = vld [vmem:[#allocation10 + $0x84] ss:$8 sps:$4 sm:$0xff]  }
 0x841   : > { %7613 = vmatprep.subr.bf16.mxu1 %v10210_v21  ;;  %v10222_v21 = vld [vmem:[#allocation10 + $0x184] ss:$8 sps:$4 sm:$0xff]  }
 0x843   : > { %7573 = vmatpush1.bf16.msra.mxu0 %v10211_v47  ;;  %v10223_v47 = vld [vmem:[#allocation10 + $0x80] ss:$8 sps:$4 sm:$0xff]  }
 0x844   : > { %7614 = vmatpush1.bf16.msra.mxu1 %v10212_v62  ;;  %7574 = vmatprep.subr.bf16.mxu0 %v10213_v56  ;;  %v10224_v62 = vld [vmem:[#allocation10 + $0x180] ss:$8 sps:$4 sm:$0xff]   ;;  %v10225_v56 = vld [vmem:[#allocation10 + $0x94] ss:$8 sps:$4 sm:$0xff]  }
 0x845   : > { %7615 = vmatprep.subr.bf16.mxu1 %v10214_v8  ;;  %v10226_v8 = vld [vmem:[#allocation10 + $0x194] ss:$8 sps:$4 sm:$0xff]  }
 0x847   : > { %7575 = vmatpush1.bf16.msra.mxu0 %v10215_v16  ;;  %v10227_v16 = vld [vmem:[#allocation10 + $0x90] ss:$8 sps:$4 sm:$0xff]  }
 0x848   : > { %7616 = vmatpush1.bf16.msra.mxu1 %v10216_v63  ;;  %7576 = vmatprep.subr.bf16.mxu0 %v10217_v30  ;;  %v10228_v63 = vld [vmem:[#allocation10 + $0x190] ss:$8 sps:$4 sm:$0xff]   ;;  %v10229_v30 = vld [vmem:[#allocation10 + $0xa4] ss:$8 sps:$4 sm:$0xff]  }
 0x849   : > { %7617 = vmatprep.subr.bf16.mxu1 %v10218_v0  ;;  %v10230_v0 = vld [vmem:[#allocation10 + $0x1a4] ss:$8 sps:$4 sm:$0xff]  }
 0x84b   : > { %7577 = vmatpush1.bf16.msra.mxu0 %v10219_v36  ;;  %v10231_v36 = vld [vmem:[#allocation10 + $0xa0] ss:$8 sps:$4 sm:$0xff]  }
 0x84c   : > { %7618 = vmatpush1.bf16.msra.mxu1 %v10220_v59  ;;  %7578 = vmatprep.subr.bf16.mxu0 %v10221_v13  ;;  %v10232_v59 = vld [vmem:[#allocation10 + $0x1a0] ss:$8 sps:$4 sm:$0xff]   ;;  %v10233_v13 = vld [vmem:[#allocation10 + $0xb4] ss:$8 sps:$4 sm:$0xff]  }
 0x84d   : > { %7619 = vmatprep.subr.bf16.mxu1 %v10222_v21  ;;  %v10234_v21 = vld [vmem:[#allocation10 + $0x1b4] ss:$8 sps:$4 sm:$0xff]  }
 0x84f   : > { %7579 = vmatpush1.bf16.msra.mxu0 %v10223_v47  ;;  %v10235_v47 = vld [vmem:[#allocation10 + $0xb0] ss:$8 sps:$4 sm:$0xff]  }
 0x850   : > { %7620 = vmatpush1.bf16.msra.mxu1 %v10224_v62  ;;  %7580 = vmatprep.subr.bf16.mxu0 %v10225_v56  ;;  %v10236_v62 = vld [vmem:[#allocation10 + $0x1b0] ss:$8 sps:$4 sm:$0xff]   ;;  %v10237_v56 = vld [vmem:[#allocation10 + $0xc4] ss:$8 sps:$4 sm:$0xff]  }
 0x851   : > { %7621 = vmatprep.subr.bf16.mxu1 %v10226_v8  ;;  %v10238_v8 = vld [vmem:[#allocation10 + $0x1c4] ss:$8 sps:$4 sm:$0xff]  }
 0x853   : > { %7581 = vmatpush1.bf16.msra.mxu0 %v10227_v16  ;;  %v10239_v16 = vld [vmem:[#allocation10 + $0xc0] ss:$8 sps:$4 sm:$0xff]  }
 0x854   : > { %7622 = vmatpush1.bf16.msra.mxu1 %v10228_v63  ;;  %7582 = vmatprep.subr.bf16.mxu0 %v10229_v30  ;;  %v10240_v63 = vld [vmem:[#allocation10 + $0x1c0] ss:$8 sps:$4 sm:$0xff]   ;;  %v10241_v30 = vld [vmem:[#allocation10 + $0xd4] ss:$8 sps:$4 sm:$0xff]  }
 0x855   : > { %7623 = vmatprep.subr.bf16.mxu1 %v10230_v0  ;;  %v10242_v0 = vld [vmem:[#allocation10 + $0x1d4] ss:$8 sps:$4 sm:$0xff]  }
 0x857   : > { %7583 = vmatpush1.bf16.msra.mxu0 %v10231_v36  ;;  %v10243_v36 = vld [vmem:[#allocation10 + $0xd0] ss:$8 sps:$4 sm:$0xff]  }
 0x858   : > { %7624 = vmatpush1.bf16.msra.mxu1 %v10232_v59  ;;  %7584 = vmatprep.subr.bf16.mxu0 %v10233_v13  ;;  %v10244_v59 = vld [vmem:[#allocation10 + $0x1d0] ss:$8 sps:$4 sm:$0xff]   ;;  %v10245_v13 = vld [vmem:[#allocation10 + $0xe4] ss:$8 sps:$4 sm:$0xff]  }
 0x859   : > { %7625 = vmatprep.subr.bf16.mxu1 %v10234_v21  ;;  %v10246_v21 = vld [vmem:[#allocation10 + $0x1e4] ss:$8 sps:$4 sm:$0xff]  }
 0x85b   : > { %7585 = vmatpush1.bf16.msra.mxu0 %v10235_v47  ;;  %v10247_v47 = vld [vmem:[#allocation10 + $0xe0] ss:$8 sps:$4 sm:$0xff]  }
 0x85c   : > { %7626 = vmatpush1.bf16.msra.mxu1 %v10236_v62  ;;  %7586 = vmatprep.subr.bf16.mxu0 %v10237_v56  ;;  %v9750_v62 = vadd.f32 %v13803_v9, %v13081_v23  ;;  %v10248_v56 = vld [vmem:[#allocation10 + $0x1e0] ss:$8 sps:$4 sm:$0xff]  }
 0x85d   : > { %7627 = vmatprep.subr.bf16.mxu1 %v10238_v8  ;;  %v10249_v8 = vld [vmem:[#allocation10 + $0xf4] ss:$8 sps:$4 sm:$0xff]   ;;  %v10255_v9 = vld [vmem:[#allocation10 + $0x200] ss:$8 sps:$4 sm:$0xff]  }
 0x85f   : > { %7587 = vmatpush1.bf16.msra.mxu0 %v10239_v16  ;;  %v9752_v16 = vadd.f32 %v13806_v11, %v13086_v17  ;;  %v10258_v11 = vld [vmem:[#allocation10 + $0x314] ss:$8 sps:$4 sm:$0xff]  }
 0x860   : > { %7628 = vmatpush1.bf16.msra.mxu1 %v10240_v63  ;;  %7588 = vmatprep.subr.bf16.mxu0 %v10241_v30  ;;  %v10250_v63 = vld [vmem:[#allocation10 + $0x1f4] ss:$8 sps:$4 sm:$0xff]   ;;  %v10251_v30 = vld [vmem:[#allocation10 + $0xf0] ss:$8 sps:$4 sm:$0xff]  }
 0x861   : > { %7629 = vmatprep.subr.bf16.mxu1 %v10242_v0  ;;  %v7554_v0 = vpack.c.bf16 %v9750_v62, %v9750_v62  ;;  %v10260_v62 = vld [vmem:[#allocation10 + $0x310] ss:$8 sps:$4 sm:$0xff]  }
 0x863   : > { %7589 = vmatpush1.bf16.msra.mxu0 %v10243_v36  ;;  %v10252_v36 = vld [vmem:[#allocation10 + $0x1f0] ss:$8 sps:$4 sm:$0xff]  }
 0x864   : > { %7630 = vmatpush1.bf16.msra.mxu1 %v10244_v59  ;;  %7590 = vmatprep.subr.bf16.mxu0 %v10245_v13  ;;  %v10253_v59 = vld [vmem:[#allocation10 + $0x204] ss:$8 sps:$4 sm:$0xff]   ;;  %v7556_v13 = vpack.c.bf16 %v9752_v16, %v9752_v16  ;;  %v10263_v16 = vld [vmem:[#allocation10 + $0x220] ss:$8 sps:$4 sm:$0xff]  }
 0x865   : > { %7631 = vmatprep.subr.bf16.mxu1 %v10246_v21  ;;  %v10254_v21 = vld [vmem:[#allocation10 + $0x304] ss:$8 sps:$4 sm:$0xff]  }
 0x867   : > { %7591 = vmatpush1.bf16.msra.mxu0 %v10247_v47  ;;  %v10256_v47 = vld [vmem:[#allocation10 + $0x300] ss:$8 sps:$4 sm:$0xff]  }
 0x868   : > { %7632 = vmatpush1.bf16.msra.mxu1 %v10248_v56  ;;  %7592 = vmatprep.subr.bf16.mxu0 %v10249_v8  ;;  %v10257_v56 = vld [vmem:[#allocation10 + $0x214] ss:$8 sps:$4 sm:$0xff]   ;;  %v10259_v8 = vld [vmem:[#allocation10 + $0x210] ss:$8 sps:$4 sm:$0xff]  }
 0x869   : > { %7633 = vmatprep.subr.bf16.mxu1 %v10250_v63  ;;  %v10261_v63 = vld [vmem:[#allocation10 + $0x224] ss:$8 sps:$4 sm:$0xff]  }
 0x86b   : > { %7593 = vmatpush1.bf16.msra.mxu0 %v10251_v30  ;;  %v10262_v30 = vld [vmem:[#allocation10 + $0x324] ss:$8 sps:$4 sm:$0xff]  }
 0x86c   : > { %7634 = vmatpush1.bf16.msra.mxu1 %v10252_v36  ;;  %7644 = vmatprep.subr.bf16.mxu0 %v10253_v59  ;;  %v10265_v36 = vld [vmem:[#allocation10 + $0x234] ss:$8 sps:$4 sm:$0xff]  }
 0x86d   : > { %7685 = vmatprep.subr.bf16.mxu1 %v10254_v21  ;;  %v10266_v59 = vld [vmem:[#allocation10 + $0x334] ss:$8 sps:$4 sm:$0xff]   ;;  %v10268_v21 = vld [vmem:[#allocation10 + $0x330] ss:$8 sps:$4 sm:$0xff]  }
 0x86e   : > { %7595 = vmatmul.mubr.bf16.vlgmr.msra.gmra.mrb[48].mxu0 %v7554_v0  ;;  %v10264_v0 = vld [vmem:[#allocation10 + $0x320] ss:$8 sps:$4 sm:$0xff]  }
 0x86f   : > { %7636 = vmatmul.mubr.bf16.vlgmr.msra.gmra.mrb[48].mxu1 %v7556_v13  ;;  %7645 = vmatpush1.bf16.msra.mxu0 %v10255_v9  ;;  %v10267_v13 = vld [vmem:[#allocation10 + $0x230] ss:$8 sps:$4 sm:$0xff]   ;;  %v10269_v9 = vld [vmem:[#allocation10 + $0x244] ss:$8 sps:$4 sm:$0xff]  }
 0x870   : > { %7686 = vmatpush1.bf16.msra.mxu1 %v10256_v47  ;;  %7646 = vmatprep.subr.bf16.mxu0 %v10257_v56  ;;  %v10270_v47 = vld [vmem:[#allocation10 + $0x344] ss:$8 sps:$4 sm:$0xff]   ;;  %v10271_v56 = vld [vmem:[#allocation10 + $0x240] ss:$8 sps:$4 sm:$0xff]  }
 0x871   : > { %7687 = vmatprep.subr.bf16.mxu1 %v10258_v11  ;;  %v10272_v11 = vld [vmem:[#allocation10 + $0x340] ss:$8 sps:$4 sm:$0xff]  }
 0x873   : > { %7647 = vmatpush1.bf16.msra.mxu0 %v10259_v8  ;;  %v10273_v8 = vld [vmem:[#allocation10 + $0x254] ss:$8 sps:$4 sm:$0xff]  }
 0x874   : > { %7688 = vmatpush1.bf16.msra.mxu1 %v10260_v62  ;;  %7648 = vmatprep.subr.bf16.mxu0 %v10261_v63  ;;  %v10274_v62 = vld [vmem:[#allocation10 + $0x354] ss:$8 sps:$4 sm:$0xff]   ;;  %v10275_v63 = vld [vmem:[#allocation10 + $0x250] ss:$8 sps:$4 sm:$0xff]  }
 0x875   : > { %7689 = vmatprep.subr.bf16.mxu1 %v10262_v30  ;;  %v10276_v30 = vld [vmem:[#allocation10 + $0x350] ss:$8 sps:$4 sm:$0xff]  }
 0x877   : > { %7649 = vmatpush1.bf16.msra.mxu0 %v10263_v16  ;;  %v10277_v16 = vld [vmem:[#allocation10 + $0x264] ss:$8 sps:$4 sm:$0xff]  }
 0x878   : > { %7690 = vmatpush1.bf16.msra.mxu1 %v10264_v0  ;;  %7650 = vmatprep.subr.bf16.mxu0 %v10265_v36  ;;  %v10278_v0 = vld [vmem:[#allocation10 + $0x364] ss:$8 sps:$4 sm:$0xff]   ;;  %v10279_v36 = vld [vmem:[#allocation10 + $0x260] ss:$8 sps:$4 sm:$0xff]  }
 0x879   : > { %7691 = vmatprep.subr.bf16.mxu1 %v10266_v59  ;;  %v10280_v59 = vld [vmem:[#allocation10 + $0x360] ss:$8 sps:$4 sm:$0xff]  }
 0x87b   : > { %7651 = vmatpush1.bf16.msra.mxu0 %v10267_v13  ;;  %v10281_v13 = vld [vmem:[#allocation10 + $0x274] ss:$8 sps:$4 sm:$0xff]  }
 0x87c   : > { %7692 = vmatpush1.bf16.msra.mxu1 %v10268_v21  ;;  %7652 = vmatprep.subr.bf16.mxu0 %v10269_v9  ;;  %v10282_v21 = vld [vmem:[#allocation10 + $0x374] ss:$8 sps:$4 sm:$0xff]   ;;  %v10283_v9 = vld [vmem:[#allocation10 + $0x270] ss:$8 sps:$4 sm:$0xff]  }
 0x87d   : > { %7693 = vmatprep.subr.bf16.mxu1 %v10270_v47  ;;  %v10284_v47 = vld [vmem:[#allocation10 + $0x370] ss:$8 sps:$4 sm:$0xff]  }
 0x87f   : > { %7653 = vmatpush1.bf16.msra.mxu0 %v10271_v56  ;;  %v10285_v56 = vld [vmem:[#allocation10 + $0x284] ss:$8 sps:$4 sm:$0xff]  }
 0x880   : > { %7694 = vmatpush1.bf16.msra.mxu1 %v10272_v11  ;;  %7654 = vmatprep.subr.bf16.mxu0 %v10273_v8  ;;  %v10286_v11 = vld [vmem:[#allocation10 + $0x384] ss:$8 sps:$4 sm:$0xff]   ;;  %v10287_v8 = vld [vmem:[#allocation10 + $0x280] ss:$8 sps:$4 sm:$0xff]  }
 0x881   : > { %7695 = vmatprep.subr.bf16.mxu1 %v10274_v62  ;;  %v10288_v62 = vld [vmem:[#allocation10 + $0x380] ss:$8 sps:$4 sm:$0xff]  }
 0x883   : > { %7655 = vmatpush1.bf16.msra.mxu0 %v10275_v63  ;;  %v10289_v63 = vld [vmem:[#allocation10 + $0x294] ss:$8 sps:$4 sm:$0xff]  }
 0x884   : > { %7696 = vmatpush1.bf16.msra.mxu1 %v10276_v30  ;;  %7656 = vmatprep.subr.bf16.mxu0 %v10277_v16  ;;  %v10290_v30 = vld [vmem:[#allocation10 + $0x394] ss:$8 sps:$4 sm:$0xff]   ;;  %v10291_v16 = vld [vmem:[#allocation10 + $0x290] ss:$8 sps:$4 sm:$0xff]  }
 0x885   : > { %7697 = vmatprep.subr.bf16.mxu1 %v10278_v0  ;;  %v10292_v0 = vld [vmem:[#allocation10 + $0x390] ss:$8 sps:$4 sm:$0xff]  }
 0x887   : > { %7657 = vmatpush1.bf16.msra.mxu0 %v10279_v36  ;;  %v10293_v36 = vld [vmem:[#allocation10 + $0x2a4] ss:$8 sps:$4 sm:$0xff]  }
 0x888   : > { %7698 = vmatpush1.bf16.msra.mxu1 %v10280_v59  ;;  %7658 = vmatprep.subr.bf16.mxu0 %v10281_v13  ;;  %v10294_v59 = vld [vmem:[#allocation10 + $0x3a4] ss:$8 sps:$4 sm:$0xff]   ;;  %v10295_v13 = vld [vmem:[#allocation10 + $0x2a0] ss:$8 sps:$4 sm:$0xff]  }
 0x889   : > { %7699 = vmatprep.subr.bf16.mxu1 %v10282_v21  ;;  %v10296_v21 = vld [vmem:[#allocation10 + $0x3a0] ss:$8 sps:$4 sm:$0xff]  }
 0x88b   : > { %7659 = vmatpush1.bf16.msra.mxu0 %v10283_v9  ;;  %v10297_v9 = vld [vmem:[#allocation10 + $0x2b4] ss:$8 sps:$4 sm:$0xff]  }
 0x88c   : > { %7700 = vmatpush1.bf16.msra.mxu1 %v10284_v47  ;;  %7660 = vmatprep.subr.bf16.mxu0 %v10285_v56  ;;  %v10298_v47 = vld [vmem:[#allocation10 + $0x3b4] ss:$8 sps:$4 sm:$0xff]   ;;  %v10299_v56 = vld [vmem:[#allocation10 + $0x2b0] ss:$8 sps:$4 sm:$0xff]  }
 0x88d   : > { %7701 = vmatprep.subr.bf16.mxu1 %v10286_v11  ;;  %v10300_v11 = vld [vmem:[#allocation10 + $0x3b0] ss:$8 sps:$4 sm:$0xff]  }
 0x88f   : > { %7661 = vmatpush1.bf16.msra.mxu0 %v10287_v8  ;;  %v10301_v8 = vld [vmem:[#allocation10 + $0x2c4] ss:$8 sps:$4 sm:$0xff]  }
 0x890   : > { %7702 = vmatpush1.bf16.msra.mxu1 %v10288_v62  ;;  %7662 = vmatprep.subr.bf16.mxu0 %v10289_v63  ;;  %v10302_v62 = vld [vmem:[#allocation10 + $0x3c4] ss:$8 sps:$4 sm:$0xff]   ;;  %v10303_v63 = vld [vmem:[#allocation10 + $0x2c0] ss:$8 sps:$4 sm:$0xff]  }
 0x891   : > { %7703 = vmatprep.subr.bf16.mxu1 %v10290_v30  ;;  %v10304_v30 = vld [vmem:[#allocation10 + $0x3c0] ss:$8 sps:$4 sm:$0xff]  }
 0x893   : > { %7663 = vmatpush1.bf16.msra.mxu0 %v10291_v16  ;;  %v10305_v16 = vld [vmem:[#allocation10 + $0x2d4] ss:$8 sps:$4 sm:$0xff]  }
 0x894   : > { %7704 = vmatpush1.bf16.msra.mxu1 %v10292_v0  ;;  %7664 = vmatprep.subr.bf16.mxu0 %v10293_v36  ;;  %v10306_v0 = vld [vmem:[#allocation10 + $0x3d4] ss:$8 sps:$4 sm:$0xff]   ;;  %v10307_v36 = vld [vmem:[#allocation10 + $0x2d0] ss:$8 sps:$4 sm:$0xff]  }
 0x895   : > { %7705 = vmatprep.subr.bf16.mxu1 %v10294_v59  ;;  %v10308_v59 = vld [vmem:[#allocation10 + $0x3d0] ss:$8 sps:$4 sm:$0xff]  }
 0x897   : > { %7665 = vmatpush1.bf16.msra.mxu0 %v10295_v13  ;;  %v10309_v13 = vld [vmem:[#allocation10 + $0x2e4] ss:$8 sps:$4 sm:$0xff]  }
 0x898   : > { %7706 = vmatpush1.bf16.msra.mxu1 %v10296_v21  ;;  %7666 = vmatprep.subr.bf16.mxu0 %v10297_v9  ;;  %v10310_v21 = vld [vmem:[#allocation10 + $0x3e4] ss:$8 sps:$4 sm:$0xff]   ;;  %v10311_v9 = vld [vmem:[#allocation10 + $0x2e0] ss:$8 sps:$4 sm:$0xff]  }
 0x899   : > { %7707 = vmatprep.subr.bf16.mxu1 %v10298_v47  ;;  %v10312_v47 = vld [vmem:[#allocation10 + $0x3e0] ss:$8 sps:$4 sm:$0xff]  }
 0x89b   : > { %7667 = vmatpush1.bf16.msra.mxu0 %v10299_v56  ;;  %v10313_v56 = vld [vmem:[#allocation10 + $0x2f4] ss:$8 sps:$4 sm:$0xff]  }
 0x89c   : > { %7708 = vmatpush1.bf16.msra.mxu1 %v10300_v11  ;;  %7668 = vmatprep.subr.bf16.mxu0 %v10301_v8  ;;  %v10314_v11 = vld [vmem:[#allocation10 + $0x3f4] ss:$8 sps:$4 sm:$0xff]   ;;  %v10315_v8 = vld [vmem:[#allocation10 + $0x2f0] ss:$8 sps:$4 sm:$0xff]  }
 0x89d   : > { %7709 = vmatprep.subr.bf16.mxu1 %v10302_v62  ;;  %v10316_v62 = vld [vmem:[#allocation10 + $0x3f0] ss:$8 sps:$4 sm:$0xff]  }
 0x89f   : > { %7669 = vmatpush1.bf16.msra.mxu0 %v10303_v63  ;;  %v17130_v63 = vld [vmem:[#allocation17_spill] sm:$0xff] }
 0x8a0   : > { %7710 = vmatpush1.bf16.msra.mxu1 %v10304_v30  ;;  %7670 = vmatprep.subr.bf16.mxu0 %v10305_v16 }
 0x8a1   : > { %7711 = vmatprep.subr.bf16.mxu1 %v10306_v0 }
 0x8a3   : > { %7671 = vmatpush1.bf16.msra.mxu0 %v10307_v36 }
 0x8a4   : > { %7712 = vmatpush1.bf16.msra.mxu1 %v10308_v59  ;;  %7672 = vmatprep.subr.bf16.mxu0 %v10309_v13 }
 0x8a5   : > { %7713 = vmatprep.subr.bf16.mxu1 %v10310_v21 }
 0x8a7   : > { %7673 = vmatpush1.bf16.msra.mxu0 %v10311_v9 }
 0x8a8   : > { %7714 = vmatpush1.bf16.msra.mxu1 %v10312_v47  ;;  %7674 = vmatprep.subr.bf16.mxu0 %v10313_v56 }
 0x8a9   : > { %7715 = vmatprep.subr.bf16.mxu1 %v10314_v11 }
 0x8ab   : > { %7675 = vmatpush1.bf16.msra.mxu0 %v10315_v8 }
 0x8ac   : > { %7716 = vmatpush1.bf16.msra.mxu1 %v10316_v62  ;;  %7732 = vmatprep.subr.bf16.mxu0 %v10968_v7 }
 0x8ad   : > { %7773 = vmatprep.subr.bf16.mxu1 %v17130_v63 }
 0x901   : > { %v7383_v30 = vpop.f32.mrb[44].mxu0 }
 0x902   : > { %v9754_v16 = vadd.f32 %v7383_v30, %v13097_v6  ;;  %v7547_v0 = vpop.f32.mrb[44].mxu1  ;;  %v7385_v36 = vpop.f32.mrb[45].mxu0  ;;  %v17154_v30 = vld [vmem:[#allocation41_spill] sm:$0xff] }
 0x903   : > { %v9756_v59 = vadd.f32 %v7547_v0, %v13102_v43  ;;  %v9755_v13 = vadd.f32 %v7385_v36, %v13107_v1  ;;  %v7549_v21 = vpop.f32.mrb[45].mxu1  ;;  %v7387_v9 = vpop.f32.mrb[46].mxu0  ;;  %v17156_v0 = vld [vmem:[#allocation43_spill] sm:$0xff]  ;;  %v17157_v36 = vld [vmem:[#allocation44_spill] sm:$0xff] }
 0x904   : > { %v9757_v47 = vadd.f32 %v7549_v21, %v13112_v33  ;;  %v7551_v56 = vpop.f32.mrb[46].mxu1  ;;  %v7388_v11 = vpop.f32.mrb[47].mxu0  ;;  %v7558_v7 = vpack.c.bf16 %v9754_v16, %v9754_v16  ;;  %v17155_v16 = vld [vmem:[#allocation42_spill] sm:$0xff]  ;;  %v17160_v21 = vld [vmem:[#allocation47_spill] sm:$0xff]  ;;  %v17161_v9 = vld [vmem:[#allocation48_spill] sm:$0xff] }
 0x905   : > { %v7559_v8 = vpack.c.bf16 %v9755_v13, %v9755_v13  ;;  %v7552_v62 = vpop.f32.mrb[47].mxu1  ;;  %v7560_v63 = vpack.c.bf16 %v9756_v59, %v9756_v59  ;;  %v17158_v59 = vld [vmem:[#allocation45_spill] sm:$0xff]  ;;  %v17159_v13 = vld [vmem:[#allocation46_spill] sm:$0xff]  ;;  %v17164_v11 = vld [vmem:[#allocation51_spill] sm:$0xff] }
 0x906   : > { %v7561_v17 = vpack.c.bf16 %v9757_v47, %v9757_v47  ;;  %v17162_v47 = vld [vmem:[#allocation49_spill] sm:$0xff]  ;;  %v17163_v56 = vld [vmem:[#allocation50_spill] sm:$0xff]  ;;  %v17165_v62 = vld [vmem:[#allocation52_spill] sm:$0xff] }
 0x907   : > { %7676 = vmatprep.mubr.bf16.mxu0 %v7559_v8 }
 0x908   : > { %7717 = vmatprep.mubr.bf16.mxu1 %v7561_v17  ;;  %7677 = vmatmul.mubr.bf16.vlgmr.msra.gmra.mrb[52].mxu0 %v7558_v7  ;;  %v17153_v17 = vld [vmem:[#allocation40_spill] sm:$0xff] }
 0x909   : > { %7718 = vmatmul.mubr.bf16.vlgmr.msra.gmra.mrb[52].mxu1 %v7560_v63  ;;  %7733 = vmatpush1.bf16.msra.mxu0 %v10973_v15  ;;  %v17131_v15 = vld [vmem:[#allocation18_spill] sm:$0xff] }
 0x90a   : > { %7774 = vmatpush1.bf16.msra.mxu1 %v10976_v18  ;;  %7734 = vmatprep.subr.bf16.mxu0 %v10978_v19  ;;  %v17132_v18 = vld [vmem:[#allocation19_spill] sm:$0xff]  ;;  %v17133_v19 = vld [vmem:[#allocation20_spill] sm:$0xff] }
 0x90b   : > { %7775 = vmatprep.subr.bf16.mxu1 %v10981_v22  ;;  %v17134_v22 = vld [vmem:[#allocation21_spill] sm:$0xff] }
 0x90d   : > { %7735 = vmatpush1.bf16.msra.mxu0 %v10988_v24  ;;  %v17135_v24 = vld [vmem:[#allocation22_spill] sm:$0xff] }
 0x90e   : > { %7776 = vmatpush1.bf16.msra.mxu1 %v10992_v27  ;;  %7736 = vmatprep.subr.bf16.mxu0 %v10994_v28  ;;  %v17136_v27 = vld [vmem:[#allocation23_spill] sm:$0xff]  ;;  %v17137_v28 = vld [vmem:[#allocation24_spill] sm:$0xff] }
 0x90f   : > { %7777 = vmatprep.subr.bf16.mxu1 %v10997_v31  ;;  %v17138_v31 = vld [vmem:[#allocation25_spill] sm:$0xff] }
 0x911   : > { %7737 = vmatpush1.bf16.msra.mxu0 %v11002_v12  ;;  %v17139_v12 = vld [vmem:[#allocation26_spill] sm:$0xff] }
 0x912   : > { %7778 = vmatpush1.bf16.msra.mxu1 %v11006_v34  ;;  %7738 = vmatprep.subr.bf16.mxu0 %v11008_v35  ;;  %v17140_v34 = vld [vmem:[#allocation27_spill] sm:$0xff]  ;;  %v17141_v35 = vld [vmem:[#allocation28_spill] sm:$0xff] }
 0x913   : > { %7779 = vmatprep.subr.bf16.mxu1 %v11011_v38  ;;  %v17142_v38 = vld [vmem:[#allocation29_spill] sm:$0xff] }
 0x915   : > { %7739 = vmatpush1.bf16.msra.mxu0 %v11014_v39  ;;  %v17143_v39 = vld [vmem:[#allocation30_spill] sm:$0xff] }
 0x916   : > { %7780 = vmatpush1.bf16.msra.mxu1 %v11018_v41  ;;  %7740 = vmatprep.subr.bf16.mxu0 %v11020_v42  ;;  %v17144_v41 = vld [vmem:[#allocation31_spill] sm:$0xff]  ;;  %v17145_v42 = vld [vmem:[#allocation32_spill] sm:$0xff] }
 0x917   : > { %7781 = vmatprep.subr.bf16.mxu1 %v11023_v45  ;;  %v17146_v45 = vld [vmem:[#allocation33_spill] sm:$0xff] }
 0x919   : > { %7741 = vmatpush1.bf16.msra.mxu0 %v11026_v46  ;;  %v17147_v46 = vld [vmem:[#allocation34_spill] sm:$0xff] }
 0x91a   : > { %7782 = vmatpush1.bf16.msra.mxu1 %v11030_v49  ;;  %7742 = vmatprep.subr.bf16.mxu0 %v11032_v50  ;;  %v17148_v49 = vld [vmem:[#allocation35_spill] sm:$0xff]  ;;  %v17149_v50 = vld [vmem:[#allocation36_spill] sm:$0xff] }
 0x91b   : > { %7783 = vmatprep.subr.bf16.mxu1 %v11035_v53  ;;  %v17150_v53 = vld [vmem:[#allocation37_spill] sm:$0xff] }
 0x91d   : > { %7743 = vmatpush1.bf16.msra.mxu0 %v11038_v54  ;;  %v17151_v54 = vld [vmem:[#allocation38_spill] sm:$0xff] }
 0x91e   : > { %7784 = vmatpush1.bf16.msra.mxu1 %v11042_v57  ;;  %7744 = vmatprep.subr.bf16.mxu0 %v17131_v15  ;;  %v17152_v57 = vld [vmem:[#allocation39_spill] sm:$0xff]  ;;  %v17166_v15 = vld [vmem:[#allocation53_spill] sm:$0xff] }
 0x91f   : > { %7785 = vmatprep.subr.bf16.mxu1 %v17132_v18  ;;  %v17167_v18 = vld [vmem:[#allocation54_spill] sm:$0xff] }
 0x921   : > { %7745 = vmatpush1.bf16.msra.mxu0 %v17133_v19 }
 0x922   : > { %7786 = vmatpush1.bf16.msra.mxu1 %v17134_v22  ;;  %7746 = vmatprep.subr.bf16.mxu0 %v17135_v24 }
 0x923   : > { %7787 = vmatprep.subr.bf16.mxu1 %v17136_v27  ;;  %v17168_v27 = vld [vmem:[#allocation55_spill] sm:$0xff] }
 0x925   : > { %7747 = vmatpush1.bf16.msra.mxu0 %v17137_v28 }
 0x926   : > { %7788 = vmatpush1.bf16.msra.mxu1 %v17138_v31  ;;  %7748 = vmatprep.subr.bf16.mxu0 %v17139_v12 }
 0x927   : > { %7789 = vmatprep.subr.bf16.mxu1 %v17140_v34 }
 0x929   : > { %7749 = vmatpush1.bf16.msra.mxu0 %v17141_v35  ;;  %v17169_v35 = vld [vmem:[#allocation56_spill] sm:$0xff] }
 0x92a   : > { %7790 = vmatpush1.bf16.msra.mxu1 %v17142_v38  ;;  %7750 = vmatprep.subr.bf16.mxu0 %v17143_v39  ;;  %v17170_v38 = vld [vmem:[#allocation57_spill] sm:$0xff]  ;;  %v17171_v39 = vld [vmem:[#allocation58_spill] sm:$0xff] }
 0x92b   : > { %7791 = vmatprep.subr.bf16.mxu1 %v17144_v41  ;;  %v17172_v41 = vld [vmem:[#allocation59_spill] sm:$0xff] }
 0x92d   : > { %7751 = vmatpush1.bf16.msra.mxu0 %v17145_v42 }
 0x92e   : > { %7792 = vmatpush1.bf16.msra.mxu1 %v17146_v45  ;;  %7752 = vmatprep.subr.bf16.mxu0 %v17147_v46 }
 0x92f   : > { %7793 = vmatprep.subr.bf16.mxu1 %v17148_v49 }
 0x931   : > { %7753 = vmatpush1.bf16.msra.mxu0 %v17149_v50 }
 0x932   : > { %7794 = vmatpush1.bf16.msra.mxu1 %v17150_v53  ;;  %7754 = vmatprep.subr.bf16.mxu0 %v17151_v54 }
 0x933   : > { %7795 = vmatprep.subr.bf16.mxu1 %v17152_v57 }
 0x935   : > { %7755 = vmatpush1.bf16.msra.mxu0 %v17153_v17 }
 0x936   : > { %7796 = vmatpush1.bf16.msra.mxu1 %v17154_v30  ;;  %7756 = vmatprep.subr.bf16.mxu0 %v17155_v16 }
 0x937   : > { %7797 = vmatprep.subr.bf16.mxu1 %v17156_v0 }
 0x939   : > { %7757 = vmatpush1.bf16.msra.mxu0 %v17157_v36  ;;  %v17173_v36 = vld [vmem:[#allocation645_spill] sm:$0xff] }
 0x93a   : > { %7798 = vmatpush1.bf16.msra.mxu1 %v17158_v59  ;;  %7758 = vmatprep.subr.bf16.mxu0 %v17159_v13  ;;  %v17174_v13 = vld [vmem:[#allocation646_spill] sm:$0xff] }
 0x93b   : > { %7799 = vmatprep.subr.bf16.mxu1 %v17160_v21 }
 0x93d   : > { %7759 = vmatpush1.bf16.msra.mxu0 %v17161_v9  ;;  %v17175_v9 = vld [vmem:[#allocation643_spill] sm:$0xff] }
 0x93e   : > { %7800 = vmatpush1.bf16.msra.mxu1 %v17162_v47  ;;  %7760 = vmatprep.subr.bf16.mxu0 %v17163_v56  ;;  %v17176_v56 = vld [vmem:[#allocation644_spill] sm:$0xff] }
 0x93f   : > { %7801 = vmatprep.subr.bf16.mxu1 %v17164_v11 }
 0x941   : > { %v7596_v8 = vpop.f32.mrb[48].mxu0  ;;  %7761 = vmatpush1.bf16.msra.mxu0 %v17165_v62 }
 0x942   : > { %v7637_v7 = vpop.f32.mrb[48].mxu1  ;;  %v7598_v63 = vpop.f32.mrb[49].mxu0  ;;  %7802 = vmatpush1.bf16.msra.mxu1 %v17166_v15  ;;  %7762 = vmatprep.subr.bf16.mxu0 %v17167_v18  ;;  %v17179_v15 = vld [vmem:[#allocation62_spill] sm:$0xff]  ;;  %v17180_v18 = vld [vmem:[#allocation63_spill] sm:$0xff] }
 0x943   : > { %v7638_v19 = vadd.f32 %v7637_v7, %v7596_v8  ;;  %v7639_v22 = vpop.f32.mrb[49].mxu1  ;;  %v7600_v24 = vpop.f32.mrb[50].mxu0  ;;  %7803 = vmatprep.subr.bf16.mxu1 %v17168_v27  ;;  %v17177_v7 = vld [vmem:[#allocation60_spill] sm:$0xff]  ;;  %v17184_v27 = vld [vmem:[#allocation67_spill] sm:$0xff] }
 0x944   : > { %v7640_v28 = vadd.f32 %v7639_v22, %v7598_v63  ;;  %v7641_v31 = vpop.f32.mrb[50].mxu1  ;;  %v7601_v12 = vpop.f32.mrb[51].mxu0  ;;  %v17178_v63 = vld [vmem:[#allocation61_spill] sm:$0xff]  ;;  %v17183_v24 = vld [vmem:[#allocation66_spill] sm:$0xff] }
 0x945   : > { %v7642_v34 = vpop.f32.mrb[51].mxu1  ;;  %7763 = vmatpush1.bf16.msra.mxu0 %v17169_v35  ;;  %v17182_v22 = vld [vmem:[#allocation65_spill] sm:$0xff]  ;;  %v17187_v12 = vld [vmem:[#allocation70_spill] sm:$0xff]  ;;  %v17189_v35 = vld [vmem:[#allocation72_spill] sm:$0xff] }
 0x946   : > { %7804 = vmatpush1.bf16.msra.mxu1 %v17170_v38  ;;  %7814 = vmatprep.subr.bf16.mxu0 %v17171_v39  ;;  %v17186_v31 = vld [vmem:[#allocation69_spill] sm:$0xff]  ;;  %v17188_v34 = vld [vmem:[#allocation71_spill] sm:$0xff]  ;;  %v17191_v39 = vld [vmem:[#allocation74_spill] sm:$0xff] }
 0x947   : > { %7855 = vmatprep.subr.bf16.mxu1 %v17172_v41  ;;  %v17190_v38 = vld [vmem:[#allocation73_spill] sm:$0xff]  ;;  %v17192_v41 = vld [vmem:[#allocation75_spill] sm:$0xff] }
 0x9db   : > { %v7678_v42 = vpop.f32.mrb[52].mxu0 }
 0x9dc   : > { %v7679_v45 = vadd.f32 %v7678_v42, %v7638_v19  ;;  %v7719_v46 = vpop.f32.mrb[52].mxu1  ;;  %v7680_v49 = vpop.f32.mrb[53].mxu0  ;;  %v17181_v19 = vld [vmem:[#allocation64_spill] sm:$0xff] }
 0x9dd   : > { %v7681_v50 = vadd.f32 %v7680_v49, %v7640_v28  ;;  %v7721_v53 = vpop.f32.mrb[53].mxu1  ;;  %v7682_v54 = vpop.f32.mrb[54].mxu0  ;;  %v17185_v28 = vld [vmem:[#allocation68_spill] sm:$0xff]  ;;  %v17196_v49 = vld [vmem:[#allocation79_spill] sm:$0xff] }
 0x9de   : > { %v7720_v57 = vadd.f32 %v7719_v46, %v7679_v45  ;;  %v7723_v17 = vpop.f32.mrb[54].mxu1  ;;  %v7683_v30 = vpop.f32.mrb[55].mxu0  ;;  %v17193_v42 = vld [vmem:[#allocation76_spill] sm:$0xff]  ;;  %v17194_v45 = vld [vmem:[#allocation77_spill] sm:$0xff]  ;;  %v17195_v46 = vld [vmem:[#allocation78_spill] sm:$0xff] }
 0x9df   : > { %v7722_v16 = vadd.f32 %v7721_v53, %v7681_v50  ;;  %v7724_v0 = vpop.f32.mrb[55].mxu1  ;;  %v17197_v50 = vld [vmem:[#allocation80_spill] sm:$0xff]  ;;  %v17198_v53 = vld [vmem:[#allocation81_spill] sm:$0xff]  ;;  %v17199_v54 = vld [vmem:[#allocation82_spill] sm:$0xff] }
 0x9e0   : > { %v7726_v59 = vadd.f32 %v7720_v57, %v17173_v36  ;;  %v17200_v57 = vld [vmem:[#allocation83_spill] sm:$0xff]  ;;  %v17201_v17 = vld [vmem:[#allocation84_spill] sm:$0xff]  ;;  %v17202_v30 = vld [vmem:[#allocation85_spill] sm:$0xff] }
 0x9e1   : > { %v7727_v21 = vadd.f32 %v7722_v16, %v17174_v13  ;;  %v17203_v16 = vld [vmem:[#allocation86_spill] sm:$0xff]  ;;  %v17204_v0 = vld [vmem:[#allocation87_spill] sm:$0xff]  ;;  %v17205_v36 = vld [vmem:[#allocation88_spill] sm:$0xff] }
 0x9e2   : > { %v13931_v47 = vadd.f32 %v7726_v59, %v17175_v9  ;;  %v17206_v59 = vld [vmem:[#allocation89_spill] sm:$0xff]  ;;  %v17207_v13 = vld [vmem:[#allocation90_spill] sm:$0xff] }
 0x9e3   : > { %v13934_v11 = vadd.f32 %v7727_v21, %v17176_v56  ;;  %v17208_v21 = vld [vmem:[#allocation91_spill] sm:$0xff] }
 0x9e4   : > { %v13940_v62 = vpack.c.bf16 %v13931_v47, %v13931_v47 }
 0x9e5   : > { %v7731_v8 = vpack.c.bf16 %v13934_v11, %v13934_v11 }
 0x9e7   : > { %7764 = vmatprep.mubr.bf16.mxu0 %v7731_v8  ;;  %7805 = vmatprep.mubr.bf16.mxu1 %v7731_v8 }
 0x9e8   : > { %7765 = vmatmul.mubr.bf16.vlgmr.msra.gmra.mrb[56].mxu0 %v13940_v62  ;;  %7806 = vmatmul.mubr.bf16.vlgmr.msra.gmra.mrb[56].mxu1 %v13940_v62 }
 0x9e9   : > { %7815 = vmatpush1.bf16.msra.mxu0 %v17177_v7  ;;  %7856 = vmatpush1.bf16.msra.mxu1 %v17178_v63  ;;  %v17210_v7 = vld [vmem:[#allocation93_spill] sm:$0xff]  ;;  %v17211_v63 = vld [vmem:[#allocation94_spill] sm:$0xff] }
 0x9ea   : > { %7846 = vmatprep.mubr.bf16.mxu0 %v7731_v8  ;;  %7887 = vmatprep.mubr.bf16.mxu1 %v7731_v8  ;;  %v17209_v8 = vld [vmem:[#allocation92_spill] sm:$0xff] }
 0x9eb   : > { %7816 = vmatprep.subr.bf16.mxu0 %v17179_v15  ;;  %7857 = vmatprep.subr.bf16.mxu1 %v17180_v18  ;;  %v17212_v15 = vld [vmem:[#allocation95_spill] sm:$0xff]  ;;  %v17213_v18 = vld [vmem:[#allocation96_spill] sm:$0xff] }
 0x9ed   : > { %7817 = vmatpush1.bf16.msra.mxu0 %v17181_v19  ;;  %7858 = vmatpush1.bf16.msra.mxu1 %v17182_v22  ;;  %v17214_v19 = vld [vmem:[#allocation97_spill] sm:$0xff]  ;;  %v17215_v22 = vld [vmem:[#allocation98_spill] sm:$0xff] }
 0x9ee   : > { %7818 = vmatprep.subr.bf16.mxu0 %v17183_v24  ;;  %7859 = vmatprep.subr.bf16.mxu1 %v17184_v27  ;;  %v17216_v24 = vld [vmem:[#allocation99_spill] sm:$0xff]  ;;  %v17217_v27 = vld [vmem:[#allocation100_spill] sm:$0xff] }
 0x9f1   : > { %7819 = vmatpush1.bf16.msra.mxu0 %v17185_v28  ;;  %7860 = vmatpush1.bf16.msra.mxu1 %v17186_v31  ;;  %v17218_v28 = vld [vmem:[#allocation101_spill] sm:$0xff]  ;;  %v17219_v31 = vld [vmem:[#allocation102_spill] sm:$0xff] }
 0x9f2   : > { %7820 = vmatprep.subr.bf16.mxu0 %v17187_v12  ;;  %7861 = vmatprep.subr.bf16.mxu1 %v17188_v34  ;;  %v17220_v12 = vld [vmem:[#allocation103_spill] sm:$0xff]  ;;  %v17221_v34 = vld [vmem:[#allocation104_spill] sm:$0xff] }
 0x9f5   : > { %7821 = vmatpush1.bf16.msra.mxu0 %v17189_v35  ;;  %7862 = vmatpush1.bf16.msra.mxu1 %v17190_v38  ;;  %v17222_v35 = vld [vmem:[#allocation105_spill] sm:$0xff]  ;;  %v17223_v38 = vld [vmem:[#allocation106_spill] sm:$0xff] }
 0x9f6   : > { %7822 = vmatprep.subr.bf16.mxu0 %v17191_v39  ;;  %7863 = vmatprep.subr.bf16.mxu1 %v17192_v41  ;;  %v17224_v39 = vld [vmem:[#allocation107_spill] sm:$0xff]  ;;  %v17225_v41 = vld [vmem:[#allocation108_spill] sm:$0xff] }
 0x9f9   : > { %7823 = vmatpush1.bf16.msra.mxu0 %v17193_v42  ;;  %7864 = vmatpush1.bf16.msra.mxu1 %v17194_v45  ;;  %v17226_v42 = vld [vmem:[#allocation109_spill] sm:$0xff]  ;;  %v17227_v45 = vld [vmem:[#allocation110_spill] sm:$0xff] }
 0x9fa   : > { %7824 = vmatprep.subr.bf16.mxu0 %v17195_v46  ;;  %7865 = vmatprep.subr.bf16.mxu1 %v17196_v49  ;;  %v17228_v46 = vld [vmem:[#allocation111_spill] sm:$0xff]  ;;  %v17229_v49 = vld [vmem:[#allocation112_spill] sm:$0xff] }
 0x9fd   : > { %7825 = vmatpush1.bf16.msra.mxu0 %v17197_v50  ;;  %7866 = vmatpush1.bf16.msra.mxu1 %v17198_v53  ;;  %v17230_v50 = vld [vmem:[#allocation113_spill] sm:$0xff]  ;;  %v17231_v53 = vld [vmem:[#allocation114_spill] sm:$0xff] }
 0x9fe   : > { %7826 = vmatprep.subr.bf16.mxu0 %v17199_v54  ;;  %7867 = vmatprep.subr.bf16.mxu1 %v17200_v57  ;;  %v17232_v54 = vld [vmem:[#allocation115_spill] sm:$0xff]  ;;  %v17233_v57 = vld [vmem:[#allocation116_spill] sm:$0xff] }
 0xa01   : > { %7827 = vmatpush1.bf16.msra.mxu0 %v17201_v17  ;;  %7868 = vmatpush1.bf16.msra.mxu1 %v17202_v30  ;;  %v17234_v17 = vld [vmem:[#allocation117_spill] sm:$0xff]  ;;  %v17235_v30 = vld [vmem:[#allocation118_spill] sm:$0xff] }
 0xa02   : > { %7828 = vmatprep.subr.bf16.mxu0 %v17203_v16  ;;  %7869 = vmatprep.subr.bf16.mxu1 %v17204_v0  ;;  %v17236_v16 = vld [vmem:[#allocation119_spill] sm:$0xff]  ;;  %v17237_v0 = vld [vmem:[#allocation120_spill] sm:$0xff] }
 0xa05   : > { %7829 = vmatpush1.bf16.msra.mxu0 %v17205_v36  ;;  %7870 = vmatpush1.bf16.msra.mxu1 %v17206_v59  ;;  %v17238_v36 = vld [vmem:[#allocation121_spill] sm:$0xff]  ;;  %v17239_v59 = vld [vmem:[#allocation122_spill] sm:$0xff] }
 0xa06   : > { %7830 = vmatprep.subr.bf16.mxu0 %v17207_v13  ;;  %7871 = vmatprep.subr.bf16.mxu1 %v17208_v21  ;;  %v17240_v13 = vld [vmem:[#allocation123_spill] sm:$0xff]  ;;  %v17241_v21 = vld [vmem:[#allocation124_spill] sm:$0xff] }
 0xa09   : > { %7831 = vmatpush1.bf16.msra.mxu0 %v17209_v8  ;;  %7872 = vmatpush1.bf16.msra.mxu1 %v17210_v7  ;;  %v17242_v8 = vld [vmem:[#allocation125_spill] sm:$0xff]  ;;  %v17243_v7 = vld [vmem:[#allocation126_spill] sm:$0xff] }
 0xa0a   : > { %7832 = vmatprep.subr.bf16.mxu0 %v17211_v63  ;;  %7873 = vmatprep.subr.bf16.mxu1 %v17212_v15  ;;  %v17244_v63 = vld [vmem:[#allocation127_spill] sm:$0xff]  ;;  %v17245_v15 = vld [vmem:[#allocation128_spill] sm:$0xff] }
 0xa0d   : > { %7833 = vmatpush1.bf16.msra.mxu0 %v17213_v18  ;;  %7874 = vmatpush1.bf16.msra.mxu1 %v17214_v19  ;;  %v17246_v18 = vld [vmem:[#allocation129_spill] sm:$0xff]  ;;  %v17247_v19 = vld [vmem:[#allocation130_spill] sm:$0xff] }
 0xa0e   : > { %7834 = vmatprep.subr.bf16.mxu0 %v17215_v22  ;;  %7875 = vmatprep.subr.bf16.mxu1 %v17216_v24  ;;  %v17248_v22 = vld [vmem:[#allocation131_spill] sm:$0xff]  ;;  %v17249_v24 = vld [vmem:[#allocation132_spill] sm:$0xff] }
 0xa11   : > { %7835 = vmatpush1.bf16.msra.mxu0 %v17217_v27  ;;  %7876 = vmatpush1.bf16.msra.mxu1 %v17218_v28  ;;  %v17250_v27 = vld [vmem:[#allocation133_spill] sm:$0xff]  ;;  %v17252_v28 = vld [vmem:[#allocation135_spill] sm:$0xff] }
 0xa12   : > { %7836 = vmatprep.subr.bf16.mxu0 %v17219_v31  ;;  %7877 = vmatprep.subr.bf16.mxu1 %v17220_v12  ;;  %v17253_v31 = vld [vmem:[#allocation136_spill] sm:$0xff]  ;;  %v17254_v12 = vld [vmem:[#allocation137_spill] sm:$0xff] }
 0xa15   : > { %7837 = vmatpush1.bf16.msra.mxu0 %v17221_v34  ;;  %7878 = vmatpush1.bf16.msra.mxu1 %v17222_v35  ;;  %v17255_v34 = vld [vmem:[#allocation138_spill] sm:$0xff]  ;;  %v17256_v35 = vld [vmem:[#allocation139_spill] sm:$0xff] }
 0xa16   : > { %7838 = vmatprep.subr.bf16.mxu0 %v17223_v38  ;;  %7879 = vmatprep.subr.bf16.mxu1 %v17224_v39  ;;  %v17257_v38 = vld [vmem:[#allocation140_spill] sm:$0xff]  ;;  %v17258_v39 = vld [vmem:[#allocation141_spill] sm:$0xff] }
 0xa19   : > { %7839 = vmatpush1.bf16.msra.mxu0 %v17225_v41  ;;  %7880 = vmatpush1.bf16.msra.mxu1 %v17226_v42  ;;  %v17259_v41 = vld [vmem:[#allocation142_spill] sm:$0xff]  ;;  %v17260_v42 = vld [vmem:[#allocation143_spill] sm:$0xff] }
 0xa1a   : > { %7840 = vmatprep.subr.bf16.mxu0 %v17227_v45  ;;  %7881 = vmatprep.subr.bf16.mxu1 %v17228_v46  ;;  %v17261_v45 = vld [vmem:[#allocation144_spill] sm:$0xff]  ;;  %v17262_v46 = vld [vmem:[#allocation145_spill] sm:$0xff] }
 0xa1d   : > { %7841 = vmatpush1.bf16.msra.mxu0 %v17229_v49  ;;  %7882 = vmatpush1.bf16.msra.mxu1 %v17230_v50  ;;  %v17263_v49 = vld [vmem:[#allocation146_spill] sm:$0xff]  ;;  %v17264_v50 = vld [vmem:[#allocation147_spill] sm:$0xff] }
 0xa1e   : > { %7842 = vmatprep.subr.bf16.mxu0 %v17231_v53  ;;  %7883 = vmatprep.subr.bf16.mxu1 %v17232_v54  ;;  %v17265_v53 = vld [vmem:[#allocation148_spill] sm:$0xff]  ;;  %v17266_v54 = vld [vmem:[#allocation149_spill] sm:$0xff] }
 0xa21   : > { %7843 = vmatpush1.bf16.msra.mxu0 %v17233_v57  ;;  %7884 = vmatpush1.bf16.msra.mxu1 %v17234_v17  ;;  %v17267_v57 = vld [vmem:[#allocation150_spill] sm:$0xff]  ;;  %v17268_v17 = vld [vmem:[#allocation151_spill] sm:$0xff] }
 0xa22   : > { %7844 = vmatprep.subr.bf16.mxu0 %v17235_v30  ;;  %7885 = vmatprep.subr.bf16.mxu1 %v17236_v16  ;;  %v17269_v30 = vld [vmem:[#allocation152_spill] sm:$0xff]  ;;  %v17270_v16 = vld [vmem:[#allocation155_spill] sm:$0xff] }
 0xa25   : > { %7845 = vmatpush1.bf16.msra.mxu0 %v17237_v0  ;;  %7886 = vmatpush1.bf16.msra.mxu1 %v17238_v36  ;;  %v17271_v0 = vld [vmem:[#allocation156_spill] sm:$0xff]  ;;  %v17272_v36 = vld [vmem:[#allocation157_spill] sm:$0xff] }
 0xa26   : > { %7912 = vmatprep.subr.bf16.mxu0 %v17239_v59  ;;  %8076 = vmatprep.subr.bf16.mxu1 %v17240_v13  ;;  %v17273_v59 = vld [vmem:[#allocation158_spill] sm:$0xff]  ;;  %v17274_v13 = vld [vmem:[#allocation159_spill] sm:$0xff] }
 0xa28   : > { %7847 = vmatmul.mubr.bf16.vlgmr.msra.gmra.mrb[60].mxu0 %v13940_v62  ;;  %7888 = vmatmul.mubr.bf16.vlgmr.msra.gmra.mrb[60].mxu1 %v13940_v62  ;;  %v17251_v62 = vld [vmem:[#allocation134_spill] sm:$0xff] }
 0xa29   : > { %7913 = vmatpush1.bf16.msra.mxu0 %v17241_v21  ;;  %8077 = vmatpush1.bf16.msra.mxu1 %v17242_v8  ;;  %v17275_v21 = vld [vmem:[#allocation160_spill] sm:$0xff]  ;;  %v17276_v8 = vld [vmem:[#allocation161_spill] sm:$0xff] }
 0xa2a   : > { %7914 = vmatprep.subr.bf16.mxu0 %v17243_v7  ;;  %8078 = vmatprep.subr.bf16.mxu1 %v17244_v63  ;;  %v17277_v7 = vld [vmem:[#allocation162_spill] sm:$0xff]  ;;  %v17278_v63 = vld [vmem:[#allocation163_spill] sm:$0xff] }
 0xa2d   : > { %7915 = vmatpush1.bf16.msra.mxu0 %v17245_v15  ;;  %8079 = vmatpush1.bf16.msra.mxu1 %v17246_v18  ;;  %v17279_v15 = vld [vmem:[#allocation164_spill] sm:$0xff]  ;;  %v17280_v18 = vld [vmem:[#allocation165_spill] sm:$0xff] }
 0xa2e   : > { %7916 = vmatprep.subr.bf16.mxu0 %v17247_v19  ;;  %8080 = vmatprep.subr.bf16.mxu1 %v17248_v22  ;;  %v17281_v19 = vld [vmem:[#allocation166_spill] sm:$0xff]  ;;  %v17282_v22 = vld [vmem:[#allocation167_spill] sm:$0xff] }
 0xa31   : > { %7917 = vmatpush1.bf16.msra.mxu0 %v17249_v24  ;;  %8081 = vmatpush1.bf16.msra.mxu1 %v17250_v27  ;;  %v17283_v24 = vld [vmem:[#allocation168_spill] sm:$0xff]  ;;  %v17284_v27 = vld [vmem:[#allocation169_spill] sm:$0xff] }
 0xa32   : > { %7918 = vmatprep.subr.bf16.mxu0 %v17251_v62  ;;  %8082 = vmatprep.subr.bf16.mxu1 %v17252_v28  ;;  %v17285_v62 = vld [vmem:[#allocation170_spill] sm:$0xff]  ;;  %v17286_v28 = vld [vmem:[#allocation171_spill] sm:$0xff] }
 0xa35   : > { %7919 = vmatpush1.bf16.msra.mxu0 %v17253_v31  ;;  %8083 = vmatpush1.bf16.msra.mxu1 %v17254_v12  ;;  %v17287_v31 = vld [vmem:[#allocation172_spill] sm:$0xff]  ;;  %v17288_v12 = vld [vmem:[#allocation173_spill] sm:$0xff] }
 0xa36   : > { %7920 = vmatprep.subr.bf16.mxu0 %v17255_v34  ;;  %8084 = vmatprep.subr.bf16.mxu1 %v17256_v35  ;;  %v17289_v34 = vld [vmem:[#allocation174_spill] sm:$0xff]  ;;  %v17290_v35 = vld [vmem:[#allocation175_spill] sm:$0xff] }
 0xa39   : > { %7921 = vmatpush1.bf16.msra.mxu0 %v17257_v38  ;;  %8085 = vmatpush1.bf16.msra.mxu1 %v17258_v39  ;;  %v17291_v38 = vld [vmem:[#allocation176_spill] sm:$0xff]  ;;  %v17292_v39 = vld [vmem:[#allocation177_spill] sm:$0xff] }
 0xa3a   : > { %7922 = vmatprep.subr.bf16.mxu0 %v17259_v41  ;;  %8086 = vmatprep.subr.bf16.mxu1 %v17260_v42  ;;  %v17293_v41 = vld [vmem:[#allocation178_spill] sm:$0xff]  ;;  %v17294_v42 = vld [vmem:[#allocation179_spill] sm:$0xff] }
 0xa3d   : > { %7923 = vmatpush1.bf16.msra.mxu0 %v17261_v45  ;;  %8087 = vmatpush1.bf16.msra.mxu1 %v17262_v46  ;;  %v17295_v45 = vld [vmem:[#allocation180_spill] sm:$0xff]  ;;  %v17296_v46 = vld [vmem:[#allocation181_spill] sm:$0xff] }
 0xa3e   : > { %7924 = vmatprep.subr.bf16.mxu0 %v17263_v49  ;;  %8088 = vmatprep.subr.bf16.mxu1 %v17264_v50  ;;  %v17297_v49 = vld [vmem:[#allocation182_spill] sm:$0xff]  ;;  %v17298_v50 = vld [vmem:[#allocation183_spill] sm:$0xff] }
 0xa41   : > { %7925 = vmatpush1.bf16.msra.mxu0 %v17265_v53  ;;  %8089 = vmatpush1.bf16.msra.mxu1 %v17266_v54  ;;  %v17299_v53 = vld [vmem:[#allocation184_spill] sm:$0xff]  ;;  %v17300_v54 = vld [vmem:[#allocation185_spill] sm:$0xff] }
 0xa42   : > { %7926 = vmatprep.subr.bf16.mxu0 %v17267_v57  ;;  %8090 = vmatprep.subr.bf16.mxu1 %v17268_v17  ;;  %v17301_v57 = vld [vmem:[#allocation186_spill] sm:$0xff]  ;;  %v17302_v17 = vld [vmem:[#allocation187_spill] sm:$0xff] }
 0xa45   : > { %7927 = vmatpush1.bf16.msra.mxu0 %v17269_v30  ;;  %8091 = vmatpush1.bf16.msra.mxu1 %v17270_v16  ;;  %v17303_v30 = vld [vmem:[#allocation188_spill] sm:$0xff]  ;;  %v17304_v16 = vld [vmem:[#allocation189_spill] sm:$0xff] }
 0xa46   : > { %7928 = vmatprep.subr.bf16.mxu0 %v17271_v0  ;;  %8092 = vmatprep.subr.bf16.mxu1 %v17272_v36 }
 0xa49   : > { %7929 = vmatpush1.bf16.msra.mxu0 %v17273_v59  ;;  %8093 = vmatpush1.bf16.msra.mxu1 %v17274_v13  ;;  %v17305_v59 = vld [vmem:[#allocation190_spill] sm:$0xff] }
 0xa4a   : > { %7930 = vmatprep.subr.bf16.mxu0 %v17275_v21  ;;  %8094 = vmatprep.subr.bf16.mxu1 %v17276_v8 }
 0xa4d   : > { %7931 = vmatpush1.bf16.msra.mxu0 %v17277_v7  ;;  %8095 = vmatpush1.bf16.msra.mxu1 %v17278_v63  ;;  %v17306_v7 = vld [vmem:[#allocation191_spill] sm:$0xff] }
 0xa4e   : > { %7932 = vmatprep.subr.bf16.mxu0 %v17279_v15  ;;  %8096 = vmatprep.subr.bf16.mxu1 %v17280_v18 }
 0xa51   : > { %7933 = vmatpush1.bf16.msra.mxu0 %v17281_v19  ;;  %8097 = vmatpush1.bf16.msra.mxu1 %v17282_v22  ;;  %v17307_v19 = vld [vmem:[#allocation192_spill] sm:$0xff] }
 0xa52   : > { %7934 = vmatprep.subr.bf16.mxu0 %v17283_v24  ;;  %8098 = vmatprep.subr.bf16.mxu1 %v17284_v27 }
 0xa55   : > { %7935 = vmatpush1.bf16.msra.mxu0 %v17285_v62  ;;  %8099 = vmatpush1.bf16.msra.mxu1 %v17286_v28 }
 0xa56   : > { %7936 = vmatprep.subr.bf16.mxu0 %v17287_v31  ;;  %8100 = vmatprep.subr.bf16.mxu1 %v17288_v12  ;;  %v17308_v12 = vld [vmem:[#allocation153_spill] sm:$0xff] }
 0xa59   : > { %7937 = vmatpush1.bf16.msra.mxu0 %v17289_v34  ;;  %8101 = vmatpush1.bf16.msra.mxu1 %v17290_v35  ;;  %v17309_v34 = vld [vmem:[#allocation154_spill] sm:$0xff]  ;;  %v17310_v35 = vld [vmem:[#allocation193_spill] sm:$0xff] }
 0xa5a   : > { %7938 = vmatprep.subr.bf16.mxu0 %v17291_v38  ;;  %8102 = vmatprep.subr.bf16.mxu1 %v17292_v39  ;;  %v17311_v38 = vld [vmem:[#allocation194_spill] sm:$0xff]  ;;  %v17312_v39 = vld [vmem:[#allocation195_spill] sm:$0xff] }
 0xa5d   : > { %7939 = vmatpush1.bf16.msra.mxu0 %v17293_v41  ;;  %8103 = vmatpush1.bf16.msra.mxu1 %v17294_v42  ;;  %v17313_v41 = vld [vmem:[#allocation196_spill] sm:$0xff]  ;;  %v17314_v42 = vld [vmem:[#allocation197_spill] sm:$0xff] }
 0xa5e   : > { %7940 = vmatprep.subr.bf16.mxu0 %v17295_v45  ;;  %8104 = vmatprep.subr.bf16.mxu1 %v17296_v46  ;;  %v17315_v45 = vld [vmem:[#allocation198_spill] sm:$0xff]  ;;  %v17316_v46 = vld [vmem:[#allocation199_spill] sm:$0xff] }
 0xa61   : > { %7941 = vmatpush1.bf16.msra.mxu0 %v17297_v49  ;;  %8105 = vmatpush1.bf16.msra.mxu1 %v17298_v50  ;;  %v17317_v49 = vld [vmem:[#allocation200_spill] sm:$0xff]  ;;  %v17318_v50 = vld [vmem:[#allocation201_spill] sm:$0xff] }
 0xa62   : > { %7942 = vmatprep.subr.bf16.mxu0 %v17299_v53  ;;  %8106 = vmatprep.subr.bf16.mxu1 %v17300_v54  ;;  %v17319_v53 = vld [vmem:[#allocation202_spill] sm:$0xff]  ;;  %v17320_v54 = vld [vmem:[#allocation203_spill] sm:$0xff] }
 0xa65   : > { %7943 = vmatpush1.bf16.msra.mxu0 %v17301_v57  ;;  %8107 = vmatpush1.bf16.msra.mxu1 %v17302_v17  ;;  %v17321_v57 = vld [vmem:[#allocation204_spill] sm:$0xff]  ;;  %v17322_v17 = vld [vmem:[#allocation205_spill] sm:$0xff] }
 0xa66   : > { %7953 = vmatprep.subr.bf16.mxu0 %v17303_v30  ;;  %8117 = vmatprep.subr.bf16.mxu1 %v17304_v16  ;;  %v17323_v30 = vld [vmem:[#allocation206_spill] sm:$0xff]  ;;  %v17324_v16 = vld [vmem:[#allocation207_spill] sm:$0xff] }
 0xabb   : > { %v7766_v0 = vpop.f32.mrb[56].mxu0  ;;  %v14074_v36 = vpop.f32.mrb[56].mxu1 }
 0xabc   : > { %v7896_v13 = vadd.f32 %v7766_v0, %v17305_v59  ;;  %v7768_v21 = vpop.f32.mrb[57].mxu0  ;;  %v7809_v8 = vpop.f32.mrb[57].mxu1  ;;  %v17325_v0 = vld [vmem:[#allocation208_spill] sm:$0xff]  ;;  %v17326_v59 = vld [vmem:[#allocation209_spill] sm:$0xff] }
 0xabd   : > { %v7897_v63 = vadd.f32 %v7768_v21, %v17306_v7  ;;  %v7770_v15 = vpop.f32.mrb[58].mxu0  ;;  %v7811_v18 = vpop.f32.mrb[58].mxu1  ;;  %v7899_v22 = vadd.f32 %v7809_v8, %v17307_v19  ;;  %v17328_v21 = vld [vmem:[#allocation211_spill] sm:$0xff]  ;;  %v17329_v8 = vld [vmem:[#allocation212_spill] sm:$0xff]  ;;  %v17330_v7 = vld [vmem:[#allocation213_spill] sm:$0xff] }
 0xabe   : > { %v7771_v24 = vpop.f32.mrb[59].mxu0  ;;  %v7812_v27 = vpop.f32.mrb[59].mxu1  ;;  %v14081_v28 = vpack.c.bf16 %v7896_v13, %v7896_v13  ;;  %v17327_v13 = vld [vmem:[#allocation210_spill] sm:$0xff]  ;;  %v17332_v15 = vld [vmem:[#allocation215_spill] sm:$0xff]  ;;  %v17333_v18 = vld [vmem:[#allocation216_spill] sm:$0xff] }
 0xabf   : > { %v14079_v62 = vpack.c.bf16 %v7897_v63, %v7897_v63  ;;  %v14085_v31 = vpack.c.bf16 %v7899_v22, %v7899_v22  ;;  %v17331_v63 = vld [vmem:[#allocation214_spill] sm:$0xff]  ;;  %v17334_v19 = vld [vmem:[#allocation217_spill] sm:$0xff]  ;;  %v17336_v24 = vld [vmem:[#allocation219_spill] sm:$0xff] }
 0xac0   : > { %v17335_v22 = vld [vmem:[#allocation218_spill] sm:$0xff]  ;;  %v17337_v27 = vld [vmem:[#allocation220_spill] sm:$0xff] }
 0xac1   : > { %7944 = vmatprep.mubr.bf16.mxu0 %v14079_v62  ;;  %8108 = vmatprep.mubr.bf16.mxu1 %v14079_v62 }
 0xac2   : > { %7945 = vmatmul.mubr.bf16.vlgmr.msra.gmra.mrb[64].mxu0 %v14081_v28  ;;  %8109 = vmatmul.mubr.bf16.vlgmr.msra.gmra.mrb[64].mxu1 %v14081_v28 }
 0xac3   : > { %7954 = vmatpush1.bf16.msra.mxu0 %v17308_v12  ;;  %8118 = vmatpush1.bf16.msra.mxu1 %v17309_v34  ;;  %v17338_v12 = vld [vmem:[#allocation221_spill] sm:$0xff]  ;;  %v17339_v34 = vld [vmem:[#allocation222_spill] sm:$0xff] }
 0xac4   : > { %7985 = vmatprep.mubr.bf16.mxu0 %v14085_v31  ;;  %8149 = vmatprep.mubr.bf16.mxu1 %v14085_v31 }
 0xac5   : > { %7955 = vmatprep.subr.bf16.mxu0 %v17310_v35  ;;  %8119 = vmatprep.subr.bf16.mxu1 %v17311_v38  ;;  %v17340_v35 = vld [vmem:[#allocation223_spill] sm:$0xff]  ;;  %v17341_v38 = vld [vmem:[#allocation224_spill] sm:$0xff] }
 0xac7   : > { %7956 = vmatpush1.bf16.msra.mxu0 %v17312_v39  ;;  %8120 = vmatpush1.bf16.msra.mxu1 %v17313_v41  ;;  %v17342_v39 = vld [vmem:[#allocation225_spill] sm:$0xff]  ;;  %v17343_v41 = vld [vmem:[#allocation226_spill] sm:$0xff] }
 0xac8   : > { %7957 = vmatprep.subr.bf16.mxu0 %v17314_v42  ;;  %8121 = vmatprep.subr.bf16.mxu1 %v17315_v45  ;;  %v17344_v42 = vld [vmem:[#allocation227_spill] sm:$0xff]  ;;  %v17345_v45 = vld [vmem:[#allocation228_spill] sm:$0xff] }
 0xacb   : > { %7958 = vmatpush1.bf16.msra.mxu0 %v17316_v46  ;;  %8122 = vmatpush1.bf16.msra.mxu1 %v17317_v49  ;;  %v17346_v46 = vld [vmem:[#allocation229_spill] sm:$0xff]  ;;  %v17347_v49 = vld [vmem:[#allocation230_spill] sm:$0xff] }
 0xacc   : > { %7959 = vmatprep.subr.bf16.mxu0 %v17318_v50  ;;  %8123 = vmatprep.subr.bf16.mxu1 %v17319_v53  ;;  %v17348_v50 = vld [vmem:[#allocation231_spill] sm:$0xff]  ;;  %v17349_v53 = vld [vmem:[#allocation232_spill] sm:$0xff] }
 0xacf   : > { %7960 = vmatpush1.bf16.msra.mxu0 %v17320_v54  ;;  %8124 = vmatpush1.bf16.msra.mxu1 %v17321_v57  ;;  %v17350_v54 = vld [vmem:[#allocation233_spill] sm:$0xff]  ;;  %v17351_v57 = vld [vmem:[#allocation234_spill] sm:$0xff] }
 0xad0   : > { %7961 = vmatprep.subr.bf16.mxu0 %v17322_v17  ;;  %8125 = vmatprep.subr.bf16.mxu1 %v17323_v30  ;;  %v17352_v17 = vld [vmem:[#allocation235_spill] sm:$0xff]  ;;  %v17353_v30 = vld [vmem:[#allocation236_spill] sm:$0xff] }
 0xad3   : > { %7962 = vmatpush1.bf16.msra.mxu0 %v17324_v16  ;;  %8126 = vmatpush1.bf16.msra.mxu1 %v17325_v0  ;;  %v17354_v16 = vld [vmem:[#allocation237_spill] sm:$0xff]  ;;  %v17355_v0 = vld [vmem:[#allocation238_spill] sm:$0xff] }
 0xad4   : > { %7963 = vmatprep.subr.bf16.mxu0 %v17326_v59  ;;  %8127 = vmatprep.subr.bf16.mxu1 %v17327_v13  ;;  %v17356_v59 = vld [vmem:[#allocation239_spill] sm:$0xff]  ;;  %v17357_v13 = vld [vmem:[#allocation240_spill] sm:$0xff] }
 0xad7   : > { %7964 = vmatpush1.bf16.msra.mxu0 %v17328_v21  ;;  %8128 = vmatpush1.bf16.msra.mxu1 %v17329_v8  ;;  %v17358_v21 = vld [vmem:[#allocation241_spill] sm:$0xff]  ;;  %v17359_v8 = vld [vmem:[#allocation242_spill] sm:$0xff] }
 0xad8   : > { %7965 = vmatprep.subr.bf16.mxu0 %v17330_v7  ;;  %8129 = vmatprep.subr.bf16.mxu1 %v17331_v63  ;;  %v17360_v7 = vld [vmem:[#allocation243_spill] sm:$0xff]  ;;  %v17361_v63 = vld [vmem:[#allocation244_spill] sm:$0xff] }
 0xadb   : > { %7966 = vmatpush1.bf16.msra.mxu0 %v17332_v15  ;;  %8130 = vmatpush1.bf16.msra.mxu1 %v17333_v18  ;;  %v17362_v15 = vld [vmem:[#allocation245_spill] sm:$0xff]  ;;  %v17363_v18 = vld [vmem:[#allocation246_spill] sm:$0xff] }
 0xadc   : > { %7967 = vmatprep.subr.bf16.mxu0 %v17334_v19  ;;  %8131 = vmatprep.subr.bf16.mxu1 %v17335_v22 }
 0xadf   : > { %7968 = vmatpush1.bf16.msra.mxu0 %v17336_v24  ;;  %8132 = vmatpush1.bf16.msra.mxu1 %v17337_v27  ;;  %v17364_v24 = vld [vmem:[#allocation247_spill] sm:$0xff]  ;;  %v17365_v27 = vld [vmem:[#allocation248_spill] sm:$0xff] }
 0xae0   : > { %7969 = vmatprep.subr.bf16.mxu0 %v17338_v12  ;;  %8133 = vmatprep.subr.bf16.mxu1 %v17339_v34  ;;  %v17366_v12 = vld [vmem:[#allocation251_spill] sm:$0xff] }
 0xae1   : > { %v7898_v34 = vadd.f32 %v14074_v36, %v17366_v12  ;;  %v17369_v36 = vld [vmem:[#allocation255_spill] sm:$0xff]  ;;  %v17388_v12 = vld [vmem:[#allocation274_spill] sm:$0xff] }
 0xae3   : > { %7970 = vmatpush1.bf16.msra.mxu0 %v17340_v35  ;;  %8134 = vmatpush1.bf16.msra.mxu1 %v17341_v38 }
 0xae4   : > { %7971 = vmatprep.subr.bf16.mxu0 %v17342_v39  ;;  %8135 = vmatprep.subr.bf16.mxu1 %v17343_v41 }
 0xae7   : > { %7972 = vmatpush1.bf16.msra.mxu0 %v17344_v42  ;;  %8136 = vmatpush1.bf16.msra.mxu1 %v17345_v45 }
 0xae8   : > { %7973 = vmatprep.subr.bf16.mxu0 %v17346_v46  ;;  %8137 = vmatprep.subr.bf16.mxu1 %v17347_v49  ;;  %v17367_v49 = vld [vmem:[#allocation253_spill] sm:$0xff] }
 0xaeb   : > { %7974 = vmatpush1.bf16.msra.mxu0 %v17348_v50  ;;  %8138 = vmatpush1.bf16.msra.mxu1 %v17349_v53  ;;  %v17368_v50 = vld [vmem:[#allocation254_spill] sm:$0xff]  ;;  %v14162_v53 = vpack.c.bf16 %v7898_v34, %v7898_v34  ;;  %v17389_v34 = vld [vmem:[#allocation275_spill] sm:$0xff] }
 0xaec   : > { %7975 = vmatprep.subr.bf16.mxu0 %v17350_v54  ;;  %8139 = vmatprep.subr.bf16.mxu1 %v17351_v57  ;;  %v17370_v54 = vld [vmem:[#allocation256_spill] sm:$0xff] }
 0xaef   : > { %7976 = vmatpush1.bf16.msra.mxu0 %v17352_v17  ;;  %8140 = vmatpush1.bf16.msra.mxu1 %v17353_v30  ;;  %v17374_v17 = vld [vmem:[#allocation260_spill] sm:$0xff]  ;;  %v17375_v30 = vld [vmem:[#allocation261_spill] sm:$0xff] }
 0xaf0   : > { %7977 = vmatprep.subr.bf16.mxu0 %v17354_v16  ;;  %8141 = vmatprep.subr.bf16.mxu1 %v17355_v0  ;;  %v17376_v16 = vld [vmem:[#allocation262_spill] sm:$0xff]  ;;  %v17377_v0 = vld [vmem:[#allocation263_spill] sm:$0xff] }
 0xaf3   : > { %7978 = vmatpush1.bf16.msra.mxu0 %v17356_v59  ;;  %8142 = vmatpush1.bf16.msra.mxu1 %v17357_v13  ;;  %v17378_v59 = vld [vmem:[#allocation264_spill] sm:$0xff]  ;;  %v17379_v13 = vld [vmem:[#allocation265_spill] sm:$0xff] }
 0xaf4   : > { %7979 = vmatprep.subr.bf16.mxu0 %v17358_v21  ;;  %8143 = vmatprep.subr.bf16.mxu1 %v17359_v8  ;;  %v17380_v21 = vld [vmem:[#allocation266_spill] sm:$0xff]  ;;  %v17381_v8 = vld [vmem:[#allocation267_spill] sm:$0xff] }
 0xaf7   : > { %7980 = vmatpush1.bf16.msra.mxu0 %v17360_v7  ;;  %8144 = vmatpush1.bf16.msra.mxu1 %v17361_v63  ;;  %v17382_v7 = vld [vmem:[#allocation268_spill] sm:$0xff]  ;;  %v17383_v63 = vld [vmem:[#allocation269_spill] sm:$0xff] }
 0xaf8   : > { %7981 = vmatprep.subr.bf16.mxu0 %v17362_v15  ;;  %8145 = vmatprep.subr.bf16.mxu1 %v17363_v18  ;;  %v17384_v15 = vld [vmem:[#allocation270_spill] sm:$0xff]  ;;  %v17385_v18 = vld [vmem:[#allocation271_spill] sm:$0xff] }
 0xafb   : > { %v14147_v19 = vpop.f32.mrb[60].mxu0  ;;  %v14149_v22 = vpop.f32.mrb[60].mxu1  ;;  %7982 = vmatpush1.bf16.msra.mxu0 %v17364_v24  ;;  %8146 = vmatpush1.bf16.msra.mxu1 %v17365_v27  ;;  %v17386_v24 = vld [vmem:[#allocation272_spill] sm:$0xff]  ;;  %v17387_v27 = vld [vmem:[#allocation273_spill] sm:$0xff] }
 0xafc   : > { %v7850_v35 = vpop.f32.mrb[61].mxu0  ;;  %v14155_v38 = vpop.f32.mrb[61].mxu1  ;;  %7983 = vmatprep.subr.bf16.mxu0 %v16749_v51  ;;  %8147 = vmatprep.subr.bf16.mxu1 %v16750_v48  ;;  %v17372_v51 = vld [vmem:[#allocation258_spill] sm:$0xff]  ;;  %v17373_v48 = vld [vmem:[#allocation259_spill] sm:$0xff] }
 0xafd   : > { %v7901_v39 = vadd.f32 %v7850_v35, %v16751_v2  ;;  %v7852_v41 = vpop.f32.mrb[62].mxu0  ;;  %v7893_v42 = vpop.f32.mrb[62].mxu1  ;;  %v17371_v2 = vld [vmem:[#allocation257_spill] sm:$0xff]  ;;  %v17390_v35 = vld [vmem:[#allocation276_spill] sm:$0xff] }
 0xafe   : > { %v7853_v45 = vpop.f32.mrb[63].mxu0  ;;  %v7894_v46 = vpop.f32.mrb[63].mxu1  ;;  %v17392_v41 = vld [vmem:[#allocation278_spill] sm:$0xff]  ;;  %v17393_v42 = vld [vmem:[#allocation279_spill] sm:$0xff] }
 0xaff   : > { %7984 = vmatpush1.bf16.msra.mxu0 %v17367_v49  ;;  %8148 = vmatpush1.bf16.msra.mxu1 %v17368_v50  ;;  %v14166_v57 = vpack.c.bf16 %v7901_v39, %v7901_v39  ;;  %v17391_v39 = vld [vmem:[#allocation277_spill] sm:$0xff]  ;;  %v17394_v45 = vld [vmem:[#allocation280_spill] sm:$0xff]  ;;  %v17396_v49 = vld [vmem:[#allocation282_spill] sm:$0xff] }
 0xb00   : > { %7994 = vmatprep.subr.bf16.mxu0 %v17369_v36  ;;  %8158 = vmatprep.subr.bf16.mxu1 %v17370_v54  ;;  %v17395_v46 = vld [vmem:[#allocation281_spill] sm:$0xff]  ;;  %v17397_v50 = vld [vmem:[#allocation283_spill] sm:$0xff]  ;;  %v17398_v36 = vld [vmem:[#allocation284_spill] sm:$0xff] }
 0xb01   : > { %v17399_v54 = vld [vmem:[#allocation285_spill] sm:$0xff] }
 0xb02   : > { %7986 = vmatmul.mubr.bf16.vlgmr.msra.gmra.mrb[64].mxu0 %v14162_v53  ;;  %8150 = vmatmul.mubr.bf16.vlgmr.msra.gmra.mrb[64].mxu1 %v14162_v53 }
 0xb03   : > { %7995 = vmatpush1.bf16.msra.mxu0 %v17371_v2  ;;  %8026 = vmatprep.mubr.bf16.mxu0 %v14166_v57  ;;  %v17400_v2 = vld [vmem:[#allocation286_spill] sm:$0xff] }
 0xb04   : > { %8159 = vmatpush1.bf16.msra.mxu1 %v17372_v51  ;;  %8190 = vmatprep.mubr.bf16.mxu1 %v14166_v57  ;;  %v17401_v51 = vld [vmem:[#allocation287_spill] sm:$0xff] }
 0xb05   : > { %7996 = vmatprep.subr.bf16.mxu0 %v17373_v48  ;;  %8160 = vmatprep.subr.bf16.mxu1 %v17374_v17  ;;  %v17402_v48 = vld [vmem:[#allocation288_spill] sm:$0xff]  ;;  %v17403_v17 = vld [vmem:[#allocation289_spill] sm:$0xff] }
 0xb07   : > { %7997 = vmatpush1.bf16.msra.mxu0 %v17375_v30  ;;  %v17404_v30 = vld [vmem:[#allocation290_spill] sm:$0xff] }
 0xb08   : > { %8161 = vmatpush1.bf16.msra.mxu1 %v17376_v16  ;;  %7998 = vmatprep.subr.bf16.mxu0 %v17377_v0  ;;  %v17405_v16 = vld [vmem:[#allocation291_spill] sm:$0xff]  ;;  %v17406_v0 = vld [vmem:[#allocation292_spill] sm:$0xff] }
 0xb09   : > { %8162 = vmatprep.subr.bf16.mxu1 %v17378_v59  ;;  %v17407_v59 = vld [vmem:[#allocation293_spill] sm:$0xff] }
 0xb0b   : > { %7999 = vmatpush1.bf16.msra.mxu0 %v17379_v13  ;;  %v17408_v13 = vld [vmem:[#allocation294_spill] sm:$0xff] }
 0xb0c   : > { %8163 = vmatpush1.bf16.msra.mxu1 %v17380_v21  ;;  %8000 = vmatprep.subr.bf16.mxu0 %v17381_v8  ;;  %v17409_v21 = vld [vmem:[#allocation295_spill] sm:$0xff]  ;;  %v17410_v8 = vld [vmem:[#allocation296_spill] sm:$0xff] }
 0xb0d   : > { %8164 = vmatprep.subr.bf16.mxu1 %v17382_v7  ;;  %v17411_v7 = vld [vmem:[#allocation297_spill] sm:$0xff] }
 0xb0f   : > { %8001 = vmatpush1.bf16.msra.mxu0 %v17383_v63  ;;  %v17412_v63 = vld [vmem:[#allocation301_spill] sm:$0xff] }
 0xb10   : > { %8165 = vmatpush1.bf16.msra.mxu1 %v17384_v15  ;;  %8002 = vmatprep.subr.bf16.mxu0 %v17385_v18  ;;  %v17413_v15 = vld [vmem:[#allocation302_spill] sm:$0xff]  ;;  %v17414_v18 = vld [vmem:[#allocation303_spill] sm:$0xff] }
 0xb11   : > { %8166 = vmatprep.subr.bf16.mxu1 %v17386_v24  ;;  %v17415_v24 = vld [vmem:[#allocation304_spill] sm:$0xff] }
 0xb13   : > { %8003 = vmatpush1.bf16.msra.mxu0 %v17387_v27  ;;  %v17416_v27 = vld [vmem:[#allocation305_spill] sm:$0xff] }
 0xb14   : > { %8167 = vmatpush1.bf16.msra.mxu1 %v17388_v12  ;;  %8004 = vmatprep.subr.bf16.mxu0 %v17389_v34  ;;  %v17417_v12 = vld [vmem:[#allocation306_spill] sm:$0xff]  ;;  %v17418_v34 = vld [vmem:[#allocation307_spill] sm:$0xff] }
 0xb15   : > { %8168 = vmatprep.subr.bf16.mxu1 %v17390_v35  ;;  %v17419_v35 = vld [vmem:[#allocation308_spill] sm:$0xff] }
 0xb17   : > { %8005 = vmatpush1.bf16.msra.mxu0 %v17391_v39  ;;  %v17423_v39 = vld [vmem:[#allocation312_spill] sm:$0xff] }
 0xb18   : > { %8169 = vmatpush1.bf16.msra.mxu1 %v17392_v41  ;;  %8006 = vmatprep.subr.bf16.mxu0 %v17393_v42  ;;  %v17424_v41 = vld [vmem:[#allocation313_spill] sm:$0xff]  ;;  %v7900_v42 = vadd.f32 %v14147_v19, %v16809_v20  ;;  %v17433_v19 = vld [vmem:[#allocation323_spill] sm:$0xff] }
 0xb19   : > { %8170 = vmatprep.subr.bf16.mxu1 %v17394_v45  ;;  %v17425_v45 = vld [vmem:[#allocation314_spill] sm:$0xff] }
 0xb1b   : > { %8007 = vmatpush1.bf16.msra.mxu0 %v17395_v46  ;;  %v17426_v46 = vld [vmem:[#allocation315_spill] sm:$0xff] }
 0xb1c   : > { %8171 = vmatpush1.bf16.msra.mxu1 %v17396_v49  ;;  %8008 = vmatprep.subr.bf16.mxu0 %v17397_v50  ;;  %v17427_v49 = vld [vmem:[#allocation316_spill] sm:$0xff]  ;;  %v17428_v50 = vld [vmem:[#allocation318_spill] sm:$0xff] }
 0xb1d   : > { %8172 = vmatprep.subr.bf16.mxu1 %v17398_v36  ;;  %v7903_v36 = vadd.f32 %v14155_v38, %v17428_v50  ;;  %v17434_v38 = vld [vmem:[#allocation324_spill] sm:$0xff]  ;;  %v17460_v50 = vld [vmem:[#allocation350_spill] sm:$0xff] }
 0xb1f   : > { %8009 = vmatpush1.bf16.msra.mxu0 %v17399_v54  ;;  %v17429_v54 = vld [vmem:[#allocation319_spill] sm:$0xff]  ;;  %v14242_v20 = vpack.c.bf16 %v7903_v36, %v7903_v36 }
 0xb20   : > { %8173 = vmatpush1.bf16.msra.mxu1 %v17400_v2  ;;  %8010 = vmatprep.subr.bf16.mxu0 %v17401_v51  ;;  %v14237_v2 = vpack.c.bf16 %v7900_v42, %v7900_v42  ;;  %v17430_v51 = vld [vmem:[#allocation320_spill] sm:$0xff]  ;;  %v17456_v42 = vld [vmem:[#allocation346_spill] sm:$0xff]  ;;  %v17461_v36 = vld [vmem:[#allocation351_spill] sm:$0xff] }
 0xb21   : > { %8174 = vmatprep.subr.bf16.mxu1 %v17402_v48  ;;  %v17431_v48 = vld [vmem:[#allocation321_spill] sm:$0xff] }
 0xb23   : > { %8011 = vmatpush1.bf16.msra.mxu0 %v17403_v17  ;;  %v17432_v17 = vld [vmem:[#allocation322_spill] sm:$0xff] }
 0xb24   : > { %8175 = vmatpush1.bf16.msra.mxu1 %v17404_v30  ;;  %8012 = vmatprep.subr.bf16.mxu0 %v17405_v16  ;;  %v17435_v30 = vld [vmem:[#allocation325_spill] sm:$0xff]  ;;  %v17436_v16 = vld [vmem:[#allocation326_spill] sm:$0xff] }
 0xb25   : > { %8176 = vmatprep.subr.bf16.mxu1 %v17406_v0  ;;  %v17437_v0 = vld [vmem:[#allocation327_spill] sm:$0xff] }
 0xb27   : > { %8013 = vmatpush1.bf16.msra.mxu0 %v17407_v59  ;;  %v17438_v59 = vld [vmem:[#allocation328_spill] sm:$0xff] }
 0xb28   : > { %8177 = vmatpush1.bf16.msra.mxu1 %v17408_v13  ;;  %8014 = vmatprep.subr.bf16.mxu0 %v17409_v21  ;;  %v17439_v13 = vld [vmem:[#allocation329_spill] sm:$0xff]  ;;  %v17440_v21 = vld [vmem:[#allocation330_spill] sm:$0xff] }
 0xb29   : > { %8178 = vmatprep.subr.bf16.mxu1 %v17410_v8  ;;  %v17441_v8 = vld [vmem:[#allocation331_spill] sm:$0xff] }
 0xb2b   : > { %8015 = vmatpush1.bf16.msra.mxu0 %v17411_v7  ;;  %v17442_v7 = vld [vmem:[#allocation332_spill] sm:$0xff] }
 0xb2c   : > { %8179 = vmatpush1.bf16.msra.mxu1 %v16797_v4  ;;  %8016 = vmatprep.subr.bf16.mxu0 %v16798_v32  ;;  %v17420_v4 = vld [vmem:[#allocation309_spill] sm:$0xff]  ;;  %v17421_v32 = vld [vmem:[#allocation310_spill] sm:$0xff] }
 0xb2d   : > { %8180 = vmatprep.subr.bf16.mxu1 %v16799_v29  ;;  %v17422_v29 = vld [vmem:[#allocation311_spill] sm:$0xff] }
 0xb2f   : > { %8017 = vmatpush1.bf16.msra.mxu0 %v17412_v63  ;;  %v17443_v63 = vld [vmem:[#allocation333_spill] sm:$0xff] }
 0xb30   : > { %8181 = vmatpush1.bf16.msra.mxu1 %v17413_v15  ;;  %8018 = vmatprep.subr.bf16.mxu0 %v17414_v18  ;;  %v17444_v15 = vld [vmem:[#allocation334_spill] sm:$0xff]  ;;  %v17445_v18 = vld [vmem:[#allocation335_spill] sm:$0xff] }
 0xb31   : > { %8182 = vmatprep.subr.bf16.mxu1 %v17415_v24  ;;  %v17446_v24 = vld [vmem:[#allocation336_spill] sm:$0xff] }
 0xb33   : > { %8019 = vmatpush1.bf16.msra.mxu0 %v17416_v27  ;;  %v17447_v27 = vld [vmem:[#allocation337_spill] sm:$0xff] }
 0xb34   : > { %8183 = vmatpush1.bf16.msra.mxu1 %v17417_v12  ;;  %8020 = vmatprep.subr.bf16.mxu0 %v17418_v34  ;;  %v17448_v12 = vld [vmem:[#allocation338_spill] sm:$0xff]  ;;  %v17449_v34 = vld [vmem:[#allocation339_spill] sm:$0xff] }
 0xb35   : > { %8184 = vmatprep.subr.bf16.mxu1 %v17419_v35  ;;  %v17450_v35 = vld [vmem:[#allocation340_spill] sm:$0xff] }
 0xb37   : > { %8021 = vmatpush1.bf16.msra.mxu0 %v17420_v4  ;;  %v17451_v4 = vld [vmem:[#allocation341_spill] sm:$0xff] }
 0xb38   : > { %8185 = vmatpush1.bf16.msra.mxu1 %v17421_v32  ;;  %8022 = vmatprep.subr.bf16.mxu0 %v17422_v29  ;;  %v17452_v32 = vld [vmem:[#allocation342_spill] sm:$0xff]  ;;  %v17453_v29 = vld [vmem:[#allocation343_spill] sm:$0xff] }
 0xb39   : > { %8186 = vmatprep.subr.bf16.mxu1 %v17423_v39  ;;  %v17454_v39 = vld [vmem:[#allocation344_spill] sm:$0xff] }
 0xb3b   : > { %8023 = vmatpush1.bf16.msra.mxu0 %v17424_v41  ;;  %v17455_v41 = vld [vmem:[#allocation345_spill] sm:$0xff] }
 0xb3c   : > { %8187 = vmatpush1.bf16.msra.mxu1 %v17425_v45  ;;  %8024 = vmatprep.subr.bf16.mxu0 %v17426_v46  ;;  %v17457_v45 = vld [vmem:[#allocation347_spill] sm:$0xff]  ;;  %v17458_v46 = vld [vmem:[#allocation348_spill] sm:$0xff] }
 0xb3d   : > { %8188 = vmatprep.subr.bf16.mxu1 %v17427_v49  ;;  %v17459_v49 = vld [vmem:[#allocation349_spill] sm:$0xff] }
 0xb3f   : > { %8025 = vmatpush1.bf16.msra.mxu0 %v17429_v54  ;;  %v17462_v54 = vld [vmem:[#allocation352_spill] sm:$0xff] }
 0xb40   : > { %8189 = vmatpush1.bf16.msra.mxu1 %v17430_v51  ;;  %8035 = vmatprep.subr.bf16.mxu0 %v17431_v48  ;;  %v17463_v51 = vld [vmem:[#allocation353_spill] sm:$0xff]  ;;  %v17464_v48 = vld [vmem:[#allocation354_spill] sm:$0xff] }
 0xb41   : > { %8199 = vmatprep.subr.bf16.mxu1 %v17432_v17  ;;  %v17465_v17 = vld [vmem:[#allocation355_spill] sm:$0xff] }
 0xb42   : > { %8027 = vmatmul.mubr.bf16.vlgmr.msra.gmra.mrb[64].mxu0 %v14237_v2 }
 0xb43   : > { %8191 = vmatmul.mubr.bf16.vlgmr.msra.gmra.mrb[64].mxu1 %v14237_v2  ;;  %8036 = vmatpush1.bf16.msra.mxu0 %v17433_v19  ;;  %v17466_v19 = vld [vmem:[#allocation356_spill] sm:$0xff] }
 0xb44   : > { %8067 = vmatprep.mubr.bf16.mxu0 %v14242_v20  ;;  %8200 = vmatpush1.bf16.msra.mxu1 %v17434_v38  ;;  %v17467_v38 = vld [vmem:[#allocation357_spill] sm:$0xff] }
 0xb45   : > { %8231 = vmatprep.mubr.bf16.mxu1 %v14242_v20  ;;  %8037 = vmatprep.subr.bf16.mxu0 %v17435_v30  ;;  %v17468_v30 = vld [vmem:[#allocation358_spill] sm:$0xff] }
 0xb46   : > { %8201 = vmatprep.subr.bf16.mxu1 %v17436_v16  ;;  %v17469_v16 = vld [vmem:[#allocation359_spill] sm:$0xff] }
 0xb47   : > { %8038 = vmatpush1.bf16.msra.mxu0 %v17437_v0  ;;  %v17470_v0 = vld [vmem:[#allocation360_spill] sm:$0xff] }
 0xb48   : > { %8202 = vmatpush1.bf16.msra.mxu1 %v17438_v59  ;;  %8039 = vmatprep.subr.bf16.mxu0 %v17439_v13  ;;  %v17471_v59 = vld [vmem:[#allocation361_spill] sm:$0xff]  ;;  %v17472_v13 = vld [vmem:[#allocation362_spill] sm:$0xff] }
 0xb49   : > { %8203 = vmatprep.subr.bf16.mxu1 %v17440_v21  ;;  %v17473_v21 = vld [vmem:[#allocation363_spill] sm:$0xff] }
 0xb4b   : > { %8040 = vmatpush1.bf16.msra.mxu0 %v17441_v8  ;;  %v17474_v8 = vld [vmem:[#allocation364_spill] sm:$0xff] }
 0xb4c   : > { %8204 = vmatpush1.bf16.msra.mxu1 %v17442_v7  ;;  %8041 = vmatprep.subr.bf16.mxu0 %v17443_v63  ;;  %v17475_v7 = vld [vmem:[#allocation366_spill] sm:$0xff]  ;;  %v17476_v63 = vld [vmem:[#allocation367_spill] sm:$0xff] }
 0xb4d   : > { %8205 = vmatprep.subr.bf16.mxu1 %v17444_v15  ;;  %v17477_v15 = vld [vmem:[#allocation369_spill] sm:$0xff] }
 0xb4f   : > { %8042 = vmatpush1.bf16.msra.mxu0 %v17445_v18  ;;  %v17478_v18 = vld [vmem:[#allocation370_spill] sm:$0xff] }
 0xb50   : > { %8206 = vmatpush1.bf16.msra.mxu1 %v17446_v24  ;;  %8043 = vmatprep.subr.bf16.mxu0 %v17447_v27  ;;  %v17479_v24 = vld [vmem:[#allocation371_spill] sm:$0xff]  ;;  %v17480_v27 = vld [vmem:[#allocation372_spill] sm:$0xff] }
 0xb51   : > { %8207 = vmatprep.subr.bf16.mxu1 %v17448_v12  ;;  %v17481_v12 = vld [vmem:[#allocation373_spill] sm:$0xff] }
 0xb53   : > { %8044 = vmatpush1.bf16.msra.mxu0 %v17449_v34  ;;  %v17482_v34 = vld [vmem:[#allocation374_spill] sm:$0xff] }
 0xb54   : > { %8208 = vmatpush1.bf16.msra.mxu1 %v17450_v35  ;;  %8045 = vmatprep.subr.bf16.mxu0 %v17451_v4  ;;  %v17483_v35 = vld [vmem:[#allocation375_spill] sm:$0xff]  ;;  %v17485_v4 = vld [vmem:[#allocation377_spill] sm:$0xff] }
 0xb55   : > { %8209 = vmatprep.subr.bf16.mxu1 %v17452_v32  ;;  %v17486_v32 = vld [vmem:[#allocation378_spill] sm:$0xff] }
 0xb57   : > { %8046 = vmatpush1.bf16.msra.mxu0 %v17453_v29 }
 0xb58   : > { %8210 = vmatpush1.bf16.msra.mxu1 %v17454_v39  ;;  %8047 = vmatprep.subr.bf16.mxu0 %v17455_v41  ;;  %v17488_v39 = vld [vmem:[#allocation379_spill] sm:$0xff]  ;;  %v17489_v41 = vld [vmem:[#allocation380_spill] sm:$0xff] }
 0xb59   : > { %8211 = vmatprep.subr.bf16.mxu1 %v17456_v42  ;;  %v17490_v42 = vld [vmem:[#allocation381_spill] sm:$0xff] }
 0xb5b   : > { %8048 = vmatpush1.bf16.msra.mxu0 %v17457_v45  ;;  %v17491_v45 = vld [vmem:[#allocation383_spill] sm:$0xff] }
 0xb5c   : > { %8212 = vmatpush1.bf16.msra.mxu1 %v17458_v46  ;;  %8049 = vmatprep.subr.bf16.mxu0 %v17459_v49  ;;  %v17492_v49 = vld [vmem:[#allocation384_spill] sm:$0xff] }
 0xb5d   : > { %8213 = vmatprep.subr.bf16.mxu1 %v17460_v50  ;;  %v17493_v50 = vld [vmem:[#allocation385_spill] sm:$0xff] }
 0xb5f   : > { %8050 = vmatpush1.bf16.msra.mxu0 %v17461_v36  ;;  %v17494_v36 = vld [vmem:[#allocation386_spill] sm:$0xff] }
 0xb60   : > { %8214 = vmatpush1.bf16.msra.mxu1 %v17462_v54  ;;  %8051 = vmatprep.subr.bf16.mxu0 %v17463_v51  ;;  %v17497_v54 = vld [vmem:[#allocation389_spill] sm:$0xff]  ;;  %v17498_v51 = vld [vmem:[#allocation390_spill] sm:$0xff] }
 0xb61   : > { %8215 = vmatprep.subr.bf16.mxu1 %v17464_v48  ;;  %v17499_v48 = vld [vmem:[#allocation391_spill] sm:$0xff] }
 0xb63   : > { %8052 = vmatpush1.bf16.msra.mxu0 %v17465_v17  ;;  %v17500_v17 = vld [vmem:[#allocation392_spill] sm:$0xff] }
 0xb64   : > { %8216 = vmatpush1.bf16.msra.mxu1 %v17466_v19  ;;  %8053 = vmatprep.subr.bf16.mxu0 %v17467_v38  ;;  %v17501_v19 = vld [vmem:[#allocation393_spill] sm:$0xff]  ;;  %v17502_v38 = vld [vmem:[#allocation394_spill] sm:$0xff] }
 0xb65   : > { %8217 = vmatprep.subr.bf16.mxu1 %v17468_v30  ;;  %v17503_v30 = vld [vmem:[#allocation395_spill] sm:$0xff] }
 0xb67   : > { %8054 = vmatpush1.bf16.msra.mxu0 %v17469_v16  ;;  %v17504_v16 = vld [vmem:[#allocation396_spill] sm:$0xff] }
 0xb68   : > { %8218 = vmatpush1.bf16.msra.mxu1 %v17470_v0  ;;  %8055 = vmatprep.subr.bf16.mxu0 %v17471_v59  ;;  %v17505_v0 = vld [vmem:[#allocation397_spill] sm:$0xff]  ;;  %v17506_v59 = vld [vmem:[#allocation398_spill] sm:$0xff] }
 0xb69   : > { %8219 = vmatprep.subr.bf16.mxu1 %v17472_v13  ;;  %v17508_v13 = vld [vmem:[#allocation400_spill] sm:$0xff] }
 0xb6b   : > { %8056 = vmatpush1.bf16.msra.mxu0 %v17473_v21  ;;  %v17509_v21 = vld [vmem:[#allocation401_spill] sm:$0xff] }
 0xb6c   : > { %8220 = vmatpush1.bf16.msra.mxu1 %v17474_v8  ;;  %8057 = vmatprep.subr.bf16.mxu0 %v16860_v3  ;;  %v17484_v3 = vld [vmem:[#allocation376_spill] sm:$0xff]  ;;  %v17510_v8 = vld [vmem:[#allocation402_spill] sm:$0xff] }
 0xb6d   : > { %8221 = vmatprep.subr.bf16.mxu1 %v17475_v7  ;;  %v17511_v7 = vld [vmem:[#allocation403_spill] sm:$0xff] }
 0xb6f   : > { %8058 = vmatpush1.bf16.msra.mxu0 %v17476_v63  ;;  %v17512_v63 = vld [vmem:[#allocation404_spill] sm:$0xff] }
 0xb70   : > { %8222 = vmatpush1.bf16.msra.mxu1 %v16863_v14  ;;  %8059 = vmatprep.subr.bf16.mxu0 %v17477_v15  ;;  %v17487_v14 = vld [vmem:[#allocation382_spill] sm:$0xff]  ;;  %v17513_v15 = vld [vmem:[#allocation405_spill] sm:$0xff] }
 0xb71   : > { %8223 = vmatprep.subr.bf16.mxu1 %v17478_v18  ;;  %v7902_v29 = vadd.f32 %v14149_v22, %v17487_v14  ;;  %v17496_v22 = vld [vmem:[#allocation388_spill] sm:$0xff]  ;;  %v17514_v18 = vld [vmem:[#allocation406_spill] sm:$0xff]  ;;  %v17523_v14 = vld [vmem:[#allocation415_spill] sm:$0xff] }
 0xb73   : > { %8060 = vmatpush1.bf16.msra.mxu0 %v17479_v24  ;;  %v14311_v46 = vpack.c.bf16 %v7902_v29, %v7902_v29  ;;  %v17515_v24 = vld [vmem:[#allocation407_spill] sm:$0xff]  ;;  %v17524_v29 = vld [vmem:[#allocation416_spill] sm:$0xff] }
 0xb74   : > { %8224 = vmatpush1.bf16.msra.mxu1 %v17480_v27  ;;  %8061 = vmatprep.subr.bf16.mxu0 %v17481_v12  ;;  %v17516_v27 = vld [vmem:[#allocation408_spill] sm:$0xff]  ;;  %v17517_v12 = vld [vmem:[#allocation409_spill] sm:$0xff] }
 0xb75   : > { %8225 = vmatprep.subr.bf16.mxu1 %v17482_v34  ;;  %v17518_v34 = vld [vmem:[#allocation410_spill] sm:$0xff] }
 0xb77   : > { %8062 = vmatpush1.bf16.msra.mxu0 %v17483_v35  ;;  %v17519_v35 = vld [vmem:[#allocation411_spill] sm:$0xff] }
 0xb78   : > { %8226 = vmatpush1.bf16.msra.mxu1 %v17484_v3  ;;  %8063 = vmatprep.subr.bf16.mxu0 %v17485_v4  ;;  %v17520_v3 = vld [vmem:[#allocation412_spill] sm:$0xff]  ;;  %v17521_v4 = vld [vmem:[#allocation413_spill] sm:$0xff] }
 0xb79   : > { %8227 = vmatprep.subr.bf16.mxu1 %v17486_v32  ;;  %v17522_v32 = vld [vmem:[#allocation414_spill] sm:$0xff] }
 0xb7b   : > { %8064 = vmatpush1.bf16.msra.mxu0 %v12242_v10  ;;  %v17495_v10 = vld [vmem:[#allocation387_spill] sm:$0xff] }
 0xb7c   : > { %8228 = vmatpush1.bf16.msra.mxu1 %v17488_v39  ;;  %8065 = vmatprep.subr.bf16.mxu0 %v17489_v41  ;;  %v17525_v39 = vld [vmem:[#allocation417_spill] sm:$0xff]  ;;  %v17526_v41 = vld [vmem:[#allocation418_spill] sm:$0xff] }
 0xb7d   : > { %8229 = vmatprep.subr.bf16.mxu1 %v17490_v42  ;;  %v17527_v42 = vld [vmem:[#allocation419_spill] sm:$0xff] }
 0xb7f   : > { %8066 = vmatpush1.bf16.msra.mxu0 %v17491_v45  ;;  %v17528_v45 = vld [vmem:[#allocation420_spill] sm:$0xff] }
 0xb80   : > { %8230 = vmatpush1.bf16.msra.mxu1 %v17492_v49  ;;  %8240 = vmatprep.subr.bf16.mxu0 %v17493_v50  ;;  %v17529_v49 = vld [vmem:[#allocation421_spill] sm:$0xff]  ;;  %v17530_v50 = vld [vmem:[#allocation422_spill] sm:$0xff] }
 0xb81   : > { %8404 = vmatprep.subr.bf16.mxu1 %v17494_v36  ;;  %v17531_v36 = vld [vmem:[#allocation423_spill] sm:$0xff] }
 0xb82   : > { %8068 = vmatmul.mubr.bf16.vlgmr.msra.gmra.mrb[64].mxu0 %v14311_v46 }
 0xb83   : > { %8232 = vmatmul.mubr.bf16.vlgmr.msra.gmra.mrb[64].mxu1 %v14311_v46  ;;  %8241 = vmatpush1.bf16.msra.mxu0 %v17495_v10  ;;  %v17532_v10 = vld [vmem:[#allocation424_spill] sm:$0xff] }
 0xb84   : > { %8272 = vmatprep.mubr.bf16.mxu0 %v14079_v62  ;;  %8405 = vmatpush1.bf16.msra.mxu1 %v17496_v22  ;;  %v17533_v22 = vld [vmem:[#allocation425_spill] sm:$0xff] }
 0xb85   : > { %8436 = vmatprep.mubr.bf16.mxu1 %v14079_v62  ;;  %8242 = vmatprep.subr.bf16.mxu0 %v17497_v54  ;;  %v17507_v62 = vld [vmem:[#allocation399_spill] sm:$0xff]  ;;  %v17534_v54 = vld [vmem:[#allocation426_spill] sm:$0xff] }
 0xb86   : > { %8406 = vmatprep.subr.bf16.mxu1 %v17498_v51  ;;  %v17535_v51 = vld [vmem:[#allocation427_spill] sm:$0xff] }
 0xb87   : > { %8243 = vmatpush1.bf16.msra.mxu0 %v17499_v48  ;;  %v17536_v48 = vld [vmem:[#allocation429_spill] sm:$0xff] }
 0xb88   : > { %8407 = vmatpush1.bf16.msra.mxu1 %v17500_v17  ;;  %8244 = vmatprep.subr.bf16.mxu0 %v17501_v19  ;;  %v17537_v17 = vld [vmem:[#allocation430_spill] sm:$0xff]  ;;  %v17538_v19 = vld [vmem:[#allocation431_spill] sm:$0xff] }
 0xb89   : > { %8408 = vmatprep.subr.bf16.mxu1 %v17502_v38  ;;  %v17539_v38 = vld [vmem:[#allocation432_spill] sm:$0xff] }
 0xb8b   : > { %8245 = vmatpush1.bf16.msra.mxu0 %v17503_v30  ;;  %v17540_v30 = vld [vmem:[#allocation433_spill] sm:$0xff] }
 0xb8c   : > { %8409 = vmatpush1.bf16.msra.mxu1 %v17504_v16  ;;  %8246 = vmatprep.subr.bf16.mxu0 %v17505_v0  ;;  %v17541_v16 = vld [vmem:[#allocation434_spill] sm:$0xff]  ;;  %v17542_v0 = vld [vmem:[#allocation435_spill] sm:$0xff] }
 0xb8d   : > { %8410 = vmatprep.subr.bf16.mxu1 %v17506_v59  ;;  %v17543_v59 = vld [vmem:[#allocation436_spill] sm:$0xff] }
 0xb8f   : > { %8247 = vmatpush1.bf16.msra.mxu0 %v17507_v62  ;;  %v17544_v62 = vld [vmem:[#allocation437_spill] sm:$0xff] }
 0xb90   : > { %8411 = vmatpush1.bf16.msra.mxu1 %v17508_v13  ;;  %8248 = vmatprep.subr.bf16.mxu0 %v17509_v21  ;;  %v17545_v13 = vld [vmem:[#allocation438_spill] sm:$0xff]  ;;  %v17547_v21 = vld [vmem:[#allocation441_spill] sm:$0xff] }
 0xb91   : > { %8412 = vmatprep.subr.bf16.mxu1 %v17510_v8  ;;  %v17548_v8 = vld [vmem:[#allocation442_spill] sm:$0xff] }
 0xb93   : > { %8249 = vmatpush1.bf16.msra.mxu0 %v17511_v7  ;;  %v17549_v7 = vld [vmem:[#allocation443_spill] sm:$0xff] }
 0xb94   : > { %8413 = vmatpush1.bf16.msra.mxu1 %v17512_v63  ;;  %8250 = vmatprep.subr.bf16.mxu0 %v17513_v15  ;;  %v17550_v63 = vld [vmem:[#allocation444_spill] sm:$0xff]  ;;  %v17551_v15 = vld [vmem:[#allocation445_spill] sm:$0xff] }
 0xb95   : > { %8414 = vmatprep.subr.bf16.mxu1 %v17514_v18  ;;  %v17552_v18 = vld [vmem:[#allocation446_spill] sm:$0xff] }
 0xb97   : > { %8251 = vmatpush1.bf16.msra.mxu0 %v17515_v24  ;;  %v17553_v24 = vld [vmem:[#allocation447_spill] sm:$0xff] }
 0xb98   : > { %8415 = vmatpush1.bf16.msra.mxu1 %v17516_v27  ;;  %8252 = vmatprep.subr.bf16.mxu0 %v17517_v12  ;;  %v17554_v27 = vld [vmem:[#allocation448_spill] sm:$0xff]  ;;  %v17555_v12 = vld [vmem:[#allocation449_spill] sm:$0xff] }
 0xb99   : > { %8416 = vmatprep.subr.bf16.mxu1 %v17518_v34  ;;  %v17556_v34 = vld [vmem:[#allocation450_spill] sm:$0xff] }
 0xb9b   : > { %8253 = vmatpush1.bf16.msra.mxu0 %v17519_v35  ;;  %v17558_v35 = vld [vmem:[#allocation452_spill] sm:$0xff] }
 0xb9c   : > { %8417 = vmatpush1.bf16.msra.mxu1 %v17520_v3  ;;  %8254 = vmatprep.subr.bf16.mxu0 %v17521_v4  ;;  %v17559_v3 = vld [vmem:[#allocation453_spill] sm:$0xff]  ;;  %v17560_v4 = vld [vmem:[#allocation454_spill] sm:$0xff] }
 0xb9d   : > { %8418 = vmatprep.subr.bf16.mxu1 %v17522_v32  ;;  %v17561_v32 = vld [vmem:[#allocation455_spill] sm:$0xff] }
 0xb9f   : > { %8255 = vmatpush1.bf16.msra.mxu0 %v17523_v14  ;;  %v17562_v14 = vld [vmem:[#allocation456_spill] sm:$0xff] }
 0xba0   : > { %8419 = vmatpush1.bf16.msra.mxu1 %v17524_v29  ;;  %8256 = vmatprep.subr.bf16.mxu0 %v17525_v39  ;;  %v17563_v29 = vld [vmem:[#allocation457_spill] sm:$0xff]  ;;  %v17564_v39 = vld [vmem:[#allocation458_spill] sm:$0xff] }
 0xba1   : > { %8420 = vmatprep.subr.bf16.mxu1 %v17526_v41  ;;  %v17566_v41 = vld [vmem:[#allocation460_spill] sm:$0xff] }
 0xba3   : > { %8257 = vmatpush1.bf16.msra.mxu0 %v17527_v42  ;;  %v17567_v42 = vld [vmem:[#allocation461_spill] sm:$0xff] }
 0xba4   : > { %8421 = vmatpush1.bf16.msra.mxu1 %v17528_v45  ;;  %8258 = vmatprep.subr.bf16.mxu0 %v17529_v49  ;;  %v17568_v45 = vld [vmem:[#allocation462_spill] sm:$0xff]  ;;  %v17570_v49 = vld [vmem:[#allocation464_spill] sm:$0xff] }
 0xba5   : > { %8422 = vmatprep.subr.bf16.mxu1 %v17530_v50  ;;  %v17571_v50 = vld [vmem:[#allocation465_spill] sm:$0xff] }
 0xba7   : > { %8259 = vmatpush1.bf16.msra.mxu0 %v17531_v36  ;;  %v17572_v36 = vld [vmem:[#allocation466_spill] sm:$0xff] }
 0xba8   : > { %8423 = vmatpush1.bf16.msra.mxu1 %v17532_v10  ;;  %8260 = vmatprep.subr.bf16.mxu0 %v17533_v22  ;;  %v17573_v10 = vld [vmem:[#allocation467_spill] sm:$0xff]  ;;  %v17574_v22 = vld [vmem:[#allocation468_spill] sm:$0xff] }
 0xba9   : > { %8424 = vmatprep.subr.bf16.mxu1 %v17534_v54  ;;  %v17575_v54 = vld [vmem:[#allocation469_spill] sm:$0xff] }
 0xbab   : > { %8261 = vmatpush1.bf16.msra.mxu0 %v17535_v51  ;;  %v17576_v51 = vld [vmem:[#allocation470_spill] sm:$0xff] }
 0xbac   : > { %8425 = vmatpush1.bf16.msra.mxu1 %v16922_v40  ;;  %8262 = vmatprep.subr.bf16.mxu0 %v17536_v48  ;;  %v17546_v40 = vld [vmem:[#allocation439_spill] sm:$0xff] }
 0xbad   : > { %8426 = vmatprep.subr.bf16.mxu1 %v17537_v17  ;;  %v17577_v48 = vld [vmem:[#allocation471_spill] sm:$0xff]  ;;  %v17578_v17 = vld [vmem:[#allocation472_spill] sm:$0xff] }
 0xbaf   : > { %8263 = vmatpush1.bf16.msra.mxu0 %v17538_v19  ;;  %v17579_v19 = vld [vmem:[#allocation473_spill] sm:$0xff] }
 0xbb0   : > { %8427 = vmatpush1.bf16.msra.mxu1 %v17539_v38  ;;  %8264 = vmatprep.subr.bf16.mxu0 %v17540_v30  ;;  %v17580_v38 = vld [vmem:[#allocation474_spill] sm:$0xff]  ;;  %v17581_v30 = vld [vmem:[#allocation475_spill] sm:$0xff] }
 0xbb1   : > { %8428 = vmatprep.subr.bf16.mxu1 %v17541_v16  ;;  %v17582_v16 = vld [vmem:[#allocation476_spill] sm:$0xff] }
 0xbb3   : > { %8265 = vmatpush1.bf16.msra.mxu0 %v17542_v0  ;;  %v17583_v0 = vld [vmem:[#allocation477_spill] sm:$0xff] }
 0xbb4   : > { %8429 = vmatpush1.bf16.msra.mxu1 %v17543_v59  ;;  %8266 = vmatprep.subr.bf16.mxu0 %v17544_v62  ;;  %v17584_v59 = vld [vmem:[#allocation478_spill] sm:$0xff]  ;;  %v17585_v62 = vld [vmem:[#allocation479_spill] sm:$0xff] }
 0xbb5   : > { %8430 = vmatprep.subr.bf16.mxu1 %v17545_v13  ;;  %v17586_v13 = vld [vmem:[#allocation480_spill] sm:$0xff] }
 0xbb7   : > { %8267 = vmatpush1.bf16.msra.mxu0 %v17546_v40  ;;  %v17587_v40 = vld [vmem:[#allocation481_spill] sm:$0xff] }
 0xbb8   : > { %8431 = vmatpush1.bf16.msra.mxu1 %v16933_v61  ;;  %8268 = vmatprep.subr.bf16.mxu0 %v17547_v21  ;;  %v17557_v61 = vld [vmem:[#allocation451_spill] sm:$0xff]  ;;  %v17588_v21 = vld [vmem:[#allocation482_spill] sm:$0xff] }
 0xbb9   : > { %8432 = vmatprep.subr.bf16.mxu1 %v17548_v8  ;;  %v17589_v8 = vld [vmem:[#allocation483_spill] sm:$0xff] }
 0xbbb   : > { %8269 = vmatpush1.bf16.msra.mxu0 %v17549_v7  ;;  %v17590_v7 = vld [vmem:[#allocation484_spill] sm:$0xff] }
 0xbbc   : > { %8433 = vmatpush1.bf16.msra.mxu1 %v17550_v63  ;;  %8270 = vmatprep.subr.bf16.mxu0 %v17551_v15  ;;  %v17591_v63 = vld [vmem:[#allocation485_spill] sm:$0xff]  ;;  %v17592_v15 = vld [vmem:[#allocation486_spill] sm:$0xff] }
 0xbbd   : > { %8434 = vmatprep.subr.bf16.mxu1 %v17552_v18  ;;  %v17593_v18 = vld [vmem:[#allocation487_spill] sm:$0xff] }
 0xbbf   : > { %8271 = vmatpush1.bf16.msra.mxu0 %v17553_v24  ;;  %v17594_v24 = vld [vmem:[#allocation488_spill] sm:$0xff] }
 0xbc0   : > { %8435 = vmatpush1.bf16.msra.mxu1 %v17554_v27  ;;  %8281 = vmatprep.subr.bf16.mxu0 %v17555_v12  ;;  %v17595_v27 = vld [vmem:[#allocation489_spill] sm:$0xff]  ;;  %v17596_v12 = vld [vmem:[#allocation490_spill] sm:$0xff] }
 0xbc1   : > { %8445 = vmatprep.subr.bf16.mxu1 %v17556_v34  ;;  %v17597_v34 = vld [vmem:[#allocation491_spill] sm:$0xff] }
 0xbc2   : > { %8273 = vmatmul.mubr.bf16.vlgmr.msra.gmra.mrb[68].mxu0 %v14081_v28 }
 0xbc3   : > { %8437 = vmatmul.mubr.bf16.vlgmr.msra.gmra.mrb[68].mxu1 %v14081_v28  ;;  %8282 = vmatpush1.bf16.msra.mxu0 %v17557_v61  ;;  %v17565_v28 = vld [vmem:[#allocation459_spill] sm:$0xff]  ;;  %v17598_v61 = vld [vmem:[#allocation492_spill] sm:$0xff] }
 0xbc4   : > { %8313 = vmatprep.mubr.bf16.mxu0 %v14085_v31  ;;  %8446 = vmatpush1.bf16.msra.mxu1 %v17558_v35  ;;  %v17599_v35 = vld [vmem:[#allocation493_spill] sm:$0xff] }
 0xbc5   : > { %8477 = vmatprep.mubr.bf16.mxu1 %v14085_v31  ;;  %8283 = vmatprep.subr.bf16.mxu0 %v17559_v3  ;;  %v17569_v31 = vld [vmem:[#allocation463_spill] sm:$0xff]  ;;  %v17600_v3 = vld [vmem:[#allocation494_spill] sm:$0xff] }
 0xbc6   : > { %8447 = vmatprep.subr.bf16.mxu1 %v17560_v4  ;;  %v17601_v4 = vld [vmem:[#allocation495_spill] sm:$0xff] }
 0xbc7   : > { %8284 = vmatpush1.bf16.msra.mxu0 %v17561_v32  ;;  %v17602_v32 = vld [vmem:[#allocation496_spill] sm:$0xff] }
 0xbc8   : > { %8448 = vmatpush1.bf16.msra.mxu1 %v17562_v14  ;;  %8285 = vmatprep.subr.bf16.mxu0 %v17563_v29  ;;  %v17603_v14 = vld [vmem:[#allocation497_spill] sm:$0xff]  ;;  %v17604_v29 = vld [vmem:[#allocation498_spill] sm:$0xff] }
 0xbc9   : > { %8449 = vmatprep.subr.bf16.mxu1 %v17564_v39  ;;  %v17605_v39 = vld [vmem:[#allocation499_spill] sm:$0xff] }
 0xbcb   : > { %8286 = vmatpush1.bf16.msra.mxu0 %v17565_v28  ;;  %v17606_v28 = vld [vmem:[#allocation500_spill] sm:$0xff] }
 0xbcc   : > { %8450 = vmatpush1.bf16.msra.mxu1 %v17566_v41  ;;  %8287 = vmatprep.subr.bf16.mxu0 %v17567_v42  ;;  %v17607_v41 = vld [vmem:[#allocation501_spill] sm:$0xff]  ;;  %v17608_v42 = vld [vmem:[#allocation502_spill] sm:$0xff] }
 0xbcd   : > { %8451 = vmatprep.subr.bf16.mxu1 %v17568_v45  ;;  %v17609_v45 = vld [vmem:[#allocation503_spill] sm:$0xff] }
 0xbcf   : > { %8288 = vmatpush1.bf16.msra.mxu0 %v17569_v31  ;;  %v17610_v31 = vld [vmem:[#allocation504_spill] sm:$0xff] }
 0xbd0   : > { %8452 = vmatpush1.bf16.msra.mxu1 %v17570_v49  ;;  %8289 = vmatprep.subr.bf16.mxu0 %v17571_v50  ;;  %v17611_v49 = vld [vmem:[#allocation505_spill] sm:$0xff]  ;;  %v17612_v50 = vld [vmem:[#allocation506_spill] sm:$0xff] }
 0xbd1   : > { %8453 = vmatprep.subr.bf16.mxu1 %v17572_v36  ;;  %v17613_v36 = vld [vmem:[#allocation507_spill] sm:$0xff] }
 0xbd3   : > { %8290 = vmatpush1.bf16.msra.mxu0 %v17573_v10  ;;  %v17614_v10 = vld [vmem:[#allocation508_spill] sm:$0xff] }
 0xbd4   : > { %8454 = vmatpush1.bf16.msra.mxu1 %v17574_v22  ;;  %8291 = vmatprep.subr.bf16.mxu0 %v17575_v54  ;;  %v17615_v22 = vld [vmem:[#allocation509_spill] sm:$0xff]  ;;  %v17616_v54 = vld [vmem:[#allocation510_spill] sm:$0xff] }
 0xbd5   : > { %8455 = vmatprep.subr.bf16.mxu1 %v17576_v51  ;;  %v17617_v51 = vld [vmem:[#allocation511_spill] sm:$0xff] }
 0xbd7   : > { %8292 = vmatpush1.bf16.msra.mxu0 %v17577_v48  ;;  %v17618_v48 = vld [vmem:[#allocation512_spill] sm:$0xff] }
 0xbd8   : > { %8456 = vmatpush1.bf16.msra.mxu1 %v17578_v17  ;;  %8293 = vmatprep.subr.bf16.mxu0 %v17579_v19  ;;  %v17619_v17 = vld [vmem:[#allocation513_spill] sm:$0xff]  ;;  %v17620_v19 = vld [vmem:[#allocation514_spill] sm:$0xff] }
 0xbd9   : > { %8457 = vmatprep.subr.bf16.mxu1 %v17580_v38  ;;  %v17621_v38 = vld [vmem:[#allocation515_spill] sm:$0xff] }
 0xbdb   : > { %8294 = vmatpush1.bf16.msra.mxu0 %v17581_v30  ;;  %v17622_v30 = vld [vmem:[#allocation516_spill] sm:$0xff] }
 0xbdc   : > { %8458 = vmatpush1.bf16.msra.mxu1 %v17582_v16  ;;  %8295 = vmatprep.subr.bf16.mxu0 %v17583_v0  ;;  %v17623_v16 = vld [vmem:[#allocation517_spill] sm:$0xff]  ;;  %v17624_v0 = vld [vmem:[#allocation518_spill] sm:$0xff] }
 0xbdd   : > { %8459 = vmatprep.subr.bf16.mxu1 %v17584_v59  ;;  %v17625_v59 = vld [vmem:[#allocation519_spill] sm:$0xff] }
 0xbdf   : > { %8296 = vmatpush1.bf16.msra.mxu0 %v17585_v62  ;;  %v17626_v62 = vld [vmem:[#allocation520_spill] sm:$0xff] }
 0xbe0   : > { %8460 = vmatpush1.bf16.msra.mxu1 %v17586_v13  ;;  %8297 = vmatprep.subr.bf16.mxu0 %v17587_v40  ;;  %v17627_v13 = vld [vmem:[#allocation521_spill] sm:$0xff]  ;;  %v17628_v40 = vld [vmem:[#allocation522_spill] sm:$0xff] }
 0xbe1   : > { %8461 = vmatprep.subr.bf16.mxu1 %v17588_v21  ;;  %v17630_v21 = vld [vmem:[#allocation524_spill] sm:$0xff] }
 0xbe3   : > { %8298 = vmatpush1.bf16.msra.mxu0 %v17589_v8  ;;  %v17631_v8 = vld [vmem:[#allocation525_spill] sm:$0xff] }
 0xbe4   : > { %8462 = vmatpush1.bf16.msra.mxu1 %v17590_v7  ;;  %8299 = vmatprep.subr.bf16.mxu0 %v17591_v63  ;;  %v17632_v7 = vld [vmem:[#allocation526_spill] sm:$0xff]  ;;  %v17634_v63 = vld [vmem:[#allocation528_spill] sm:$0xff] }
 0xbe5   : > { %8463 = vmatprep.subr.bf16.mxu1 %v17592_v15  ;;  %v17635_v15 = vld [vmem:[#allocation529_spill] sm:$0xff] }
 0xbe7   : > { %8300 = vmatpush1.bf16.msra.mxu0 %v17593_v18  ;;  %v17636_v18 = vld [vmem:[#allocation530_spill] sm:$0xff] }
 0xbe8   : > { %8464 = vmatpush1.bf16.msra.mxu1 %v17594_v24  ;;  %8301 = vmatprep.subr.bf16.mxu0 %v17595_v27  ;;  %v17637_v24 = vld [vmem:[#allocation531_spill] sm:$0xff]  ;;  %v17638_v27 = vld [vmem:[#allocation532_spill] sm:$0xff] }
 0xbe9   : > { %8465 = vmatprep.subr.bf16.mxu1 %v17596_v12  ;;  %v17639_v12 = vld [vmem:[#allocation533_spill] sm:$0xff] }
 0xbeb   : > { %8302 = vmatpush1.bf16.msra.mxu0 %v17597_v34  ;;  %v17640_v34 = vld [vmem:[#allocation534_spill] sm:$0xff] }
 0xbec   : > { %8466 = vmatpush1.bf16.msra.mxu1 %v17598_v61  ;;  %8303 = vmatprep.subr.bf16.mxu0 %v17599_v35  ;;  %v17641_v61 = vld [vmem:[#allocation535_spill] sm:$0xff]  ;;  %v17642_v35 = vld [vmem:[#allocation536_spill] sm:$0xff] }
 0xbed   : > { %8467 = vmatprep.subr.bf16.mxu1 %v17600_v3  ;;  %v17643_v3 = vld [vmem:[#allocation537_spill] sm:$0xff] }
 0xbef   : > { %8304 = vmatpush1.bf16.msra.mxu0 %v17601_v4  ;;  %v17644_v4 = vld [vmem:[#allocation538_spill] sm:$0xff] }
 0xbf0   : > { %8468 = vmatpush1.bf16.msra.mxu1 %v17602_v32  ;;  %8305 = vmatprep.subr.bf16.mxu0 %v17603_v14  ;;  %v17645_v32 = vld [vmem:[#allocation539_spill] sm:$0xff]  ;;  %v17646_v14 = vld [vmem:[#allocation540_spill] sm:$0xff] }
 0xbf1   : > { %8469 = vmatprep.subr.bf16.mxu1 %v17604_v29  ;;  %v17647_v29 = vld [vmem:[#allocation541_spill] sm:$0xff] }
 0xbf3   : > { %8306 = vmatpush1.bf16.msra.mxu0 %v17605_v39  ;;  %v17648_v39 = vld [vmem:[#allocation542_spill] sm:$0xff] }
 0xbf4   : > { %8470 = vmatpush1.bf16.msra.mxu1 %v17606_v28  ;;  %8307 = vmatprep.subr.bf16.mxu0 %v17607_v41  ;;  %v17649_v28 = vld [vmem:[#allocation543_spill] sm:$0xff]  ;;  %v17650_v41 = vld [vmem:[#allocation544_spill] sm:$0xff] }
 0xbf5   : > { %8471 = vmatprep.subr.bf16.mxu1 %v17608_v42  ;;  %v17651_v42 = vld [vmem:[#allocation545_spill] sm:$0xff] }
 0xbf7   : > { %8308 = vmatpush1.bf16.msra.mxu0 %v17609_v45  ;;  %v17652_v45 = vld [vmem:[#allocation546_spill] sm:$0xff] }
 0xbf8   : > { %8472 = vmatpush1.bf16.msra.mxu1 %v17610_v31  ;;  %8309 = vmatprep.subr.bf16.mxu0 %v17611_v49  ;;  %v17653_v31 = vld [vmem:[#allocation547_spill] sm:$0xff]  ;;  %v17654_v49 = vld [vmem:[#allocation548_spill] sm:$0xff] }
 0xbf9   : > { %8473 = vmatprep.subr.bf16.mxu1 %v17612_v50  ;;  %v17655_v50 = vld [vmem:[#allocation549_spill] sm:$0xff] }
 0xbfb   : > { %8310 = vmatpush1.bf16.msra.mxu0 %v17613_v36  ;;  %v17656_v36 = vld [vmem:[#allocation550_spill] sm:$0xff] }
 0xbfc   : > { %8474 = vmatpush1.bf16.msra.mxu1 %v17614_v10  ;;  %8311 = vmatprep.subr.bf16.mxu0 %v17615_v22  ;;  %v17657_v10 = vld [vmem:[#allocation551_spill] sm:$0xff]  ;;  %v17658_v22 = vld [vmem:[#allocation552_spill] sm:$0xff] }
 0xbfd   : > { %8475 = vmatprep.subr.bf16.mxu1 %v17616_v54  ;;  %v17659_v54 = vld [vmem:[#allocation553_spill] sm:$0xff] }
 0xbff   : > { %8312 = vmatpush1.bf16.msra.mxu0 %v17617_v51  ;;  %v17660_v51 = vld [vmem:[#allocation554_spill] sm:$0xff] }
 0xc00   : > { %8476 = vmatpush1.bf16.msra.mxu1 %v17618_v48  ;;  %8322 = vmatprep.subr.bf16.mxu0 %v17619_v17  ;;  %v17661_v48 = vld [vmem:[#allocation555_spill] sm:$0xff]  ;;  %v17662_v17 = vld [vmem:[#allocation556_spill] sm:$0xff] }
 0xc01   : > { %8486 = vmatprep.subr.bf16.mxu1 %v17620_v19  ;;  %v17663_v19 = vld [vmem:[#allocation557_spill] sm:$0xff] }
 0xc02   : > { %8314 = vmatmul.mubr.bf16.vlgmr.msra.gmra.mrb[68].mxu0 %v14162_v53 }
 0xc03   : > { %8478 = vmatmul.mubr.bf16.vlgmr.msra.gmra.mrb[68].mxu1 %v14162_v53  ;;  %8323 = vmatpush1.bf16.msra.mxu0 %v17621_v38  ;;  %v17629_v53 = vld [vmem:[#allocation523_spill] sm:$0xff]  ;;  %v17664_v38 = vld [vmem:[#allocation558_spill] sm:$0xff] }
 0xc04   : > { %8354 = vmatprep.mubr.bf16.mxu0 %v14166_v57  ;;  %8487 = vmatpush1.bf16.msra.mxu1 %v17622_v30  ;;  %v17665_v30 = vld [vmem:[#allocation559_spill] sm:$0xff] }
 0xc05   : > { %8518 = vmatprep.mubr.bf16.mxu1 %v14166_v57  ;;  %8324 = vmatprep.subr.bf16.mxu0 %v17623_v16  ;;  %v17633_v57 = vld [vmem:[#allocation527_spill] sm:$0xff]  ;;  %v17666_v16 = vld [vmem:[#allocation560_spill] sm:$0xff] }
 0xc06   : > { %8488 = vmatprep.subr.bf16.mxu1 %v17624_v0  ;;  %v17667_v0 = vld [vmem:[#allocation561_spill] sm:$0xff] }
 0xc07   : > { %8325 = vmatpush1.bf16.msra.mxu0 %v17625_v59  ;;  %v17668_v59 = vld [vmem:[#allocation562_spill] sm:$0xff] }
 0xc08   : > { %8489 = vmatpush1.bf16.msra.mxu1 %v17626_v62  ;;  %8326 = vmatprep.subr.bf16.mxu0 %v17627_v13  ;;  %v17669_v62 = vld [vmem:[#allocation563_spill] sm:$0xff]  ;;  %v17670_v13 = vld [vmem:[#allocation564_spill] sm:$0xff] }
 0xc09   : > { %8490 = vmatprep.subr.bf16.mxu1 %v17628_v40  ;;  %v17671_v40 = vld [vmem:[#allocation565_spill] sm:$0xff] }
 0xc0b   : > { %8327 = vmatpush1.bf16.msra.mxu0 %v17629_v53  ;;  %v17672_v53 = vld [vmem:[#allocation566_spill] sm:$0xff] }
 0xc0c   : > { %8491 = vmatpush1.bf16.msra.mxu1 %v17630_v21  ;;  %8328 = vmatprep.subr.bf16.mxu0 %v17631_v8  ;;  %v17673_v21 = vld [vmem:[#allocation567_spill] sm:$0xff]  ;;  %v17674_v8 = vld [vmem:[#allocation568_spill] sm:$0xff] }
 0xc0d   : > { %8492 = vmatprep.subr.bf16.mxu1 %v17632_v7  ;;  %v17675_v7 = vld [vmem:[#allocation569_spill] sm:$0xff] }
 0xc0f   : > { %8329 = vmatpush1.bf16.msra.mxu0 %v17633_v57  ;;  %v17676_v57 = vld [vmem:[#allocation570_spill] sm:$0xff] }
 0xc10   : > { %8493 = vmatpush1.bf16.msra.mxu1 %v17634_v63  ;;  %8330 = vmatprep.subr.bf16.mxu0 %v17635_v15  ;;  %v17677_v63 = vld [vmem:[#allocation571_spill] sm:$0xff]  ;;  %v17678_v15 = vld [vmem:[#allocation572_spill] sm:$0xff] }
 0xc11   : > { %8494 = vmatprep.subr.bf16.mxu1 %v17636_v18  ;;  %v17679_v18 = vld [vmem:[#allocation573_spill] sm:$0xff] }
 0xc13   : > { %8331 = vmatpush1.bf16.msra.mxu0 %v17637_v24  ;;  %v17680_v24 = vld [vmem:[#allocation574_spill] sm:$0xff] }
 0xc14   : > { %8495 = vmatpush1.bf16.msra.mxu1 %v17638_v27  ;;  %8332 = vmatprep.subr.bf16.mxu0 %v17639_v12  ;;  %v17681_v27 = vld [vmem:[#allocation575_spill] sm:$0xff]  ;;  %v17682_v12 = vld [vmem:[#allocation576_spill] sm:$0xff] }
 0xc15   : > { %8496 = vmatprep.subr.bf16.mxu1 %v17640_v34  ;;  %v17683_v34 = vld [vmem:[#allocation577_spill] sm:$0xff] }
 0xc17   : > { %8333 = vmatpush1.bf16.msra.mxu0 %v17641_v61  ;;  %v17684_v61 = vld [vmem:[#allocation578_spill] sm:$0xff] }
 0xc18   : > { %8497 = vmatpush1.bf16.msra.mxu1 %v17642_v35  ;;  %8334 = vmatprep.subr.bf16.mxu0 %v17643_v3  ;;  %v17685_v35 = vld [vmem:[#allocation579_spill] sm:$0xff]  ;;  %v17686_v3 = vld [vmem:[#allocation580_spill] sm:$0xff] }
 0xc19   : > { %8498 = vmatprep.subr.bf16.mxu1 %v17644_v4  ;;  %v17687_v4 = vld [vmem:[#allocation581_spill] sm:$0xff] }
 0xc1b   : > { %8335 = vmatpush1.bf16.msra.mxu0 %v17645_v32  ;;  %v17688_v32 = vld [vmem:[#allocation582_spill] sm:$0xff] }
 0xc1c   : > { %8499 = vmatpush1.bf16.msra.mxu1 %v17646_v14  ;;  %8336 = vmatprep.subr.bf16.mxu0 %v17647_v29  ;;  %v17689_v14 = vld [vmem:[#allocation583_spill] sm:$0xff]  ;;  %v17690_v29 = vld [vmem:[#allocation584_spill] sm:$0xff] }
 0xc1d   : > { %8500 = vmatprep.subr.bf16.mxu1 %v17648_v39  ;;  %v17691_v39 = vld [vmem:[#allocation585_spill] sm:$0xff] }
 0xc1f   : > { %8337 = vmatpush1.bf16.msra.mxu0 %v17649_v28  ;;  %v17692_v28 = vld [vmem:[#allocation586_spill] sm:$0xff] }
 0xc20   : > { %8501 = vmatpush1.bf16.msra.mxu1 %v17650_v41  ;;  %8338 = vmatprep.subr.bf16.mxu0 %v17651_v42  ;;  %v17694_v41 = vld [vmem:[#allocation588_spill] sm:$0xff]  ;;  %v17695_v42 = vld [vmem:[#allocation589_spill] sm:$0xff] }
 0xc21   : > { %8502 = vmatprep.subr.bf16.mxu1 %v17652_v45  ;;  %v17696_v45 = vld [vmem:[#allocation590_spill] sm:$0xff] }
 0xc23   : > { %8339 = vmatpush1.bf16.msra.mxu0 %v17653_v31  ;;  %v17698_v31 = vld [vmem:[#allocation592_spill] sm:$0xff] }
 0xc24   : > { %8503 = vmatpush1.bf16.msra.mxu1 %v17654_v49  ;;  %8340 = vmatprep.subr.bf16.mxu0 %v17655_v50  ;;  %v17699_v49 = vld [vmem:[#allocation593_spill] sm:$0xff]  ;;  %v17700_v50 = vld [vmem:[#allocation594_spill] sm:$0xff] }
 0xc25   : > { %8504 = vmatprep.subr.bf16.mxu1 %v17656_v36  ;;  %v17701_v36 = vld [vmem:[#allocation595_spill] sm:$0xff] }
 0xc27   : > { %8341 = vmatpush1.bf16.msra.mxu0 %v17657_v10  ;;  %v17702_v10 = vld [vmem:[#allocation596_spill] sm:$0xff] }
 0xc28   : > { %8505 = vmatpush1.bf16.msra.mxu1 %v17658_v22  ;;  %8342 = vmatprep.subr.bf16.mxu0 %v17659_v54  ;;  %v17703_v22 = vld [vmem:[#allocation597_spill] sm:$0xff] }
 0xc29   : > { %8506 = vmatprep.subr.bf16.mxu1 %v17660_v51  ;;  %v17704_v51 = vld [vmem:[#allocation598_spill] sm:$0xff] }
 0xc2b   : > { %8343 = vmatpush1.bf16.msra.mxu0 %v17661_v48 }
 0xc2c   : > { %8507 = vmatpush1.bf16.msra.mxu1 %v17662_v17  ;;  %8344 = vmatprep.subr.bf16.mxu0 %v17663_v19 }
 0xc2d   : > { %8508 = vmatprep.subr.bf16.mxu1 %v17664_v38 }
 0xc2f   : > { %8345 = vmatpush1.bf16.msra.mxu0 %v17665_v30  ;;  %v17705_v30 = vld [vmem:[#allocation599_spill] sm:$0xff] }
 0xc30   : > { %8509 = vmatpush1.bf16.msra.mxu1 %v17666_v16  ;;  %8346 = vmatprep.subr.bf16.mxu0 %v17667_v0 }
 0xc31   : > { %8510 = vmatprep.subr.bf16.mxu1 %v17668_v59  ;;  %v17706_v59 = vld [vmem:[#allocation601_spill] sm:$0xff] }
 0xc33   : > { %8347 = vmatpush1.bf16.msra.mxu0 %v17669_v62 }
 0xc34   : > { %8511 = vmatpush1.bf16.msra.mxu1 %v17670_v13  ;;  %8348 = vmatprep.subr.bf16.mxu0 %v17671_v40  ;;  %v17707_v13 = vld [vmem:[#allocation602_spill] sm:$0xff]  ;;  %v17708_v40 = vld [vmem:[#allocation603_spill] sm:$0xff] }
 0xc35   : > { %8512 = vmatprep.subr.bf16.mxu1 %v17672_v53  ;;  %v17709_v53 = vld [vmem:[#allocation604_spill] sm:$0xff] }
 0xc37   : > { %8349 = vmatpush1.bf16.msra.mxu0 %v17673_v21  ;;  %v17710_v21 = vld [vmem:[#allocation605_spill] sm:$0xff] }
 0xc38   : > { %8513 = vmatpush1.bf16.msra.mxu1 %v17674_v8  ;;  %8350 = vmatprep.subr.bf16.mxu0 %v17675_v7  ;;  %v17711_v8 = vld [vmem:[#allocation606_spill] sm:$0xff]  ;;  %v17712_v7 = vld [vmem:[#allocation607_spill] sm:$0xff] }
 0xc39   : > { %8514 = vmatprep.subr.bf16.mxu1 %v17676_v57  ;;  %v17713_v57 = vld [vmem:[#allocation608_spill] sm:$0xff] }
 0xc3b   : > { %8351 = vmatpush1.bf16.msra.mxu0 %v17677_v63  ;;  %v17714_v63 = vld [vmem:[#allocation609_spill] sm:$0xff] }
 0xc3c   : > { %8515 = vmatpush1.bf16.msra.mxu1 %v17678_v15  ;;  %8352 = vmatprep.subr.bf16.mxu0 %v17679_v18  ;;  %v17716_v15 = vld [vmem:[#allocation611_spill] sm:$0xff]  ;;  %v17717_v18 = vld [vmem:[#allocation612_spill] sm:$0xff] }
 0xc3d   : > { %8516 = vmatprep.subr.bf16.mxu1 %v17680_v24  ;;  %v17718_v24 = vld [vmem:[#allocation613_spill] sm:$0xff] }
 0xc3f   : > { %8353 = vmatpush1.bf16.msra.mxu0 %v17681_v27  ;;  %v17719_v27 = vld [vmem:[#allocation614_spill] sm:$0xff] }
 0xc40   : > { %8517 = vmatpush1.bf16.msra.mxu1 %v17682_v12  ;;  %8363 = vmatprep.subr.bf16.mxu0 %v17683_v34  ;;  %v17720_v12 = vld [vmem:[#allocation615_spill] sm:$0xff] }
 0xc41   : > { %8527 = vmatprep.subr.bf16.mxu1 %v17684_v61  ;;  %v17721_v34 = vld [vmem:[#allocation619_spill] sm:$0xff]  ;;  %v17722_v61 = vld [vmem:[#allocation620_spill] sm:$0xff] }
 0xc42   : > { %8355 = vmatmul.mubr.bf16.vlgmr.msra.gmra.mrb[68].mxu0 %v14237_v2 }
 0xc43   : > { %8519 = vmatmul.mubr.bf16.vlgmr.msra.gmra.mrb[68].mxu1 %v14237_v2  ;;  %8364 = vmatpush1.bf16.msra.mxu0 %v17685_v35  ;;  %v17693_v2 = vld [vmem:[#allocation587_spill] sm:$0xff]  ;;  %v17723_v35 = vld [vmem:[#allocation622_spill] sm:$0xff] }
 0xc44   : > { %8395 = vmatprep.mubr.bf16.mxu0 %v14242_v20  ;;  %8528 = vmatpush1.bf16.msra.mxu1 %v17686_v3  ;;  %v17724_v3 = vld [vmem:[#allocation623_spill] sm:$0xff] }
 0xc45   : > { %8559 = vmatprep.mubr.bf16.mxu1 %v14242_v20  ;;  %8365 = vmatprep.subr.bf16.mxu0 %v17687_v4  ;;  %v17697_v20 = vld [vmem:[#allocation591_spill] sm:$0xff]  ;;  %v17725_v4 = vld [vmem:[#allocation624_spill] sm:$0xff] }
 0xc46   : > { %8529 = vmatprep.subr.bf16.mxu1 %v17688_v32  ;;  %v17726_v32 = vld [vmem:[#allocation625_spill] sm:$0xff] }
 0xc47   : > { %8366 = vmatpush1.bf16.msra.mxu0 %v17689_v14  ;;  %v17727_v14 = vld [vmem:[#allocation626_spill] sm:$0xff] }
 0xc48   : > { %8530 = vmatpush1.bf16.msra.mxu1 %v17690_v29  ;;  %8367 = vmatprep.subr.bf16.mxu0 %v17691_v39  ;;  %v17731_v29 = vld [vmem:[#allocation630_spill] sm:$0xff]  ;;  %v17732_v39 = vld [vmem:[#allocation631_spill] sm:$0xff] }
 0xc49   : > { %8531 = vmatprep.subr.bf16.mxu1 %v17692_v28  ;;  %v17734_v28 = vld [vmem:[#allocation633_spill] sm:$0xff] }
 0xc4b   : > { %8368 = vmatpush1.bf16.msra.mxu0 %v17693_v2  ;;  %v17735_v2 = vld [vmem:[#allocation634_spill] sm:$0xff] }
 0xc4c   : > { %8532 = vmatpush1.bf16.msra.mxu1 %v17694_v41  ;;  %8369 = vmatprep.subr.bf16.mxu0 %v17695_v42  ;;  %v17736_v41 = vld [vmem:[#allocation635_spill] sm:$0xff]  ;;  %v17737_v42 = vld [vmem:[#allocation636_spill] sm:$0xff] }
 0xc4d   : > { %8533 = vmatprep.subr.bf16.mxu1 %v17696_v45 }
 0xc4f   : > { %8370 = vmatpush1.bf16.msra.mxu0 %v17697_v20 }
 0xc50   : > { %8534 = vmatpush1.bf16.msra.mxu1 %v17698_v31  ;;  %8371 = vmatprep.subr.bf16.mxu0 %v17699_v49  ;;  %v17738_v31 = vld [vmem:[#allocation640_spill] sm:$0xff]  ;;  %v17739_v49 = vld [vmem:[#allocation641_spill] sm:$0xff] }
 0xc51   : > { %8535 = vmatprep.subr.bf16.mxu1 %v17700_v50  ;;  %v10317_v50 = vld [vmem:[#allocation10 + $0x4] ss:$8 sps:$4 sm:$0xff]  }
 0xc53   : > { %8372 = vmatpush1.bf16.msra.mxu0 %v17701_v36  ;;  %v10318_v36 = vld [vmem:[#allocation10 + $0x104] ss:$8 sps:$4 sm:$0xff]  }
 0xc54   : > { %8536 = vmatpush1.bf16.msra.mxu1 %v17702_v10  ;;  %8373 = vmatprep.subr.bf16.mxu0 %v17703_v22  ;;  %v10319_v22 = vld [vmem:[#allocation10] ss:$8 sps:$4 sm:$0xff]  }
 0xc55   : > { %v14543_v54 = vpop.f32.mrb[64].mxu0  ;;  %8537 = vmatprep.subr.bf16.mxu1 %v17704_v51  ;;  %v10323_v51 = vld [vmem:[#allocation10 + $0x10] ss:$8 sps:$4 sm:$0xff]  }
 0xc56   : > { %v14546_v48 = vpop.f32.mrb[64].mxu1  ;;  %v8071_v17 = vpop.f32.mrb[65].mxu0 }
 0xc57   : > { %v8235_v19 = vpop.f32.mrb[65].mxu1  ;;  %v8073_v38 = vpop.f32.mrb[66].mxu0  ;;  %8374 = vmatpush1.bf16.msra.mxu0 %v17705_v30  ;;  %v9759_v45 = vadd.f32 %v8071_v17, %v17126_v26  ;;  %v10322_v26 = vld [vmem:[#allocation10 + $0x114] ss:$8 sps:$4 sm:$0xff]   ;;  %v10324_v17 = vld [vmem:[#allocation10 + $0x110] ss:$8 sps:$4 sm:$0xff]  }
 0xc58   : > { %v8237_v16 = vpop.f32.mrb[66].mxu1  ;;  %8538 = vmatpush1.bf16.msra.mxu1 %v17093_v25  ;;  %v8074_v0 = vpop.f32.mrb[67].mxu0  ;;  %8375 = vmatprep.subr.bf16.mxu0 %v17706_v59  ;;  %v17715_v25 = vld [vmem:[#allocation610_spill] sm:$0xff]  ;;  %v9761_v20 = vadd.f32 %v8235_v19, %v17127_v5  ;;  %v10321_v5 = vld [vmem:[#allocation10 + $0x14] ss:$8 sps:$4 sm:$0xff]  }
 0xc59   : > { %v8238_v62 = vpop.f32.mrb[67].mxu1  ;;  %8539 = vmatprep.subr.bf16.mxu1 %v17707_v13  ;;  %v8569_v10 = vpack.c.bf16 %v9759_v45, %v9759_v45  ;;  %v10325_v19 = vld [vmem:[#allocation10 + $0x24] ss:$8 sps:$4 sm:$0xff]   ;;  %v10327_v30 = vld [vmem:[#allocation10 + $0x20] ss:$8 sps:$4 sm:$0xff]  }
 0xc5a   : > { %v10326_v38 = vld [vmem:[#allocation10 + $0x124] ss:$8 sps:$4 sm:$0xff]   ;;  %v10329_v16 = vld [vmem:[#allocation10 + $0x34] ss:$8 sps:$4 sm:$0xff]   ;;  %v10331_v59 = vld [vmem:[#allocation10 + $0x30] ss:$8 sps:$4 sm:$0xff]  }
 0xc5b   : > { %8376 = vmatpush1.bf16.msra.mxu0 %v17708_v40  ;;  %v10330_v0 = vld [vmem:[#allocation10 + $0x134] ss:$8 sps:$4 sm:$0xff]   ;;  %v10332_v62 = vld [vmem:[#allocation10 + $0x130] ss:$8 sps:$4 sm:$0xff]   ;;  %v10333_v13 = vld [vmem:[#allocation10 + $0x44] ss:$8 sps:$4 sm:$0xff]  }
 0xc5c   : > { %8540 = vmatpush1.bf16.msra.mxu1 %v17709_v53  ;;  %8377 = vmatprep.subr.bf16.mxu0 %v17710_v21  ;;  %v10334_v40 = vld [vmem:[#allocation10 + $0x144] ss:$8 sps:$4 sm:$0xff]   ;;  %v10335_v53 = vld [vmem:[#allocation10 + $0x40] ss:$8 sps:$4 sm:$0xff]   ;;  %v10364_v45 = vld [vmem:[#allocation10 + $0x1b0] ss:$8 sps:$4 sm:$0xff]  }
 0xc5d   : > { %8541 = vmatprep.subr.bf16.mxu1 %v17711_v8  ;;  %v10336_v21 = vld [vmem:[#allocation10 + $0x140] ss:$8 sps:$4 sm:$0xff]   ;;  %v10337_v8 = vld [vmem:[#allocation10 + $0x54] ss:$8 sps:$4 sm:$0xff]  }
 0xc5f   : > { %8378 = vmatpush1.bf16.msra.mxu0 %v17712_v7  ;;  %v10338_v7 = vld [vmem:[#allocation10 + $0x154] ss:$8 sps:$4 sm:$0xff]  }
 0xc60   : > { %8542 = vmatpush1.bf16.msra.mxu1 %v17713_v57  ;;  %8379 = vmatprep.subr.bf16.mxu0 %v17714_v63  ;;  %v10339_v57 = vld [vmem:[#allocation10 + $0x50] ss:$8 sps:$4 sm:$0xff]  }
 0xc61   : > { %8543 = vmatprep.subr.bf16.mxu1 %v17715_v25  ;;  %v10340_v63 = vld [vmem:[#allocation10 + $0x150] ss:$8 sps:$4 sm:$0xff]   ;;  %v10341_v25 = vld [vmem:[#allocation10 + $0x64] ss:$8 sps:$4 sm:$0xff]  }
 0xc63   : > { %8380 = vmatpush1.bf16.msra.mxu0 %v17716_v15  ;;  %v10342_v15 = vld [vmem:[#allocation10 + $0x164] ss:$8 sps:$4 sm:$0xff]  }
 0xc64   : > { %8544 = vmatpush1.bf16.msra.mxu1 %v17717_v18  ;;  %8381 = vmatprep.subr.bf16.mxu0 %v17718_v24  ;;  %v10343_v18 = vld [vmem:[#allocation10 + $0x60] ss:$8 sps:$4 sm:$0xff]  }
 0xc65   : > { %8545 = vmatprep.subr.bf16.mxu1 %v17719_v27  ;;  %v10344_v24 = vld [vmem:[#allocation10 + $0x160] ss:$8 sps:$4 sm:$0xff]   ;;  %v10345_v27 = vld [vmem:[#allocation10 + $0x74] ss:$8 sps:$4 sm:$0xff]  }
 0xc67   : > { %8382 = vmatpush1.bf16.msra.mxu0 %v17720_v12  ;;  %v10346_v12 = vld [vmem:[#allocation10 + $0x174] ss:$8 sps:$4 sm:$0xff]  }
 0xc68   : > { %8546 = vmatpush1.bf16.msra.mxu1 %v17109_v60  ;;  %8383 = vmatprep.subr.bf16.mxu0 %v17110_v58  ;;  %v17728_v60 = vld [vmem:[#allocation627_spill] sm:$0xff]  ;;  %v17729_v58 = vld [vmem:[#allocation628_spill] sm:$0xff] }
 0xc69   : > { %8547 = vmatprep.subr.bf16.mxu1 %v17111_v44  ;;  %v17730_v44 = vld [vmem:[#allocation629_spill] sm:$0xff] }
 0xc6b   : > { %8384 = vmatpush1.bf16.msra.mxu0 %v17721_v34  ;;  %v10347_v34 = vld [vmem:[#allocation10 + $0x70] ss:$8 sps:$4 sm:$0xff]  }
 0xc6c   : > { %8548 = vmatpush1.bf16.msra.mxu1 %v17722_v61  ;;  %8385 = vmatprep.subr.bf16.mxu0 %v17114_v52  ;;  %v17733_v52 = vld [vmem:[#allocation632_spill] sm:$0xff] }
 0xc6d   : > { %8549 = vmatprep.subr.bf16.mxu1 %v17723_v35  ;;  %v10348_v61 = vld [vmem:[#allocation10 + $0x170] ss:$8 sps:$4 sm:$0xff]   ;;  %v10349_v35 = vld [vmem:[#allocation10 + $0x84] ss:$8 sps:$4 sm:$0xff]  }
 0xc6f   : > { %8386 = vmatpush1.bf16.msra.mxu0 %v17724_v3  ;;  %v10350_v3 = vld [vmem:[#allocation10 + $0x184] ss:$8 sps:$4 sm:$0xff]  }
 0xc70   : > { %8550 = vmatpush1.bf16.msra.mxu1 %v17725_v4  ;;  %8387 = vmatprep.subr.bf16.mxu0 %v17726_v32  ;;  %v10351_v4 = vld [vmem:[#allocation10 + $0x80] ss:$8 sps:$4 sm:$0xff]  }
 0xc71   : > { %8551 = vmatprep.subr.bf16.mxu1 %v17727_v14  ;;  %v10352_v32 = vld [vmem:[#allocation10 + $0x180] ss:$8 sps:$4 sm:$0xff]   ;;  %v10353_v14 = vld [vmem:[#allocation10 + $0x94] ss:$8 sps:$4 sm:$0xff]  }
 0xc73   : > { %8388 = vmatpush1.bf16.msra.mxu0 %v17728_v60  ;;  %v10354_v60 = vld [vmem:[#allocation10 + $0x194] ss:$8 sps:$4 sm:$0xff]  }
 0xc74   : > { %8552 = vmatpush1.bf16.msra.mxu1 %v17729_v58  ;;  %8389 = vmatprep.subr.bf16.mxu0 %v17730_v44  ;;  %v10355_v58 = vld [vmem:[#allocation10 + $0x90] ss:$8 sps:$4 sm:$0xff]  }
 0xc75   : > { %8553 = vmatprep.subr.bf16.mxu1 %v17731_v29  ;;  %v10356_v44 = vld [vmem:[#allocation10 + $0x190] ss:$8 sps:$4 sm:$0xff]   ;;  %v10357_v29 = vld [vmem:[#allocation10 + $0xa4] ss:$8 sps:$4 sm:$0xff]  }
 0xc77   : > { %8390 = vmatpush1.bf16.msra.mxu0 %v17732_v39  ;;  %v10358_v39 = vld [vmem:[#allocation10 + $0x1a4] ss:$8 sps:$4 sm:$0xff]  }
 0xc78   : > { %8554 = vmatpush1.bf16.msra.mxu1 %v17733_v52  ;;  %8391 = vmatprep.subr.bf16.mxu0 %v17734_v28  ;;  %v10359_v52 = vld [vmem:[#allocation10 + $0xa0] ss:$8 sps:$4 sm:$0xff]  }
 0xc79   : > { %8555 = vmatprep.subr.bf16.mxu1 %v17735_v2  ;;  %v10360_v28 = vld [vmem:[#allocation10 + $0x1a0] ss:$8 sps:$4 sm:$0xff]   ;;  %v10361_v2 = vld [vmem:[#allocation10 + $0xb4] ss:$8 sps:$4 sm:$0xff]  }
 0xc7b   : > { %8392 = vmatpush1.bf16.msra.mxu0 %v13043_v37  ;;  %v8571_v37 = vpack.c.bf16 %v9761_v20, %v9761_v20  ;;  %v10365_v20 = vld [vmem:[#allocation10 + $0xc4] ss:$8 sps:$4 sm:$0xff]  }
 0xc7c   : > { %8556 = vmatpush1.bf16.msra.mxu1 %v17736_v41  ;;  %8393 = vmatprep.subr.bf16.mxu0 %v17737_v42  ;;  %v10362_v41 = vld [vmem:[#allocation10 + $0x1b4] ss:$8 sps:$4 sm:$0xff]   ;;  %v10363_v42 = vld [vmem:[#allocation10 + $0xb0] ss:$8 sps:$4 sm:$0xff]  }
 0xc7d   : > { %8557 = vmatprep.subr.bf16.mxu1 %v17125_v55  ;;  %v10320_v55 = vld [vmem:[#allocation10 + $0x100] ss:$8 sps:$4 sm:$0xff]  }
 0xc7f   : > { %8394 = vmatpush1.bf16.msra.mxu0 %v17738_v31  ;;  %v10366_v31 = vld [vmem:[#allocation10 + $0x1c4] ss:$8 sps:$4 sm:$0xff]  }
 0xc80   : > { %8558 = vmatpush1.bf16.msra.mxu1 %v17739_v49  ;;  %8576 = vmatprep.subr.bf16.mxu0 %v10317_v50  ;;  %v10367_v49 = vld [vmem:[#allocation10 + $0xc0] ss:$8 sps:$4 sm:$0xff]  }
 0xc81   : > { %8617 = vmatprep.subr.bf16.mxu1 %v10318_v36  ;;  %v10368_v50 = vld [vmem:[#allocation10 + $0x1c0] ss:$8 sps:$4 sm:$0xff]   ;;  %v10369_v36 = vld [vmem:[#allocation10 + $0xd4] ss:$8 sps:$4 sm:$0xff]  }
 0xc82   : > { %8396 = vmatmul.mubr.bf16.vlgmr.msra.gmra.mrb[68].mxu0 %v14311_v46 }
 0xc83   : > { %8560 = vmatmul.mubr.bf16.vlgmr.msra.gmra.mrb[68].mxu1 %v14311_v46  ;;  %8577 = vmatpush1.bf16.msra.mxu0 %v10319_v22  ;;  %v10328_v46 = vld [vmem:[#allocation10 + $0x120] ss:$8 sps:$4 sm:$0xff]   ;;  %v10372_v22 = vld [vmem:[#allocation10 + $0x1d0] ss:$8 sps:$4 sm:$0xff]  }
 0xc84   : > { %8608 = vmatprep.mubr.bf16.mxu0 %v8569_v10  ;;  %8618 = vmatpush1.bf16.msra.mxu1 %v10320_v55  ;;  %v10370_v10 = vld [vmem:[#allocation10 + $0x1d4] ss:$8 sps:$4 sm:$0xff]   ;;  %v10373_v55 = vld [vmem:[#allocation10 + $0xe4] ss:$8 sps:$4 sm:$0xff]  }
 0xc85   : > { %8649 = vmatprep.mubr.bf16.mxu1 %v8571_v37  ;;  %8578 = vmatprep.subr.bf16.mxu0 %v10321_v5  ;;  %v10371_v37 = vld [vmem:[#allocation10 + $0xd0] ss:$8 sps:$4 sm:$0xff]   ;;  %v10374_v5 = vld [vmem:[#allocation10 + $0x1e4] ss:$8 sps:$4 sm:$0xff]  }
 0xc86   : > { %8619 = vmatprep.subr.bf16.mxu1 %v10322_v26  ;;  %v10375_v26 = vld [vmem:[#allocation10 + $0xe0] ss:$8 sps:$4 sm:$0xff]  }
 0xc87   : > { %8579 = vmatpush1.bf16.msra.mxu0 %v10323_v51  ;;  %v9758_v51 = vadd.f32 %v14543_v54, %v13081_v23  ;;  %v10383_v23 = vld [vmem:[#allocation10 + $0x200] ss:$8 sps:$4 sm:$0xff]  }
 0xc88   : > { %8620 = vmatpush1.bf16.msra.mxu1 %v10324_v17  ;;  %8580 = vmatprep.subr.bf16.mxu0 %v10325_v19  ;;  %v10376_v17 = vld [vmem:[#allocation10 + $0x1e0] ss:$8 sps:$4 sm:$0xff]   ;;  %v10377_v19 = vld [vmem:[#allocation10 + $0xf4] ss:$8 sps:$4 sm:$0xff]  }
 0xc89   : > { %8621 = vmatprep.subr.bf16.mxu1 %v10326_v38  ;;  %v17740_v38 = vld [vmem:[#allocation642_spill] sm:$0xff] }
 0xc8a   : > { %v10384_v54 = vld [vmem:[#allocation10 + $0x300] ss:$8 sps:$4 sm:$0xff]  }
 0xc8b   : > { %8581 = vmatpush1.bf16.msra.mxu0 %v10327_v30  ;;  %v9760_v30 = vadd.f32 %v14546_v48, %v17740_v38  ;;  %v10386_v48 = vld [vmem:[#allocation10 + $0x314] ss:$8 sps:$4 sm:$0xff]   ;;  %v10430_v38 = vld [vmem:[#allocation10 + $0x3c4] ss:$8 sps:$4 sm:$0xff]  }
 0xc8c   : > { %8622 = vmatpush1.bf16.msra.mxu1 %v10328_v46  ;;  %8582 = vmatprep.subr.bf16.mxu0 %v10329_v16  ;;  %v10378_v46 = vld [vmem:[#allocation10 + $0x1f4] ss:$8 sps:$4 sm:$0xff]   ;;  %v10379_v16 = vld [vmem:[#allocation10 + $0xf0] ss:$8 sps:$4 sm:$0xff]  }
 0xc8d   : > { %8623 = vmatprep.subr.bf16.mxu1 %v10330_v0  ;;  %v8568_v0 = vpack.c.bf16 %v9758_v51, %v9758_v51  ;;  %v10427_v51 = vld [vmem:[#allocation10 + $0x2b0] ss:$8 sps:$4 sm:$0xff]  }
 0xc8f   : > { %8583 = vmatpush1.bf16.msra.mxu0 %v10331_v59  ;;  %v10380_v59 = vld [vmem:[#allocation10 + $0x1f0] ss:$8 sps:$4 sm:$0xff]  }
 0xc90   : > { %8624 = vmatpush1.bf16.msra.mxu1 %v10332_v62  ;;  %8584 = vmatprep.subr.bf16.mxu0 %v10333_v13  ;;  %v10381_v62 = vld [vmem:[#allocation10 + $0x204] ss:$8 sps:$4 sm:$0xff]   ;;  %v8570_v13 = vpack.c.bf16 %v9760_v30, %v9760_v30  ;;  %v10431_v30 = vld [vmem:[#allocation10 + $0x2c0] ss:$8 sps:$4 sm:$0xff]  }
 0xc91   : > { %8625 = vmatprep.subr.bf16.mxu1 %v10334_v40  ;;  %v10382_v40 = vld [vmem:[#allocation10 + $0x304] ss:$8 sps:$4 sm:$0xff]  }
 0xc93   : > { %8585 = vmatpush1.bf16.msra.mxu0 %v10335_v53  ;;  %v10385_v53 = vld [vmem:[#allocation10 + $0x214] ss:$8 sps:$4 sm:$0xff]  }
 0xc94   : > { %8626 = vmatpush1.bf16.msra.mxu1 %v10336_v21  ;;  %8586 = vmatprep.subr.bf16.mxu0 %v10337_v8  ;;  %v10387_v21 = vld [vmem:[#allocation10 + $0x210] ss:$8 sps:$4 sm:$0xff]  }
 0xc95   : > { %8627 = vmatprep.subr.bf16.mxu1 %v10338_v7  ;;  %v10388_v8 = vld [vmem:[#allocation10 + $0x310] ss:$8 sps:$4 sm:$0xff]   ;;  %v10389_v7 = vld [vmem:[#allocation10 + $0x224] ss:$8 sps:$4 sm:$0xff]  }
 0xc97   : > { %8587 = vmatpush1.bf16.msra.mxu0 %v10339_v57  ;;  %v10390_v57 = vld [vmem:[#allocation10 + $0x324] ss:$8 sps:$4 sm:$0xff]  }
 0xc98   : > { %8628 = vmatpush1.bf16.msra.mxu1 %v10340_v63  ;;  %8588 = vmatprep.subr.bf16.mxu0 %v10341_v25  ;;  %v10391_v63 = vld [vmem:[#allocation10 + $0x220] ss:$8 sps:$4 sm:$0xff]  }
 0xc99   : > { %8629 = vmatprep.subr.bf16.mxu1 %v10342_v15  ;;  %v10392_v25 = vld [vmem:[#allocation10 + $0x320] ss:$8 sps:$4 sm:$0xff]   ;;  %v10393_v15 = vld [vmem:[#allocation10 + $0x234] ss:$8 sps:$4 sm:$0xff]  }
 0xc9b   : > { %8589 = vmatpush1.bf16.msra.mxu0 %v10343_v18  ;;  %v10394_v18 = vld [vmem:[#allocation10 + $0x334] ss:$8 sps:$4 sm:$0xff]  }
 0xc9c   : > { %8630 = vmatpush1.bf16.msra.mxu1 %v10344_v24  ;;  %8590 = vmatprep.subr.bf16.mxu0 %v10345_v27  ;;  %v10395_v24 = vld [vmem:[#allocation10 + $0x230] ss:$8 sps:$4 sm:$0xff]  }
 0xc9d   : > { %8631 = vmatprep.subr.bf16.mxu1 %v10346_v12  ;;  %v10396_v27 = vld [vmem:[#allocation10 + $0x330] ss:$8 sps:$4 sm:$0xff]   ;;  %v10397_v12 = vld [vmem:[#allocation10 + $0x244] ss:$8 sps:$4 sm:$0xff]  }
 0xc9f   : > { %8591 = vmatpush1.bf16.msra.mxu0 %v10347_v34  ;;  %v10398_v34 = vld [vmem:[#allocation10 + $0x344] ss:$8 sps:$4 sm:$0xff]  }
 0xca0   : > { %8632 = vmatpush1.bf16.msra.mxu1 %v10348_v61  ;;  %8592 = vmatprep.subr.bf16.mxu0 %v10349_v35  ;;  %v10399_v61 = vld [vmem:[#allocation10 + $0x240] ss:$8 sps:$4 sm:$0xff]  }
 0xca1   : > { %8633 = vmatprep.subr.bf16.mxu1 %v10350_v3  ;;  %v10400_v35 = vld [vmem:[#allocation10 + $0x340] ss:$8 sps:$4 sm:$0xff]   ;;  %v10401_v3 = vld [vmem:[#allocation10 + $0x254] ss:$8 sps:$4 sm:$0xff]  }
 0xca3   : > { %8593 = vmatpush1.bf16.msra.mxu0 %v10351_v4  ;;  %v10402_v4 = vld [vmem:[#allocation10 + $0x354] ss:$8 sps:$4 sm:$0xff]  }
 0xca4   : > { %8634 = vmatpush1.bf16.msra.mxu1 %v10352_v32  ;;  %8594 = vmatprep.subr.bf16.mxu0 %v10353_v14  ;;  %v10403_v32 = vld [vmem:[#allocation10 + $0x250] ss:$8 sps:$4 sm:$0xff]  }
 0xca5   : > { %8635 = vmatprep.subr.bf16.mxu1 %v10354_v60  ;;  %v10404_v14 = vld [vmem:[#allocation10 + $0x350] ss:$8 sps:$4 sm:$0xff]   ;;  %v10405_v60 = vld [vmem:[#allocation10 + $0x264] ss:$8 sps:$4 sm:$0xff]  }
 0xca7   : > { %8595 = vmatpush1.bf16.msra.mxu0 %v10355_v58  ;;  %v10406_v58 = vld [vmem:[#allocation10 + $0x364] ss:$8 sps:$4 sm:$0xff]  }
 0xca8   : > { %8636 = vmatpush1.bf16.msra.mxu1 %v10356_v44  ;;  %8596 = vmatprep.subr.bf16.mxu0 %v10357_v29  ;;  %v10407_v44 = vld [vmem:[#allocation10 + $0x260] ss:$8 sps:$4 sm:$0xff]  }
 0xca9   : > { %8637 = vmatprep.subr.bf16.mxu1 %v10358_v39  ;;  %v10408_v29 = vld [vmem:[#allocation10 + $0x360] ss:$8 sps:$4 sm:$0xff]   ;;  %v10409_v39 = vld [vmem:[#allocation10 + $0x274] ss:$8 sps:$4 sm:$0xff]  }
 0xcab   : > { %8597 = vmatpush1.bf16.msra.mxu0 %v10359_v52  ;;  %v10410_v52 = vld [vmem:[#allocation10 + $0x374] ss:$8 sps:$4 sm:$0xff]  }
 0xcac   : > { %8638 = vmatpush1.bf16.msra.mxu1 %v10360_v28  ;;  %8598 = vmatprep.subr.bf16.mxu0 %v10361_v2  ;;  %v10411_v28 = vld [vmem:[#allocation10 + $0x270] ss:$8 sps:$4 sm:$0xff]  }
 0xcad   : > { %8639 = vmatprep.subr.bf16.mxu1 %v10362_v41  ;;  %v10412_v2 = vld [vmem:[#allocation10 + $0x370] ss:$8 sps:$4 sm:$0xff]   ;;  %v10413_v41 = vld [vmem:[#allocation10 + $0x284] ss:$8 sps:$4 sm:$0xff]  }
 0xcaf   : > { %8599 = vmatpush1.bf16.msra.mxu0 %v10363_v42  ;;  %v10414_v42 = vld [vmem:[#allocation10 + $0x384] ss:$8 sps:$4 sm:$0xff]  }
 0xcb0   : > { %8640 = vmatpush1.bf16.msra.mxu1 %v10364_v45  ;;  %8600 = vmatprep.subr.bf16.mxu0 %v10365_v20  ;;  %v10415_v45 = vld [vmem:[#allocation10 + $0x280] ss:$8 sps:$4 sm:$0xff]  }
 0xcb1   : > { %8641 = vmatprep.subr.bf16.mxu1 %v10366_v31  ;;  %v10416_v20 = vld [vmem:[#allocation10 + $0x380] ss:$8 sps:$4 sm:$0xff]   ;;  %v10417_v31 = vld [vmem:[#allocation10 + $0x294] ss:$8 sps:$4 sm:$0xff]  }
 0xcb3   : > { %8601 = vmatpush1.bf16.msra.mxu0 %v10367_v49  ;;  %v10418_v49 = vld [vmem:[#allocation10 + $0x394] ss:$8 sps:$4 sm:$0xff]  }
 0xcb4   : > { %8642 = vmatpush1.bf16.msra.mxu1 %v10368_v50  ;;  %8602 = vmatprep.subr.bf16.mxu0 %v10369_v36  ;;  %v10419_v50 = vld [vmem:[#allocation10 + $0x290] ss:$8 sps:$4 sm:$0xff]  }
 0xcb5   : > { %8643 = vmatprep.subr.bf16.mxu1 %v10370_v10  ;;  %v10420_v36 = vld [vmem:[#allocation10 + $0x390] ss:$8 sps:$4 sm:$0xff]   ;;  %v10421_v10 = vld [vmem:[#allocation10 + $0x2a4] ss:$8 sps:$4 sm:$0xff]  }
 0xcb7   : > { %8603 = vmatpush1.bf16.msra.mxu0 %v10371_v37  ;;  %v10422_v37 = vld [vmem:[#allocation10 + $0x3a4] ss:$8 sps:$4 sm:$0xff]  }
 0xcb8   : > { %8644 = vmatpush1.bf16.msra.mxu1 %v10372_v22  ;;  %8604 = vmatprep.subr.bf16.mxu0 %v10373_v55  ;;  %v10423_v22 = vld [vmem:[#allocation10 + $0x2a0] ss:$8 sps:$4 sm:$0xff]  }
 0xcb9   : > { %8645 = vmatprep.subr.bf16.mxu1 %v10374_v5  ;;  %v10424_v55 = vld [vmem:[#allocation10 + $0x3a0] ss:$8 sps:$4 sm:$0xff]   ;;  %v10425_v5 = vld [vmem:[#allocation10 + $0x2b4] ss:$8 sps:$4 sm:$0xff]  }
 0xcbb   : > { %8605 = vmatpush1.bf16.msra.mxu0 %v10375_v26  ;;  %v10426_v26 = vld [vmem:[#allocation10 + $0x3b4] ss:$8 sps:$4 sm:$0xff]  }
 0xcbc   : > { %8646 = vmatpush1.bf16.msra.mxu1 %v10376_v17  ;;  %8606 = vmatprep.subr.bf16.mxu0 %v10377_v19  ;;  %v10428_v17 = vld [vmem:[#allocation10 + $0x3b0] ss:$8 sps:$4 sm:$0xff]   ;;  %v10429_v19 = vld [vmem:[#allocation10 + $0x2c4] ss:$8 sps:$4 sm:$0xff]  }
 0xcbd   : > { %8647 = vmatprep.subr.bf16.mxu1 %v10378_v46  ;;  %v10432_v46 = vld [vmem:[#allocation10 + $0x3c0] ss:$8 sps:$4 sm:$0xff]  }
 0xcbf   : > { %8607 = vmatpush1.bf16.msra.mxu0 %v10379_v16  ;;  %v10433_v16 = vld [vmem:[#allocation10 + $0x2d4] ss:$8 sps:$4 sm:$0xff]  }
 0xcc0   : > { %8648 = vmatpush1.bf16.msra.mxu1 %v10380_v59  ;;  %8658 = vmatprep.subr.bf16.mxu0 %v10381_v62  ;;  %v10435_v59 = vld [vmem:[#allocation10 + $0x2d0] ss:$8 sps:$4 sm:$0xff]  }
 0xcc1   : > { %8699 = vmatprep.subr.bf16.mxu1 %v10382_v40  ;;  %v10436_v62 = vld [vmem:[#allocation10 + $0x3d0] ss:$8 sps:$4 sm:$0xff]   ;;  %v10438_v40 = vld [vmem:[#allocation10 + $0x3e4] ss:$8 sps:$4 sm:$0xff]  }
 0xcc2   : > { %8609 = vmatmul.mubr.bf16.vlgmr.msra.gmra.mrb[72].mxu0 %v8568_v0  ;;  %v10434_v0 = vld [vmem:[#allocation10 + $0x3d4] ss:$8 sps:$4 sm:$0xff]  }
 0xcc3   : > { %8650 = vmatmul.mubr.bf16.vlgmr.msra.gmra.mrb[72].mxu1 %v8570_v13  ;;  %8659 = vmatpush1.bf16.msra.mxu0 %v10383_v23  ;;  %v10437_v13 = vld [vmem:[#allocation10 + $0x2e4] ss:$8 sps:$4 sm:$0xff]   ;;  %v10439_v23 = vld [vmem:[#allocation10 + $0x2e0] ss:$8 sps:$4 sm:$0xff]  }
 0xcc4   : > { %8700 = vmatpush1.bf16.msra.mxu1 %v10384_v54  ;;  %8660 = vmatprep.subr.bf16.mxu0 %v10385_v53  ;;  %v10440_v54 = vld [vmem:[#allocation10 + $0x3e0] ss:$8 sps:$4 sm:$0xff]   ;;  %v10441_v53 = vld [vmem:[#allocation10 + $0x2f4] ss:$8 sps:$4 sm:$0xff]  }
 0xcc5   : > { %8701 = vmatprep.subr.bf16.mxu1 %v10386_v48  ;;  %v10442_v48 = vld [vmem:[#allocation10 + $0x3f4] ss:$8 sps:$4 sm:$0xff]  }
 0xcc7   : > { %8661 = vmatpush1.bf16.msra.mxu0 %v10387_v21  ;;  %v10443_v21 = vld [vmem:[#allocation10 + $0x2f0] ss:$8 sps:$4 sm:$0xff]  }
 0xcc8   : > { %8702 = vmatpush1.bf16.msra.mxu1 %v10388_v8  ;;  %8662 = vmatprep.subr.bf16.mxu0 %v10389_v7  ;;  %v10444_v8 = vld [vmem:[#allocation10 + $0x3f0] ss:$8 sps:$4 sm:$0xff]  }
 0xcc9   : > { %8703 = vmatprep.subr.bf16.mxu1 %v10390_v57 }
 0xccb   : > { %8663 = vmatpush1.bf16.msra.mxu0 %v10391_v63 }
 0xccc   : > { %8704 = vmatpush1.bf16.msra.mxu1 %v10392_v25  ;;  %8664 = vmatprep.subr.bf16.mxu0 %v10393_v15 }
 0xccd   : > { %8705 = vmatprep.subr.bf16.mxu1 %v10394_v18 }
 0xccf   : > { %8665 = vmatpush1.bf16.msra.mxu0 %v10395_v24 }
 0xcd0   : > { %8706 = vmatpush1.bf16.msra.mxu1 %v10396_v27  ;;  %8666 = vmatprep.subr.bf16.mxu0 %v10397_v12 }
 0xcd1   : > { %8707 = vmatprep.subr.bf16.mxu1 %v10398_v34 }
 0xcd3   : > { %8667 = vmatpush1.bf16.msra.mxu0 %v10399_v61 }
 0xcd4   : > { %8708 = vmatpush1.bf16.msra.mxu1 %v10400_v35  ;;  %8668 = vmatprep.subr.bf16.mxu0 %v10401_v3 }
 0xcd5   : > { %8709 = vmatprep.subr.bf16.mxu1 %v10402_v4 }
 0xcd7   : > { %8669 = vmatpush1.bf16.msra.mxu0 %v10403_v32 }
 0xcd8   : > { %8710 = vmatpush1.bf16.msra.mxu1 %v10404_v14  ;;  %8670 = vmatprep.subr.bf16.mxu0 %v10405_v60 }
 0xcd9   : > { %8711 = vmatprep.subr.bf16.mxu1 %v10406_v58 }
 0xcdb   : > { %8671 = vmatpush1.bf16.msra.mxu0 %v10407_v44 }
 0xcdc   : > { %8712 = vmatpush1.bf16.msra.mxu1 %v10408_v29  ;;  %8672 = vmatprep.subr.bf16.mxu0 %v10409_v39 }
 0xcdd   : > { %8713 = vmatprep.subr.bf16.mxu1 %v10410_v52 }
 0xcdf   : > { %8673 = vmatpush1.bf16.msra.mxu0 %v10411_v28 }
 0xce0   : > { %8714 = vmatpush1.bf16.msra.mxu1 %v10412_v2  ;;  %8674 = vmatprep.subr.bf16.mxu0 %v10413_v41 }
 0xce1   : > { %8715 = vmatprep.subr.bf16.mxu1 %v10414_v42 }
 0xce3   : > { %8675 = vmatpush1.bf16.msra.mxu0 %v10415_v45 }
 0xce4   : > { %8716 = vmatpush1.bf16.msra.mxu1 %v10416_v20  ;;  %8676 = vmatprep.subr.bf16.mxu0 %v10417_v31 }
 0xce5   : > { %8717 = vmatprep.subr.bf16.mxu1 %v10418_v49 }
 0xce7   : > { %8677 = vmatpush1.bf16.msra.mxu0 %v10419_v50 }
 0xce8   : > { %8718 = vmatpush1.bf16.msra.mxu1 %v10420_v36  ;;  %8678 = vmatprep.subr.bf16.mxu0 %v10421_v10 }
 0xce9   : > { %8719 = vmatprep.subr.bf16.mxu1 %v10422_v37 }
 0xceb   : > { %8679 = vmatpush1.bf16.msra.mxu0 %v10423_v22 }
 0xcec   : > { %8720 = vmatpush1.bf16.msra.mxu1 %v10424_v55  ;;  %8680 = vmatprep.subr.bf16.mxu0 %v10425_v5 }
 0xced   : > { %8721 = vmatprep.subr.bf16.mxu1 %v10426_v26 }
 0xcef   : > { %8681 = vmatpush1.bf16.msra.mxu0 %v10427_v51 }
 0xcf0   : > { %8722 = vmatpush1.bf16.msra.mxu1 %v10428_v17  ;;  %8682 = vmatprep.subr.bf16.mxu0 %v10429_v19 }
 0xcf1   : > { %8723 = vmatprep.subr.bf16.mxu1 %v10430_v38 }
 0xcf3   : > { %8683 = vmatpush1.bf16.msra.mxu0 %v10431_v30 }
 0xcf4   : > { %8724 = vmatpush1.bf16.msra.mxu1 %v10432_v46  ;;  %8684 = vmatprep.subr.bf16.mxu0 %v10433_v16 }
 0xcf5   : > { %8725 = vmatprep.subr.bf16.mxu1 %v10434_v0 }
 0xcf7   : > { %8685 = vmatpush1.bf16.msra.mxu0 %v10435_v59 }
 0xcf8   : > { %8726 = vmatpush1.bf16.msra.mxu1 %v10436_v62  ;;  %8686 = vmatprep.subr.bf16.mxu0 %v10437_v13 }
 0xcf9   : > { %8727 = vmatprep.subr.bf16.mxu1 %v10438_v40 }
 0xcfb   : > { %8687 = vmatpush1.bf16.msra.mxu0 %v10439_v23 }
 0xcfc   : > { %8728 = vmatpush1.bf16.msra.mxu1 %v10440_v54  ;;  %8688 = vmatprep.subr.bf16.mxu0 %v10441_v53 }
 0xcfd   : > { %8729 = vmatprep.subr.bf16.mxu1 %v10442_v48 }
 0xcff   : > { %8689 = vmatpush1.bf16.msra.mxu0 %v10443_v21 }
 0xd00   : > { %8730 = vmatpush1.bf16.msra.mxu1 %v10444_v8 }
 0xd55   : > { %v8397_v7 = vpop.f32.mrb[68].mxu0 }
 0xd56   : > { %v9762_v57 = vadd.f32 %v8397_v7, %v13097_v6  ;;  %v8561_v63 = vpop.f32.mrb[68].mxu1  ;;  %v8399_v25 = vpop.f32.mrb[69].mxu0 }
 0xd57   : > { %v9764_v15 = vadd.f32 %v8561_v63, %v13102_v43  ;;  %v9763_v18 = vadd.f32 %v8399_v25, %v13107_v1  ;;  %v8563_v24 = vpop.f32.mrb[69].mxu1  ;;  %v8401_v27 = vpop.f32.mrb[70].mxu0 }
 0xd58   : > { %v9765_v12 = vadd.f32 %v8563_v24, %v13112_v33  ;;  %v8565_v34 = vpop.f32.mrb[70].mxu1  ;;  %v8402_v61 = vpop.f32.mrb[71].mxu0  ;;  %v8572_v4 = vpack.c.bf16 %v9762_v57, %v9762_v57 }
 0xd59   : > { %v8573_v35 = vpack.c.bf16 %v9763_v18, %v9763_v18  ;;  %v8566_v3 = vpop.f32.mrb[71].mxu1  ;;  %v8574_v14 = vpack.c.bf16 %v9764_v15, %v9764_v15 }
 0xd5a   : > { %v8575_v32 = vpack.c.bf16 %v9765_v12, %v9765_v12 }
 0xd5b   : > { %8690 = vmatprep.mubr.bf16.mxu0 %v8573_v35 }
 0xd5c   : > { %8731 = vmatprep.mubr.bf16.mxu1 %v8575_v32  ;;  %8691 = vmatmul.mubr.bf16.vlgmr.msra.gmra.mrb[76].mxu0 %v8572_v4 }
 0xd5d   : > { %8732 = vmatmul.mubr.bf16.vlgmr.msra.gmra.mrb[76].mxu1 %v8574_v14 }
 0xd95   : > { %v8610_v6 = vpop.f32.mrb[72].mxu0 }
 0xd96   : > { %v8651_v60 = vpop.f32.mrb[72].mxu1  ;;  %v8612_v43 = vpop.f32.mrb[73].mxu0 }
 0xd97   : > { %v8652_v58 = vadd.f32 %v8651_v60, %v8610_v6  ;;  %v8653_v1 = vpop.f32.mrb[73].mxu1  ;;  %v8614_v44 = vpop.f32.mrb[74].mxu0 }
 0xd98   : > { %v8654_v29 = vadd.f32 %v8653_v1, %v8612_v43  ;;  %v8655_v39 = vpop.f32.mrb[74].mxu1  ;;  %v8615_v33 = vpop.f32.mrb[75].mxu0 }
 0xd99   : > { %v8656_v52 = vpop.f32.mrb[75].mxu1 }
 0xe2f   : > { %v8692_v28 = vpop.f32.mrb[76].mxu0 }
 0xe30   : > { %v8693_v2 = vadd.f32 %v8692_v28, %v8652_v58  ;;  %v8733_v41 = vpop.f32.mrb[76].mxu1  ;;  %v8694_v42 = vpop.f32.mrb[77].mxu0 }
 0xe31   : > { %v8695_v45 = vadd.f32 %v8694_v42, %v8654_v29  ;;  %v8735_v20 = vpop.f32.mrb[77].mxu1  ;;  %v8696_v31 = vpop.f32.mrb[78].mxu0 }
 0xe32   : > { %v8734_v49 = vadd.f32 %v8733_v41, %v8693_v2  ;;  %v8737_v50 = vpop.f32.mrb[78].mxu1  ;;  %v8697_v36 = vpop.f32.mrb[79].mxu0 }
 0xe33   : > { %v8736_v10 = vadd.f32 %v8735_v20, %v8695_v45  ;;  %v8738_v37 = vpop.f32.mrb[79].mxu1 }
 0xe34   : > { %v8740_v22 = vadd.f32 %v8734_v49, %v13931_v47 }
 0xe35   : > { %v8741_v55 = vadd.f32 %v8736_v10, %v13934_v11 }
 0xe36   : > { %v8742_v5 = vadd.f32 %v8740_v22, %v17175_v9 }
 0xe37   : > { %v8743_v26 = vadd.f32 %v8741_v55, %v17176_v56 }
 0xe38   : > { %8744 = vst [vmem:[%s445_s12] sm:$0xff] %v8742_v5 }
 0xe39   : > { %8745 = vst [vmem:[%s445_s12 + $0x8] sm:$0xff] %v8743_v26 }
 0xe3a PF: > { %s23_s30 = sadd.s32 1, %s10663_s30  }
 0xe3b   : > { %p20_p9 = scmp.ge.s32.totalorder %s23_s30, 4  }
 0xe3d   :  { %22 = sbr.rel (!%p20_p9) target bundleno = 4 (0x4), region = 118 }
 0xe44   :  { %8767 = vsyncpa [#allocation3], 1 }
 0xe45   :  { %8769 = vsyncpa [#allocation3 + $0x1], 1 }
 0xe46   :  { %8770 = vsyncpa [#allocation5], 1 }
 0xe47   :  { %8771 = vsyncpa [#allocation8], 1 }
 0xe48   :  { %8772 = vsyncpa [#allocation11], 1 }

</bundles_post_ra>
